<compile_context>
chip_gen: v5e
topology: v5e:2x2
jax: 0.10.0
libtpu: 0.0.40
codegen_flags: <defaults>
</compile_context>

<pallas_src>
import functools

import jax
import jax.numpy as jnp
import numpy as np
from jax.experimental import pallas as pl
from jax.experimental.pallas import tpu as pltpu

LANE = 128


def _round_up(x, m):
    return ((x + m - 1) // m) * m


def _vmem_limit(nbytes):
    """Generation-aware scoped-VMEM limit sized from the actual block bytes."""
    try:
        cap = int(pltpu.get_tpu_info().vmem_capacity_bytes)
    except Exception:  # pragma: no cover - conservative fallback
        cap = 64 << 20
    ceiling = (cap * 7) // 8                      # headroom for compiler scratch
    want = (nbytes * 5) // 4 + (2 << 20)
    return int(max(16 << 20, min(want, ceiling)))


def _mish(y):
    """Mish in f32 with a single exp:  y * tanh(softplus(y)).

    tanh(softplus(y)) = n/d with e = exp(-|y|):
      y >= 0:  n = 1 + 2e,     d = 1 + 2e + 2e^2
      y <  0:  n = 2e + e^2,   d = 2 + 2e + e^2
    """
    e = jnp.exp(-jnp.abs(y))
    e2 = e * e
    pos = y >= 0.0
    n = jnp.where(pos, 1.0 + 2.0 * e, 2.0 * e + e2)
    d = jnp.where(pos, 1.0 + 2.0 * e + 2.0 * e2, 2.0 + 2.0 * e + e2)
    return y * n * pl.reciprocal(d, approx=True)


# --------------------- kernel 1: matmul + bias + mish -----------------------
# (used only for the stem 3x3 stride-2 conv, via im2col with padded K)

def _matmul_bias_mish_kernel(x_ref, w_ref, b_ref, o_ref):
    acc = jnp.dot(x_ref[...], w_ref[...], preferred_element_type=jnp.float32)
    o_ref[...] = _mish(acc + b_ref[...]).astype(o_ref.dtype)


def _pick_tm(m, target=1024):
    if m <= target:
        return m
    for tm in range(target - target % 8, 7, -8):
        if m % tm == 0:
            return tm
    return target  # remainder handled by padding (not hit at these shapes)


def matmul_bias_mish(x2d, w2d, bias, *, tm_target=1024):
    """x2d (M, K) , w2d (K, Cout) bf16 with BN scale folded, bias (1, Cout) f32."""
    m, k = x2d.shape
    cout = w2d.shape[1]
    x2d = x2d.astype(jnp.bfloat16)

    tm = _pick_tm(m, tm_target)
    mp = _round_up(m, tm)
    if mp != m:
        x2d = jnp.pad(x2d, ((0, mp - m), (0, 0)))

    grid = (mp // tm,)
    bytes_accessed = mp * k * 2 + k * cout * 2 + cout * 4 + mp * cout * 2
    cost = pl.CostEstimate(flops=int(2 * mp * k * cout),
                           transcendentals=int(2 * mp * cout),
                           bytes_accessed=int(bytes_accessed))
    need = 2 * (tm * k * 2 + tm * cout * 2) + k * cout * 2 + cout * 4

    out = pl.pallas_call(
        _matmul_bias_mish_kernel,
        out_shape=jax.ShapeDtypeStruct((mp, cout), jnp.bfloat16),
        grid=grid,
        in_specs=[
            pl.BlockSpec((tm, k), lambda i: (i, 0)),
            pl.BlockSpec((k, cout), lambda i: (0, 0)),
            pl.BlockSpec((1, cout), lambda i: (0, 0)),
        ],
        out_specs=pl.BlockSpec((tm, cout), lambda i: (i, 0)),
        compiler_params=pltpu.CompilerParams(
            dimension_semantics=("parallel",),
            vmem_limit_bytes=_vmem_limit(need)),
        cost_estimate=cost,
    )(x2d, w2d, bias)
    return out if mp == m else out[:m]


# ------------- kernel 2: fully fused CSP chain (sm -> units -> post) --------

def _make_chain_kernel(p_pad, cp, w2p, num_block, marg):
    """One batch element of: fused shortcut+main 1x1  ->  num_block ResUnits
    (1x1 Conv+BN+Mish -> 3x3(pad=1) Conv+BN+Mish -> +residual)  ->  post 1x1.

    Activations are in 'flat padded' layout: row p <-> padded-image position
    (p // w2p, p % w2p); a 3x3 tap (dy, dx) is the row shift (dy-1)*w2p+(dx-1).
    The hidden's border/pad rows are zeroed with the mask so shifted reads of
    the staging buffer implement exact zero padding.  The trunk lives in the
    post-output ref (VMEM) for the whole chain; only the final post result and
    the shortcut are written back to HBM.
    """
    offs = [(dy - 1) * w2p + (dx - 1) for dy in range(3) for dx in range(3)]

    def kernel(x_ref, mask_ref, wsm_ref, bsm_ref, w1_ref, b1_ref,
               w2_ref, b2_ref, wp_ref, bp_ref, post_ref, short_ref, hbuf_ref):
        # Zero only the halo margins of the staging buffer (the interior rows
        # are fully overwritten by every unit before they are read).
        zeros_marg = jnp.zeros((marg, cp), hbuf_ref.dtype)
        hbuf_ref[0:marg, :] = zeros_marg
        hbuf_ref[marg + p_pad:marg + p_pad + marg, :] = zeros_marg

        mask = jnp.broadcast_to(mask_ref[...], (p_pad, cp))   # hoisted once

        # fused shortcut + main 1x1 convs: one matmul, 2*cp output channels
        x = x_ref[0]                                           # (p_pad, cp) bf16
        sm = _mish(jnp.dot(x, wsm_ref[...], preferred_element_type=jnp.float32)
                   + bsm_ref[...])
        short_ref[0] = sm[:, :cp].astype(jnp.bfloat16)
        post_ref[0] = sm[:, cp:].astype(jnp.bfloat16)          # trunk seed

        for u in range(num_block):                             # small static unroll
            trunk = post_ref[0]                                # bf16, VMEM-resident
            h = jnp.dot(trunk, w1_ref[u], preferred_element_type=jnp.float32)
            h = _mish(h + b1_ref[u]) * mask                    # zero border/pad rows
            hbuf_ref[marg:marg + p_pad, :] = h.astype(hbuf_ref.dtype)

            # 3x3 conv (pad=1) as 9 row-shifted matmuls accumulated in f32
            acc = None
            for t, off in enumerate(offs):
                win = hbuf_ref[marg + off:marg + off + p_pad, :]
                part = jnp.dot(win, w2_ref[u, t],
                               preferred_element_type=jnp.float32)
                acc = part if acc is None else acc + part

            # residual input re-read here (no long-lived f32 copy of the trunk)
            y = _mish(acc + b2_ref[u]) * mask + post_ref[0].astype(jnp.float32)
            post_ref[0] = y.astype(jnp.bfloat16)

        # fused post 1x1 conv — trunk never round-trips HBM
        out = jnp.dot(post_ref[0], wp_ref[...], preferred_element_type=jnp.float32)
        post_ref[0] = _mish(out + bp_ref[...]).astype(jnp.bfloat16)

    return kernel


def csp_chain(x3, mask, params, *, num_block, w2p):
    """x3: (N, P_pad, CP) bf16 flat-padded stem output.  Returns (post, shortcut)."""
    n, p_pad, cp = x3.shape
    nbp = params["res_w1"].shape[0]
    marg = _round_up(w2p + 1, 8)
    kernel = _make_chain_kernel(p_pad, cp, w2p, num_block, marg)

    wbytes = (params["sm_w"].size * 2 + params["post_w"].size * 2
              + params["res_w1"].size * 2 + params["res_w2"].size * 2
              + params["sm_b"].size * 4 + params["post_b"].size * 4
              + params["res_b1"].size * 4 + params["res_b2"].size * 4)
    act_bytes = 3 * p_pad * cp * 2                       # in + 2 outs (bf16) per step
    hbuf_bytes = (p_pad + 2 * marg) * cp * 2
    need = 2 * act_bytes + 2 * wbytes + hbuf_bytes + p_pad * 128 * 4 \
        + 3 * p_pad * cp * 4                             # slack for f32 temporaries

    flops = 2 * n * p_pad * cp * cp * (3 + 10 * num_block)
    trans = 2 * n * p_pad * cp * (3 + 2 * num_block)
    cost = pl.CostEstimate(flops=int(flops), transcendentals=int(trans),
                           bytes_accessed=int(n * act_bytes + wbytes + p_pad * 4))

    return pl.pallas_call(
        kernel,
        out_shape=(jax.ShapeDtypeStruct((n, p_pad, cp), jnp.bfloat16),
                   jax.ShapeDtypeStruct((n, p_pad, cp), jnp.bfloat16)),
        grid=(n,),
        in_specs=[
            pl.BlockSpec((1, p_pad, cp), lambda i: (i, 0, 0)),        # x
            pl.BlockSpec((p_pad, 1), lambda i: (0, 0)),               # interior mask
            pl.BlockSpec((cp, 2 * cp), lambda i: (0, 0)),             # w shortcut|main
            pl.BlockSpec((1, 2 * cp), lambda i: (0, 0)),              # b shortcut|main
            pl.BlockSpec((nbp, cp, cp), lambda i: (0, 0, 0)),         # unit 1x1 w
            pl.BlockSpec((nbp, 1, cp), lambda i: (0, 0, 0)),          # unit 1x1 b
            pl.BlockSpec((nbp, 9, cp, cp), lambda i: (0, 0, 0, 0)),   # unit 3x3 w
            pl.BlockSpec((nbp, 1, cp), lambda i: (0, 0, 0)),          # unit 3x3 b
            pl.BlockSpec((cp, cp), lambda i: (0, 0)),                 # post w
            pl.BlockSpec((1, cp), lambda i: (0, 0)),                  # post b
        ],
        out_specs=(pl.BlockSpec((1, p_pad, cp), lambda i: (i, 0, 0)),
                   pl.BlockSpec((1, p_pad, cp), lambda i: (i, 0, 0))),
        scratch_shapes=[pltpu.VMEM((p_pad + 2 * marg, cp), jnp.bfloat16)],
        compiler_params=pltpu.CompilerParams(
            dimension_semantics=("parallel",),
            vmem_limit_bytes=_vmem_limit(need)),
        cost_estimate=cost,
    )(x3.astype(jnp.bfloat16), mask,
      params["sm_w"], params["sm_b"],
      params["res_w1"], params["res_b1"], params["res_w2"], params["res_b2"],
      params["post_w"], params["post_b"])


# ------------------------------ JAX glue -------------------------------------

def conv3x3_s2_im2col(x, w2d, bias):
    """x: (N, H, W, C) f32 (already ZeroPad2d'ed). 3x3 stride-2 Conv+BN+Mish."""
    n, h, w, c = x.shape
    oh = (h - 3) // 2 + 1
    ow = (w - 3) // 2 + 1
    cols = []
    for i in range(3):
        for j in range(3):
            cols.append(x[:, i:i + 2 * (oh - 1) + 1:2, j:j + 2 * (ow - 1) + 1:2, :])
    patches = jnp.concatenate(cols, axis=-1)              # (N, OH, OW, 9C)
    x2d = patches.reshape(n * oh * ow, 9 * c)
    k_pad = w2d.shape[0]                                  # K padded to mult of 128
    if k_pad != 9 * c:
        x2d = jnp.pad(x2d, ((0, 0), (0, k_pad - 9 * c)))
    out2d = matmul_bias_mish(x2d, w2d, bias)              # (N*OH*OW, CP) bf16
    return out2d.reshape(n, oh, ow, -1), oh, ow


def _folded_conv(key, cin, cout, k):
    """Conv2d(bias=False) weights + eval-mode BN folded: returns (w*scale, bias)."""
    k1, k2, k3, k4, k5 = jax.random.split(key, 5)
    w = 0.1 * jax.random.normal(k1, (k, k, cin, cout), jnp.float32)   # HWIO
    gamma = 1.0 + 0.1 * jax.random.normal(k2, (cout,), jnp.float32)
    beta = 0.1 * jax.random.normal(k3, (cout,), jnp.float32)
    mean = 0.1 * jax.random.normal(k4, (cout,), jnp.float32)
    var = jnp.abs(jax.random.normal(k5, (cout,), jnp.float32)) + 0.5
    scale = gamma / jnp.sqrt(var + 1e-5)
    bias = beta - mean * scale
    return w * scale, bias                  # BN scale folded into the weights


def _pad_w(w2d, cin_pad, cout_pad):
    k, co = w2d.shape
    return jnp.pad(w2d, ((0, cin_pad - k), (0, cout_pad - co))).astype(jnp.bfloat16)


def _pad_b(bias, cout_pad):
    return jnp.pad(bias, (0, cout_pad - bias.shape[0])).reshape(1, cout_pad).astype(jnp.float32)


def init_csp_res_block(key, in_channels, out_channels, num_block):
    half = out_channels // 2
    cp = _round_up(max(half, 1), LANE)
    keys = jax.random.split(key, 4 + 2 * max(num_block, 1))

    # stem 3x3 s2: im2col K padded to a multiple of 128, lane-dense Cout
    w, b = _folded_conv(keys[0], in_channels, half, 3)
    k_raw = 9 * in_channels
    prev_w = _pad_w(w.reshape(k_raw, half), _round_up(k_raw, LANE), cp)
    prev_b = _pad_b(b, cp)

    # shortcut & main 1x1 share the input -> single matmul, concat out channels
    ws, bs = _folded_conv(keys[1], half, half, 1)
    wm, bm = _folded_conv(keys[2], half, half, 1)
    sm_w = jnp.concatenate([_pad_w(ws.reshape(half, half), cp, cp),
                            _pad_w(wm.reshape(half, half), cp, cp)], axis=1)
    sm_b = jnp.concatenate([_pad_b(bs, cp), _pad_b(bm, cp)], axis=1)

    wp, bp = _folded_conv(keys[3], half, half, 1)
    post_w = _pad_w(wp.reshape(half, half), cp, cp)
    post_b = _pad_b(bp, cp)

    w1_l, b1_l, w2_l, b2_l = [], [], [], []
    for r in range(num_block):
        w1, b1 = _folded_conv(keys[4 + 2 * r], half, half, 1)
        w2, b2 = _folded_conv(keys[5 + 2 * r], half, half, 3)
        w1_l.append(_pad_w(w1.reshape(half, half), cp, cp))
        b1_l.append(_pad_b(b1, cp))
        w2_l.append(jnp.pad(w2.reshape(9, half, half),
                            ((0, 0), (0, cp - half), (0, cp - half))).astype(jnp.bfloat16))
        b2_l.append(_pad_b(b2, cp))
    if num_block == 0:   # keep leading dim >= 1 so BlockSpecs stay valid
        w1_l = [jnp.zeros((cp, cp), jnp.bfloat16)]
        b1_l = [jnp.zeros((1, cp), jnp.float32)]
        w2_l = [jnp.zeros((9, cp, cp), jnp.bfloat16)]
        b2_l = [jnp.zeros((1, cp), jnp.float32)]

    return {"prev_w": prev_w, "prev_b": prev_b,
            "sm_w": sm_w, "sm_b": sm_b,
            "res_w1": jnp.stack(w1_l), "res_b1": jnp.stack(b1_l),
            "res_w2": jnp.stack(w2_l), "res_b2": jnp.stack(b2_l),
            "post_w": post_w, "post_b": post_b}


@functools.partial(jax.jit, static_argnames=("half", "num_block"))
def csp_res_block_forward(x_nchw, params, *, half, num_block):
    cp = params["post_w"].shape[1]
    x = jnp.transpose(x_nchw, (0, 2, 3, 1)).astype(jnp.float32)   # NCHW -> NHWC
    # nn.ZeroPad2d((1, 0, 1, 0)): pad left=1, right=0, top=1, bottom=0
    x = jnp.pad(x, ((0, 0), (1, 0), (1, 0), (0, 0)))

    y, oh, ow = conv3x3_s2_im2col(x, params["prev_w"], params["prev_b"])
    n = y.shape[0]

    # flat padded layout: zero 1-px spatial border, row pitch padded to mult of 8
    w2p = _round_up(ow + 2, 8)
    h2 = oh + 2
    p_pad = h2 * w2p                                   # already a multiple of 8
    yp = jnp.pad(y, ((0, 0), (1, 1), (1, w2p - ow - 1), (0, 0)))
    x3 = yp.reshape(n, p_pad, cp)

    # interior-row mask, (p_pad, 1) f32 (compile-time constant)
    m = np.zeros((p_pad, 1), np.float32)
    for yy in range(1, oh + 1):
        m[yy * w2p + 1: yy * w2p + 1 + ow, 0] = 1.0
    mask = jnp.asarray(m)

    # ONE fused pallas_call: shortcut/main 1x1 -> all ResUnits -> post 1x1
    post_out, short_out = csp_chain(x3, mask, params, num_block=num_block, w2p=w2p)

    def unflatten(a):
        a = a.reshape(n, h2, w2p, cp)
        return a[:, 1:oh + 1, 1:ow + 1, :half]         # interior rows, real channels

    out = jnp.concatenate([unflatten(post_out), unflatten(short_out)], axis=-1)
    return jnp.transpose(out.astype(jnp.float32), (0, 3, 1, 2))    # NHWC -> NCHW


if __name__ == "__main__":
    key = jax.random.PRNGKey(0)
    kx, kp = jax.random.split(key)

    batch, in_channels, out_channels, spatial, num_block = 2, 4, 8, 16, 2
    x = jax.random.normal(kx, (batch, in_channels, spatial, spatial), jnp.float32)
    params = init_csp_res_block(kp, in_channels, out_channels, num_block)

    out = csp_res_block_forward(x, params, half=out_channels // 2,
                                num_block=num_block)
    out = jax.block_until_ready(out)

    # zero-pad -> 17x17, 3x3 stride-2 conv -> 8x8; concat doubles channels back
    assert out.shape == (batch, out_channels, spatial // 2, spatial // 2), out.shape
    assert bool(jnp.all(jnp.isfinite(out)))
    print("KERNEL_OK")
</pallas_src>

<mosaic_0001>
module attributes {stable_mosaic.version = 11 : i64} {
  func.func @_matmul_bias_mish_kernel(%arg0: i32, %arg1: memref<128x128xbf16, #tpu.memory_space<vmem>>, %arg2: memref<128x128xbf16, #tpu.memory_space<vmem>>, %arg3: memref<1x128xf32, #tpu.memory_space<vmem>>, %arg4: memref<128x128xbf16, #tpu.memory_space<vmem>>) attributes {dimension_semantics = [#tpu.dimension_semantics<parallel>], iteration_bounds = array<i64: 1>, scalar_prefetch = 0 : i64, scratch_operands = 0 : i64, tpu.core_type = #tpu.core_type<tc>, window_params = [{transform_indices = @transform_0, window_bounds = array<i64: 128, 128>}, {pipeline_mode = #tpu.pipeline_mode<synchronous>, transform_indices = @transform_1, window_bounds = array<i64: 128, 128>}, {pipeline_mode = #tpu.pipeline_mode<synchronous>, transform_indices = @transform_2, window_bounds = array<i64: 1, 128>}, {transform_indices = @transform_3, window_bounds = array<i64: 128, 128>}]} {
    %c0 = arith.constant 0 : index
    %c0_0 = arith.constant 0 : index
    %0 = vector.load %arg1[%c0, %c0_0] : memref<128x128xbf16, #tpu.memory_space<vmem>>, vector<128x128xbf16>
    %c0_1 = arith.constant 0 : index
    %c0_2 = arith.constant 0 : index
    %1 = vector.load %arg2[%c0_1, %c0_2] : memref<128x128xbf16, #tpu.memory_space<vmem>>, vector<128x128xbf16>
    %cst = arith.constant dense<0.000000e+00> : vector<128x128xf32>
    %2 = tpu.matmul %0, %1, %cst {dimension_numbers = #tpu.dot_dimension_numbers<[1], [0], [0], [1], [0, 0, 1, 1], [], []>} : vector<128x128xbf16>, vector<128x128xbf16>, vector<128x128xf32> -> vector<128x128xf32>
    %c0_3 = arith.constant 0 : index
    %c0_4 = arith.constant 0 : index
    %3 = vector.load %arg3[%c0_3, %c0_4] : memref<1x128xf32, #tpu.memory_space<vmem>>, vector<1x128xf32>
    %4 = vector.broadcast %3 : vector<1x128xf32> to vector<128x128xf32>
    %5 = arith.addf %2, %4 : vector<128x128xf32>
    %6 = math.absf %5 : vector<128x128xf32>
    %cst_5 = arith.constant 0.000000e+00 : f32
    %7 = vector.broadcast %cst_5 : f32 to vector<128x128xf32>
    %8 = arith.subf %7, %6 : vector<128x128xf32>
    %9 = math.exp %8 : vector<128x128xf32>
    %10 = arith.mulf %9, %9 : vector<128x128xf32>
    %cst_6 = arith.constant 0.000000e+00 : f32
    %11 = vector.broadcast %cst_6 : f32 to vector<128x128xf32>
    %12 = arith.cmpf oge, %5, %11 : vector<128x128xf32>
    %cst_7 = arith.constant 2.000000e+00 : f32
    %13 = vector.broadcast %cst_7 : f32 to vector<128x128xf32>
    %14 = arith.mulf %13, %9 : vector<128x128xf32>
    %cst_8 = arith.constant 1.000000e+00 : f32
    %15 = vector.broadcast %cst_8 : f32 to vector<128x128xf32>
    %16 = arith.addf %15, %14 : vector<128x128xf32>
    %cst_9 = arith.constant 2.000000e+00 : f32
    %17 = vector.broadcast %cst_9 : f32 to vector<128x128xf32>
    %18 = arith.mulf %17, %9 : vector<128x128xf32>
    %19 = arith.addf %18, %10 : vector<128x128xf32>
    %20 = arith.select %12, %16, %19 : vector<128x128xi1>, vector<128x128xf32>
    %cst_10 = arith.constant 2.000000e+00 : f32
    %21 = vector.broadcast %cst_10 : f32 to vector<128x128xf32>
    %22 = arith.mulf %21, %9 : vector<128x128xf32>
    %cst_11 = arith.constant 1.000000e+00 : f32
    %23 = vector.broadcast %cst_11 : f32 to vector<128x128xf32>
    %24 = arith.addf %23, %22 : vector<128x128xf32>
    %cst_12 = arith.constant 2.000000e+00 : f32
    %25 = vector.broadcast %cst_12 : f32 to vector<128x128xf32>
    %26 = arith.mulf %25, %10 : vector<128x128xf32>
    %27 = arith.addf %24, %26 : vector<128x128xf32>
    %cst_13 = arith.constant 2.000000e+00 : f32
    %28 = vector.broadcast %cst_13 : f32 to vector<128x128xf32>
    %29 = arith.mulf %28, %9 : vector<128x128xf32>
    %cst_14 = arith.constant 2.000000e+00 : f32
    %30 = vector.broadcast %cst_14 : f32 to vector<128x128xf32>
    %31 = arith.addf %30, %29 : vector<128x128xf32>
    %32 = arith.addf %31, %10 : vector<128x128xf32>
    %33 = arith.select %12, %27, %32 : vector<128x128xi1>, vector<128x128xf32>
    %34 = arith.mulf %5, %20 : vector<128x128xf32>
    %35 = tpu.reciprocal %33 {approx = true} : vector<128x128xf32> -> vector<128x128xf32>
    %36 = arith.mulf %34, %35 : vector<128x128xf32>
    %37 = arith.truncf %36 : vector<128x128xf32> to vector<128x128xbf16>
    %c0_15 = arith.constant 0 : index
    %c0_16 = arith.constant 0 : index
    %38 = vector.load %arg4[%c0_15, %c0_16] : memref<128x128xbf16, #tpu.memory_space<vmem>>, vector<128x128xbf16>
    tpu.vector_store %arg4[%c0_15, %c0_16], %37 {strides = array<i32>} : memref<128x128xbf16, #tpu.memory_space<vmem>>, vector<128x128xbf16>,
    return
  }
  func.func @transform_0(%arg0: i32) -> (i32, i32) {
    %c0_i32 = arith.constant 0 : i32
    %c0_i32_0 = arith.constant 0 : i32
    return %arg0, %c0_i32 : i32, i32
  }
  func.func @transform_1(%arg0: i32) -> (i32, i32) {
    %c0_i32 = arith.constant 0 : i32
    %c0_i32_0 = arith.constant 0 : i32
    %c0_i32_1 = arith.constant 0 : i32
    return %c0_i32, %c0_i32_0 : i32, i32
  }
  func.func @transform_2(%arg0: i32) -> (i32, i32) {
    %c0_i32 = arith.constant 0 : i32
    %c0_i32_0 = arith.constant 0 : i32
    %c0_i32_1 = arith.constant 0 : i32
    return %c0_i32, %c0_i32_0 : i32, i32
  }
  func.func @transform_3(%arg0: i32) -> (i32, i32) {
    %c0_i32 = arith.constant 0 : i32
    %c0_i32_0 = arith.constant 0 : i32
    return %arg0, %c0_i32 : i32, i32
  }
}

module attributes {stable_mosaic.version = 11 : i64} {
  func.func @kernel(%arg0: i32, %arg1: memref<1x160x128xbf16, #tpu.memory_space<vmem>>, %arg2: memref<160x1xf32, #tpu.memory_space<vmem>>, %arg3: memref<128x256xbf16, #tpu.memory_space<vmem>>, %arg4: memref<1x256xf32, #tpu.memory_space<vmem>>, %arg5: memref<2x128x128xbf16, #tpu.memory_space<vmem>>, %arg6: memref<2x1x128xf32, #tpu.memory_space<vmem>>, %arg7: memref<2x9x128x128xbf16, #tpu.memory_space<vmem>>, %arg8: memref<2x1x128xf32, #tpu.memory_space<vmem>>, %arg9: memref<128x128xbf16, #tpu.memory_space<vmem>>, %arg10: memref<1x128xf32, #tpu.memory_space<vmem>>, %arg11: memref<1x160x128xbf16, #tpu.memory_space<vmem>>, %arg12: memref<1x160x128xbf16, #tpu.memory_space<vmem>>, %arg13: memref<208x128xbf16, #tpu.memory_space<vmem>>) attributes {dimension_semantics = [#tpu.dimension_semantics<parallel>], iteration_bounds = array<i64: 2>, scalar_prefetch = 0 : i64, scratch_operands = 1 : i64, tpu.core_type = #tpu.core_type<tc>, window_params = [{transform_indices = @transform_0, window_bounds = array<i64: 1, 160, 128>}, {pipeline_mode = #tpu.pipeline_mode<synchronous>, transform_indices = @transform_1, window_bounds = array<i64: 160, 1>}, {pipeline_mode = #tpu.pipeline_mode<synchronous>, transform_indices = @transform_2, window_bounds = array<i64: 128, 256>}, {pipeline_mode = #tpu.pipeline_mode<synchronous>, transform_indices = @transform_3, window_bounds = array<i64: 1, 256>}, {pipeline_mode = #tpu.pipeline_mode<synchronous>, transform_indices = @transform_4, window_bounds = array<i64: 2, 128, 128>}, {pipeline_mode = #tpu.pipeline_mode<synchronous>, transform_indices = @transform_5, window_bounds = array<i64: 2, 1, 128>}, {pipeline_mode = #tpu.pipeline_mode<synchronous>, transform_indices = @transform_6, window_bounds = array<i64: 2, 9, 128, 128>}, {pipeline_mode = #tpu.pipeline_mode<synchronous>, transform_indices = @transform_7, window_bounds = array<i64: 2, 1, 128>}, {pipeline_mode = #tpu.pipeline_mode<synchronous>, transform_indices = @transform_8, window_bounds = array<i64: 128, 128>}, {pipeline_mode = #tpu.pipeline_mode<synchronous>, transform_indices = @transform_9, window_bounds = array<i64: 1, 128>}, {transform_indices = @transform_10, window_bounds = array<i64: 1, 160, 128>}, {transform_indices = @transform_11, window_bounds = array<i64: 1, 160, 128>}]} {
    %cst = arith.constant 0.000000e+00 : bf16
    %0 = vector.broadcast %cst : bf16 to vector<24x128xbf16>
    %c0 = arith.constant 0 : index
    %c0_0 = arith.constant 0 : index
    %1 = vector.load %arg13[%c0, %c0_0] : memref<208x128xbf16, #tpu.memory_space<vmem>>, vector<24x128xbf16>
    tpu.vector_store %arg13[%c0, %c0_0], %0 {strides = array<i32>} : memref<208x128xbf16, #tpu.memory_space<vmem>>, vector<24x128xbf16>,
    %c184 = arith.constant 184 : index
    %c0_1 = arith.constant 0 : index
    %2 = vector.load %arg13[%c184, %c0_1] : memref<208x128xbf16, #tpu.memory_space<vmem>>, vector<24x128xbf16>
    tpu.vector_store %arg13[%c184, %c0_1], %0 {strides = array<i32>} : memref<208x128xbf16, #tpu.memory_space<vmem>>, vector<24x128xbf16>,
    %c0_2 = arith.constant 0 : index
    %c0_3 = arith.constant 0 : index
    %3 = vector.load %arg2[%c0_2, %c0_3] : memref<160x1xf32, #tpu.memory_space<vmem>>, vector<160x1xf32>
    %4 = vector.shape_cast %3 : vector<160x1xf32> to vector<160x1xf32>
    %5 = vector.broadcast %4 : vector<160x1xf32> to vector<160x128xf32>
    %c0_4 = arith.constant 0 : index
    %c0_5 = arith.constant 0 : index
    %c0_6 = arith.constant 0 : index
    %6 = vector.load %arg1[%c0_4, %c0_5, %c0_6] : memref<1x160x128xbf16, #tpu.memory_space<vmem>>, vector<1x160x128xbf16>
    %7 = vector.shape_cast %6 : vector<1x160x128xbf16> to vector<160x128xbf16>
    %c0_7 = arith.constant 0 : index
    %c0_8 = arith.constant 0 : index
    %8 = vector.load %arg3[%c0_7, %c0_8] : memref<128x256xbf16, #tpu.memory_space<vmem>>, vector<128x256xbf16>
    %cst_9 = arith.constant dense<0.000000e+00> : vector<160x256xf32>
    %9 = tpu.matmul %7, %8, %cst_9 {dimension_numbers = #tpu.dot_dimension_numbers<[1], [0], [0], [1], [0, 0, 1, 1], [], []>} : vector<160x128xbf16>, vector<128x256xbf16>, vector<160x256xf32> -> vector<160x256xf32>
    %c0_10 = arith.constant 0 : index
    %c0_11 = arith.constant 0 : index
    %10 = vector.load %arg4[%c0_10, %c0_11] : memref<1x256xf32, #tpu.memory_space<vmem>>, vector<1x256xf32>
    %11 = vector.broadcast %10 : vector<1x256xf32> to vector<160x256xf32>
    %12 = arith.addf %9, %11 : vector<160x256xf32>
    %13 = math.absf %12 : vector<160x256xf32>
    %cst_12 = arith.constant 0.000000e+00 : f32
    %14 = vector.broadcast %cst_12 : f32 to vector<160x256xf32>
    %15 = arith.subf %14, %13 : vector<160x256xf32>
    %16 = math.exp %15 : vector<160x256xf32>
    %17 = arith.mulf %16, %16 : vector<160x256xf32>
    %cst_13 = arith.constant 0.000000e+00 : f32
    %18 = vector.broadcast %cst_13 : f32 to vector<160x256xf32>
    %19 = arith.cmpf oge, %12, %18 : vector<160x256xf32>
    %cst_14 = arith.constant 2.000000e+00 : f32
    %20 = vector.broadcast %cst_14 : f32 to vector<160x256xf32>
    %21 = arith.mulf %20, %16 : vector<160x256xf32>
    %cst_15 = arith.constant 1.000000e+00 : f32
    %22 = vector.broadcast %cst_15 : f32 to vector<160x256xf32>
    %23 = arith.addf %22, %21 : vector<160x256xf32>
    %cst_16 = arith.constant 2.000000e+00 : f32
    %24 = vector.broadcast %cst_16 : f32 to vector<160x256xf32>
    %25 = arith.mulf %24, %16 : vector<160x256xf32>
    %26 = arith.addf %25, %17 : vector<160x256xf32>
    %27 = arith.select %19, %23, %26 : vector<160x256xi1>, vector<160x256xf32>
    %cst_17 = arith.constant 2.000000e+00 : f32
    %28 = vector.broadcast %cst_17 : f32 to vector<160x256xf32>
    %29 = arith.mulf %28, %16 : vector<160x256xf32>
    %cst_18 = arith.constant 1.000000e+00 : f32
    %30 = vector.broadcast %cst_18 : f32 to vector<160x256xf32>
    %31 = arith.addf %30, %29 : vector<160x256xf32>
    %cst_19 = arith.constant 2.000000e+00 : f32
    %32 = vector.broadcast %cst_19 : f32 to vector<160x256xf32>
    %33 = arith.mulf %32, %17 : vector<160x256xf32>
    %34 = arith.addf %31, %33 : vector<160x256xf32>
    %cst_20 = arith.constant 2.000000e+00 : f32
    %35 = vector.broadcast %cst_20 : f32 to vector<160x256xf32>
    %36 = arith.mulf %35, %16 : vector<160x256xf32>
    %cst_21 = arith.constant 2.000000e+00 : f32
    %37 = vector.broadcast %cst_21 : f32 to vector<160x256xf32>
    %38 = arith.addf %37, %36 : vector<160x256xf32>
    %39 = arith.addf %38, %17 : vector<160x256xf32>
    %40 = arith.select %19, %34, %39 : vector<160x256xi1>, vector<160x256xf32>
    %41 = arith.mulf %12, %27 : vector<160x256xf32>
    %42 = tpu.reciprocal %40 {approx = true} : vector<160x256xf32> -> vector<160x256xf32>
    %43 = arith.mulf %41, %42 : vector<160x256xf32>
    %44 = vector.extract_strided_slice %43 {offsets = [0, 0], sizes = [160, 128], strides = [1, 1]} : vector<160x256xf32> to vector<160x128xf32>
    %45 = arith.truncf %44 : vector<160x128xf32> to vector<160x128xbf16>
    %c0_22 = arith.constant 0 : index
    %c0_23 = arith.constant 0 : index
    %c0_24 = arith.constant 0 : index
    %46 = vector.load %arg12[%c0_22, %c0_23, %c0_24] : memref<1x160x128xbf16, #tpu.memory_space<vmem>>, vector<1x160x128xbf16>
    %47 = vector.shape_cast %46 : vector<1x160x128xbf16> to vector<160x128xbf16>
    %48 = vector.shape_cast %45 : vector<160x128xbf16> to vector<1x160x128xbf16>
    tpu.vector_store %arg12[%c0_22, %c0_23, %c0_24], %48 {strides = array<i32>} : memref<1x160x128xbf16, #tpu.memory_space<vmem>>, vector<1x160x128xbf16>,
    %49 = vector.extract_strided_slice %43 {offsets = [0, 128], sizes = [160, 128], strides = [1, 1]} : vector<160x256xf32> to vector<160x128xf32>
    %50 = arith.truncf %49 : vector<160x128xf32> to vector<160x128xbf16>
    %c0_25 = arith.constant 0 : index
    %c0_26 = arith.constant 0 : index
    %c0_27 = arith.constant 0 : index
    %51 = vector.load %arg11[%c0_25, %c0_26, %c0_27] : memref<1x160x128xbf16, #tpu.memory_space<vmem>>, vector<1x160x128xbf16>
    %52 = vector.shape_cast %51 : vector<1x160x128xbf16> to vector<160x128xbf16>
    %53 = vector.shape_cast %50 : vector<160x128xbf16> to vector<1x160x128xbf16>
    tpu.vector_store %arg11[%c0_25, %c0_26, %c0_27], %53 {strides = array<i32>} : memref<1x160x128xbf16, #tpu.memory_space<vmem>>, vector<1x160x128xbf16>,
    %c0_28 = arith.constant 0 : index
    %c0_29 = arith.constant 0 : index
    %c0_30 = arith.constant 0 : index
    %54 = vector.load %arg11[%c0_28, %c0_29, %c0_30] : memref<1x160x128xbf16, #tpu.memory_space<vmem>>, vector<1x160x128xbf16>
    %55 = vector.shape_cast %54 : vector<1x160x128xbf16> to vector<160x128xbf16>
    %c0_31 = arith.constant 0 : index
    %c0_32 = arith.constant 0 : index
    %c0_33 = arith.constant 0 : index
    %56 = vector.load %arg5[%c0_31, %c0_32, %c0_33] : memref<2x128x128xbf16, #tpu.memory_space<vmem>>, vector<1x128x128xbf16>
    %57 = vector.shape_cast %56 : vector<1x128x128xbf16> to vector<128x128xbf16>
    %cst_34 = arith.constant dense<0.000000e+00> : vector<160x128xf32>
    %58 = tpu.matmul %55, %57, %cst_34 {dimension_numbers = #tpu.dot_dimension_numbers<[1], [0], [0], [1], [0, 0, 1, 1], [], []>} : vector<160x128xbf16>, vector<128x128xbf16>, vector<160x128xf32> -> vector<160x128xf32>
    %c0_35 = arith.constant 0 : index
    %c0_36 = arith.constant 0 : index
    %c0_37 = arith.constant 0 : index
    %59 = vector.load %arg6[%c0_35, %c0_36, %c0_37] : memref<2x1x128xf32, #tpu.memory_space<vmem>>, vector<1x1x128xf32>
    %60 = vector.shape_cast %59 : vector<1x1x128xf32> to vector<1x128xf32>
    %61 = vector.broadcast %60 : vector<1x128xf32> to vector<160x128xf32>
    %62 = arith.addf %58, %61 : vector<160x128xf32>
    %63 = math.absf %62 : vector<160x128xf32>
    %cst_38 = arith.constant 0.000000e+00 : f32
    %64 = vector.broadcast %cst_38 : f32 to vector<160x128xf32>
    %65 = arith.subf %64, %63 : vector<160x128xf32>
    %66 = math.exp %65 : vector<160x128xf32>
    %67 = arith.mulf %66, %66 : vector<160x128xf32>
    %cst_39 = arith.constant 0.000000e+00 : f32
    %68 = vector.broadcast %cst_39 : f32 to vector<160x128xf32>
    %69 = arith.cmpf oge, %62, %68 : vector<160x128xf32>
    %cst_40 = arith.constant 2.000000e+00 : f32
    %70 = vector.broadcast %cst_40 : f32 to vector<160x128xf32>
    %71 = arith.mulf %70, %66 : vector<160x128xf32>
    %cst_41 = arith.constant 1.000000e+00 : f32
    %72 = vector.broadcast %cst_41 : f32 to vector<160x128xf32>
    %73 = arith.addf %72, %71 : vector<160x128xf32>
    %cst_42 = arith.constant 2.000000e+00 : f32
    %74 = vector.broadcast %cst_42 : f32 to vector<160x128xf32>
    %75 = arith.mulf %74, %66 : vector<160x128xf32>
    %76 = arith.addf %75, %67 : vector<160x128xf32>
    %77 = arith.select %69, %73, %76 : vector<160x128xi1>, vector<160x128xf32>
    %cst_43 = arith.constant 2.000000e+00 : f32
    %78 = vector.broadcast %cst_43 : f32 to vector<160x128xf32>
    %79 = arith.mulf %78, %66 : vector<160x128xf32>
    %cst_44 = arith.constant 1.000000e+00 : f32
    %80 = vector.broadcast %cst_44 : f32 to vector<160x128xf32>
    %81 = arith.addf %80, %79 : vector<160x128xf32>
    %cst_45 = arith.constant 2.000000e+00 : f32
    %82 = vector.broadcast %cst_45 : f32 to vector<160x128xf32>
    %83 = arith.mulf %82, %67 : vector<160x128xf32>
    %84 = arith.addf %81, %83 : vector<160x128xf32>
    %cst_46 = arith.constant 2.000000e+00 : f32
    %85 = vector.broadcast %cst_46 : f32 to vector<160x128xf32>
    %86 = arith.mulf %85, %66 : vector<160x128xf32>
    %cst_47 = arith.constant 2.000000e+00 : f32
    %87 = vector.broadcast %cst_47 : f32 to vector<160x128xf32>
    %88 = arith.addf %87, %86 : vector<160x128xf32>
    %89 = arith.addf %88, %67 : vector<160x128xf32>
    %90 = arith.select %69, %84, %89 : vector<160x128xi1>, vector<160x128xf32>
    %91 = arith.mulf %62, %77 : vector<160x128xf32>
    %92 = tpu.reciprocal %90 {approx = true} : vector<160x128xf32> -> vector<160x128xf32>
    %93 = arith.mulf %91, %92 : vector<160x128xf32>
    %94 = arith.mulf %93, %5 : vector<160x128xf32>
    %95 = arith.truncf %94 : vector<160x128xf32> to vector<160x128xbf16>
    %c24 = arith.constant 24 : index
    %c0_48 = arith.constant 0 : index
    %96 = vector.load %arg13[%c24, %c0_48] : memref<208x128xbf16, #tpu.memory_space<vmem>>, vector<160x128xbf16>
    tpu.vector_store %arg13[%c24, %c0_48], %95 {strides = array<i32>} : memref<208x128xbf16, #tpu.memory_space<vmem>>, vector<160x128xbf16>,
    %c7 = arith.constant 7 : index
    %c0_49 = arith.constant 0 : index
    %97 = vector.load %arg13[%c7, %c0_49] : memref<208x128xbf16, #tpu.memory_space<vmem>>, vector<160x128xbf16>
    %c0_50 = arith.constant 0 : index
    %c0_51 = arith.constant 0 : index
    %c0_52 = arith.constant 0 : index
    %c0_53 = arith.constant 0 : index
    %98 = vector.load %arg7[%c0_50, %c0_51, %c0_52, %c0_53] : memref<2x9x128x128xbf16, #tpu.memory_space<vmem>>, vector<1x1x128x128xbf16>
    %99 = vector.shape_cast %98 : vector<1x1x128x128xbf16> to vector<128x128xbf16>
    %cst_54 = arith.constant dense<0.000000e+00> : vector<160x128xf32>
    %100 = tpu.matmul %97, %99, %cst_54 {dimension_numbers = #tpu.dot_dimension_numbers<[1], [0], [0], [1], [0, 0, 1, 1], [], []>} : vector<160x128xbf16>, vector<128x128xbf16>, vector<160x128xf32> -> vector<160x128xf32>
    %c8 = arith.constant 8 : index
    %c0_55 = arith.constant 0 : index
    %101 = vector.load %arg13[%c8, %c0_55] : memref<208x128xbf16, #tpu.memory_space<vmem>>, vector<160x128xbf16>
    %c0_56 = arith.constant 0 : index
    %c1 = arith.constant 1 : index
    %c0_57 = arith.constant 0 : index
    %c0_58 = arith.constant 0 : index
    %102 = vector.load %arg7[%c0_56, %c1, %c0_57, %c0_58] : memref<2x9x128x128xbf16, #tpu.memory_space<vmem>>, vector<1x1x128x128xbf16>
    %103 = vector.shape_cast %102 : vector<1x1x128x128xbf16> to vector<128x128xbf16>
    %cst_59 = arith.constant dense<0.000000e+00> : vector<160x128xf32>
    %104 = tpu.matmul %101, %103, %cst_59 {dimension_numbers = #tpu.dot_dimension_numbers<[1], [0], [0], [1], [0, 0, 1, 1], [], []>} : vector<160x128xbf16>, vector<128x128xbf16>, vector<160x128xf32> -> vector<160x128xf32>
    %105 = arith.addf %100, %104 : vector<160x128xf32>
    %c9 = arith.constant 9 : index
    %c0_60 = arith.constant 0 : index
    %106 = vector.load %arg13[%c9, %c0_60] : memref<208x128xbf16, #tpu.memory_space<vmem>>, vector<160x128xbf16>
    %c0_61 = arith.constant 0 : index
    %c2 = arith.constant 2 : index
    %c0_62 = arith.constant 0 : index
    %c0_63 = arith.constant 0 : index
    %107 = vector.load %arg7[%c0_61, %c2, %c0_62, %c0_63] : memref<2x9x128x128xbf16, #tpu.memory_space<vmem>>, vector<1x1x128x128xbf16>
    %108 = vector.shape_cast %107 : vector<1x1x128x128xbf16> to vector<128x128xbf16>
    %cst_64 = arith.constant dense<0.000000e+00> : vector<160x128xf32>
    %109 = tpu.matmul %106, %108, %cst_64 {dimension_numbers = #tpu.dot_dimension_numbers<[1], [0], [0], [1], [0, 0, 1, 1], [], []>} : vector<160x128xbf16>, vector<128x128xbf16>, vector<160x128xf32> -> vector<160x128xf32>
    %110 = arith.addf %105, %109 : vector<160x128xf32>
    %c23 = arith.constant 23 : index
    %c0_65 = arith.constant 0 : index
    %111 = vector.load %arg13[%c23, %c0_65] : memref<208x128xbf16, #tpu.memory_space<vmem>>, vector<160x128xbf16>
    %c0_66 = arith.constant 0 : index
    %c3 = arith.constant 3 : index
    %c0_67 = arith.constant 0 : index
    %c0_68 = arith.constant 0 : index
    %112 = vector.load %arg7[%c0_66, %c3, %c0_67, %c0_68] : memref<2x9x128x128xbf16, #tpu.memory_space<vmem>>, vector<1x1x128x128xbf16>
    %113 = vector.shape_cast %112 : vector<1x1x128x128xbf16> to vector<128x128xbf16>
    %cst_69 = arith.constant dense<0.000000e+00> : vector<160x128xf32>
    %114 = tpu.matmul %111, %113, %cst_69 {dimension_numbers = #tpu.dot_dimension_numbers<[1], [0], [0], [1], [0, 0, 1, 1], [], []>} : vector<160x128xbf16>, vector<128x128xbf16>, vector<160x128xf32> -> vector<160x128xf32>
    %115 = arith.addf %110, %114 : vector<160x128xf32>
    %c24_70 = arith.constant 24 : index
    %c0_71 = arith.constant 0 : index
    %116 = vector.load %arg13[%c24_70, %c0_71] : memref<208x128xbf16, #tpu.memory_space<vmem>>, vector<160x128xbf16>
    %c0_72 = arith.constant 0 : index
    %c4 = arith.constant 4 : index
    %c0_73 = arith.constant 0 : index
    %c0_74 = arith.constant 0 : index
    %117 = vector.load %arg7[%c0_72, %c4, %c0_73, %c0_74] : memref<2x9x128x128xbf16, #tpu.memory_space<vmem>>, vector<1x1x128x128xbf16>
    %118 = vector.shape_cast %117 : vector<1x1x128x128xbf16> to vector<128x128xbf16>
    %cst_75 = arith.constant dense<0.000000e+00> : vector<160x128xf32>
    %119 = tpu.matmul %116, %118, %cst_75 {dimension_numbers = #tpu.dot_dimension_numbers<[1], [0], [0], [1], [0, 0, 1, 1], [], []>} : vector<160x128xbf16>, vector<128x128xbf16>, vector<160x128xf32> -> vector<160x128xf32>
    %120 = arith.addf %115, %119 : vector<160x128xf32>
    %c25 = arith.constant 25 : index
    %c0_76 = arith.constant 0 : index
    %121 = vector.load %arg13[%c25, %c0_76] : memref<208x128xbf16, #tpu.memory_space<vmem>>, vector<160x128xbf16>
    %c0_77 = arith.constant 0 : index
    %c5 = arith.constant 5 : index
    %c0_78 = arith.constant 0 : index
    %c0_79 = arith.constant 0 : index
    %122 = vector.load %arg7[%c0_77, %c5, %c0_78, %c0_79] : memref<2x9x128x128xbf16, #tpu.memory_space<vmem>>, vector<1x1x128x128xbf16>
    %123 = vector.shape_cast %122 : vector<1x1x128x128xbf16> to vector<128x128xbf16>
    %cst_80 = arith.constant dense<0.000000e+00> : vector<160x128xf32>
    %124 = tpu.matmul %121, %123, %cst_80 {dimension_numbers = #tpu.dot_dimension_numbers<[1], [0], [0], [1], [0, 0, 1, 1], [], []>} : vector<160x128xbf16>, vector<128x128xbf16>, vector<160x128xf32> -> vector<160x128xf32>
    %125 = arith.addf %120, %124 : vector<160x128xf32>
    %c39 = arith.constant 39 : index
    %c0_81 = arith.constant 0 : index
    %126 = vector.load %arg13[%c39, %c0_81] : memref<208x128xbf16, #tpu.memory_space<vmem>>, vector<160x128xbf16>
    %c0_82 = arith.constant 0 : index
    %c6 = arith.constant 6 : index
    %c0_83 = arith.constant 0 : index
    %c0_84 = arith.constant 0 : index
    %127 = vector.load %arg7[%c0_82, %c6, %c0_83, %c0_84] : memref<2x9x128x128xbf16, #tpu.memory_space<vmem>>, vector<1x1x128x128xbf16>
    %128 = vector.shape_cast %127 : vector<1x1x128x128xbf16> to vector<128x128xbf16>
    %cst_85 = arith.constant dense<0.000000e+00> : vector<160x128xf32>
    %129 = tpu.matmul %126, %128, %cst_85 {dimension_numbers = #tpu.dot_dimension_numbers<[1], [0], [0], [1], [0, 0, 1, 1], [], []>} : vector<160x128xbf16>, vector<128x128xbf16>, vector<160x128xf32> -> vector<160x128xf32>
    %130 = arith.addf %125, %129 : vector<160x128xf32>
    %c40 = arith.constant 40 : index
    %c0_86 = arith.constant 0 : index
    %131 = vector.load %arg13[%c40, %c0_86] : memref<208x128xbf16, #tpu.memory_space<vmem>>, vector<160x128xbf16>
    %c0_87 = arith.constant 0 : index
    %c7_88 = arith.constant 7 : index
    %c0_89 = arith.constant 0 : index
    %c0_90 = arith.constant 0 : index
    %132 = vector.load %arg7[%c0_87, %c7_88, %c0_89, %c0_90] : memref<2x9x128x128xbf16, #tpu.memory_space<vmem>>, vector<1x1x128x128xbf16>
    %133 = vector.shape_cast %132 : vector<1x1x128x128xbf16> to vector<128x128xbf16>
    %cst_91 = arith.constant dense<0.000000e+00> : vector<160x128xf32>
    %134 = tpu.matmul %131, %133, %cst_91 {dimension_numbers = #tpu.dot_dimension_numbers<[1], [0], [0], [1], [0, 0, 1, 1], [], []>} : vector<160x128xbf16>, vector<128x128xbf16>, vector<160x128xf32> -> vector<160x128xf32>
    %135 = arith.addf %130, %134 : vector<160x128xf32>
    %c41 = arith.constant 41 : index
    %c0_92 = arith.constant 0 : index
    %136 = vector.load %arg13[%c41, %c0_92] : memref<208x128xbf16, #tpu.memory_space<vmem>>, vector<160x128xbf16>
    %c0_93 = arith.constant 0 : index
    %c8_94 = arith.constant 8 : index
    %c0_95 = arith.constant 0 : index
    %c0_96 = arith.constant 0 : index
    %137 = vector.load %arg7[%c0_93, %c8_94, %c0_95, %c0_96] : memref<2x9x128x128xbf16, #tpu.memory_space<vmem>>, vector<1x1x128x128xbf16>
    %138 = vector.shape_cast %137 : vector<1x1x128x128xbf16> to vector<128x128xbf16>
    %cst_97 = arith.constant dense<0.000000e+00> : vector<160x128xf32>
    %139 = tpu.matmul %136, %138, %cst_97 {dimension_numbers = #tpu.dot_dimension_numbers<[1], [0], [0], [1], [0, 0, 1, 1], [], []>} : vector<160x128xbf16>, vector<128x128xbf16>, vector<160x128xf32> -> vector<160x128xf32>
    %140 = arith.addf %135, %139 : vector<160x128xf32>
    %c0_98 = arith.constant 0 : index
    %c0_99 = arith.constant 0 : index
    %c0_100 = arith.constant 0 : index
    %141 = vector.load %arg8[%c0_98, %c0_99, %c0_100] : memref<2x1x128xf32, #tpu.memory_space<vmem>>, vector<1x1x128xf32>
    %142 = vector.shape_cast %141 : vector<1x1x128xf32> to vector<1x128xf32>
    %143 = vector.broadcast %142 : vector<1x128xf32> to vector<160x128xf32>
    %144 = arith.addf %140, %143 : vector<160x128xf32>
    %145 = math.absf %144 : vector<160x128xf32>
    %cst_101 = arith.constant 0.000000e+00 : f32
    %146 = vector.broadcast %cst_101 : f32 to vector<160x128xf32>
    %147 = arith.subf %146, %145 : vector<160x128xf32>
    %148 = math.exp %147 : vector<160x128xf32>
    %149 = arith.mulf %148, %148 : vector<160x128xf32>
    %cst_102 = arith.constant 0.000000e+00 : f32
    %150 = vector.broadcast %cst_102 : f32 to vector<160x128xf32>
    %151 = arith.cmpf oge, %144, %150 : vector<160x128xf32>
    %cst_103 = arith.constant 2.000000e+00 : f32
    %152 = vector.broadcast %cst_103 : f32 to vector<160x128xf32>
    %153 = arith.mulf %152, %148 : vector<160x128xf32>
    %cst_104 = arith.constant 1.000000e+00 : f32
    %154 = vector.broadcast %cst_104 : f32 to vector<160x128xf32>
    %155 = arith.addf %154, %153 : vector<160x128xf32>
    %cst_105 = arith.constant 2.000000e+00 : f32
    %156 = vector.broadcast %cst_105 : f32 to vector<160x128xf32>
    %157 = arith.mulf %156, %148 : vector<160x128xf32>
    %158 = arith.addf %157, %149 : vector<160x128xf32>
    %159 = arith.select %151, %155, %158 : vector<160x128xi1>, vector<160x128xf32>
    %cst_106 = arith.constant 2.000000e+00 : f32
    %160 = vector.broadcast %cst_106 : f32 to vector<160x128xf32>
    %161 = arith.mulf %160, %148 : vector<160x128xf32>
    %cst_107 = arith.constant 1.000000e+00 : f32
    %162 = vector.broadcast %cst_107 : f32 to vector<160x128xf32>
    %163 = arith.addf %162, %161 : vector<160x128xf32>
    %cst_108 = arith.constant 2.000000e+00 : f32
    %164 = vector.broadcast %cst_108 : f32 to vector<160x128xf32>
    %165 = arith.mulf %164, %149 : vector<160x128xf32>
    %166 = arith.addf %163, %165 : vector<160x128xf32>
    %cst_109 = arith.constant 2.000000e+00 : f32
    %167 = vector.broadcast %cst_109 : f32 to vector<160x128xf32>
    %168 = arith.mulf %167, %148 : vector<160x128xf32>
    %cst_110 = arith.constant 2.000000e+00 : f32
    %169 = vector.broadcast %cst_110 : f32 to vector<160x128xf32>
    %170 = arith.addf %169, %168 : vector<160x128xf32>
    %171 = arith.addf %170, %149 : vector<160x128xf32>
    %172 = arith.select %151, %166, %171 : vector<160x128xi1>, vector<160x128xf32>
    %173 = arith.mulf %144, %159 : vector<160x128xf32>
    %174 = tpu.reciprocal %172 {approx = true} : vector<160x128xf32> -> vector<160x128xf32>
    %175 = arith.mulf %173, %174 : vector<160x128xf32>
    %176 = arith.mulf %175, %5 : vector<160x128xf32>
    %c0_111 = arith.constant 0 : index
    %c0_112 = arith.constant 0 : index
    %c0_113 = arith.constant 0 : index
    %177 = vector.load %arg11[%c0_111, %c0_112, %c0_113] : memref<1x160x128xbf16, #tpu.memory_space<vmem>>, vector<1x160x128xbf16>
    %178 = vector.shape_cast %177 : vector<1x160x128xbf16> to vector<160x128xbf16>
    %179 = arith.extf %178 : vector<160x128xbf16> to vector<160x128xf32>
    %180 = arith.addf %176, %179 : vector<160x128xf32>
    %181 = arith.truncf %180 : vector<160x128xf32> to vector<160x128xbf16>
    %c0_114 = arith.constant 0 : index
    %c0_115 = arith.constant 0 : index
    %c0_116 = arith.constant 0 : index
    %182 = vector.load %arg11[%c0_114, %c0_115, %c0_116] : memref<1x160x128xbf16, #tpu.memory_space<vmem>>, vector<1x160x128xbf16>
    %183 = vector.shape_cast %182 : vector<1x160x128xbf16> to vector<160x128xbf16>
    %184 = vector.shape_cast %181 : vector<160x128xbf16> to vector<1x160x128xbf16>
    tpu.vector_store %arg11[%c0_114, %c0_115, %c0_116], %184 {strides = array<i32>} : memref<1x160x128xbf16, #tpu.memory_space<vmem>>, vector<1x160x128xbf16>,
    %c0_117 = arith.constant 0 : index
    %c0_118 = arith.constant 0 : index
    %c0_119 = arith.constant 0 : index
    %185 = vector.load %arg11[%c0_117, %c0_118, %c0_119] : memref<1x160x128xbf16, #tpu.memory_space<vmem>>, vector<1x160x128xbf16>
    %186 = vector.shape_cast %185 : vector<1x160x128xbf16> to vector<160x128xbf16>
    %c1_120 = arith.constant 1 : index
    %c0_121 = arith.constant 0 : index
    %c0_122 = arith.constant 0 : index
    %187 = vector.load %arg5[%c1_120, %c0_121, %c0_122] : memref<2x128x128xbf16, #tpu.memory_space<vmem>>, vector<1x128x128xbf16>
    %188 = vector.shape_cast %187 : vector<1x128x128xbf16> to vector<128x128xbf16>
    %cst_123 = arith.constant dense<0.000000e+00> : vector<160x128xf32>
    %189 = tpu.matmul %186, %188, %cst_123 {dimension_numbers = #tpu.dot_dimension_numbers<[1], [0], [0], [1], [0, 0, 1, 1], [], []>} : vector<160x128xbf16>, vector<128x128xbf16>, vector<160x128xf32> -> vector<160x128xf32>
    %c1_124 = arith.constant 1 : index
    %c0_125 = arith.constant 0 : index
    %c0_126 = arith.constant 0 : index
    %190 = vector.load %arg6[%c1_124, %c0_125, %c0_126] : memref<2x1x128xf32, #tpu.memory_space<vmem>>, vector<1x1x128xf32>
    %191 = vector.shape_cast %190 : vector<1x1x128xf32> to vector<1x128xf32>
    %192 = vector.broadcast %191 : vector<1x128xf32> to vector<160x128xf32>
    %193 = arith.addf %189, %192 : vector<160x128xf32>
    %194 = math.absf %193 : vector<160x128xf32>
    %cst_127 = arith.constant 0.000000e+00 : f32
    %195 = vector.broadcast %cst_127 : f32 to vector<160x128xf32>
    %196 = arith.subf %195, %194 : vector<160x128xf32>
    %197 = math.exp %196 : vector<160x128xf32>
    %198 = arith.mulf %197, %197 : vector<160x128xf32>
    %cst_128 = arith.constant 0.000000e+00 : f32
    %199 = vector.broadcast %cst_128 : f32 to vector<160x128xf32>
    %200 = arith.cmpf oge, %193, %199 : vector<160x128xf32>
    %cst_129 = arith.constant 2.000000e+00 : f32
    %201 = vector.broadcast %cst_129 : f32 to vector<160x128xf32>
    %202 = arith.mulf %201, %197 : vector<160x128xf32>
    %cst_130 = arith.constant 1.000000e+00 : f32
    %203 = vector.broadcast %cst_130 : f32 to vector<160x128xf32>
    %204 = arith.addf %203, %202 : vector<160x128xf32>
    %cst_131 = arith.constant 2.000000e+00 : f32
    %205 = vector.broadcast %cst_131 : f32 to vector<160x128xf32>
    %206 = arith.mulf %205, %197 : vector<160x128xf32>
    %207 = arith.addf %206, %198 : vector<160x128xf32>
    %208 = arith.select %200, %204, %207 : vector<160x128xi1>, vector<160x128xf32>
    %cst_132 = arith.constant 2.000000e+00 : f32
    %209 = vector.broadcast %cst_132 : f32 to vector<160x128xf32>
    %210 = arith.mulf %209, %197 : vector<160x128xf32>
    %cst_133 = arith.constant 1.000000e+00 : f32
    %211 = vector.broadcast %cst_133 : f32 to vector<160x128xf32>
    %212 = arith.addf %211, %210 : vector<160x128xf32>
    %cst_134 = arith.constant 2.000000e+00 : f32
    %213 = vector.broadcast %cst_134 : f32 to vector<160x128xf32>
    %214 = arith.mulf %213, %198 : vector<160x128xf32>
    %215 = arith.addf %212, %214 : vector<160x128xf32>
    %cst_135 = arith.constant 2.000000e+00 : f32
    %216 = vector.broadcast %cst_135 : f32 to vector<160x128xf32>
    %217 = arith.mulf %216, %197 : vector<160x128xf32>
    %cst_136 = arith.constant 2.000000e+00 : f32
    %218 = vector.broadcast %cst_136 : f32 to vector<160x128xf32>
    %219 = arith.addf %218, %217 : vector<160x128xf32>
    %220 = arith.addf %219, %198 : vector<160x128xf32>
    %221 = arith.select %200, %215, %220 : vector<160x128xi1>, vector<160x128xf32>
    %222 = arith.mulf %193, %208 : vector<160x128xf32>
    %223 = tpu.reciprocal %221 {approx = true} : vector<160x128xf32> -> vector<160x128xf32>
    %224 = arith.mulf %222, %223 : vector<160x128xf32>
    %225 = arith.mulf %224, %5 : vector<160x128xf32>
    %226 = arith.truncf %225 : vector<160x128xf32> to vector<160x128xbf16>
    %c24_137 = arith.constant 24 : index
    %c0_138 = arith.constant 0 : index
    %227 = vector.load %arg13[%c24_137, %c0_138] : memref<208x128xbf16, #tpu.memory_space<vmem>>, vector<160x128xbf16>
    tpu.vector_store %arg13[%c24_137, %c0_138], %226 {strides = array<i32>} : memref<208x128xbf16, #tpu.memory_space<vmem>>, vector<160x128xbf16>,
    %c7_139 = arith.constant 7 : index
    %c0_140 = arith.constant 0 : index
    %228 = vector.load %arg13[%c7_139, %c0_140] : memref<208x128xbf16, #tpu.memory_space<vmem>>, vector<160x128xbf16>
    %c1_141 = arith.constant 1 : index
    %c0_142 = arith.constant 0 : index
    %c0_143 = arith.constant 0 : index
    %c0_144 = arith.constant 0 : index
    %229 = vector.load %arg7[%c1_141, %c0_142, %c0_143, %c0_144] : memref<2x9x128x128xbf16, #tpu.memory_space<vmem>>, vector<1x1x128x128xbf16>
    %230 = vector.shape_cast %229 : vector<1x1x128x128xbf16> to vector<128x128xbf16>
    %cst_145 = arith.constant dense<0.000000e+00> : vector<160x128xf32>
    %231 = tpu.matmul %228, %230, %cst_145 {dimension_numbers = #tpu.dot_dimension_numbers<[1], [0], [0], [1], [0, 0, 1, 1], [], []>} : vector<160x128xbf16>, vector<128x128xbf16>, vector<160x128xf32> -> vector<160x128xf32>
    %c8_146 = arith.constant 8 : index
    %c0_147 = arith.constant 0 : index
    %232 = vector.load %arg13[%c8_146, %c0_147] : memref<208x128xbf16, #tpu.memory_space<vmem>>, vector<160x128xbf16>
    %c1_148 = arith.constant 1 : index
    %c1_149 = arith.constant 1 : index
    %c0_150 = arith.constant 0 : index
    %c0_151 = arith.constant 0 : index
    %233 = vector.load %arg7[%c1_148, %c1_149, %c0_150, %c0_151] : memref<2x9x128x128xbf16, #tpu.memory_space<vmem>>, vector<1x1x128x128xbf16>
    %234 = vector.shape_cast %233 : vector<1x1x128x128xbf16> to vector<128x128xbf16>
    %cst_152 = arith.constant dense<0.000000e+00> : vector<160x128xf32>
    %235 = tpu.matmul %232, %234, %cst_152 {dimension_numbers = #tpu.dot_dimension_numbers<[1], [0], [0], [1], [0, 0, 1, 1], [], []>} : vector<160x128xbf16>, vector<128x128xbf16>, vector<160x128xf32> -> vector<160x128xf32>
    %236 = arith.addf %231, %235 : vector<160x128xf32>
    %c9_153 = arith.constant 9 : index
    %c0_154 = arith.constant 0 : index
    %237 = vector.load %arg13[%c9_153, %c0_154] : memref<208x128xbf16, #tpu.memory_space<vmem>>, vector<160x128xbf16>
    %c1_155 = arith.constant 1 : index
    %c2_156 = arith.constant 2 : index
    %c0_157 = arith.constant 0 : index
    %c0_158 = arith.constant 0 : index
    %238 = vector.load %arg7[%c1_155, %c2_156, %c0_157, %c0_158] : memref<2x9x128x128xbf16, #tpu.memory_space<vmem>>, vector<1x1x128x128xbf16>
    %239 = vector.shape_cast %238 : vector<1x1x128x128xbf16> to vector<128x128xbf16>
    %cst_159 = arith.constant dense<0.000000e+00> : vector<160x128xf32>
    %240 = tpu.matmul %237, %239, %cst_159 {dimension_numbers = #tpu.dot_dimension_numbers<[1], [0], [0], [1], [0, 0, 1, 1], [], []>} : vector<160x128xbf16>, vector<128x128xbf16>, vector<160x128xf32> -> vector<160x128xf32>
    %241 = arith.addf %236, %240 : vector<160x128xf32>
    %c23_160 = arith.constant 23 : index
    %c0_161 = arith.constant 0 : index
    %242 = vector.load %arg13[%c23_160, %c0_161] : memref<208x128xbf16, #tpu.memory_space<vmem>>, vector<160x128xbf16>
    %c1_162 = arith.constant 1 : index
    %c3_163 = arith.constant 3 : index
    %c0_164 = arith.constant 0 : index
    %c0_165 = arith.constant 0 : index
    %243 = vector.load %arg7[%c1_162, %c3_163, %c0_164, %c0_165] : memref<2x9x128x128xbf16, #tpu.memory_space<vmem>>, vector<1x1x128x128xbf16>
    %244 = vector.shape_cast %243 : vector<1x1x128x128xbf16> to vector<128x128xbf16>
    %cst_166 = arith.constant dense<0.000000e+00> : vector<160x128xf32>
    %245 = tpu.matmul %242, %244, %cst_166 {dimension_numbers = #tpu.dot_dimension_numbers<[1], [0], [0], [1], [0, 0, 1, 1], [], []>} : vector<160x128xbf16>, vector<128x128xbf16>, vector<160x128xf32> -> vector<160x128xf32>
    %246 = arith.addf %241, %245 : vector<160x128xf32>
    %c24_167 = arith.constant 24 : index
    %c0_168 = arith.constant 0 : index
    %247 = vector.load %arg13[%c24_167, %c0_168] : memref<208x128xbf16, #tpu.memory_space<vmem>>, vector<160x128xbf16>
    %c1_169 = arith.constant 1 : index
    %c4_170 = arith.constant 4 : index
    %c0_171 = arith.constant 0 : index
    %c0_172 = arith.constant 0 : index
    %248 = vector.load %arg7[%c1_169, %c4_170, %c0_171, %c0_172] : memref<2x9x128x128xbf16, #tpu.memory_space<vmem>>, vector<1x1x128x128xbf16>
    %249 = vector.shape_cast %248 : vector<1x1x128x128xbf16> to vector<128x128xbf16>
    %cst_173 = arith.constant dense<0.000000e+00> : vector<160x128xf32>
    %250 = tpu.matmul %247, %249, %cst_173 {dimension_numbers = #tpu.dot_dimension_numbers<[1], [0], [0], [1], [0, 0, 1, 1], [], []>} : vector<160x128xbf16>, vector<128x128xbf16>, vector<160x128xf32> -> vector<160x128xf32>
    %251 = arith.addf %246, %250 : vector<160x128xf32>
    %c25_174 = arith.constant 25 : index
    %c0_175 = arith.constant 0 : index
    %252 = vector.load %arg13[%c25_174, %c0_175] : memref<208x128xbf16, #tpu.memory_space<vmem>>, vector<160x128xbf16>
    %c1_176 = arith.constant 1 : index
    %c5_177 = arith.constant 5 : index
    %c0_178 = arith.constant 0 : index
    %c0_179 = arith.constant 0 : index
    %253 = vector.load %arg7[%c1_176, %c5_177, %c0_178, %c0_179] : memref<2x9x128x128xbf16, #tpu.memory_space<vmem>>, vector<1x1x128x128xbf16>
    %254 = vector.shape_cast %253 : vector<1x1x128x128xbf16> to vector<128x128xbf16>
    %cst_180 = arith.constant dense<0.000000e+00> : vector<160x128xf32>
    %255 = tpu.matmul %252, %254, %cst_180 {dimension_numbers = #tpu.dot_dimension_numbers<[1], [0], [0], [1], [0, 0, 1, 1], [], []>} : vector<160x128xbf16>, vector<128x128xbf16>, vector<160x128xf32> -> vector<160x128xf32>
    %256 = arith.addf %251, %255 : vector<160x128xf32>
    %c39_181 = arith.constant 39 : index
    %c0_182 = arith.constant 0 : index
    %257 = vector.load %arg13[%c39_181, %c0_182] : memref<208x128xbf16, #tpu.memory_space<vmem>>, vector<160x128xbf16>
    %c1_183 = arith.constant 1 : index
    %c6_184 = arith.constant 6 : index
    %c0_185 = arith.constant 0 : index
    %c0_186 = arith.constant 0 : index
    %258 = vector.load %arg7[%c1_183, %c6_184, %c0_185, %c0_186] : memref<2x9x128x128xbf16, #tpu.memory_space<vmem>>, vector<1x1x128x128xbf16>
    %259 = vector.shape_cast %258 : vector<1x1x128x128xbf16> to vector<128x128xbf16>
    %cst_187 = arith.constant dense<0.000000e+00> : vector<160x128xf32>
    %260 = tpu.matmul %257, %259, %cst_187 {dimension_numbers = #tpu.dot_dimension_numbers<[1], [0], [0], [1], [0, 0, 1, 1], [], []>} : vector<160x128xbf16>, vector<128x128xbf16>, vector<160x128xf32> -> vector<160x128xf32>
    %261 = arith.addf %256, %260 : vector<160x128xf32>
    %c40_188 = arith.constant 40 : index
    %c0_189 = arith.constant 0 : index
    %262 = vector.load %arg13[%c40_188, %c0_189] : memref<208x128xbf16, #tpu.memory_space<vmem>>, vector<160x128xbf16>
    %c1_190 = arith.constant 1 : index
    %c7_191 = arith.constant 7 : index
    %c0_192 = arith.constant 0 : index
    %c0_193 = arith.constant 0 : index
    %263 = vector.load %arg7[%c1_190, %c7_191, %c0_192, %c0_193] : memref<2x9x128x128xbf16, #tpu.memory_space<vmem>>, vector<1x1x128x128xbf16>
    %264 = vector.shape_cast %263 : vector<1x1x128x128xbf16> to vector<128x128xbf16>
    %cst_194 = arith.constant dense<0.000000e+00> : vector<160x128xf32>
    %265 = tpu.matmul %262, %264, %cst_194 {dimension_numbers = #tpu.dot_dimension_numbers<[1], [0], [0], [1], [0, 0, 1, 1], [], []>} : vector<160x128xbf16>, vector<128x128xbf16>, vector<160x128xf32> -> vector<160x128xf32>
    %266 = arith.addf %261, %265 : vector<160x128xf32>
    %c41_195 = arith.constant 41 : index
    %c0_196 = arith.constant 0 : index
    %267 = vector.load %arg13[%c41_195, %c0_196] : memref<208x128xbf16, #tpu.memory_space<vmem>>, vector<160x128xbf16>
    %c1_197 = arith.constant 1 : index
    %c8_198 = arith.constant 8 : index
    %c0_199 = arith.constant 0 : index
    %c0_200 = arith.constant 0 : index
    %268 = vector.load %arg7[%c1_197, %c8_198, %c0_199, %c0_200] : memref<2x9x128x128xbf16, #tpu.memory_space<vmem>>, vector<1x1x128x128xbf16>
    %269 = vector.shape_cast %268 : vector<1x1x128x128xbf16> to vector<128x128xbf16>
    %cst_201 = arith.constant dense<0.000000e+00> : vector<160x128xf32>
    %270 = tpu.matmul %267, %269, %cst_201 {dimension_numbers = #tpu.dot_dimension_numbers<[1], [0], [0], [1], [0, 0, 1, 1], [], []>} : vector<160x128xbf16>, vector<128x128xbf16>, vector<160x128xf32> -> vector<160x128xf32>
    %271 = arith.addf %266, %270 : vector<160x128xf32>
    %c1_202 = arith.constant 1 : index
    %c0_203 = arith.constant 0 : index
    %c0_204 = arith.constant 0 : index
    %272 = vector.load %arg8[%c1_202, %c0_203, %c0_204] : memref<2x1x128xf32, #tpu.memory_space<vmem>>, vector<1x1x128xf32>
    %273 = vector.shape_cast %272 : vector<1x1x128xf32> to vector<1x128xf32>
    %274 = vector.broadcast %273 : vector<1x128xf32> to vector<160x128xf32>
    %275 = arith.addf %271, %274 : vector<160x128xf32>
    %276 = math.absf %275 : vector<160x128xf32>
    %cst_205 = arith.constant 0.000000e+00 : f32
    %277 = vector.broadcast %cst_205 : f32 to vector<160x128xf32>
    %278 = arith.subf %277, %276 : vector<160x128xf32>
    %279 = math.exp %278 : vector<160x128xf32>
    %280 = arith.mulf %279, %279 : vector<160x128xf32>
    %cst_206 = arith.constant 0.000000e+00 : f32
    %281 = vector.broadcast %cst_206 : f32 to vector<160x128xf32>
    %282 = arith.cmpf oge, %275, %281 : vector<160x128xf32>
    %cst_207 = arith.constant 2.000000e+00 : f32
    %283 = vector.broadcast %cst_207 : f32 to vector<160x128xf32>
    %284 = arith.mulf %283, %279 : vector<160x128xf32>
    %cst_208 = arith.constant 1.000000e+00 : f32
    %285 = vector.broadcast %cst_208 : f32 to vector<160x128xf32>
    %286 = arith.addf %285, %284 : vector<160x128xf32>
    %cst_209 = arith.constant 2.000000e+00 : f32
    %287 = vector.broadcast %cst_209 : f32 to vector<160x128xf32>
    %288 = arith.mulf %287, %279 : vector<160x128xf32>
    %289 = arith.addf %288, %280 : vector<160x128xf32>
    %290 = arith.select %282, %286, %289 : vector<160x128xi1>, vector<160x128xf32>
    %cst_210 = arith.constant 2.000000e+00 : f32
    %291 = vector.broadcast %cst_210 : f32 to vector<160x128xf32>
    %292 = arith.mulf %291, %279 : vector<160x128xf32>
    %cst_211 = arith.constant 1.000000e+00 : f32
    %293 = vector.broadcast %cst_211 : f32 to vector<160x128xf32>
    %294 = arith.addf %293, %292 : vector<160x128xf32>
    %cst_212 = arith.constant 2.000000e+00 : f32
    %295 = vector.broadcast %cst_212 : f32 to vector<160x128xf32>
    %296 = arith.mulf %295, %280 : vector<160x128xf32>
    %297 = arith.addf %294, %296 : vector<160x128xf32>
    %cst_213 = arith.constant 2.000000e+00 : f32
    %298 = vector.broadcast %cst_213 : f32 to vector<160x128xf32>
    %299 = arith.mulf %298, %279 : vector<160x128xf32>
    %cst_214 = arith.constant 2.000000e+00 : f32
    %300 = vector.broadcast %cst_214 : f32 to vector<160x128xf32>
    %301 = arith.addf %300, %299 : vector<160x128xf32>
    %302 = arith.addf %301, %280 : vector<160x128xf32>
    %303 = arith.select %282, %297, %302 : vector<160x128xi1>, vector<160x128xf32>
    %304 = arith.mulf %275, %290 : vector<160x128xf32>
    %305 = tpu.reciprocal %303 {approx = true} : vector<160x128xf32> -> vector<160x128xf32>
    %306 = arith.mulf %304, %305 : vector<160x128xf32>
    %307 = arith.mulf %306, %5 : vector<160x128xf32>
    %c0_215 = arith.constant 0 : index
    %c0_216 = arith.constant 0 : index
    %c0_217 = arith.constant 0 : index
    %308 = vector.load %arg11[%c0_215, %c0_216, %c0_217] : memref<1x160x128xbf16, #tpu.memory_space<vmem>>, vector<1x160x128xbf16>
    %309 = vector.shape_cast %308 : vector<1x160x128xbf16> to vector<160x128xbf16>
    %310 = arith.extf %309 : vector<160x128xbf16> to vector<160x128xf32>
    %311 = arith.addf %307, %310 : vector<160x128xf32>
    %312 = arith.truncf %311 : vector<160x128xf32> to vector<160x128xbf16>
    %c0_218 = arith.constant 0 : index
    %c0_219 = arith.constant 0 : index
    %c0_220 = arith.constant 0 : index
    %313 = vector.load %arg11[%c0_218, %c0_219, %c0_220] : memref<1x160x128xbf16, #tpu.memory_space<vmem>>, vector<1x160x128xbf16>
    %314 = vector.shape_cast %313 : vector<1x160x128xbf16> to vector<160x128xbf16>
    %315 = vector.shape_cast %312 : vector<160x128xbf16> to vector<1x160x128xbf16>
    tpu.vector_store %arg11[%c0_218, %c0_219, %c0_220], %315 {strides = array<i32>} : memref<1x160x128xbf16, #tpu.memory_space<vmem>>, vector<1x160x128xbf16>,
    %c0_221 = arith.constant 0 : index
    %c0_222 = arith.constant 0 : index
    %c0_223 = arith.constant 0 : index
    %316 = vector.load %arg11[%c0_221, %c0_222, %c0_223] : memref<1x160x128xbf16, #tpu.memory_space<vmem>>, vector<1x160x128xbf16>
    %317 = vector.shape_cast %316 : vector<1x160x128xbf16> to vector<160x128xbf16>
    %c0_224 = arith.constant 0 : index
    %c0_225 = arith.constant 0 : index
    %318 = vector.load %arg9[%c0_224, %c0_225] : memref<128x128xbf16, #tpu.memory_space<vmem>>, vector<128x128xbf16>
    %cst_226 = arith.constant dense<0.000000e+00> : vector<160x128xf32>
    %319 = tpu.matmul %317, %318, %cst_226 {dimension_numbers = #tpu.dot_dimension_numbers<[1], [0], [0], [1], [0, 0, 1, 1], [], []>} : vector<160x128xbf16>, vector<128x128xbf16>, vector<160x128xf32> -> vector<160x128xf32>
    %c0_227 = arith.constant 0 : index
    %c0_228 = arith.constant 0 : index
    %320 = vector.load %arg10[%c0_227, %c0_228] : memref<1x128xf32, #tpu.memory_space<vmem>>, vector<1x128xf32>
    %321 = vector.broadcast %320 : vector<1x128xf32> to vector<160x128xf32>
    %322 = arith.addf %319, %321 : vector<160x128xf32>
    %323 = math.absf %322 : vector<160x128xf32>
    %cst_229 = arith.constant 0.000000e+00 : f32
    %324 = vector.broadcast %cst_229 : f32 to vector<160x128xf32>
    %325 = arith.subf %324, %323 : vector<160x128xf32>
    %326 = math.exp %325 : vector<160x128xf32>
    %327 = arith.mulf %326, %326 : vector<160x128xf32>
    %cst_230 = arith.constant 0.000000e+00 : f32
    %328 = vector.broadcast %cst_230 : f32 to vector<160x128xf32>
    %329 = arith.cmpf oge, %322, %328 : vector<160x128xf32>
    %cst_231 = arith.constant 2.000000e+00 : f32
    %330 = vector.broadcast %cst_231 : f32 to vector<160x128xf32>
    %331 = arith.mulf %330, %326 : vector<160x128xf32>
    %cst_232 = arith.constant 1.000000e+00 : f32
    %332 = vector.broadcast %cst_232 : f32 to vector<160x128xf32>
    %333 = arith.addf %332, %331 : vector<160x128xf32>
    %cst_233 = arith.constant 2.000000e+00 : f32
    %334 = vector.broadcast %cst_233 : f32 to vector<160x128xf32>
    %335 = arith.mulf %334, %326 : vector<160x128xf32>
    %336 = arith.addf %335, %327 : vector<160x128xf32>
    %337 = arith.select %329, %333, %336 : vector<160x128xi1>, vector<160x128xf32>
    %cst_234 = arith.constant 2.000000e+00 : f32
    %338 = vector.broadcast %cst_234 : f32 to vector<160x128xf32>
    %339 = arith.mulf %338, %326 : vector<160x128xf32>
    %cst_235 = arith.constant 1.000000e+00 : f32
    %340 = vector.broadcast %cst_235 : f32 to vector<160x128xf32>
    %341 = arith.addf %340, %339 : vector<160x128xf32>
    %cst_236 = arith.constant 2.000000e+00 : f32
    %342 = vector.broadcast %cst_236 : f32 to vector<160x128xf32>
    %343 = arith.mulf %342, %327 : vector<160x128xf32>
    %344 = arith.addf %341, %343 : vector<160x128xf32>
    %cst_237 = arith.constant 2.000000e+00 : f32
    %345 = vector.broadcast %cst_237 : f32 to vector<160x128xf32>
    %346 = arith.mulf %345, %326 : vector<160x128xf32>
    %cst_238 = arith.constant 2.000000e+00 : f32
    %347 = vector.broadcast %cst_238 : f32 to vector<160x128xf32>
    %348 = arith.addf %347, %346 : vector<160x128xf32>
    %349 = arith.addf %348, %327 : vector<160x128xf32>
    %350 = arith.select %329, %344, %349 : vector<160x128xi1>, vector<160x128xf32>
    %351 = arith.mulf %322, %337 : vector<160x128xf32>
    %352 = tpu.reciprocal %350 {approx = true} : vector<160x128xf32> -> vector<160x128xf32>
    %353 = arith.mulf %351, %352 : vector<160x128xf32>
    %354 = arith.truncf %353 : vector<160x128xf32> to vector<160x128xbf16>
    %c0_239 = arith.constant 0 : index
    %c0_240 = arith.constant 0 : index
    %c0_241 = arith.constant 0 : index
    %355 = vector.load %arg11[%c0_239, %c0_240, %c0_241] : memref<1x160x128xbf16, #tpu.memory_space<vmem>>, vector<1x160x128xbf16>
    %356 = vector.shape_cast %355 : vector<1x160x128xbf16> to vector<160x128xbf16>
    %357 = vector.shape_cast %354 : vector<160x128xbf16> to vector<1x160x128xbf16>
    tpu.vector_store %arg11[%c0_239, %c0_240, %c0_241], %357 {strides = array<i32>} : memref<1x160x128xbf16, #tpu.memory_space<vmem>>, vector<1x160x128xbf16>,
    return
  }
  func.func @transform_0(%arg0: i32) -> (i32, i32, i32) {
    %c0_i32 = arith.constant 0 : i32
    %c0_i32_0 = arith.constant 0 : i32
    %c0_i32_1 = arith.constant 0 : i32
    return %arg0, %c0_i32, %c0_i32_0 : i32, i32, i32
  }
  func.func @transform_1(%arg0: i32) -> (i32, i32) {
    %c0_i32 = arith.constant 0 : i32
    %c0_i32_0 = arith.constant 0 : i32
    %c0_i32_1 = arith.constant 0 : i32
    return %c0_i32, %c0_i32_0 : i32, i32
  }
  func.func @transform_2(%arg0: i32) -> (i32, i32) {
    %c0_i32 = arith.constant 0 : i32
    %c0_i32_0 = arith.constant 0 : i32
    %c0_i32_1 = arith.constant 0 : i32
    return %c0_i32, %c0_i32_0 : i32, i32
  }
  func.func @transform_3(%arg0: i32) -> (i32, i32) {
    %c0_i32 = arith.constant 0 : i32
    %c0_i32_0 = arith.constant 0 : i32
    %c0_i32_1 = arith.constant 0 : i32
    return %c0_i32, %c0_i32_0 : i32, i32
  }
  func.func @transform_4(%arg0: i32) -> (i32, i32, i32) {
    %c0_i32 = arith.constant 0 : i32
    %c0_i32_0 = arith.constant 0 : i32
    %c0_i32_1 = arith.constant 0 : i32
    %c0_i32_2 = arith.constant 0 : i32
    return %c0_i32, %c0_i32_0, %c0_i32_1 : i32, i32, i32
  }
  func.func @transform_5(%arg0: i32) -> (i32, i32, i32) {
    %c0_i32 = arith.constant 0 : i32
    %c0_i32_0 = arith.constant 0 : i32
    %c0_i32_1 = arith.constant 0 : i32
    %c0_i32_2 = arith.constant 0 : i32
    return %c0_i32, %c0_i32_0, %c0_i32_1 : i32, i32, i32
  }
  func.func @transform_6(%arg0: i32) -> (i32, i32, i32, i32) {
    %c0_i32 = arith.constant 0 : i32
    %c0_i32_0 = arith.constant 0 : i32
    %c0_i32_1 = arith.constant 0 : i32
    %c0_i32_2 = arith.constant 0 : i32
    %c0_i32_3 = arith.constant 0 : i32
    return %c0_i32, %c0_i32_0, %c0_i32_1, %c0_i32_2 : i32, i32, i32, i32
  }
  func.func @transform_7(%arg0: i32) -> (i32, i32, i32) {
    %c0_i32 = arith.constant 0 : i32
    %c0_i32_0 = arith.constant 0 : i32
    %c0_i32_1 = arith.constant 0 : i32
    %c0_i32_2 = arith.constant 0 : i32
    return %c0_i32, %c0_i32_0, %c0_i32_1 : i32, i32, i32
  }
  func.func @transform_8(%arg0: i32) -> (i32, i32) {
    %c0_i32 = arith.constant 0 : i32
    %c0_i32_0 = arith.constant 0 : i32
    %c0_i32_1 = arith.constant 0 : i32
    return %c0_i32, %c0_i32_0 : i32, i32
  }
  func.func @transform_9(%arg0: i32) -> (i32, i32) {
    %c0_i32 = arith.constant 0 : i32
    %c0_i32_0 = arith.constant 0 : i32
    %c0_i32_1 = arith.constant 0 : i32
    return %c0_i32, %c0_i32_0 : i32, i32
  }
  func.func @transform_10(%arg0: i32) -> (i32, i32, i32) {
    %c0_i32 = arith.constant 0 : i32
    %c0_i32_0 = arith.constant 0 : i32
    %c0_i32_1 = arith.constant 0 : i32
    return %arg0, %c0_i32, %c0_i32_0 : i32, i32, i32
  }
  func.func @transform_11(%arg0: i32) -> (i32, i32, i32) {
    %c0_i32 = arith.constant 0 : i32
    %c0_i32_0 = arith.constant 0 : i32
    %c0_i32_1 = arith.constant 0 : i32
    return %arg0, %c0_i32, %c0_i32_0 : i32, i32, i32
  }
}

</mosaic_0001>

<bundles_post_ra>
// kernel: csp_res_block_forward.2
= control target key start
LH: loop header
LB: loop body
LE: loop exit
PB: predicated region body
PF: predicated region fallthrough
CT: control target
= control target key end

     0   :  { %s1012_s1 = inlined_call_operand.vmem [shape: bf16[128,128], index: 1, kind: input, shape index: {}]   ;;  %s1013_s2 = inlined_call_operand.vmem [shape: f32[1,128], index: 2, kind: input, shape index: {}]   ;;  %s1014_s0 = inlined_call_operand.vmem [shape: bf16[128,128], index: 0, kind: input, shape index: {}]   ;;  %s1015_s3 = inlined_call_operand.vmem [shape: bf16[128,128], index: 3, kind: output, shape index: {}]  }
   0x1   :  { %v598_v0 = vld [vmem:[%s1012_s1 + $0x38] sm:$0xff]  ;;  %v597_v1 = vld [vmem:[%s1012_s1 + $0x30] sm:$0xff]  ;;  %v596_v2 = vld [vmem:[%s1012_s1 + $0x28] sm:$0xff] }
   0x2   :  { %146 = vmatpush.bf16.msra.mxu0 %v598_v0  ;;  %646 = vmatpush.bf16.msra.mxu1 %v598_v0  ;;  %v595_v3 = vld [vmem:[%s1012_s1 + $0x20] sm:$0xff]  ;;  %v594_v4 = vld [vmem:[%s1012_s1 + $0x18] sm:$0xff]  ;;  %v593_v5 = vld [vmem:[%s1012_s1 + $0x10] sm:$0xff] }
   0x3   :  { %647 = vmatpush.bf16.msra.mxu2 %v598_v0  ;;  %648 = vmatpush.bf16.msra.mxu3 %v598_v0  ;;  %v592_v6 = vld [vmem:[%s1012_s1 + $0x8] sm:$0xff]  ;;  %v591_v7 = vld [vmem:[%s1012_s1] sm:$0xff]  ;;  %v585_v9 = vld [vmem:[%s1014_s0 + $0x10] sm:$0xff] }
   0x4   :  { %v583_v8 = vld [vmem:[%s1014_s0] sm:$0xff]  ;;  %v589_v11 = vld [vmem:[%s1014_s0 + $0x30] sm:$0xff]  ;;  %v584_v12 = vld [vmem:[%s1014_s0 + $0x8] sm:$0xff] }
   0x5   :  { %v587_v10 = vld [vmem:[%s1014_s0 + $0x20] sm:$0xff]  ;;  %v586_v13 = vld [vmem:[%s1014_s0 + $0x18] sm:$0xff]  ;;  %v588_v14 = vld [vmem:[%s1014_s0 + $0x28] sm:$0xff] }
   0x6   :  { %147 = vmatpush.bf16.msra.mxu0 %v597_v1  ;;  %649 = vmatpush.bf16.msra.mxu1 %v597_v1  ;;  %v590_v15 = vld [vmem:[%s1014_s0 + $0x38] sm:$0xff]  ;;  %v806_v16 = vld [vmem:[%s1013_s2] ss:$0 sm:$0xff] }
   0x7   :  { %650 = vmatpush.bf16.msra.mxu2 %v597_v1  ;;  %651 = vmatpush.bf16.msra.mxu3 %v597_v1 }
   0xa   :  { %148 = vmatpush.bf16.msra.mxu0 %v596_v2  ;;  %652 = vmatpush.bf16.msra.mxu1 %v596_v2 }
   0xb   :  { %653 = vmatpush.bf16.msra.mxu2 %v596_v2  ;;  %654 = vmatpush.bf16.msra.mxu3 %v596_v2 }
   0xe   :  { %149 = vmatpush.bf16.msra.mxu0 %v595_v3  ;;  %655 = vmatpush.bf16.msra.mxu1 %v595_v3 }
   0xf   :  { %656 = vmatpush.bf16.msra.mxu2 %v595_v3  ;;  %657 = vmatpush.bf16.msra.mxu3 %v595_v3 }
  0x12   :  { %150 = vmatpush.bf16.msra.mxu0 %v594_v4  ;;  %658 = vmatpush.bf16.msra.mxu1 %v594_v4 }
  0x13   :  { %659 = vmatpush.bf16.msra.mxu2 %v594_v4  ;;  %660 = vmatpush.bf16.msra.mxu3 %v594_v4 }
  0x16   :  { %151 = vmatpush.bf16.msra.mxu0 %v593_v5  ;;  %661 = vmatpush.bf16.msra.mxu1 %v593_v5 }
  0x17   :  { %662 = vmatpush.bf16.msra.mxu2 %v593_v5  ;;  %663 = vmatpush.bf16.msra.mxu3 %v593_v5 }
  0x1a   :  { %152 = vmatpush.bf16.msra.mxu0 %v592_v6  ;;  %664 = vmatpush.bf16.msra.mxu1 %v592_v6 }
  0x1b   :  { %665 = vmatpush.bf16.msra.mxu2 %v592_v6  ;;  %666 = vmatpush.bf16.msra.mxu3 %v592_v6 }
  0x1e   :  { %153 = vmatpush.bf16.msra.mxu0 %v591_v7  ;;  %667 = vmatpush.bf16.msra.mxu1 %v591_v7 }
  0x1f   :  { %668 = vmatpush.bf16.msra.mxu2 %v591_v7  ;;  %669 = vmatpush.bf16.msra.mxu3 %v591_v7 }
  0x21   :  { %154 = vmatmul.bf16.vlgmr.msra.gmra.mxu0 %v583_v8  ;;  %164 = vmatmul.bf16.vlgmr.msra.gmra.mxu1 %v585_v9 }
  0x22   :  { %174 = vmatmul.bf16.vlgmr.msra.gmra.mxu2 %v587_v10  ;;  %184 = vmatmul.bf16.vlgmr.msra.gmra.mxu3 %v589_v11 }
  0x31   :  { %159 = vmatmul.bf16.gmra.mxu0 %v584_v12  ;;  %169 = vmatmul.bf16.gmra.mxu1 %v586_v13 }
  0x32   :  { %179 = vmatmul.bf16.gmra.mxu2 %v588_v14  ;;  %189 = vmatmul.bf16.gmra.mxu3 %v590_v15 }
  0x9e   :  { %v155_v17 = vpop.f32.mrf.mxu0  ;;  %v165_v18 = vpop.f32.mrf.mxu1 }
  0x9f   :  { %v809_v19 = vadd.f32 %v806_v16, %v155_v17  ;;  %v812_v20 = vadd.f32 %v806_v16, %v165_v18 }
  0xa1   :  { %v195_v21 = vand.u32 2147483647, %v809_v19  ;;  %v199_v22 = vand.u32 2147483647, %v812_v20  ;;  %vm275_vm0 = vcmp.ge.f32.partialorder %v809_v19, 0.0  ;;  %vm279_vm1 = vcmp.ge.f32.partialorder %v812_v20, 0.0 }
  0xa3   :  { %v211_v23 = vsub.f32 0.0, %v195_v21  ;;  %v215_v24 = vsub.f32 0.0, %v199_v22 }
  0xa5   :  { %v227_v25 = vmul.f32 1.442695, %v211_v23  ;;  %v235_v26 = vmul.f32 1.442695, %v215_v24  ;;  %v175_v27 = vpop.f32.mrf.mxu2  ;;  %v185_v28 = vpop.f32.mrf.mxu3 }
  0xa6   :  { %v817_v29 = vadd.f32 %v806_v16, %v175_v27  ;;  %v820_v30 = vadd.f32 %v806_v16, %v185_v28  ;;  %v157_v31 = vpop.f32.mrf.mxu0  ;;  %v167_v32 = vpop.f32.mrf.mxu1 }
  0xa7   :  { %671 = vpow2.f32 %v227_v25  ;;  %v823_v33 = vadd.f32 %v806_v16, %v157_v31  ;;  %v826_v34 = vadd.f32 %v806_v16, %v167_v32 }
  0xa8   :  { %673 = vpow2.f32 %v235_v26  ;;  %v203_v35 = vand.u32 2147483647, %v817_v29  ;;  %v207_v36 = vand.u32 2147483647, %v820_v30  ;;  %vm283_vm3 = vcmp.ge.f32.partialorder %v817_v29, 0.0 }
  0xa9   :  { %v196_v37 = vand.u32 2147483647, %v823_v33  ;;  %v200_v38 = vand.u32 2147483647, %v826_v34  ;;  %vm276_vm2 = vcmp.ge.f32.partialorder %v823_v33, 0.0  ;;  %vm280_vm4 = vcmp.ge.f32.partialorder %v826_v34, 0.0 }
  0xaa   :  { %v219_v39 = vsub.f32 0.0, %v203_v35  ;;  %v223_v40 = vsub.f32 0.0, %v207_v36  ;;  %vm287_vm5 = vcmp.ge.f32.partialorder %v820_v30, 0.0 }
  0xab   :  { %v212_v41 = vsub.f32 0.0, %v196_v37  ;;  %v216_v43 = vsub.f32 0.0, %v200_v38 }
  0xac   :  { %v243_v42 = vmul.f32 1.442695, %v219_v39  ;;  %v251_v45 = vmul.f32 1.442695, %v223_v40 }
  0xad   :  { %v672_v44 = vpop.eup %671  ;;  %v229_v49 = vmul.f32 1.442695, %v212_v41  ;;  %v177_v50 = vpop.f32.mrf.mxu2  ;;  %v237_v56 = vmul.f32 1.442695, %v216_v43 }
  0xae   :  { %v674_v46 = vpop.eup %673  ;;  %v259_v47 = vmul.f32 %v672_v44, %v672_v44  ;;  %v291_v48 = vmul.f32 2.0, %v672_v44  ;;  %675 = vpow2.f32 %v243_v42  ;;  %v833_v57 = vadd.f32 %v806_v16, %v177_v50  ;;  %v187_v4 = vpop.f32.mrf.mxu3 }
  0xaf   :  { %v263_v51 = vmul.f32 %v674_v46, %v674_v46  ;;  %v295_v52 = vmul.f32 2.0, %v674_v46  ;;  %677 = vpow2.f32 %v251_v45  ;;  %v840_v13 = vadd.f32 %v806_v16, %v187_v4  ;;  %v160_v39 = vpop.f32.mrf.mxu0 }
  0xb0   :  { %v307_v53 = vadd.f32 1.0, %v291_v48  ;;  %v355_v54 = vmul.f32 2.0, %v259_v47  ;;  %v387_v55 = vadd.f32 2.0, %v291_v48  ;;  %679 = vpow2.f32 %v229_v49 }
  0xb1   :  { %v311_v58 = vadd.f32 1.0, %v295_v52  ;;  %v359_v59 = vmul.f32 2.0, %v263_v51  ;;  %v391_v60 = vadd.f32 2.0, %v295_v52  ;;  %v323_v61 = vadd.f32 %v291_v48, %v259_v47 }
  0xb2   :  { %v371_v62 = vadd.f32 %v355_v54, %v307_v53  ;;  %v403_v63 = vadd.f32 %v387_v55, %v259_v47  ;;  %681 = vpow2.f32 %v237_v56  ;;  %v204_v3 = vand.u32 2147483647, %v833_v57  ;;  %v170_v56 = vpop.f32.mrf.mxu1 }
  0xb3   :  { %v375_v1 = vadd.f32 %v359_v59, %v311_v58  ;;  %v407_v2 = vadd.f32 %v391_v60, %v263_v51  ;;  %v339_v6 = vsel %vm275_vm0, %v307_v53, %v323_v61  ;;  %v327_v11 = vadd.f32 %v295_v52, %v263_v51 }
  0xb4   :  { %v676_v0 = vpop.eup %675  ;;  %v419_v7 = vsel %vm275_vm0, %v371_v62, %v403_v63  ;;  %v435_v15 = vmul.f32 %v339_v6, %v809_v19  ;;  %v220_v18 = vsub.f32 0.0, %v204_v3  ;;  %v208_v43 = vand.u32 2147483647, %v840_v13 }
  0xb5   :  { %v678_v5 = vpop.eup %677  ;;  %v267_v9 = vmul.f32 %v676_v0, %v676_v0  ;;  %v299_v10 = vmul.f32 2.0, %v676_v0  ;;  %683 = vrcp.f32 %v419_v7  ;;  %v423_v17 = vsel %vm279_vm1, %v375_v1, %v407_v2 }
  0xb6   :  { %v680_v8 = vpop.eup %679  ;;  %v846_v21 = vmul.f32 %v678_v5, %v678_v5  ;;  %v848_v22 = vmul.f32 2.0, %v678_v5  ;;  %v343_v19 = vsel %vm279_vm1, %v311_v58, %v327_v11  ;;  %685 = vrcp.f32 %v423_v17  ;;  %v180_v58 = vpop.f32.mrf.mxu2 }
  0xb7   :  { %v260_v12 = vmul.f32 %v680_v8, %v680_v8  ;;  %v292_v23 = vmul.f32 2.0, %v680_v8  ;;  %v315_v25 = vadd.f32 1.0, %v299_v10  ;;  %v363_v26 = vmul.f32 2.0, %v267_v9 }
  0xb8   :  { %v682_v14 = vpop.eup %681  ;;  %v395_v27 = vadd.f32 2.0, %v299_v10  ;;  %v331_v31 = vadd.f32 %v299_v10, %v267_v9  ;;  %v245_v38 = vmul.f32 1.442695, %v220_v18  ;;  %v854_v40 = vadd.f32 1.0, %v848_v22 }
  0xb9   :  { %v356_v24 = vmul.f32 2.0, %v260_v12  ;;  %v264_v28 = vmul.f32 %v682_v14, %v682_v14  ;;  %v308_v32 = vadd.f32 1.0, %v292_v23  ;;  %v388_v35 = vadd.f32 2.0, %v292_v23 }
  0xba   :  { %v296_v36 = vmul.f32 2.0, %v682_v14  ;;  %v367_v41 = vmul.f32 2.0, %v846_v21  ;;  %v379_v45 = vadd.f32 %v363_v26, %v315_v25  ;;  %v411_v46 = vadd.f32 %v395_v27, %v267_v9  ;;  %v190_v14 = vpop.f32.mrf.mxu3 }
  0xbb   :  { %v360_v37 = vmul.f32 2.0, %v264_v28  ;;  %v372_v42 = vadd.f32 %v356_v24, %v308_v32  ;;  %v684_v44 = vpop.eup %683  ;;  %v404_v47 = vadd.f32 %v388_v35, %v260_v12  ;;  %v324_v49 = vadd.f32 %v292_v23, %v260_v12 }
  0xbc   :  { %v312_v48 = vadd.f32 1.0, %v296_v36  ;;  %v392_v50 = vadd.f32 2.0, %v296_v36  ;;  %687 = vpow2.f32 %v245_v38  ;;  %v224_v51 = vsub.f32 0.0, %v208_v43  ;;  %v686_v59 = vpop.eup %685 }
  0xbd   :  { %v420_v52 = vsel %vm276_vm2, %v372_v42, %v404_v47  ;;  %v328_v53 = vadd.f32 %v296_v36, %v264_v28  ;;  %v861_v55 = vadd.f32 %v806_v16, %v160_v39  ;;  %v439_v60 = vmul.f32 %v343_v19, %v812_v20  ;;  %v172_v47 = vpop.f32.mrf.mxu1 }
  0xbe   :  { %v376_v54 = vadd.f32 %v360_v37, %v312_v48  ;;  %v399_v61 = vadd.f32 2.0, %v848_v22  ;;  %689 = vrcp.f32 %v420_v52  ;;  %v408_v62 = vadd.f32 %v392_v50, %v264_v28 }
  0xbf   :  { %v868_v63 = vsel %vm283_vm3, %v315_v25, %v331_v31  ;;  %v383_v0 = vadd.f32 %v367_v41, %v854_v40  ;;  %v253_v1 = vmul.f32 1.442695, %v224_v51  ;;  %v197_v2 = vand.u32 2147483647, %v861_v55  ;;  %v162_v25 = vpop.f32.mrf.mxu0 }
  0xc0   :  { %v340_v3 = vsel %vm276_vm2, %v308_v32, %v324_v49  ;;  %v424_v20 = vsel %vm280_vm4, %v376_v54, %v408_v62  ;;  %v877_v4 = vadd.f32 %v806_v16, %v170_v56  ;;  %v880_v5 = vadd.f32 %v806_v16, %v180_v58 }
  0xc1   :  { %v427_v6 = vsel %vm283_vm3, %v379_v45, %v411_v46  ;;  %v344_v7 = vsel %vm280_vm4, %v312_v48, %v328_v53  ;;  %691 = vrcp.f32 %v424_v20  ;;  %v213_v8 = vsub.f32 0.0, %v197_v2 }
  0xc2   :  { %v688_v9 = vpop.eup %687  ;;  %v467_v10 = vmul.f32 %v684_v44, %v435_v15  ;;  %v415_v11 = vadd.f32 %v399_v61, %v846_v21  ;;  %693 = vpow2.f32 %v253_v1  ;;  %v201_v12 = vand.u32 2147483647, %v877_v4 }
  0xc3   :  { %v436_v17 = vmul.f32 %v340_v3, %v823_v33  ;;  %v268_v18 = vmul.f32 %v688_v9, %v688_v9  ;;  %v300_v23 = vmul.f32 2.0, %v688_v9  ;;  %v231_v24 = vmul.f32 1.442695, %v213_v8 }
  0xc4   :  { %v690_v26 = vpop.eup %689  ;;  %695 = vrcp.f32 %v427_v6  ;;  %v440_v27 = vmul.f32 %v344_v7, %v826_v34  ;;  %v217_v28 = vsub.f32 0.0, %v201_v12  ;;  %v205_v19 = vand.u32 2147483647, %v880_v5 }
  0xc5   :  { %v468_v15 = vmul.f32 %v690_v26, %v436_v17  ;;  %v316_v31 = vadd.f32 1.0, %v300_v23  ;;  %v364_v32 = vmul.f32 2.0, %v268_v18  ;;  %v892_v35 = vadd.f32 %v806_v16, %v190_v14 }
  0xc6   :  { %v396_v36 = vadd.f32 2.0, %v300_v23  ;;  %697 = vpow2.f32 %v231_v24  ;;  %v239_v33 = vmul.f32 1.442695, %v217_v28  ;;  %v895_v37 = vadd.f32 %v806_v16, %v162_v25 }
  0xc7   :  { %v692_v38 = vpop.eup %691  ;;  %v471_v39 = vmul.f32 %v686_v59, %v439_v60  ;;  %v431_v34 = vsel %vm287_vm5, %v383_v0, %v415_v11  ;;  %v602_v41 = vpack.c.bf16 %v468_v15, %v467_v10  ;;  %v380_v42 = vadd.f32 %v364_v32, %v316_v31 }
  0xc8   :  { %v694_v43 = vpop.eup %693  ;;  %v472_v44 = vmul.f32 %v692_v38, %v440_v27  ;;  %vm284_vm6 = vcmp.ge.f32.partialorder %v833_v57, 0.0  ;;  %v412_v45 = vadd.f32 %v396_v36, %v268_v18  ;;  %v221_v46 = vsub.f32 0.0, %v205_v19 }
  0xc9   :  { %603 = vst [vmem:[%s1015_s3] sm:$0xff] %v602_v41   ;;  %v332_v48 = vadd.f32 %v300_v23, %v268_v18  ;;  %v272_v49 = vmul.f32 %v694_v43, %v694_v43  ;;  %v304_v50 = vmul.f32 2.0, %v694_v43  ;;  %v209_v51 = vand.u32 2147483647, %v892_v35 }
  0xca   :  { %v696_v52 = vpop.eup %695  ;;  %v612_v53 = vpack.c.bf16 %v472_v44, %v471_v39  ;;  %v428_v54 = vsel %vm284_vm6, %v380_v42, %v412_v45  ;;  %699 = vpow2.f32 %v239_v33  ;;  %v198_v56 = vand.u32 2147483647, %v895_v37 }
  0xcb   :  { %701 = vrcp.f32 %v428_v54  ;;  %v320_v58 = vadd.f32 1.0, %v304_v50  ;;  %v368_v59 = vmul.f32 2.0, %v272_v49  ;;  %v908_v60 = vadd.f32 %v806_v16, %v172_v47  ;;  %v182_v47 = vpop.f32.mrf.mxu2 }
  0xcc   :  { %v698_v61 = vpop.eup %697  ;;  %v335_v62 = vadd.f32 %v848_v22, %v846_v21  ;;  %640 = vst [vmem:[%s1015_s3 + $0x10] sm:$0xff] %v612_v53   ;;  %v400_v0 = vadd.f32 2.0, %v304_v50  ;;  %v247_v1 = vmul.f32 1.442695, %v221_v46  ;;  %v443_v2 = vmul.f32 %v868_v63, %v817_v29 }
  0xcd   :  { %703 = vrcp.f32 %v431_v34  ;;  %v348_v3 = vsel %vm284_vm6, %v316_v31, %v332_v48  ;;  %v384_v20 = vadd.f32 %v368_v59, %v320_v58  ;;  %v336_v6 = vadd.f32 %v304_v50, %v272_v49 }
  0xce   :  { %v416_v7 = vadd.f32 %v400_v0, %v272_v49  ;;  %v225_v8 = vsub.f32 0.0, %v209_v51  ;;  %v214_v9 = vsub.f32 0.0, %v198_v56  ;;  %vm288_vm7 = vcmp.ge.f32.partialorder %v840_v13, 0.0  ;;  %v192_v49 = vpop.f32.mrf.mxu3 }
  0xcf   :  { %v261_v21 = vmul.f32 %v698_v61, %v698_v61  ;;  %v293_v22 = vmul.f32 2.0, %v698_v61  ;;  %v202_v10 = vand.u32 2147483647, %v908_v60  ;;  %v444_v12 = vmul.f32 %v348_v3, %v833_v57 }
  0xd0   :  { %v700_v11 = vpop.eup %699  ;;  %v432_v14 = vsel %vm288_vm7, %v384_v20, %v416_v7  ;;  %705 = vpow2.f32 %v247_v1  ;;  %v475_v63 = vmul.f32 %v696_v52, %v443_v2  ;;  %v351_v17 = vsel %vm287_vm5, %v854_v40, %v335_v62 }
  0xd1   :  { %v702_v29 = vpop.eup %701  ;;  %707 = vrcp.f32 %v432_v14  ;;  %v352_v23 = vsel %vm288_vm7, %v320_v58, %v336_v6  ;;  %v255_v24 = vmul.f32 1.442695, %v225_v8  ;;  %v233_v25 = vmul.f32 1.442695, %v214_v9 }
  0xd2   :  { %v476_v18 = vmul.f32 %v702_v29, %v444_v12  ;;  %v309_v27 = vadd.f32 1.0, %v293_v22  ;;  %v357_v28 = vmul.f32 2.0, %v261_v21  ;;  %v389_v19 = vadd.f32 2.0, %v293_v22 }
  0xd3   :  { %v704_v26 = vpop.eup %703  ;;  %v218_v15 = vsub.f32 0.0, %v202_v10  ;;  %v447_v57 = vmul.f32 %v351_v17, %v820_v30  ;;  %v265_v32 = vmul.f32 %v700_v11, %v700_v11  ;;  %v297_v36 = vmul.f32 2.0, %v700_v11 }
  0xd4   :  { %v622_v31 = vpack.c.bf16 %v476_v18, %v475_v63  ;;  %v448_v40 = vmul.f32 %v352_v23, %v840_v13  ;;  %709 = vpow2.f32 %v255_v24  ;;  %v373_v34 = vadd.f32 %v357_v28, %v309_v27 }
  0xd5   :  { %v479_v38 = vmul.f32 %v704_v26, %v447_v57  ;;  %v405_v41 = vadd.f32 %v389_v19, %v261_v21  ;;  %711 = vpow2.f32 %v233_v25  ;;  %v241_v42 = vmul.f32 1.442695, %v218_v15 }
  0xd6   :  { %v706_v33 = vpop.eup %705  ;;  %642 = vst [vmem:[%s1015_s3 + $0x20] sm:$0xff] %v622_v31   ;;  %v930_v44 = vadd.f32 1.0, %v297_v36  ;;  %v361_v30 = vmul.f32 2.0, %v265_v32  ;;  %v393_v45 = vadd.f32 2.0, %v297_v36  ;;  %v325_v46 = vadd.f32 %v293_v22, %v261_v21 }
  0xd7   :  { %v708_v39 = vpop.eup %707  ;;  %713 = vpow2.f32 %v241_v42  ;;  %vm277_vm8 = vcmp.ge.f32.partialorder %v861_v55, 0.0  ;;  %vm281_vm9 = vcmp.ge.f32.partialorder %v877_v4, 0.0  ;;  %v934_v13 = vmul.f32 %v706_v33, %v706_v33 }
  0xd8   :  { %v480_v43 = vmul.f32 %v708_v39, %v448_v40  ;;  %v421_v51 = vsel %vm277_vm8, %v373_v34, %v405_v41  ;;  %v377_v52 = vadd.f32 %v361_v30, %v930_v44  ;;  %v409_v53 = vadd.f32 %v393_v45, %v265_v32 }
  0xd9   :  { %v941_v54 = vadd.f32 %v806_v16, %v182_v47  ;;  %v341_v58 = vsel %vm277_vm8, %v309_v27, %v325_v46  ;;  %v329_v59 = vadd.f32 %v297_v36, %v265_v32  ;;  %vm278_vm10 = vcmp.ge.f32.partialorder %v895_v37, 0.0 }
  0xda   :  { %v632_v48 = vpack.c.bf16 %v480_v43, %v479_v38  ;;  %v710_v50 = vpop.eup %709  ;;  %v945_v61 = vadd.f32 %v806_v16, %v192_v49  ;;  %v301_v62 = vmul.f32 2.0, %v706_v33  ;;  %715 = vrcp.f32 %v421_v51 }
  0xdb   :  { %v712_v56 = vpop.eup %711  ;;  %v206_v2 = vand.u32 2147483647, %v941_v54  ;;  %v365_v3 = vmul.f32 2.0, %v934_v13  ;;  %v949_v20 = vmul.f32 2.0, %v710_v50  ;;  %v425_v8 = vsel %vm281_vm9, %v377_v52, %v409_v53 }
  0xdc   :  { %644 = vst [vmem:[%s1015_s3 + $0x30] sm:$0xff] %v632_v48   ;;  %v262_v0 = vmul.f32 %v712_v56, %v712_v56  ;;  %v294_v1 = vmul.f32 2.0, %v712_v56  ;;  %v210_v6 = vand.u32 2147483647, %v945_v61  ;;  %v954_v14 = vadd.f32 1.0, %v301_v62 }
  0xdd   :  { %v714_v7 = vpop.eup %713  ;;  %v222_v11 = vsub.f32 0.0, %v206_v2  ;;  %v956_v29 = vmul.f32 %v710_v50, %v710_v50  ;;  %717 = vrcp.f32 %v425_v8  ;;  %v397_v15 = vadd.f32 2.0, %v301_v62 }
  0xde   :  { %v310_v9 = vadd.f32 1.0, %v294_v1  ;;  %v358_v21 = vmul.f32 2.0, %v262_v0  ;;  %v390_v16 = vadd.f32 2.0, %v294_v1  ;;  %v266_v22 = vmul.f32 %v714_v7, %v714_v7 }
  0xdf   :  { %v298_v10 = vmul.f32 2.0, %v714_v7  ;;  %v226_v12 = vsub.f32 0.0, %v210_v6  ;;  %v326_v18 = vadd.f32 %v294_v1, %v262_v0  ;;  %v249_v27 = vmul.f32 1.442695, %v222_v11 }
  0xe0   :  { %v374_v63 = vadd.f32 %v358_v21, %v310_v9  ;;  %v406_v17 = vadd.f32 %v390_v16, %v262_v0  ;;  %v362_v24 = vmul.f32 2.0, %v266_v22  ;;  %v716_v19 = vpop.eup %715  ;;  %v961_v57 = vadd.f32 1.0, %v949_v20 }
  0xe1   :  { %v314_v23 = vadd.f32 1.0, %v298_v10  ;;  %v394_v26 = vadd.f32 2.0, %v298_v10  ;;  %v257_v28 = vmul.f32 1.442695, %v226_v12  ;;  %v369_v32 = vmul.f32 2.0, %v956_v29 }
  0xe2   :  { %v422_v25 = vsel %vm278_vm10, %v374_v63, %v406_v17  ;;  %v401_v36 = vadd.f32 2.0, %v949_v20  ;;  %v342_v38 = vsel %vm278_vm10, %v310_v9, %v326_v18  ;;  %vm282_vm11 = vcmp.ge.f32.partialorder %v908_v60, 0.0 }
  0xe3   :  { %719 = vrcp.f32 %v422_v25  ;;  %v378_v31 = vadd.f32 %v362_v24, %v314_v23  ;;  %v410_v33 = vadd.f32 %v394_v26, %v266_v22  ;;  %v330_v40 = vadd.f32 %v298_v10, %v266_v22  ;;  %v718_v34 = vpop.eup %717 }
  0xe4   :  { %721 = vpow2.f32 %v249_v27  ;;  %v345_v41 = vsel %vm281_vm9, %v930_v44, %v329_v59  ;;  %v381_v42 = vadd.f32 %v365_v3, %v954_v14  ;;  %v413_v43 = vadd.f32 %v397_v15, %v934_v13 }
  0xe5   :  { %723 = vpow2.f32 %v257_v28  ;;  %v426_v39 = vsel %vm282_vm11, %v378_v31, %v410_v33  ;;  %v437_v30 = vmul.f32 %v341_v58, %v861_v55  ;;  %v438_v45 = vmul.f32 %v342_v38, %v895_v37 }
  0xe6   :  { %725 = vrcp.f32 %v426_v39  ;;  %vm285_vm12 = vcmp.ge.f32.partialorder %v880_v5, 0.0  ;;  %v385_v47 = vadd.f32 %v369_v32, %v961_v57  ;;  %v417_v48 = vadd.f32 %v401_v36, %v956_v29 }
  0xe7   :  { %v346_v49 = vsel %vm282_vm11, %v314_v23, %v330_v40  ;;  %v469_v51 = vmul.f32 %v716_v19, %v437_v30  ;;  %v441_v44 = vmul.f32 %v345_v41, %v877_v4  ;;  %vm289_vm13 = vcmp.ge.f32.partialorder %v892_v35, 0.0 }
  0xe8   :  { %v333_v55 = vadd.f32 %v301_v62, %v934_v13  ;;  %v429_v37 = vsel %vm285_vm12, %v381_v42, %v413_v43  ;;  %v442_v0 = vmul.f32 %v346_v49, %v908_v60  ;;  %v433_v4 = vsel %vm289_vm13, %v385_v47, %v417_v48 }
  0xe9   :  { %v720_v46 = vpop.eup %719  ;;  %v473_v9 = vmul.f32 %v718_v34, %v441_v44  ;;  %727 = vrcp.f32 %v429_v37  ;;  %vm286_vm14 = vcmp.ge.f32.partialorder %v941_v54, 0.0  ;;  %v337_v18 = vadd.f32 %v949_v20, %v956_v29 }
  0xea   :  { %v722_v50 = vpop.eup %721  ;;  %v470_v52 = vmul.f32 %v720_v46, %v438_v45  ;;  %729 = vrcp.f32 %v433_v4  ;;  %vm290_vm15 = vcmp.ge.f32.partialorder %v945_v61, 0.0  ;;  %v349_v25 = vsel %vm285_vm12, %v954_v14, %v333_v55 }
  0xeb   :  { %v724_v53 = vpop.eup %723  ;;  %v270_v56 = vmul.f32 %v722_v50, %v722_v50  ;;  %v302_v58 = vmul.f32 2.0, %v722_v50  ;;  %v353_v20 = vsel %vm289_vm13, %v961_v57, %v337_v18  ;;  %v445_v19 = vmul.f32 %v349_v25, %v880_v5 }
  0xec   :  { %v607_v59 = vpack.c.bf16 %v470_v52, %v469_v51  ;;  %v274_v1 = vmul.f32 %v724_v53, %v724_v53  ;;  %v306_v2 = vmul.f32 2.0, %v724_v53  ;;  %v726_v3 = vpop.eup %725  ;;  %v449_v36 = vmul.f32 %v353_v20, %v892_v35 }
  0xed   :  { %v318_v6 = vadd.f32 1.0, %v302_v58  ;;  %v366_v7 = vmul.f32 2.0, %v270_v56  ;;  %v398_v8 = vadd.f32 2.0, %v302_v58  ;;  %v474_v13 = vmul.f32 %v726_v3, %v442_v0 }
  0xee   :  { %639 = vst [vmem:[%s1015_s3 + $0x8] sm:$0xff] %v607_v59   ;;  %v322_v62 = vadd.f32 1.0, %v306_v2  ;;  %v370_v21 = vmul.f32 2.0, %v274_v1  ;;  %v402_v22 = vadd.f32 2.0, %v306_v2  ;;  %v334_v11 = vadd.f32 %v302_v58, %v270_v56 }
  0xef   :  { %v382_v16 = vadd.f32 %v366_v7, %v318_v6  ;;  %v414_v60 = vadd.f32 %v398_v8, %v270_v56  ;;  %v617_v10 = vpack.c.bf16 %v474_v13, %v473_v9  ;;  %v338_v23 = vadd.f32 %v306_v2, %v274_v1  ;;  %v728_v27 = vpop.eup %727 }
  0xf0   :  { %v386_v12 = vadd.f32 %v370_v21, %v322_v62  ;;  %v418_v17 = vadd.f32 %v402_v22, %v274_v1  ;;  %v350_v26 = vsel %vm286_vm14, %v318_v6, %v334_v11  ;;  %v730_v28 = vpop.eup %729  ;;  %v477_v32 = vmul.f32 %v728_v27, %v445_v19 }
  0xf1   :  { %v430_v63 = vsel %vm286_vm14, %v382_v16, %v414_v60  ;;  %641 = vst [vmem:[%s1015_s3 + $0x18] sm:$0xff] %v617_v10   ;;  %v354_v29 = vsel %vm290_vm15, %v322_v62, %v338_v23  ;;  %v446_v15 = vmul.f32 %v350_v26, %v941_v54  ;;  %v481_v40 = vmul.f32 %v730_v28, %v449_v36 }
  0xf2   :  { %731 = vrcp.f32 %v430_v63  ;;  %v434_v24 = vsel %vm290_vm15, %v386_v12, %v418_v17  ;;  %v450_v14 = vmul.f32 %v354_v29, %v945_v61 }
  0xf3   :  { %733 = vrcp.f32 %v434_v24 }
  0xf8   :  { %v732_v31 = vpop.eup %731 }
  0xf9   :  { %v478_v33 = vmul.f32 %v732_v31, %v446_v15  ;;  %v734_v38 = vpop.eup %733 }
  0xfa   :  { %v482_v34 = vmul.f32 %v734_v38, %v450_v14 }
  0xfb   :  { %v627_v39 = vpack.c.bf16 %v478_v33, %v477_v32 }
  0xfc   :  { %v637_v57 = vpack.c.bf16 %v482_v34, %v481_v40 }
  0xfd   :  { %643 = vst [vmem:[%s1015_s3 + $0x28] sm:$0xff] %v627_v39  }
  0xfe   :  { %645 = vst [vmem:[%s1015_s3 + $0x38] sm:$0xff] %v637_v57  }

// kernel: csp_res_block_forward.3
= control target key start
LH: loop header
LB: loop body
LE: loop exit
PB: predicated region body
PF: predicated region fallthrough
CT: control target
= control target key end

     0   :  { %s12825_s17 = smov 0   ;;  %s15885_s0 = inlined_call_operand.vmem [shape: bf16[2,160,128], index: 0, kind: input, shape index: {}]   ;;  %s15886_s1 = inlined_call_operand.vmem [shape: f32[160,1], index: 1, kind: input, shape index: {}]   ;;  %s15887_s2 = inlined_call_operand.vmem [shape: bf16[128,256], index: 2, kind: input, shape index: {}]   ;;  %s15888_s3 = inlined_call_operand.vmem [shape: f32[1,256], index: 3, kind: input, shape index: {}]   ;;  %s15889_s4 = inlined_call_operand.vmem [shape: bf16[2,128,128], index: 4, kind: input, shape index: {}]   ;;  %s15890_s5 = inlined_call_operand.vmem [shape: f32[2,1,128], index: 5, kind: input, shape index: {}]   ;;  %s15891_s6 = inlined_call_operand.vmem [shape: bf16[2,9,128,128], index: 6, kind: input, shape index: {}]   ;;  %s15892_s7 = inlined_call_operand.vmem [shape: f32[2,1,128], index: 7, kind: input, shape index: {}]   ;;  %s15893_s8 = inlined_call_operand.vmem [shape: bf16[128,128], index: 8, kind: input, shape index: {}]   ;;  %s15894_s9 = inlined_call_operand.vmem [shape: f32[1,128], index: 9, kind: input, shape index: {}]   ;;  %s15895_s10 = inlined_call_operand.vmem [shape: bf16[2,160,128], index: 10, kind: output, shape index: {0}]   ;;  %s15896_s11 = inlined_call_operand.vmem [shape: bf16[2,160,128], index: 11, kind: output, shape index: {1}]  }
   0x1 LB: > { %s9320_s18 = sadd.s32 4294967295, %s12762_s17   ;;  %p9324_p0 = scmp.ge.s32.totalorder %s12762_s17, 1  ;;  %s12762_s17 = sphi %s12825_s17, %s22_s17  }
   0x2   : > { %p340_p1 = scmp.lt.s32.totalorder %s12762_s17, 3 }
   0x4   : > { %p341_p2 = pnand %p9324_p0, %p340_p1 }
   0x6   : > { %344 = sbr.rel (%p341_p2) target bundleno = 1967 (0x7af), region = 60 }
   0xb   : > { %v9426_v0 = vld [vmem:[%s15887_s2 + $0x70] sm:$0xf]  ;;  %v10781_v1 = vld [vmem:[%s15887_s2 + $0x74] sm:$0xf0]  ;;  %v10780_v2 = vld [vmem:[%s15887_s2 + $0x74] sm:$0xf] }
   0xc   : > { %v9427_v3 = vor.u32 %v10781_v1, %v9426_v0  ;;  %v9428_v4 = vld [vmem:[%s15887_s2 + $0x78] sm:$0xf0]  ;;  %v9418_v5 = vld [vmem:[%s15887_s2 + $0x60] sm:$0xf]  ;;  %v10779_v6 = vld [vmem:[%s15887_s2 + $0x64] sm:$0xf0] }
   0xd   : > { %v12851_v7 = vor.u32 %v10780_v2, %v9428_v4  ;;  %v10778_v8 = vld [vmem:[%s15887_s2 + $0x64] sm:$0xf]  ;;  %v9420_v9 = vld [vmem:[%s15887_s2 + $0x68] sm:$0xf0]  ;;  %v9419_v10 = vor.u32 %v10779_v6, %v9418_v5  ;;  %v9410_v12 = vld [vmem:[%s15887_s2 + $0x50] sm:$0xf] }
   0xe   : > { %709 = vmatpush.bf16.msra.mxu0 %v9427_v3  ;;  %12115 = vmatpush.bf16.msra.mxu3 %v9427_v3  ;;  %v12860_v11 = vor.u32 %v10778_v8, %v9420_v9  ;;  %v10777_v13 = vld [vmem:[%s15887_s2 + $0x54] sm:$0xf0]  ;;  %v10776_v14 = vld [vmem:[%s15887_s2 + $0x54] sm:$0xf]  ;;  %v9412_v15 = vld [vmem:[%s15887_s2 + $0x58] sm:$0xf0] }
   0xf   : > { %12123 = vmatpush.bf16.msra.mxu1 %v12851_v7  ;;  %v9411_v16 = vor.u32 %v10777_v13, %v9410_v12  ;;  %v9415_v17 = vor.u32 %v10776_v14, %v9412_v15  ;;  %v9402_v18 = vld [vmem:[%s15887_s2 + $0x40] sm:$0xf]  ;;  %v10775_v19 = vld [vmem:[%s15887_s2 + $0x44] sm:$0xf0]  ;;  %v10774_v20 = vld [vmem:[%s15887_s2 + $0x44] sm:$0xf] }
  0x10   : > { %v9404_v21 = vld [vmem:[%s15887_s2 + $0x48] sm:$0xf0]  ;;  %v9394_v22 = vld [vmem:[%s15887_s2 + $0x30] sm:$0xf]  ;;  %v9403_v23 = vor.u32 %v10775_v19, %v9402_v18  ;;  %v10773_v25 = vld [vmem:[%s15887_s2 + $0x34] sm:$0xf0] }
  0x11   : > { %v9407_v24 = vor.u32 %v10774_v20, %v9404_v21  ;;  %v10772_v26 = vld [vmem:[%s15887_s2 + $0x34] sm:$0xf]  ;;  %v9396_v27 = vld [vmem:[%s15887_s2 + $0x38] sm:$0xf0]  ;;  %v9395_v28 = vor.u32 %v10773_v25, %v9394_v22  ;;  %p385_p3 = scmp.lt.s32.totalorder %s9320_s18, 1  ;;  %v10797_v5 = vld [vmem:[%s15889_s4 + $0x28] sm:$0xff] }
  0x12   : > { %710 = vmatpush.bf16.msra.mxu0 %v9419_v10  ;;  %12116 = vmatpush.bf16.msra.mxu3 %v9419_v10  ;;  %v9399_v29 = vor.u32 %v10772_v26, %v9396_v27  ;;  %v9386_v30 = vld [vmem:[%s15887_s2 + $0x20] sm:$0xf]  ;;  %v10771_v31 = vld [vmem:[%s15887_s2 + $0x24] sm:$0xf0]  ;;  %v10770_v32 = vld [vmem:[%s15887_s2 + $0x24] sm:$0xf] }
  0x13   : > { %12124 = vmatpush.bf16.msra.mxu1 %v12860_v11  ;;  %v9388_v33 = vld [vmem:[%s15887_s2 + $0x28] sm:$0xf0]  ;;  %v9387_v34 = vor.u32 %v10771_v31, %v9386_v30  ;;  %s15974_s18 = smov (!%p385_p3, %s9320_s18), 1  ;;  %v9378_v36 = vld [vmem:[%s15887_s2 + $0x10] sm:$0xf]  ;;  %v10799_v58 = vld [vmem:[%s15889_s4 + $0x38] sm:$0xff] }
  0x14   : > { %v9391_v35 = vor.u32 %v10770_v32, %v9388_v33  ;;  %v10769_v37 = vld [vmem:[%s15887_s2 + $0x14] sm:$0xf0]  ;;  %v10768_v38 = vld [vmem:[%s15887_s2 + $0x14] sm:$0xf]  ;;  %v9380_v39 = vld [vmem:[%s15887_s2 + $0x18] sm:$0xf0]  ;;  %12131 = vmatpush.bf16.msra.mxu2 %v10799_v58 }
  0x15   : > { %v9379_v40 = vor.u32 %v10769_v37, %v9378_v36  ;;  %s12927_s24 = smul.u32 80, %s15974_s18  ;;  %v9383_v41 = vor.u32 %v10768_v38, %v9380_v39  ;;  %v9370_v42 = vld [vmem:[%s15887_s2] sm:$0xf]  ;;  %v10767_v43 = vld [vmem:[%s15887_s2 + $0x4] sm:$0xf0]  ;;  %v10798_v63 = vld [vmem:[%s15889_s4 + $0x30] sm:$0xff] }
  0x16   : > { %711 = vmatpush.bf16.msra.mxu0 %v9411_v16  ;;  %12117 = vmatpush.bf16.msra.mxu3 %v9411_v16  ;;  %v10766_v44 = vld [vmem:[%s15887_s2 + $0x4] sm:$0xf]  ;;  %v9372_v45 = vld [vmem:[%s15887_s2 + $0x8] sm:$0xf0]  ;;  %v9371_v46 = vor.u32 %v10767_v43, %v9370_v42  ;;  %v563_v59 = vld [vmem:[%s15888_s3] sm:$0x3] }
  0x17   : > { %12125 = vmatpush.bf16.msra.mxu1 %v9415_v17  ;;  %s12945_s15 = scalar_lea.vmem %s15885_s0, %s12927_s24  ;;  %v9375_v47 = vor.u32 %v10766_v44, %v9372_v45  ;;  %v12965_v60 = vperm.slane %v563_v59, 0  ;;  %v12967_v61 = vperm.slane %v563_v59, 1  ;;  %v10794_v45 = vld [vmem:[%s15889_s4 + $0x10] sm:$0xff]  ;;  %s13054_s21 = scalar_lea.vmem %s15896_s11, %s12927_s24 }
  0x18   : > { %v10756_v48 = vld [vmem:[%s12945_s15] sm:$0xff]  ;;  %v10758_v49 = vld [vmem:[%s12945_s15 + $0x10] sm:$0xff]  ;;  %v10757_v50 = vld [vmem:[%s12945_s15 + $0x8] sm:$0xff]  ;;  %12132 = vmatpush.bf16.msra.mxu2 %v10798_v63  ;;  %s13061_s25 = scalar_lea.vmem %s15895_s10, %s12927_s24 }
  0x19   : > { %v10759_v51 = vld [vmem:[%s12945_s15 + $0x18] sm:$0xff]  ;;  %v10760_v52 = vld [vmem:[%s12945_s15 + $0x20] sm:$0xff]  ;;  %v10761_v53 = vld [vmem:[%s12945_s15 + $0x28] sm:$0xff] }
  0x1a   : > { %712 = vmatpush.bf16.msra.mxu0 %v9403_v23  ;;  %12118 = vmatpush.bf16.msra.mxu3 %v9403_v23  ;;  %v10762_v54 = vld [vmem:[%s12945_s15 + $0x30] sm:$0xff]  ;;  %v10763_v55 = vld [vmem:[%s12945_s15 + $0x38] sm:$0xff]  ;;  %v10764_v56 = vld [vmem:[%s12945_s15 + $0x40] sm:$0xff] }
  0x1b   : > { %12126 = vmatpush.bf16.msra.mxu1 %v9407_v24  ;;  %v10765_v57 = vld [vmem:[%s12945_s15 + $0x48] sm:$0xff] }
  0x1c   : > { %12133 = vmatpush.bf16.msra.mxu2 %v10797_v5 }
  0x1e   : > { %713 = vmatpush.bf16.msra.mxu0 %v9395_v28  ;;  %12119 = vmatpush.bf16.msra.mxu3 %v9395_v28 }
  0x1f   : > { %12127 = vmatpush.bf16.msra.mxu1 %v9399_v29 }
  0x22   : > { %714 = vmatpush.bf16.msra.mxu0 %v9387_v34  ;;  %12120 = vmatpush.bf16.msra.mxu3 %v9387_v34 }
  0x23   : > { %12128 = vmatpush.bf16.msra.mxu1 %v9391_v35 }
  0x26   : > { %715 = vmatpush.bf16.msra.mxu0 %v9379_v40  ;;  %12121 = vmatpush.bf16.msra.mxu3 %v9379_v40 }
  0x27   : > { %12129 = vmatpush.bf16.msra.mxu1 %v9383_v41 }
  0x2a   : > { %716 = vmatpush.bf16.msra.mxu0 %v9371_v46  ;;  %12122 = vmatpush.bf16.msra.mxu3 %v9371_v46 }
  0x2b   : > { %12130 = vmatpush.bf16.msra.mxu1 %v9375_v47 }
  0x2d   : > { %717 = vmatmul.bf16.vlgmr.msra.gmra.mxu0 %v10756_v48  ;;  %727 = vmatmul.bf16.vlgmr.msra.gmra.mxu3 %v10758_v49 }
  0x2e   : > { %768 = vmatpush.bf16.msrb.mxu0 %v12851_v7  ;;  %786 = vmatmul.bf16.vlgmr.msra.gmra.mxu1 %v10758_v49 }
  0x32   : > { %769 = vmatpush.bf16.msrb.mxu0 %v12860_v11  ;;  %v10796_v11 = vld [vmem:[%s15889_s4 + $0x20] sm:$0xff] }
  0x33   : > { %12134 = vmatpush.bf16.msra.mxu2 %v10796_v11 }
  0x36   : > { %770 = vmatpush.bf16.msrb.mxu0 %v9415_v17  ;;  %v10795_v17 = vld [vmem:[%s15889_s4 + $0x18] sm:$0xff] }
  0x37   : > { %12135 = vmatpush.bf16.msra.mxu2 %v10795_v17 }
  0x3a   : > { %771 = vmatpush.bf16.msrb.mxu0 %v9407_v24 }
  0x3b   : > { %12136 = vmatpush.bf16.msra.mxu2 %v10794_v45 }
  0x3d   : > { %722 = vmatmul.bf16.gmra.mxu0 %v10757_v50  ;;  %732 = vmatmul.bf16.gmra.mxu3 %v10759_v51 }
  0x3e   : > { %772 = vmatpush.bf16.msrb.mxu0 %v9399_v29  ;;  %791 = vmatmul.bf16.gmra.mxu1 %v10759_v51 }
  0x42   : > { %773 = vmatpush.bf16.msrb.mxu0 %v9391_v35 }
  0x46   : > { %774 = vmatpush.bf16.msrb.mxu0 %v9383_v41 }
  0x4a   : > { %775 = vmatpush.bf16.msrb.mxu0 %v9375_v47 }
  0x4d   : > { %776 = vmatmul.bf16.vlgmr.msrb.gmra.mxu0 %v10756_v48  ;;  %737 = vmatmul.bf16.gmra.mxu3 %v10760_v52 }
  0x4e   : > { %796 = vmatmul.bf16.gmra.mxu1 %v10760_v52  ;;  %1775 = vmatpush.bf16.msra.mxu0 %v10799_v58 }
  0x52   : > { %1776 = vmatpush.bf16.msra.mxu0 %v10798_v63 }
  0x56   : > { %1777 = vmatpush.bf16.msra.mxu0 %v10797_v5 }
  0x5a   : > { %1778 = vmatpush.bf16.msra.mxu0 %v10796_v11 }
  0x5d   : > { %781 = vmatmul.bf16.gmra.mxu0 %v10757_v50  ;;  %742 = vmatmul.bf16.gmra.mxu3 %v10761_v53 }
  0x5e   : > { %801 = vmatmul.bf16.gmra.mxu1 %v10761_v53  ;;  %1779 = vmatpush.bf16.msra.mxu0 %v10795_v17 }
  0x62   : > { %1780 = vmatpush.bf16.msra.mxu0 %v10794_v45 }
  0x6d   : > { %747 = vmatmul.bf16.gmra.mxu3 %v10762_v54 }
  0x6e   : > { %806 = vmatmul.bf16.gmra.mxu1 %v10762_v54 }
  0x7d   : > { %752 = vmatmul.bf16.gmra.mxu3 %v10763_v55 }
  0x7e   : > { %811 = vmatmul.bf16.gmra.mxu1 %v10763_v55 }
  0x8d   : > { %757 = vmatmul.bf16.gmra.mxu3 %v10764_v56 }
  0x8e   : > { %816 = vmatmul.bf16.gmra.mxu1 %v10764_v56 }
  0x9d   : > { %762 = vmatmul.bf16.gmra.mxu3 %v10765_v57 }
  0x9e   : > { %821 = vmatmul.bf16.gmra.mxu1 %v10765_v57 }
  0xaa   : > { %v718_v62 = vpop.f32.mrf.mxu0 }
  0xab   : > { %v12973_v0 = vadd.f32 %v718_v62, %v12965_v60  ;;  %v787_v1 = vpop.f32.mrf.mxu1 }
  0xac   : > { %v12976_v2 = vadd.f32 %v787_v1, %v12967_v61 }
  0xad   : > { %v827_v3 = vand.u32 2147483647, %v12973_v0  ;;  %vm1027_vm0 = vcmp.ge.f32.partialorder %v12973_v0, 0.0 }
  0xae   : > { %v836_v4 = vand.u32 2147483647, %v12976_v2  ;;  %vm1036_vm1 = vcmp.ge.f32.partialorder %v12976_v2, 0.0 }
  0xaf   : > { %v867_v6 = vsub.f32 0.0, %v827_v3 }
  0xb0   : > { %v876_v7 = vsub.f32 0.0, %v836_v4  ;;  %v10793_v4 = vld [vmem:[%s15889_s4 + $0x8] sm:$0xff] }
  0xb1   : > { %v907_v8 = vmul.f32 1.442695, %v867_v6  ;;  %12137 = vmatpush.bf16.msra.mxu2 %v10793_v4  ;;  %1781 = vmatpush.bf16.msra.mxu0 %v10793_v4 }
  0xb2   : > { %v925_v9 = vmul.f32 1.442695, %v876_v7  ;;  %v720_v10 = vpop.f32.mrf.mxu0 }
  0xb3   : > { %12189 = vpow2.f32 %v907_v8  ;;  %v12987_v12 = vadd.f32 %v720_v10, %v12965_v60  ;;  %v789_v13 = vpop.f32.mrf.mxu1 }
  0xb4   : > { %12191 = vpow2.f32 %v925_v9  ;;  %v12990_v14 = vadd.f32 %v789_v13, %v12967_v61 }
  0xb5   : > { %v829_v15 = vand.u32 2147483647, %v12987_v12  ;;  %vm1029_vm2 = vcmp.ge.f32.partialorder %v12987_v12, 0.0 }
  0xb6   : > { %v838_v16 = vand.u32 2147483647, %v12990_v14  ;;  %vm1038_vm3 = vcmp.ge.f32.partialorder %v12990_v14, 0.0 }
  0xb7   : > { %v869_v18 = vsub.f32 0.0, %v829_v15 }
  0xb8   : > { %v878_v19 = vsub.f32 0.0, %v838_v16 }
  0xb9   : > { %v12190_v20 = vpop.eup %12189  ;;  %v911_v21 = vmul.f32 1.442695, %v869_v18 }
  0xba   : > { %v12192_v22 = vpop.eup %12191  ;;  %v987_v23 = vmul.f32 %v12190_v20, %v12190_v20  ;;  %v1067_v24 = vmul.f32 2.0, %v12190_v20  ;;  %v929_v25 = vmul.f32 1.442695, %v878_v19  ;;  %v723_v26 = vpop.f32.mrf.mxu0  ;;  %v10792_v19 = vld [vmem:[%s15889_s4] sm:$0xff] }
  0xbb   : > { %v996_v27 = vmul.f32 %v12192_v22, %v12192_v22  ;;  %v1076_v28 = vmul.f32 2.0, %v12192_v22  ;;  %12193 = vpow2.f32 %v911_v21  ;;  %v792_v29 = vpop.f32.mrf.mxu1  ;;  %v12998_v33 = vadd.f32 %v723_v26, %v12965_v60  ;;  %12138 = vmatpush.bf16.msra.mxu2 %v10792_v19  ;;  %1782 = vmatpush.bf16.msra.mxu0 %v10792_v19 }
  0xbc   : > { %v1107_v30 = vadd.f32 1.0, %v1067_v24  ;;  %v1227_v31 = vmul.f32 2.0, %v987_v23  ;;  %v1307_v32 = vadd.f32 2.0, %v1067_v24  ;;  %12195 = vpow2.f32 %v929_v25 }
  0xbd   : > { %v1116_v34 = vadd.f32 1.0, %v1076_v28  ;;  %v1236_v35 = vmul.f32 2.0, %v996_v27  ;;  %v1316_v36 = vadd.f32 2.0, %v1076_v28  ;;  %v1147_v39 = vadd.f32 %v1067_v24, %v987_v23 }
  0xbe   : > { %v1267_v37 = vadd.f32 %v1227_v31, %v1107_v30  ;;  %v1347_v38 = vadd.f32 %v1307_v32, %v987_v23  ;;  %v831_v42 = vand.u32 2147483647, %v12998_v33  ;;  %v13005_v44 = vadd.f32 %v792_v29, %v12967_v61 }
  0xbf   : > { %v1276_v40 = vadd.f32 %v1236_v35, %v1116_v34  ;;  %v1356_v41 = vadd.f32 %v1316_v36, %v996_v27  ;;  %v1187_v51 = vsel %vm1027_vm0, %v1107_v30, %v1147_v39  ;;  %v1156_v52 = vadd.f32 %v1076_v28, %v996_v27 }
  0xc0   : > { %v1387_v46 = vsel %vm1027_vm0, %v1267_v37, %v1347_v38  ;;  %v871_v49 = vsub.f32 0.0, %v831_v42  ;;  %v840_v53 = vand.u32 2147483647, %v13005_v44  ;;  %v1427_v16 = vmul.f32 %v1187_v51, %v12973_v0 }
  0xc1   : > { %v12194_v43 = vpop.eup %12193  ;;  %v1396_v57 = vsel %vm1036_vm1, %v1276_v40, %v1356_v41  ;;  %12197 = vrcp.f32 %v1387_v46  ;;  %v1196_v20 = vsel %vm1036_vm1, %v1116_v34, %v1156_v52  ;;  %vm1031_vm4 = vcmp.ge.f32.partialorder %v12998_v33, 0.0 }
  0xc2   : > { %v989_v47 = vmul.f32 %v12194_v43, %v12194_v43  ;;  %v1069_v48 = vmul.f32 2.0, %v12194_v43  ;;  %v725_v50 = vpop.f32.mrf.mxu0  ;;  %v12196_v56 = vpop.eup %12195  ;;  %v915_v3 = vmul.f32 1.442695, %v871_v49  ;;  %v880_v7 = vsub.f32 0.0, %v840_v53 }
  0xc3   : > { %v13012_v54 = vadd.f32 %v725_v50, %v12965_v60  ;;  %v794_v55 = vpop.f32.mrf.mxu1  ;;  %v998_v63 = vmul.f32 %v12196_v56, %v12196_v56  ;;  %v1078_v1 = vmul.f32 2.0, %v12196_v56  ;;  %12199 = vrcp.f32 %v1396_v57 }
  0xc4   : > { %v1109_v58 = vadd.f32 1.0, %v1069_v48  ;;  %v1229_v59 = vmul.f32 2.0, %v989_v47  ;;  %v1309_v62 = vadd.f32 2.0, %v1069_v48  ;;  %v1149_v9 = vadd.f32 %v1069_v48, %v989_v47 }
  0xc5   : > { %v833_v8 = vand.u32 2147483647, %v13012_v54  ;;  %v1118_v10 = vadd.f32 1.0, %v1078_v1  ;;  %v1238_v11 = vmul.f32 2.0, %v998_v63  ;;  %v1318_v15 = vadd.f32 2.0, %v1078_v1 }
  0xc6   : > { %v1269_v5 = vadd.f32 %v1229_v59, %v1109_v58  ;;  %v1349_v6 = vadd.f32 %v1309_v62, %v989_v47  ;;  %12201 = vpow2.f32 %v915_v3  ;;  %v1158_v17 = vadd.f32 %v1078_v1, %v998_v63 }
  0xc7   : > { %v1278_v18 = vadd.f32 %v1238_v11, %v1118_v10  ;;  %v1358_v21 = vadd.f32 %v1318_v15, %v998_v63  ;;  %v933_v22 = vmul.f32 1.442695, %v880_v7  ;;  %v873_v23 = vsub.f32 0.0, %v833_v8  ;;  %v12198_v25 = vpop.eup %12197 }
  0xc8   : > { %v1389_v13 = vsel %vm1029_vm2, %v1269_v5, %v1349_v6  ;;  %v1189_v26 = vsel %vm1029_vm2, %v1109_v58, %v1149_v9  ;;  %v13032_v0 = vadd.f32 %v794_v55, %v12967_v61  ;;  %v1198_v34 = vsel %vm1038_vm3, %v1118_v10, %v1158_v17 }
  0xc9   : > { %12203 = vrcp.f32 %v1389_v13  ;;  %v1398_v29 = vsel %vm1038_vm3, %v1278_v18, %v1358_v21  ;;  %v919_v30 = vmul.f32 1.442695, %v873_v23  ;;  %v12200_v32 = vpop.eup %12199  ;;  %v1436_v38 = vmul.f32 %v1196_v20, %v12976_v2 }
  0xca   : > { %v777_v24 = vpop.f32.mrf.mxu0  ;;  %12205 = vpow2.f32 %v933_v22  ;;  %v842_v35 = vand.u32 2147483647, %v13032_v0  ;;  %v1429_v39 = vmul.f32 %v1189_v26, %v12987_v12  ;;  %v1507_v47 = vmul.f32 %v12198_v25, %v1427_v16 }
  0xcb   : > { %v13035_v27 = vadd.f32 %v777_v24, %v12967_v61  ;;  %v797_v28 = vpop.f32.mrf.mxu1  ;;  %12207 = vrcp.f32 %v1398_v29  ;;  %v1438_v49 = vmul.f32 %v1198_v34, %v12990_v14  ;;  %v1516_v52 = vmul.f32 %v12200_v32, %v1436_v38 }
  0xcc   : > { %v13040_v31 = vadd.f32 %v797_v28, %v12967_v61  ;;  %v12202_v37 = vpop.eup %12201  ;;  %12209 = vpow2.f32 %v919_v30  ;;  %v882_v45 = vsub.f32 0.0, %v842_v35  ;;  %vm1040_vm5 = vcmp.ge.f32.partialorder %v13005_v44, 0.0 }
  0xcd   : > { %v828_v36 = vand.u32 2147483647, %v13035_v27  ;;  %v991_v42 = vmul.f32 %v12202_v37, %v12202_v37  ;;  %v1071_v43 = vmul.f32 2.0, %v12202_v37  ;;  %vm1033_vm6 = vcmp.ge.f32.partialorder %v13012_v54, 0.0 }
  0xce   : > { %v844_v40 = vand.u32 2147483647, %v13040_v31  ;;  %v937_v55 = vmul.f32 1.442695, %v882_v45  ;;  %vm1042_vm7 = vcmp.ge.f32.partialorder %v13032_v0, 0.0  ;;  %vm1028_vm8 = vcmp.ge.f32.partialorder %v13035_v27, 0.0 }
  0xcf   : > { %v12204_v41 = vpop.eup %12203  ;;  %v868_v46 = vsub.f32 0.0, %v828_v36  ;;  %v1111_v2 = vadd.f32 1.0, %v1071_v43  ;;  %v1231_v12 = vmul.f32 2.0, %v991_v42  ;;  %v1311_v50 = vadd.f32 2.0, %v1071_v43 }
  0xd0   : > { %v1509_v48 = vmul.f32 %v12204_v41, %v1429_v39  ;;  %v12206_v51 = vpop.eup %12205  ;;  %v884_v56 = vsub.f32 0.0, %v844_v40  ;;  %12211 = vpow2.f32 %v937_v55  ;;  %v1151_v9 = vadd.f32 %v1071_v43, %v991_v42 }
  0xd1   : > { %v12208_v57 = vpop.eup %12207  ;;  %v1271_v58 = vadd.f32 %v1231_v12, %v1111_v2  ;;  %v1000_v59 = vmul.f32 %v12206_v51, %v12206_v51  ;;  %v909_v62 = vmul.f32 1.442695, %v868_v46  ;;  %v1351_v3 = vadd.f32 %v1311_v50, %v991_v42 }
  0xd2   : > { %v11043_v53 = vpack.c.bf16 %v1509_v48, %v1507_v47  ;;  %v12210_v63 = vpop.eup %12209  ;;  %v1518_v1 = vmul.f32 %v12208_v57, %v1438_v49  ;;  %v1080_v4 = vmul.f32 2.0, %v12206_v51  ;;  %v941_v11 = vmul.f32 1.442695, %v884_v56  ;;  %v779_v13 = vpop.f32.mrf.mxu0 }
  0xd3   : > { %v799_v14 = vpop.f32.mrf.mxu1  ;;  %v1240_v5 = vmul.f32 2.0, %v1000_v59  ;;  %v993_v6 = vmul.f32 %v12210_v63, %v12210_v63  ;;  %v1073_v7 = vmul.f32 2.0, %v12210_v63  ;;  %v1391_v18 = vsel %vm1031_vm4, %v1271_v58, %v1351_v3 }
  0xd4   : > { %11044 = vst [vmem:[%s13054_s21] sm:$0xff] %v11043_v53   ;;  %v11103_v8 = vpack.c.bf16 %v1518_v1, %v1516_v52  ;;  %v1120_v10 = vadd.f32 1.0, %v1080_v4  ;;  %v1320_v15 = vadd.f32 2.0, %v1080_v4  ;;  %12213 = vpow2.f32 %v909_v62 }
  0xd5   : > { %v1113_v16 = vadd.f32 1.0, %v1073_v7  ;;  %v1233_v17 = vmul.f32 2.0, %v993_v6  ;;  %v1313_v20 = vadd.f32 2.0, %v1073_v7  ;;  %v1191_v24 = vsel %vm1031_vm4, %v1111_v2, %v1151_v9 }
  0xd6   : > { %11686 = vst [vmem:[%s13061_s25 + $0x10] sm:$0xff] %v11103_v8   ;;  %v1280_v19 = vadd.f32 %v1240_v5, %v1120_v10  ;;  %v1360_v21 = vadd.f32 %v1320_v15, %v1000_v59  ;;  %v12212_v23 = vpop.eup %12211  ;;  %12215 = vpow2.f32 %v941_v11  ;;  %v13073_v26 = vadd.f32 %v779_v13, %v12967_v61 }
  0xd7   : > { %v1273_v22 = vadd.f32 %v1233_v17, %v1113_v16  ;;  %v1353_v25 = vadd.f32 %v1313_v20, %v993_v6  ;;  %12217 = vrcp.f32 %v1391_v18  ;;  %v1153_v28 = vadd.f32 %v1073_v7, %v993_v6 }
  0xd8   : > { %v1002_v29 = vmul.f32 %v12212_v23, %v12212_v23  ;;  %v1082_v30 = vmul.f32 2.0, %v12212_v23  ;;  %v1160_v34 = vadd.f32 %v1080_v4, %v1000_v59  ;;  %v1400_v35 = vsel %vm1040_vm5, %v1280_v19, %v1360_v21 }
  0xd9   : > { %v1393_v36 = vsel %vm1033_vm6, %v1273_v22, %v1353_v25  ;;  %v830_v37 = vand.u32 2147483647, %v13073_v26  ;;  %v1431_v38 = vmul.f32 %v1191_v24, %v12998_v33  ;;  %v13082_v40 = vadd.f32 %v799_v14, %v12967_v61 }
  0xda   : > { %12219 = vrcp.f32 %v1393_v36  ;;  %v1122_v39 = vadd.f32 1.0, %v1082_v30  ;;  %v12214_v41 = vpop.eup %12213  ;;  %v1162_v42 = vadd.f32 %v1082_v30, %v1002_v29  ;;  %v1242_v43 = vmul.f32 2.0, %v1002_v29  ;;  %v782_v53 = vpop.f32.mrf.mxu0 }
  0xdb   : > { %v802_v32 = vpop.f32.mrf.mxu1  ;;  %v1322_v45 = vadd.f32 2.0, %v1082_v30  ;;  %v870_v46 = vsub.f32 0.0, %v830_v37  ;;  %12221 = vrcp.f32 %v1400_v35  ;;  %v1193_v47 = vsel %vm1033_vm6, %v1113_v16, %v1153_v28 }
  0xdc   : > { %v988_v48 = vmul.f32 %v12214_v41, %v12214_v41  ;;  %v1068_v49 = vmul.f32 2.0, %v12214_v41  ;;  %v12216_v12 = vpop.eup %12215  ;;  %v1200_v33 = vsel %vm1040_vm5, %v1120_v10, %v1160_v34  ;;  %v1282_v50 = vadd.f32 %v1242_v43, %v1122_v39 }
  0xdd   : > { %v10784_v2 = vld [vmem:[%s13061_s25 + $0x10] sm:$0xff]  ;;  %v1362_v51 = vadd.f32 %v1322_v45, %v1002_v29  ;;  %v913_v52 = vmul.f32 1.442695, %v870_v46  ;;  %v12218_v55 = vpop.eup %12217  ;;  %v846_v59 = vand.u32 2147483647, %v13082_v40  ;;  %v1433_v62 = vmul.f32 %v1193_v47, %v13012_v54 }
  0xde   : > { %v13089_v56 = vadd.f32 1.0, %v1068_v49  ;;  %v1228_v57 = vmul.f32 2.0, %v988_v48  ;;  %v1308_v58 = vadd.f32 2.0, %v1068_v49  ;;  %1793 = vmatmul.bf16.vlgmr.msra.gmra.mxu2 %v10784_v2  ;;  %v1202_v14 = vsel %vm1042_vm7, %v1122_v39, %v1162_v42 }
  0xdf   : > { %v1402_v63 = vsel %vm1042_vm7, %v1282_v50, %v1362_v51  ;;  %12223 = vpow2.f32 %v913_v52  ;;  %v1004_v4 = vmul.f32 %v12216_v12, %v12216_v12  ;;  %v1084_v5 = vmul.f32 2.0, %v12216_v12 }
  0xe0   : > { %v12220_v1 = vpop.eup %12219  ;;  %12225 = vrcp.f32 %v1402_v63  ;;  %v1268_v3 = vadd.f32 %v1228_v57, %v13089_v56  ;;  %v1511_v7 = vmul.f32 %v12218_v55, %v1431_v38  ;;  %v1440_v8 = vmul.f32 %v1200_v33, %v13005_v44  ;;  %v407_v55 = vld [vmem:[%s15886_s1] sm:$0xff] }
  0xe1   : > { %v1513_v9 = vmul.f32 %v12220_v1, %v1433_v62  ;;  %v1348_v54 = vadd.f32 %v1308_v58, %v988_v48  ;;  %v12222_v10 = vpop.eup %12221  ;;  %v886_v11 = vsub.f32 0.0, %v846_v59  ;;  %v1442_v15 = vmul.f32 %v1202_v14, %v13032_v0 }
  0xe2   : > { %v13102_v16 = vadd.f32 %v782_v53, %v12967_v61  ;;  %v13105_v17 = vadd.f32 %v802_v32, %v12967_v61  ;;  %vm1044_vm9 = vcmp.ge.f32.partialorder %v13040_v31, 0.0  ;;  %v1124_v44 = vadd.f32 1.0, %v1084_v5  ;;  %v784_v36 = vpop.f32.mrf.mxu0 }
  0xe3   : > { %v804_v6 = vpop.f32.mrf.mxu1  ;;  %v11048_v13 = vpack.c.bf16 %v1513_v9, %v1511_v7  ;;  %v1388_v18 = vsel %vm1028_vm8, %v1268_v3, %v1348_v54  ;;  %v1244_v19 = vmul.f32 2.0, %v1004_v4  ;;  %v1520_v21 = vmul.f32 %v12222_v10, %v1440_v8 }
  0xe4   : > { %v1148_v22 = vadd.f32 %v1068_v49, %v988_v48  ;;  %v945_v23 = vmul.f32 1.442695, %v886_v11  ;;  %v832_v0 = vand.u32 2147483647, %v13102_v16  ;;  %v1324_v25 = vadd.f32 2.0, %v1084_v5 }
  0xe5   : > { %v12224_v20 = vpop.eup %12223  ;;  %11676 = vst [vmem:[%s13054_s21 + $0x8] sm:$0xff] %v11048_v13   ;;  %v848_v30 = vand.u32 2147483647, %v13105_v17  ;;  %12227 = vrcp.f32 %v1388_v18  ;;  %v1164_v34 = vadd.f32 %v1084_v5, %v1004_v4  ;;  %v1284_v37 = vadd.f32 %v1244_v19, %v1124_v44 }
  0xe6   : > { %v12226_v24 = vpop.eup %12225  ;;  %v990_v28 = vmul.f32 %v12224_v20, %v12224_v20  ;;  %v1070_v29 = vmul.f32 2.0, %v12224_v20  ;;  %v872_v35 = vsub.f32 0.0, %v832_v0  ;;  %12229 = vpow2.f32 %v945_v23 }
  0xe7   : > { %v1522_v32 = vmul.f32 %v12226_v24, %v1442_v15  ;;  %v888_v46 = vsub.f32 0.0, %v848_v30  ;;  %v1364_v47 = vadd.f32 %v1324_v25, %v1004_v4  ;;  %v13114_v2 = vadd.f32 %v784_v36, %v12967_v61 }
  0xe8   : > { %v1110_v38 = vadd.f32 1.0, %v1070_v29  ;;  %v1230_v39 = vmul.f32 2.0, %v990_v28  ;;  %v1310_v41 = vadd.f32 2.0, %v1070_v29  ;;  %v917_v45 = vmul.f32 1.442695, %v872_v35 }
  0xe9   : > { %v11108_v43 = vpack.c.bf16 %v1522_v32, %v1520_v21  ;;  %vm1030_vm10 = vcmp.ge.f32.partialorder %v13073_v26, 0.0  ;;  %v1150_v12 = vadd.f32 %v1070_v29, %v990_v28  ;;  %v949_v33 = vmul.f32 1.442695, %v888_v46 }
  0xea   : > { %v1270_v48 = vadd.f32 %v1230_v39, %v1110_v38  ;;  %v1350_v49 = vadd.f32 %v1310_v41, %v990_v28  ;;  %12231 = vpow2.f32 %v917_v45  ;;  %v1188_v50 = vsel %vm1028_vm8, %v13089_v56, %v1148_v22 }
  0xeb   : > { %v807_v42 = vpop.f32.mrf.mxu1  ;;  %11687 = vst [vmem:[%s13061_s25 + $0x18] sm:$0xff] %v11108_v43   ;;  %v834_v52 = vand.u32 2147483647, %v13114_v2  ;;  %v13125_v53 = vadd.f32 %v804_v6, %v12967_v61  ;;  %v12228_v57 = vpop.eup %12227  ;;  %v1204_v58 = vsel %vm1044_vm9, %v1124_v44, %v1164_v34  ;;  %v1404_v56 = vsel %vm1044_vm9, %v1284_v37, %v1364_v47  ;;  %v409_v43 = vld [vmem:[%s15886_s1 + $0x10] sm:$0xff] }
  0xec   : > { %v1390_v51 = vsel %vm1030_vm10, %v1270_v48, %v1350_v49  ;;  %v13133_v59 = vadd.f32 %v807_v42, %v12967_v61  ;;  %v12764_v63 = vmov 0   ;;  %v12230_v1 = vpop.eup %12229  ;;  %v1428_v3 = vmul.f32 %v1188_v50, %v13035_v27 }
  0xed   : > { %12233 = vrcp.f32 %v1390_v51  ;;  %v874_v62 = vsub.f32 0.0, %v834_v52  ;;  %v850_v14 = vand.u32 2147483647, %v13125_v53  ;;  %12181 = vset.pattern.permute.xlu0 %v12764_v63  ;;  %401 = vst [vmem:[#allocation2] sm:$0xf] %v12764_v63  ;;  %12182 = vset.pattern.permute.xlu1 %v12764_v63  ;;  %v1190_v4 = vsel %vm1030_vm10, %v1110_v38, %v1150_v12 }
  0xee   : > { %12235 = vpow2.f32 %v949_v33  ;;  %vm1046_vm11 = vcmp.ge.f32.partialorder %v13082_v40, 0.0  ;;  %403 = vst [vmem:[#allocation2 + $0x8] sm:$0xf] %v12764_v63  ;;  %429 = vperm.xlu0 %12181, %v407_v55   ;;  %12183 = vset.pattern.permute.xlu2 %v12764_v63  ;;  %v1006_v5 = vmul.f32 %v12230_v1, %v12230_v1  ;;  %v1086_v6 = vmul.f32 2.0, %v12230_v1 }
  0xef   : > { %v921_v7 = vmul.f32 1.442695, %v874_v62  ;;  %v890_v8 = vsub.f32 0.0, %v850_v14  ;;  %405 = vst [vmem:[#allocation2 + $0x60] sm:$0xf] %v12764_v63  ;;  %v1508_v10 = vmul.f32 %v12228_v57, %v1428_v3  ;;  %v1444_v11 = vmul.f32 %v1204_v58, %v13040_v31  ;;  %439 = vperm.xlu1 %12182, %v409_v43  }
  0xf0   : > { %v12232_v54 = vpop.eup %12231  ;;  %12237 = vrcp.f32 %v1404_v56  ;;  %v852_v27 = vand.u32 2147483647, %v13133_v59  ;;  %402 = vst [vmem:[#allocation2 + $0x4] sm:$0xf] %v12764_v63  ;;  %v1430_v13 = vmul.f32 %v1190_v4, %v13073_v26  ;;  %v1126_v15 = vadd.f32 1.0, %v1086_v6  ;;  %v408_v26 = vld [vmem:[%s15886_s1 + $0x8] sm:$0xff] }
  0xf1   : > { %v1246_v18 = vmul.f32 2.0, %v1006_v5  ;;  %v1326_v44 = vadd.f32 2.0, %v1086_v6  ;;  %404 = vst [vmem:[#allocation2 + $0x5c] sm:$0xf] %v12764_v63  ;;  %v1166_v21 = vadd.f32 %v1086_v6, %v1006_v5  ;;  %v992_v22 = vmul.f32 %v12232_v54, %v12232_v54 }
  0xf2   : > { %v10785_v19 = vld [vmem:[%s13061_s25 + $0x18] sm:$0xff]  ;;  %v1072_v23 = vmul.f32 2.0, %v12232_v54  ;;  %12239 = vpow2.f32 %v921_v7  ;;  %406 = vst [vmem:[#allocation2 + $0x64] sm:$0xf] %v12764_v63  ;;  %v953_v28 = vmul.f32 1.442695, %v890_v8 }
  0xf3   : > { %v809_v9 = vpop.f32.mrf.mxu1  ;;  %v12234_v20 = vpop.eup %12233  ;;  %v1286_v31 = vadd.f32 %v1246_v18, %v1126_v15  ;;  %v1366_v25 = vadd.f32 %v1326_v44, %v1006_v5  ;;  %1798 = vmatmul.bf16.gmra.mxu2 %v10785_v19  ;;  %vm1032_vm12 = vcmp.ge.f32.partialorder %v13102_v16, 0.0  ;;  %v1232_v30 = vmul.f32 2.0, %v992_v22  ;;  %v410_v18 = vld [vmem:[%s15886_s1 + $0x18] sm:$0xff] }
  0xf4   : > { %v12236_v0 = vpop.eup %12235  ;;  %v1510_v24 = vmul.f32 %v12234_v20, %v1430_v13  ;;  %v1112_v29 = vadd.f32 1.0, %v1072_v23  ;;  %v892_v32 = vsub.f32 0.0, %v852_v27  ;;  %v1312_v36 = vadd.f32 2.0, %v1072_v23 }
  0xf5   : > { %v1406_v35 = vsel %vm1046_vm11, %v1286_v31, %v1366_v25  ;;  %v1008_v37 = vmul.f32 %v12236_v0, %v12236_v0  ;;  %v1206_v39 = vsel %vm1046_vm11, %v1126_v15, %v1166_v21  ;;  %v1088_v42 = vmul.f32 2.0, %v12236_v0 }
  0xf6   : > { %v11093_v34 = vpack.c.bf16 %v1510_v24, %v1508_v10  ;;  %v12238_v38 = vpop.eup %12237  ;;  %12241 = vrcp.f32 %v1406_v35  ;;  %v1272_v41 = vadd.f32 %v1232_v30, %v1112_v29  ;;  %434 = vperm.xlu0 %12181, %v408_v26   ;;  %v1352_v45 = vadd.f32 %v1312_v36, %v992_v22 }
  0xf7   : > { %vm1048_vm13 = vcmp.ge.f32.partialorder %v13105_v17, 0.0  ;;  %v1248_v46 = vmul.f32 2.0, %v1008_v37  ;;  %12243 = vpow2.f32 %v953_v28  ;;  %v1128_v49 = vadd.f32 1.0, %v1088_v42  ;;  %444 = vperm.xlu1 %12182, %v410_v18  }
  0xf8   : > { %11094 = vst [vmem:[%s13061_s25] sm:$0xff] %v11093_v34   ;;  %v12240_v48 = vpop.eup %12239  ;;  %v1328_v12 = vadd.f32 2.0, %v1088_v42  ;;  %v957_v33 = vmul.f32 1.442695, %v892_v32  ;;  %v13160_v50 = vadd.f32 %v809_v9, %v12967_v61  ;;  %v1446_v51 = vmul.f32 %v1206_v39, %v13082_v40  ;;  %v413_v40 = vld [vmem:[%s15886_s1 + $0x30] sm:$0xff]  ;;  %v416_v39 = vld [vmem:[%s15886_s1 + $0x48] sm:$0xff] }
  0xf9   : > { %v1152_v52 = vadd.f32 %v1072_v23, %v992_v22  ;;  %v994_v55 = vmul.f32 %v12240_v48, %v12240_v48  ;;  %v1074_v57 = vmul.f32 2.0, %v12240_v48  ;;  %v1524_v58 = vmul.f32 %v12238_v38, %v1444_v11 }
  0xfa   : > { %v1392_v56 = vsel %vm1032_vm12, %v1272_v41, %v1352_v45  ;;  %vm1034_vm14 = vcmp.ge.f32.partialorder %v13114_v2, 0.0  ;;  %vm1050_vm15 = vcmp.ge.f32.partialorder %v13125_v53, 0.0  ;;  %v1288_v62 = vadd.f32 %v1248_v46, %v1128_v49 }
  0xfb   : > { %v812_v47 = vpop.f32.mrf.mxu1  ;;  %v1368_v14 = vadd.f32 %v1328_v12, %v1008_v37  ;;  %v1114_v63 = vadd.f32 1.0, %v1074_v57  ;;  %v1234_v1 = vmul.f32 2.0, %v994_v55  ;;  %v1154_v4 = vadd.f32 %v1074_v57, %v994_v55 }
  0xfc   : > { %v12242_v3 = vpop.eup %12241  ;;  %v1314_v5 = vadd.f32 2.0, %v1074_v57  ;;  %12245 = vpow2.f32 %v957_v33  ;;  %v854_v6 = vand.u32 2147483647, %v13160_v50  ;;  %v1192_v9 = vsel %vm1032_vm12, %v1112_v29, %v1152_v52 }
  0xfd   : > { %v12244_v7 = vpop.eup %12243  ;;  %v1526_v8 = vmul.f32 %v12242_v3, %v1446_v51  ;;  %v1168_v54 = vadd.f32 %v1088_v42, %v1008_v37  ;;  %v1274_v10 = vadd.f32 %v1234_v1, %v1114_v63  ;;  %12247 = vrcp.f32 %v1392_v56 }
  0xfe   : > { %v1354_v11 = vadd.f32 %v1314_v5, %v994_v55  ;;  %v1010_v27 = vmul.f32 %v12244_v7, %v12244_v7  ;;  %v1090_v13 = vmul.f32 2.0, %v12244_v7  ;;  %459 = vperm.xlu0 %12181, %v413_v40   ;;  %v1408_v19 = vsel %vm1048_vm13, %v1288_v62, %v1368_v14 }
  0xff   : > { %v10782_v15 = vld [vmem:[%s13061_s25] sm:$0xff]  ;;  %v11113_v44 = vpack.c.bf16 %v1526_v8, %v1524_v58  ;;  %v894_v20 = vsub.f32 0.0, %v854_v6  ;;  %v13180_v21 = vadd.f32 %v812_v47, %v12967_v61  ;;  %v1194_v23 = vsel %vm1034_vm14, %v1114_v63, %v1154_v4 }
 0x100   : > { %v1394_v0 = vsel %vm1034_vm14, %v1274_v10, %v1354_v11  ;;  %v1130_v24 = vadd.f32 1.0, %v1090_v13  ;;  %v1250_v31 = vmul.f32 2.0, %v1010_v27  ;;  %1783 = vmatmul.bf16.vlgmr.msra.gmra.mxu0 %v10782_v15  ;;  %v1170_v25 = vadd.f32 %v1090_v13, %v1010_v27 }
 0x101   : > { %11688 = vst [vmem:[%s13061_s25 + $0x20] sm:$0xff] %v11113_v44   ;;  %12249 = vrcp.f32 %v1394_v0  ;;  %v1330_v28 = vadd.f32 2.0, %v1090_v13  ;;  %v961_v26 = vmul.f32 1.442695, %v894_v20  ;;  %v1432_v30 = vmul.f32 %v1192_v9, %v13102_v16  ;;  %v417_v20 = vld [vmem:[%s15886_s1 + $0x50] sm:$0xff] }
 0x102   : > { %v12246_v29 = vpop.eup %12245  ;;  %12251 = vrcp.f32 %v1408_v19  ;;  %v1290_v32 = vadd.f32 %v1250_v31, %v1130_v24  ;;  %v856_v34 = vand.u32 2147483647, %v13180_v21  ;;  %v1208_v35 = vsel %vm1048_vm13, %v1128_v49, %v1168_v54  ;;  %v419_v54 = vld [vmem:[%s15886_s1 + $0x60] sm:$0xff] }
 0x103   : > { %v814_v22 = vpop.f32.mrf.mxu1  ;;  %v1370_v36 = vadd.f32 %v1330_v28, %v1010_v27  ;;  %v1012_v37 = vmul.f32 %v12246_v29, %v12246_v29  ;;  %v1092_v38 = vmul.f32 2.0, %v12246_v29  ;;  %v12248_v41 = vpop.eup %12247  ;;  %v1434_v42 = vmul.f32 %v1194_v23, %v13114_v2  ;;  %v414_v2 = vld [vmem:[%s15886_s1 + $0x38] sm:$0xff] }
 0x104   : > { %12253 = vpow2.f32 %v961_v26  ;;  %v896_v43 = vsub.f32 0.0, %v856_v34  ;;  %v13196_v16 = vadd.f32 %v814_v22, %v12967_v61  ;;  %v1210_v45 = vsel %vm1050_vm15, %v1130_v24, %v1170_v25  ;;  %464 = vperm.xlu1 %12182, %v414_v2   ;;  %v411_v34 = vld [vmem:[%s15886_s1 + $0x20] sm:$0xff] }
 0x105   : > { %v1410_v46 = vsel %vm1050_vm15, %v1290_v32, %v1370_v36  ;;  %v1132_v47 = vadd.f32 1.0, %v1092_v38  ;;  %v1252_v48 = vmul.f32 2.0, %v1012_v37  ;;  %v1332_v49 = vadd.f32 2.0, %v1092_v38  ;;  %449 = vperm.xlu2 %12183, %v411_v34   ;;  %v10815_v34 = vld [vmem:[%s15891_s6 + $0x78] sm:$0xff] }
 0x106   : > { %12255 = vrcp.f32 %v1410_v46  ;;  %v965_v12 = vmul.f32 1.442695, %v896_v43  ;;  %v858_v33 = vand.u32 2147483647, %v13196_v16  ;;  %474 = vperm.xlu0 %12181, %v416_v39   ;;  %v1448_v52 = vmul.f32 %v1208_v35, %v13105_v17  ;;  %v422_v43 = vld [vmem:[%s15886_s1 + $0x78] sm:$0xff]  ;;  %2416 = vmatpush.bf16.msrb.mxu3 %v10815_v34 }
 0x107   : > { %v12250_v51 = vpop.eup %12249  ;;  %vm1052_vm0 = vcmp.ge.f32.partialorder %v13133_v59, 0.0  ;;  %v1292_v55 = vadd.f32 %v1252_v48, %v1132_v47  ;;  %v1512_v56 = vmul.f32 %v12248_v41, %v1432_v30  ;;  %v1372_v14 = vadd.f32 %v1332_v49, %v1012_v37 }
 0x108   : > { %v12252_v58 = vpop.eup %12251  ;;  %v1514_v62 = vmul.f32 %v12250_v51, %v1434_v42  ;;  %12257 = vpow2.f32 %v965_v12  ;;  %v10786_v63 = vld [vmem:[%s13061_s25 + $0x20] sm:$0xff]  ;;  %v1450_v1 = vmul.f32 %v1210_v45, %v13125_v53  ;;  %v898_v40 = vsub.f32 0.0, %v858_v33  ;;  %v420_v51 = vld [vmem:[%s15886_s1 + $0x68] sm:$0xff] }
 0x109   : > { %v1412_v5 = vsel %vm1052_vm0, %v1292_v55, %v1372_v14  ;;  %1803 = vmatmul.bf16.gmra.mxu2 %v10786_v63  ;;  %v1528_v6 = vmul.f32 %v12252_v58, %v1448_v52  ;;  %v1172_v53 = vadd.f32 %v1092_v38, %v1012_v37  ;;  %vm1054_vm1 = vcmp.ge.f32.partialorder %v13160_v50, 0.0 }
 0x10a   : > { %v12254_v4 = vpop.eup %12253  ;;  %v11098_v17 = vpack.c.bf16 %v1514_v62, %v1512_v56  ;;  %v969_v9 = vmul.f32 1.442695, %v898_v40  ;;  %12259 = vrcp.f32 %v1412_v5  ;;  %vm1056_vm2 = vcmp.ge.f32.partialorder %v13180_v21, 0.0 }
 0x10b   : > { %v817_v57 = vpop.f32.mrf.mxu1  ;;  %v1014_v7 = vmul.f32 %v12254_v4, %v12254_v4  ;;  %v1094_v8 = vmul.f32 2.0, %v12254_v4  ;;  %v1212_v29 = vsel %vm1052_vm0, %v1132_v47, %v1172_v53  ;;  %vm1058_vm3 = vcmp.ge.f32.partialorder %v13196_v16, 0.0  ;;  %v425_v53 = vld [vmem:[%s15886_s1 + $0x90] sm:$0xff] }
 0x10c   : > { %v13211_v3 = vadd.f32 %v817_v57, %v12967_v61  ;;  %v12256_v10 = vpop.eup %12255  ;;  %11685 = vst [vmem:[%s13061_s25 + $0x8] sm:$0xff] %v11098_v17   ;;  %12261 = vpow2.f32 %v969_v9  ;;  %479 = vperm.xlu1 %12182, %v417_v20   ;;  %v1452_v46 = vmul.f32 %v1212_v29, %v13133_v59  ;;  %v412_v17 = vld [vmem:[%s15886_s1 + $0x28] sm:$0xff] }
 0x10d   : > { %v1530_v27 = vmul.f32 %v12256_v10, %v1450_v1  ;;  %v1134_v13 = vadd.f32 1.0, %v1094_v8  ;;  %v1254_v15 = vmul.f32 2.0, %v1014_v7  ;;  %v1334_v44 = vadd.f32 2.0, %v1094_v8  ;;  %454 = vperm.xlu2 %12183, %v412_v17  }
 0x10e   : > { %v860_v11 = vand.u32 2147483647, %v13211_v3  ;;  %v12258_v18 = vpop.eup %12257  ;;  %489 = vperm.xlu0 %12181, %v419_v54   ;;  %v1174_v23 = vadd.f32 %v1094_v8, %v1014_v7  ;;  %vm1060_vm4 = vcmp.ge.f32.partialorder %v13211_v3, 0.0 }
 0x10f   : > { %v11118_v22 = vpack.c.bf16 %v1530_v27, %v1528_v6  ;;  %v1294_v0 = vadd.f32 %v1254_v15, %v1134_v13  ;;  %v1016_v24 = vmul.f32 %v12258_v18, %v12258_v18  ;;  %v1374_v25 = vadd.f32 %v1334_v44, %v1014_v7 }
 0x110   : > { %v900_v19 = vsub.f32 0.0, %v860_v11  ;;  %v1096_v28 = vmul.f32 2.0, %v12258_v18  ;;  %v12260_v37 = vpop.eup %12259  ;;  %v1214_v38 = vsel %vm1054_vm1, %v1134_v13, %v1174_v23 }
 0x111   : > { %11689 = vst [vmem:[%s13061_s25 + $0x28] sm:$0xff] %v11118_v22   ;;  %v1256_v30 = vmul.f32 2.0, %v1016_v24  ;;  %v1414_v35 = vsel %vm1054_vm1, %v1294_v0, %v1374_v25  ;;  %v1454_v33 = vmul.f32 %v1214_v38, %v13160_v50  ;;  %v1532_v56 = vmul.f32 %v12260_v37, %v1452_v46  ;;  %v423_v22 = vld [vmem:[%s15886_s1 + $0x80] sm:$0xff]  ;;  %v426_v46 = vld [vmem:[%s15886_s1 + $0x98] sm:$0xff] }
 0x112   : > { %v973_v26 = vmul.f32 1.442695, %v900_v19  ;;  %v1136_v36 = vadd.f32 1.0, %v1096_v28  ;;  %12263 = vrcp.f32 %v1414_v35  ;;  %v1336_v39 = vadd.f32 2.0, %v1096_v28  ;;  %v12262_v45 = vpop.eup %12261 }
 0x113   : > { %v819_v31 = vpop.f32.mrf.mxu1  ;;  %v10783_v41 = vld [vmem:[%s13061_s25 + $0x8] sm:$0xff]  ;;  %v1018_v49 = vmul.f32 %v12262_v45, %v12262_v45  ;;  %v1098_v12 = vmul.f32 2.0, %v12262_v45  ;;  %v1176_v52 = vadd.f32 %v1096_v28, %v1016_v24 }
 0x114   : > { %v13228_v32 = vadd.f32 %v819_v31, %v12967_v61  ;;  %v1296_v47 = vadd.f32 %v1256_v30, %v1136_v36  ;;  %12265 = vpow2.f32 %v973_v26  ;;  %v1376_v48 = vadd.f32 %v1336_v39, %v1016_v24  ;;  %1788 = vmatmul.bf16.gmra.mxu0 %v10783_v41  ;;  %494 = vperm.xlu1 %12182, %v420_v51  }
 0x115   : > { %v1138_v55 = vadd.f32 1.0, %v1098_v12  ;;  %v1258_v57 = vmul.f32 2.0, %v1018_v49  ;;  %v1338_v62 = vadd.f32 2.0, %v1098_v12  ;;  %v1178_v40 = vadd.f32 %v1098_v12, %v1018_v49 }
 0x116   : > { %v862_v42 = vand.u32 2147483647, %v13228_v32  ;;  %504 = vperm.xlu0 %12181, %v422_v43   ;;  %v1416_v59 = vsel %vm1056_vm2, %v1296_v47, %v1376_v48  ;;  %v1216_v8 = vsel %vm1056_vm2, %v1136_v36, %v1176_v52  ;;  %vm1062_vm5 = vcmp.ge.f32.partialorder %v13228_v32, 0.0 }
 0x117   : > { %12267 = vrcp.f32 %v1416_v59  ;;  %v1298_v4 = vadd.f32 %v1258_v57, %v1138_v55  ;;  %v1378_v7 = vadd.f32 %v1338_v62, %v1018_v49  ;;  %v1218_v13 = vsel %vm1058_vm3, %v1138_v55, %v1178_v40  ;;  %v415_v62 = vld [vmem:[%s15886_s1 + $0x40] sm:$0xff] }
 0x118   : > { %v902_v2 = vsub.f32 0.0, %v862_v42  ;;  %v10787_v14 = vld [vmem:[%s13061_s25 + $0x28] sm:$0xff]  ;;  %v12264_v1 = vpop.eup %12263  ;;  %v1456_v44 = vmul.f32 %v1216_v8, %v13180_v21  ;;  %v1458_v25 = vmul.f32 %v1218_v13, %v13196_v16  ;;  %469 = vperm.xlu2 %12183, %v415_v62  }
 0x119   : > { %v1534_v6 = vmul.f32 %v12264_v1, %v1454_v33  ;;  %1808 = vmatmul.bf16.gmra.mxu2 %v10787_v14  ;;  %v1418_v27 = vsel %vm1058_vm3, %v1298_v4, %v1378_v7  ;;  %v10813_v14 = vld [vmem:[%s15891_s6 + $0x68] sm:$0xff] }
 0x11a   : > { %v977_v63 = vmul.f32 1.442695, %v902_v2  ;;  %v12266_v5 = vpop.eup %12265 }
 0x11b   : > { %v822_v58 = vpop.f32.mrf.mxu1  ;;  %v1020_v9 = vmul.f32 %v12266_v5, %v12266_v5  ;;  %v1100_v54 = vmul.f32 2.0, %v12266_v5  ;;  %v11123_v11 = vpack.c.bf16 %v1534_v6, %v1532_v56 }
 0x11c   : > { %v13252_v50 = vadd.f32 %v822_v58, %v12967_v61  ;;  %12269 = vpow2.f32 %v977_v63  ;;  %509 = vperm.xlu1 %12182, %v423_v22  }
 0x11d   : > { %12271 = vrcp.f32 %v1418_v27  ;;  %v1140_v15 = vadd.f32 1.0, %v1100_v54  ;;  %v1260_v18 = vmul.f32 2.0, %v1020_v9  ;;  %11690 = vst [vmem:[%s13061_s25 + $0x30] sm:$0xff] %v11123_v11   ;;  %v1340_v19 = vadd.f32 2.0, %v1100_v54  ;;  %v12268_v23 = vpop.eup %12267 }
 0x11e   : > { %v864_v10 = vand.u32 2147483647, %v13252_v50  ;;  %519 = vperm.xlu0 %12181, %v425_v53   ;;  %v1536_v35 = vmul.f32 %v12268_v23, %v1456_v44  ;;  %v1180_v16 = vadd.f32 %v1100_v54, %v1020_v9  ;;  %vm1064_vm6 = vcmp.ge.f32.partialorder %v13252_v50, 0.0 }
 0x11f   : > { %v1300_v0 = vadd.f32 %v1260_v18, %v1140_v15  ;;  %v1380_v28 = vadd.f32 %v1340_v19, %v1020_v9 }
 0x120   : > { %v904_v20 = vsub.f32 0.0, %v864_v10  ;;  %v1220_v51 = vsel %vm1060_vm4, %v1140_v15, %v1180_v16  ;;  %v10811_v16 = vld [vmem:[%s15891_s6 + $0x58] sm:$0xff] }
 0x121   : > { %v1420_v36 = vsel %vm1060_vm4, %v1300_v0, %v1380_v28  ;;  %v1460_v56 = vmul.f32 %v1220_v51, %v13211_v3  ;;  %v418_v28 = vld [vmem:[%s15886_s1 + $0x58] sm:$0xff] }
 0x122   : > { %v12270_v31 = vpop.eup %12269  ;;  %v981_v26 = vmul.f32 1.442695, %v904_v20  ;;  %484 = vperm.xlu2 %12183, %v418_v28  }
 0x123   : > { %v824_v24 = vpop.f32.mrf.mxu1  ;;  %v1022_v29 = vmul.f32 %v12270_v31, %v12270_v31  ;;  %v1102_v30 = vmul.f32 2.0, %v12270_v31  ;;  %v12272_v38 = vpop.eup %12271 }
 0x124   : > { %v13276_v21 = vadd.f32 %v824_v24, %v12967_v61  ;;  %12273 = vpow2.f32 %v981_v26  ;;  %v10814_v61 = vld [vmem:[%s15891_s6 + $0x70] sm:$0xff]  ;;  %v1538_v42 = vmul.f32 %v12272_v38, %v1458_v25  ;;  %524 = vperm.xlu1 %12182, %v426_v46   ;;  %v10812_v26 = vld [vmem:[%s15891_s6 + $0x60] sm:$0xff] }
 0x125   : > { %v1142_v39 = vadd.f32 1.0, %v1102_v30  ;;  %v1262_v41 = vmul.f32 2.0, %v1022_v29  ;;  %v1342_v43 = vadd.f32 2.0, %v1102_v30  ;;  %12275 = vrcp.f32 %v1420_v36  ;;  %v10788_v33 = vld [vmem:[%s13061_s25 + $0x30] sm:$0xff]  ;;  %2417 = vmatpush.bf16.msrb.mxu3 %v10814_v61  ;;  %v424_v36 = vld [vmem:[%s15886_s1 + $0x88] sm:$0xff] }
 0x126   : > { %v866_v37 = vand.u32 2147483647, %v13276_v21  ;;  %v1182_v47 = vadd.f32 %v1102_v30, %v1022_v29  ;;  %v11128_v49 = vpack.c.bf16 %v1538_v42, %v1536_v35  ;;  %vm1066_vm7 = vcmp.ge.f32.partialorder %v13276_v21, 0.0  ;;  %v13331_v38 = vld [vmem:[%s15890_s5] ss:$0 sm:$0xff] }
 0x127   : > { %v1302_v48 = vadd.f32 %v1262_v41, %v1142_v39  ;;  %v1382_v12 = vadd.f32 %v1342_v43, %v1022_v29 }
 0x128   : > { %v906_v45 = vsub.f32 0.0, %v866_v37  ;;  %11691 = vst [vmem:[%s13061_s25 + $0x38] sm:$0xff] %v11128_v49   ;;  %v1222_v55 = vsel %vm1062_vm5, %v1142_v39, %v1182_v47 }
 0x129   : > { %v1422_v59 = vsel %vm1062_vm5, %v1302_v48, %v1382_v12  ;;  %1813 = vmatmul.bf16.gmra.mxu2 %v10788_v33  ;;  %v1462_v17 = vmul.f32 %v1222_v55, %v13228_v32  ;;  %2418 = vmatpush.bf16.msrb.mxu3 %v10813_v14 }
 0x12a   : > { %v985_v2 = vmul.f32 1.442695, %v906_v45  ;;  %v12274_v52 = vpop.eup %12273 }
 0x12b   : > { %v1024_v57 = vmul.f32 %v12274_v52, %v12274_v52  ;;  %v1104_v58 = vmul.f32 2.0, %v12274_v52  ;;  %v12276_v63 = vpop.eup %12275 }
 0x12c   : > { %12277 = vpow2.f32 %v985_v2  ;;  %v1540_v7 = vmul.f32 %v12276_v63, %v1460_v56  ;;  %v10807_v63 = vld [vmem:[%s15891_s6 + $0x38] sm:$0xff] }
 0x12d   : > { %12279 = vrcp.f32 %v1422_v59  ;;  %v1144_v1 = vadd.f32 1.0, %v1104_v58  ;;  %v1264_v40 = vmul.f32 2.0, %v1024_v57  ;;  %v1344_v4 = vadd.f32 2.0, %v1104_v58  ;;  %2419 = vmatpush.bf16.msrb.mxu3 %v10812_v26  ;;  %2645 = vmatpush.bf16.msrb.mxu0 %v10807_v63 }
 0x12e   : > { %v1184_v11 = vadd.f32 %v1104_v58, %v1024_v57 }
 0x12f   : > { %v1304_v3 = vadd.f32 %v1264_v40, %v1144_v1  ;;  %v1384_v5 = vadd.f32 %v1344_v4, %v1024_v57  ;;  %v10789_v0 = vld [vmem:[%s13061_s25 + $0x38] sm:$0xff] }
 0x130   : > { %v1224_v20 = vsel %vm1064_vm6, %v1144_v1, %v1184_v11  ;;  %v10810_v11 = vld [vmem:[%s15891_s6 + $0x50] sm:$0xff] }
 0x131   : > { %v1424_v9 = vsel %vm1064_vm6, %v1304_v3, %v1384_v5  ;;  %v1464_v24 = vmul.f32 %v1224_v20, %v13252_v50  ;;  %v421_v50 = vld [vmem:[%s15886_s1 + $0x70] sm:$0xff]  ;;  %2420 = vmatpush.bf16.msrb.mxu3 %v10811_v16 }
 0x132   : > { %v12278_v6 = vpop.eup %12277  ;;  %12281 = vrcp.f32 %v1424_v9  ;;  %499 = vperm.xlu2 %12183, %v421_v50  }
 0x133   : > { %v12280_v8 = vpop.eup %12279  ;;  %v1026_v54 = vmul.f32 %v12278_v6, %v12278_v6  ;;  %v1106_v10 = vmul.f32 2.0, %v12278_v6 }
 0x134   : > { %v1542_v53 = vmul.f32 %v12280_v8, %v1462_v17 }
 0x135   : > { %v1146_v27 = vadd.f32 1.0, %v1106_v10  ;;  %v1266_v13 = vmul.f32 2.0, %v1026_v54  ;;  %v1346_v32 = vadd.f32 2.0, %v1106_v10  ;;  %v1186_v18 = vadd.f32 %v1106_v10, %v1026_v54  ;;  %2421 = vmatpush.bf16.msrb.mxu3 %v10810_v11 }
 0x136   : > { %v11133_v15 = vpack.c.bf16 %v1542_v53, %v1540_v7 }
 0x137   : > { %v1306_v44 = vadd.f32 %v1266_v13, %v1146_v27  ;;  %v1386_v19 = vadd.f32 %v1346_v32, %v1026_v54  ;;  %v1226_v23 = vsel %vm1066_vm7, %v1146_v27, %v1186_v18 }
 0x138   : > { %11692 = vst [vmem:[%s13061_s25 + $0x40] sm:$0xff] %v11133_v15   ;;  %v12282_v31 = vpop.eup %12281  ;;  %v1466_v25 = vmul.f32 %v1226_v23, %v13276_v21 }
 0x139   : > { %v1426_v22 = vsel %vm1066_vm7, %v1306_v44, %v1386_v19  ;;  %1818 = vmatmul.bf16.gmra.mxu2 %v10789_v0  ;;  %v1544_v29 = vmul.f32 %v12282_v31, %v1464_v24  ;;  %v728_v44 = vpop.f32.mrf.mxu3 }
 0x13a   : > { %12283 = vrcp.f32 %v1426_v22  ;;  %514 = vperm.xlu2 %12183, %v424_v36   ;;  %v13368_v20 = vadd.f32 %v728_v44, %v12965_v60 }
 0x13c   : > { %vm1035_vm15 = vcmp.ge.f32.partialorder %v13368_v20, 0.0 }
 0x13f   : > { %v10790_v21 = vld [vmem:[%s13061_s25 + $0x40] sm:$0xff] }
 0x140   : > { %v12284_v30 = vpop.eup %12283 }
 0x141   : > { %v1546_v34 = vmul.f32 %v12284_v30, %v1466_v25  ;;  %v835_v25 = vand.u32 2147483647, %v13368_v20  ;;  %v10806_v30 = vld [vmem:[%s15891_s6 + $0x30] sm:$0xff] }
 0x142   : > { %2646 = vmatpush.bf16.msrb.mxu0 %v10806_v30 }
 0x143   : > { %v11138_v35 = vpack.c.bf16 %v1546_v34, %v1544_v29  ;;  %v875_v50 = vsub.f32 0.0, %v835_v25 }
 0x145   : > { %11693 = vst [vmem:[%s13061_s25 + $0x48] sm:$0xff] %v11138_v35  }
 0x149   : > { %1823 = vmatmul.bf16.gmra.mxu2 %v10790_v21 }
 0x14c   : > { %v10791_v37 = vld [vmem:[%s13061_s25 + $0x48] sm:$0xff] }
 0x159   : > { %1828 = vmatmul.bf16.gmra.mxu2 %v10791_v37 }
 0x160   : > { %v13365_v15 = vpop.permute.xlu0 %429 }
 0x161   : > { %v1794_v39 = vpop.f32.mrf.mxu2 }
 0x162   : > { %v13337_v41 = vadd.f32 %v13331_v38, %v1794_v39 }
 0x164   : > { %v1838_v61 = vand.u32 2147483647, %v13337_v41  ;;  %vm1938_vm8 = vcmp.ge.f32.partialorder %v13337_v41, 0.0 }
 0x166   : > { %v1858_v42 = vsub.f32 0.0, %v1838_v61 }
 0x168   : > { %v1882_v43 = vmul.f32 1.442695, %v1858_v42 }
 0x169   : > { %v1796_v45 = vpop.f32.mrf.mxu2 }
 0x16a   : > { %v13341_v46 = vadd.f32 %v13331_v38, %v1796_v45  ;;  %12285 = vpow2.f32 %v1882_v43  ;;  %v13382_v43 = vpop.permute.xlu2 %449  ;;  %v923_v45 = vmul.f32 1.442695, %v875_v50 }
 0x16c   : > { %v1839_v47 = vand.u32 2147483647, %v13341_v46  ;;  %vm1939_vm9 = vcmp.ge.f32.partialorder %v13341_v46, 0.0 }
 0x16e   : > { %v1859_v48 = vsub.f32 0.0, %v1839_v47 }
 0x170   : > { %v1884_v49 = vmul.f32 1.442695, %v1859_v48  ;;  %v12286_v12 = vpop.eup %12285 }
 0x171   : > { %v1918_v33 = vmul.f32 %v12286_v12, %v12286_v12  ;;  %v1958_v2 = vmul.f32 2.0, %v12286_v12 }
 0x172   : > { %12287 = vpow2.f32 %v1884_v49 }
 0x173   : > { %v1978_v55 = vadd.f32 1.0, %v1958_v2  ;;  %v2038_v57 = vmul.f32 2.0, %v1918_v33  ;;  %v2078_v58 = vadd.f32 2.0, %v1958_v2  ;;  %v1998_v22 = vadd.f32 %v1958_v2, %v1918_v33  ;;  %v10841_v2 = vld [vmem:[%s15891_s6 + $0xf8] sm:$0xff] }
 0x174   : > { %3264 = vmatpush.bf16.msrb.mxu2 %v10841_v2  ;;  %v10839_v2 = vld [vmem:[%s15891_s6 + $0xe8] sm:$0xff] }
 0x175   : > { %v2058_v40 = vadd.f32 %v2038_v57, %v1978_v55  ;;  %v2098_v4 = vadd.f32 %v2078_v58, %v1918_v33  ;;  %v2018_v21 = vsel %vm1938_vm8, %v1978_v55, %v1998_v22  ;;  %v10805_v33 = vld [vmem:[%s15891_s6 + $0x28] sm:$0xff]  ;;  %v13392_v55 = vpop.permute.xlu0 %434 }
 0x176   : > { %v1799_v51 = vpop.f32.mrf.mxu2  ;;  %v2138_v48 = vmul.f32 %v2018_v21, %v13337_v41  ;;  %2647 = vmatpush.bf16.msrb.mxu0 %v10805_v33 }
 0x177   : > { %v13345_v59 = vadd.f32 %v13331_v38, %v1799_v51  ;;  %v2118_v27 = vsel %vm1938_vm8, %v2058_v40, %v2098_v4 }
 0x178   : > { %v12288_v52 = vpop.eup %12287 }
 0x179   : > { %v1840_v56 = vand.u32 2147483647, %v13345_v59  ;;  %v1919_v62 = vmul.f32 %v12288_v52, %v12288_v52  ;;  %v1959_v14 = vmul.f32 2.0, %v12288_v52  ;;  %vm1940_vm10 = vcmp.ge.f32.partialorder %v13345_v59, 0.0 }
 0x17b   : > { %v1860_v1 = vsub.f32 0.0, %v1840_v56  ;;  %v1979_v5 = vadd.f32 1.0, %v1959_v14  ;;  %v2039_v6 = vmul.f32 2.0, %v1919_v62  ;;  %v2079_v7 = vadd.f32 2.0, %v1959_v14 }
 0x17c   : > { %v1999_v23 = vadd.f32 %v1959_v14, %v1919_v62 }
 0x17d   : > { %v1886_v17 = vmul.f32 1.442695, %v1860_v1  ;;  %v1784_v3 = vpop.f32.mrf.mxu0  ;;  %v2059_v13 = vadd.f32 %v2039_v6, %v1979_v5  ;;  %v2099_v32 = vadd.f32 %v2079_v7, %v1919_v62  ;;  %v10809_v6 = vld [vmem:[%s15891_s6 + $0x48] sm:$0xff]  ;;  %v10804_v7 = vld [vmem:[%s15891_s6 + $0x20] sm:$0xff] }
 0x17e   : > { %v1801_v8 = vpop.f32.mrf.mxu2  ;;  %v13352_v9 = vadd.f32 %v13331_v38, %v1784_v3  ;;  %v2019_v36 = vsel %vm1939_vm9, %v1979_v5, %v1999_v23  ;;  %2422 = vmatpush.bf16.msrb.mxu3 %v10809_v6  ;;  %2648 = vmatpush.bf16.msrb.mxu0 %v10804_v7  ;;  %v10802_v6 = vld [vmem:[%s15891_s6 + $0x10] sm:$0xff] }
 0x17f   : > { %v13356_v54 = vadd.f32 %v13331_v38, %v1801_v8  ;;  %12289 = vpow2.f32 %v1886_v17  ;;  %v2119_v26 = vsel %vm1939_vm9, %v2059_v13, %v2099_v32  ;;  %v2139_v52 = vmul.f32 %v2019_v36, %v13341_v46  ;;  %v13424_v36 = vpop.permute.xlu2 %454 }
 0x180   : > { %v1834_v10 = vand.u32 2147483647, %v13352_v9  ;;  %12291 = vrcp.f32 %v2118_v27  ;;  %vm1934_vm11 = vcmp.ge.f32.partialorder %v13352_v9, 0.0 }
 0x181   : > { %v1841_v53 = vand.u32 2147483647, %v13356_v54  ;;  %vm1941_vm12 = vcmp.ge.f32.partialorder %v13356_v54, 0.0 }
 0x182   : > { %v1854_v18 = vsub.f32 0.0, %v1834_v10 }
 0x183   : > { %v1861_v19 = vsub.f32 0.0, %v1841_v53 }
 0x184   : > { %v1874_v0 = vmul.f32 1.442695, %v1854_v18 }
 0x185   : > { %v1888_v24 = vmul.f32 1.442695, %v1861_v19  ;;  %v1786_v31 = vpop.f32.mrf.mxu0  ;;  %v12290_v28 = vpop.eup %12289 }
 0x186   : > { %12293 = vpow2.f32 %v1874_v0  ;;  %v13373_v29 = vadd.f32 %v13331_v38, %v1786_v31  ;;  %v1920_v34 = vmul.f32 %v12290_v28, %v12290_v28  ;;  %v1960_v35 = vmul.f32 2.0, %v12290_v28  ;;  %v12292_v47 = vpop.eup %12291  ;;  %v10833_v31 = vld [vmem:[%s15891_s6 + $0xb8] sm:$0xff]  ;;  %v13419_v28 = vpop.permute.xlu1 %439 }
 0x187   : > { %12295 = vpow2.f32 %v1888_v24  ;;  %v13401_v4 = vmul.f32 %v12292_v47, %v2138_v48  ;;  %2938 = vmatpush.bf16.msrb.mxu1 %v10833_v31  ;;  %v13431_v48 = vpop.permute.xlu0 %459 }
 0x188   : > { %v1835_v37 = vand.u32 2147483647, %v13373_v29  ;;  %v1980_v16 = vadd.f32 1.0, %v1960_v35  ;;  %v2000_v39 = vadd.f32 %v1960_v35, %v1920_v34  ;;  %v2040_v61 = vmul.f32 2.0, %v1920_v34 }
 0x189   : > { %v2080_v42 = vadd.f32 2.0, %v1960_v35  ;;  %12297 = vrcp.f32 %v2119_v26  ;;  %vm1935_vm14 = vcmp.ge.f32.partialorder %v13373_v29, 0.0 }
 0x18a   : > { %v2060_v49 = vadd.f32 %v2040_v61, %v1980_v16  ;;  %v1855_v57 = vsub.f32 0.0, %v1835_v37  ;;  %12299 = vpow2.f32 %v923_v45  ;;  %v2020_v41 = vsel %vm1940_vm10, %v1980_v16, %v2000_v39  ;;  %v730_v16 = vpop.f32.mrf.mxu3 }
 0x18b   : > { %v2100_v12 = vadd.f32 %v2080_v42, %v1920_v34  ;;  %v2140_v13 = vmul.f32 %v2020_v41, %v13345_v59  ;;  %v10840_v59 = vld [vmem:[%s15891_s6 + $0xf0] sm:$0xff]  ;;  %v10803_v34 = vld [vmem:[%s15891_s6 + $0x18] sm:$0xff] }
 0x18c   : > { %v12294_v51 = vpop.eup %12293  ;;  %v1804_v63 = vpop.f32.mrf.mxu2  ;;  %v1876_v0 = vmul.f32 1.442695, %v1855_v57  ;;  %3265 = vmatpush.bf16.msrb.mxu2 %v10840_v59  ;;  %2649 = vmatpush.bf16.msrb.mxu0 %v10803_v34  ;;  %v13443_v57 = vadd.f32 %v730_v16, %v12965_v60  ;;  %v10801_v59 = vld [vmem:[%s15891_s6 + $0x8] sm:$0xff] }
 0x18d   : > { %v12296_v58 = vpop.eup %12295  ;;  %v2120_v56 = vsel %vm1940_vm10, %v2060_v49, %v2100_v12  ;;  %v1914_v62 = vmul.f32 %v12294_v51, %v12294_v51  ;;  %v1954_v14 = vmul.f32 2.0, %v12294_v51  ;;  %v13399_v46 = vadd.f32 %v13331_v38, %v1804_v63  ;;  %v10832_v63 = vld [vmem:[%s15891_s6 + $0xb0] sm:$0xff] }
 0x18e   : > { %12301 = vrcp.f32 %v2120_v56  ;;  %v1921_v1 = vmul.f32 %v12296_v58, %v12296_v58  ;;  %v1961_v40 = vmul.f32 2.0, %v12296_v58  ;;  %2939 = vmatpush.bf16.msrb.mxu1 %v10832_v63  ;;  %vm1037_vm4 = vcmp.ge.f32.partialorder %v13443_v57, 0.0 }
 0x18f   : > { %v1974_v17 = vadd.f32 1.0, %v1954_v14  ;;  %v2034_v3 = vmul.f32 2.0, %v1914_v62  ;;  %v2074_v5 = vadd.f32 2.0, %v1954_v14  ;;  %v12298_v8 = vpop.eup %12297  ;;  %v1994_v27 = vadd.f32 %v1954_v14, %v1914_v62 }
 0x190   : > { %v1981_v10 = vadd.f32 1.0, %v1961_v40  ;;  %v2041_v53 = vmul.f32 2.0, %v1921_v1  ;;  %v2081_v11 = vadd.f32 2.0, %v1961_v40  ;;  %v1842_v44 = vand.u32 2147483647, %v13399_v46  ;;  %v12300_v19 = vpop.eup %12299  ;;  %3266 = vmatpush.bf16.msrb.mxu2 %v10839_v2  ;;  %2650 = vmatpush.bf16.msrb.mxu0 %v10802_v6 }
 0x191   : > { %v2054_v32 = vadd.f32 %v2034_v3, %v1974_v17  ;;  %v2094_v18 = vadd.f32 %v2074_v5, %v1914_v62  ;;  %v1789_v24 = vpop.f32.mrf.mxu0  ;;  %v2179_v30 = vmul.f32 %v12298_v8, %v2139_v52  ;;  %v2001_v50 = vadd.f32 %v1961_v40, %v1921_v1 }
 0x192   : > { %v2061_v22 = vadd.f32 %v2041_v53, %v1981_v10  ;;  %v2101_v23 = vadd.f32 %v2081_v11, %v1921_v1  ;;  %v1862_v26 = vsub.f32 0.0, %v1842_v44  ;;  %v2014_v21 = vsel %vm1934_vm11, %v1974_v17, %v1994_v27 }
 0x193   : > { %v2114_v25 = vsel %vm1934_vm11, %v2054_v32, %v2094_v18  ;;  %v13427_v37 = vadd.f32 %v13331_v38, %v1789_v24  ;;  %v995_v47 = vmul.f32 %v12300_v19, %v12300_v19  ;;  %v1075_v33 = vmul.f32 2.0, %v12300_v19  ;;  %v13470_v24 = vpop.permute.xlu1 %444 }
 0x194   : > { %v12302_v35 = vpop.eup %12301  ;;  %12303 = vrcp.f32 %v2114_v25  ;;  %v2121_v61 = vsel %vm1941_vm12, %v2061_v22, %v2101_v23  ;;  %v1890_v42 = vmul.f32 1.442695, %v1862_v26  ;;  %v1806_v45 = vpop.f32.mrf.mxu2  ;;  %v2199_v52 = vmul.f32 %v2179_v30, %v13424_v36  ;;  %2651 = vmatpush.bf16.msrb.mxu0 %v10801_v59 }
 0x195   : > { %v2180_v39 = vmul.f32 %v12302_v35, %v2140_v13  ;;  %12305 = vpow2.f32 %v1876_v0  ;;  %v13434_v49 = vadd.f32 %v13331_v38, %v1806_v45  ;;  %v1836_v12 = vand.u32 2147483647, %v13427_v37  ;;  %v10808_v13 = vld [vmem:[%s15891_s6 + $0x40] sm:$0xff] }
 0x196   : > { %12307 = vpow2.f32 %v1890_v42  ;;  %v2021_v56 = vsel %vm1941_vm12, %v1981_v10, %v2001_v50  ;;  %v2134_v62 = vmul.f32 %v2014_v21, %v13352_v9  ;;  %v1115_v3 = vadd.f32 1.0, %v1075_v33  ;;  %2423 = vmatpush.bf16.msrb.mxu3 %v10808_v13 }
 0x197   : > { %v2200_v51 = vmul.f32 %v2180_v39, %v13431_v48  ;;  %v1843_v58 = vand.u32 2147483647, %v13434_v49  ;;  %v1856_v41 = vsub.f32 0.0, %v1836_v12  ;;  %12309 = vrcp.f32 %v2121_v61 }
 0x198   : > { %v1235_v5 = vmul.f32 2.0, %v995_v47  ;;  %v13457_v8 = vmul.f32 %v13401_v4, %v13382_v43  ;;  %v1315_v9 = vadd.f32 2.0, %v1075_v33  ;;  %v837_v10 = vand.u32 2147483647, %v13443_v57 }
 0x199   : > { %v11153_v14 = vpack.c.bf16 %v2200_v51, %v2199_v52  ;;  %v1863_v40 = vsub.f32 0.0, %v1843_v58  ;;  %v1878_v17 = vmul.f32 1.442695, %v1856_v41  ;;  %v2141_v11 = vmul.f32 %v2021_v56, %v13356_v54  ;;  %v10831_v54 = vld [vmem:[%s15891_s6 + $0xa8] sm:$0xff]  ;;  %v1791_v50 = vpop.f32.mrf.mxu0 }
 0x19a   : > { %v12304_v1 = vpop.eup %12303  ;;  %vm1942_vm13 = vcmp.ge.f32.partialorder %v13399_v46, 0.0  ;;  %v1155_v19 = vadd.f32 %v1075_v33, %v995_v47  ;;  %v1275_v31 = vadd.f32 %v1235_v5, %v1115_v3  ;;  %v1355_v35 = vadd.f32 %v1315_v9, %v995_v47  ;;  %2940 = vmatpush.bf16.msrb.mxu1 %v10831_v54 }
 0x19b   : > { %v2174_v7 = vmul.f32 %v12304_v1, %v2134_v62  ;;  %11696 = vst [vmem:[#allocation2 + $0x20] sm:$0xff] %v11153_v14   ;;  %v12306_v53 = vpop.eup %12305  ;;  %v1892_v27 = vmul.f32 1.442695, %v1863_v40  ;;  %12311 = vpow2.f32 %v1878_v17  ;;  %v877_v12 = vsub.f32 0.0, %v837_v10  ;;  %v733_v14 = vpop.f32.mrf.mxu3 }
 0x19c   : > { %v12308_v4 = vpop.eup %12307  ;;  %v1915_v18 = vmul.f32 %v12306_v53, %v12306_v53  ;;  %v1955_v44 = vmul.f32 2.0, %v12306_v53  ;;  %v1809_v22 = vpop.f32.mrf.mxu2  ;;  %v13477_v58 = vadd.f32 %v13331_v38, %v1791_v50  ;;  %vm1936_vm0 = vcmp.ge.f32.partialorder %v13427_v37, 0.0 }
 0x19d   : > { %v2194_v32 = vmul.f32 %v2174_v7, %v13365_v15  ;;  %v1922_v23 = vmul.f32 %v12308_v4, %v12308_v4  ;;  %v1962_v0 = vmul.f32 2.0, %v12308_v4  ;;  %12313 = vpow2.f32 %v1892_v27  ;;  %v12310_v25 = vpop.eup %12309 }
 0x19e   : > { %v1975_v30 = vadd.f32 1.0, %v1955_v44  ;;  %v2035_v34 = vmul.f32 2.0, %v1915_v18  ;;  %v2075_v45 = vadd.f32 2.0, %v1955_v44  ;;  %v2181_v52 = vmul.f32 %v12310_v25, %v2141_v11 }
 0x19f   : > { %v2214_v26 = vpack.c.bf16 %v2194_v32, %v2194_v32  ;;  %v1982_v21 = vadd.f32 1.0, %v1962_v0  ;;  %v2002_v16 = vadd.f32 %v1962_v0, %v1922_v23  ;;  %v2042_v39 = vmul.f32 2.0, %v1922_v23 }
 0x1a0   : > { %v2082_v61 = vadd.f32 2.0, %v1962_v0  ;;  %v2055_v42 = vadd.f32 %v2035_v34, %v1975_v30  ;;  %v2095_v47 = vadd.f32 %v2075_v45, %v1915_v18  ;;  %v1195_v62 = vsel %vm1035_vm15, %v1115_v3, %v1155_v19 }
 0x1a1   : > { %2234 = vst [vmem:[#allocation2 + $0xc] sm:$0xf] %v2214_v26  ;;  %v12312_v33 = vpop.eup %12311  ;;  %v2062_v2 = vadd.f32 %v2042_v39, %v1982_v21  ;;  %v2022_v1 = vsel %vm1942_vm13, %v1982_v21, %v2002_v16  ;;  %v1395_v17 = vsel %vm1035_vm15, %v1275_v31, %v1355_v35  ;;  %v13489_v5 = vadd.f32 %v13331_v38, %v1809_v22  ;;  %v10838_v26 = vld [vmem:[%s15891_s6 + $0xe0] sm:$0xff]  ;;  %v13506_v39 = vpop.permute.xlu2 %469 }
 0x1a2   : > { %v2102_v51 = vadd.f32 %v2082_v61, %v1922_v23  ;;  %v1916_v41 = vmul.f32 %v12312_v33, %v12312_v33  ;;  %v1956_v56 = vmul.f32 2.0, %v12312_v33  ;;  %v2115_v6 = vsel %vm1935_vm14, %v2055_v42, %v2095_v47  ;;  %v13495_v23 = vpop.permute.xlu1 %464  ;;  %15925 = vst [vmem:[#allocation3_spill] sm:$0xff] %v13506_v39  ;;  %3267 = vmatpush.bf16.msrb.mxu2 %v10838_v26  ;;  %v10837_v26 = vld [vmem:[%s15891_s6 + $0xd8] sm:$0xff] }
 0x1a3   : > { %v12314_v63 = vpop.eup %12313  ;;  %v1995_v10 = vadd.f32 %v1955_v44, %v1915_v18  ;;  %v2142_v27 = vmul.f32 %v2022_v1, %v13399_v46  ;;  %v1837_v32 = vand.u32 2147483647, %v13477_v58  ;;  %v1844_v0 = vand.u32 2147483647, %v13489_v5 }
 0x1a4   : > { %v2122_v40 = vsel %vm1942_vm13, %v2062_v2, %v2102_v51  ;;  %v1923_v7 = vmul.f32 %v12314_v63, %v12314_v63  ;;  %v1963_v3 = vmul.f32 2.0, %v12314_v63  ;;  %v1811_v9 = vpop.f32.mrf.mxu2  ;;  %v1976_v53 = vadd.f32 1.0, %v1956_v56 }
 0x1a5   : > { %12315 = vrcp.f32 %v2122_v40  ;;  %v2036_v11 = vmul.f32 2.0, %v1916_v41  ;;  %v2076_v54 = vadd.f32 2.0, %v1956_v56  ;;  %vm1943_vm1 = vcmp.ge.f32.partialorder %v13434_v49, 0.0 }
 0x1a6   : > { %12317 = vrcp.f32 %v2115_v6  ;;  %v1983_v13 = vadd.f32 1.0, %v1963_v3  ;;  %v2043_v4 = vmul.f32 2.0, %v1923_v7  ;;  %v2083_v19 = vadd.f32 2.0, %v1963_v3  ;;  %3268 = vmatpush.bf16.msrb.mxu2 %v10837_v26 }
 0x1a7   : > { %v2056_v22 = vadd.f32 %v2036_v11, %v1976_v53  ;;  %v1996_v31 = vadd.f32 %v1956_v56, %v1916_v41  ;;  %v2201_v18 = vmul.f32 %v2181_v52, %v13495_v23  ;;  %v927_v44 = vmul.f32 1.442695, %v877_v12 }
 0x1a8   : > { %v2015_v46 = vsel %vm1935_vm14, %v1975_v30, %v1995_v10  ;;  %v2096_v59 = vadd.f32 %v2076_v54, %v1916_v41  ;;  %12319 = vrcp.f32 %v1395_v17  ;;  %v1864_v25 = vsub.f32 0.0, %v1844_v0  ;;  %v13534_v10 = vld [vmem:[#allocation2 + $0x8] sm:$0xff]  }
 0x1a9   : > { %v2003_v35 = vadd.f32 %v1963_v3, %v1923_v7  ;;  %v2063_v50 = vadd.f32 %v2043_v4, %v1983_v13  ;;  %v1435_v21 = vmul.f32 %v1195_v62, %v13368_v20  ;;  %v1857_v16 = vsub.f32 0.0, %v1837_v32  ;;  %v735_v20 = vpop.f32.mrf.mxu3 }
 0x1aa   : > { %v2103_v45 = vadd.f32 %v2083_v19, %v1923_v7  ;;  %v2116_v30 = vsel %vm1936_vm0, %v2056_v22, %v2096_v59  ;;  %v1894_v12 = vmul.f32 1.442695, %v1864_v25  ;;  %v2135_v33 = vmul.f32 %v2015_v46, %v13373_v29 }
 0x1ab   : > { %v12316_v34 = vpop.eup %12315  ;;  %v2016_v2 = vsel %vm1936_vm0, %v1976_v53, %v1996_v31  ;;  %12321 = vrcp.f32 %v2116_v30  ;;  %v1880_v51 = vmul.f32 1.442695, %v1857_v16  ;;  %v13514_v47 = vadd.f32 %v13331_v38, %v1811_v9  ;;  %v10830_v53 = vld [vmem:[%s15891_s6 + $0xa0] sm:$0xff] }
 0x1ac   : > { %v12318_v61 = vpop.eup %12317  ;;  %v2182_v42 = vmul.f32 %v12316_v34, %v2142_v27  ;;  %v1814_v52 = vpop.f32.mrf.mxu2  ;;  %12323 = vpow2.f32 %v1894_v12  ;;  %v13517_v41 = vadd.f32 %v733_v14, %v12965_v60  ;;  %v2023_v29 = vsel %vm1943_vm1, %v1983_v13, %v2003_v35  ;;  %2941 = vmatpush.bf16.msrb.mxu1 %v10830_v53 }
 0x1ad   : > { %v2175_v62 = vmul.f32 %v12318_v61, %v2135_v33  ;;  %12325 = vpow2.f32 %v1880_v51  ;;  %v13523_v63 = vadd.f32 %v13331_v38, %v1814_v52  ;;  %v2123_v40 = vsel %vm1943_vm1, %v2063_v50, %v2103_v45 }
 0x1ae   : > { %v2202_v56 = vmul.f32 %v2182_v42, %v13506_v39  ;;  %v12320_v1 = vpop.eup %12319  ;;  %v1845_v17 = vand.u32 2147483647, %v13514_v47  ;;  %v839_v6 = vand.u32 2147483647, %v13517_v41  ;;  %v13530_v14 = vadd.f32 %v735_v20, %v12965_v60 }
 0x1af   : > { %v2136_v7 = vmul.f32 %v2016_v2, %v13427_v37  ;;  %12327 = vpow2.f32 %v927_v44  ;;  %v1846_v9 = vand.u32 2147483647, %v13523_v63  ;;  %v13540_v11 = vmul.f32 %v2023_v29, %v13434_v49  ;;  %v10800_v37 = vld [vmem:[%s15891_s6] sm:$0xff] }
 0x1b0   : > { %v11158_v3 = vpack.c.bf16 %v2202_v56, %v2201_v18  ;;  %vm1944_vm2 = vcmp.ge.f32.partialorder %v13489_v5, 0.0  ;;  %v1865_v27 = vsub.f32 0.0, %v1845_v17  ;;  %v879_v13 = vsub.f32 0.0, %v839_v6  ;;  %2652 = vmatpush.bf16.msrb.mxu0 %v10800_v37 }
 0x1b1   : > { %v12322_v4 = vpop.eup %12321  ;;  %v2195_v32 = vmul.f32 %v2175_v62, %v13392_v55  ;;  %12329 = vrcp.f32 %v2123_v40  ;;  %v13547_v19 = vmul.f32 %v12320_v1, %v1435_v21  ;;  %vm1937_vm3 = vcmp.ge.f32.partialorder %v13477_v58, 0.0  ;;  %v10836_v1 = vld [vmem:[%s15891_s6 + $0xd0] sm:$0xff] }
 0x1b2   : > { %11697 = vst [vmem:[#allocation2 + $0x28] sm:$0xff] %v11158_v3   ;;  %v12324_v49 = vpop.eup %12323  ;;  %v2176_v22 = vmul.f32 %v12322_v4, %v2136_v7  ;;  %v1896_v54 = vmul.f32 1.442695, %v1865_v27  ;;  %v841_v0 = vand.u32 2147483647, %v13530_v14  ;;  %v11187_v31 = vunpack.c.l.b16 %v13534_v10  ;;  %3269 = vmatpush.bf16.msrb.mxu2 %v10836_v1 }
 0x1b3   : > { %v12326_v18 = vpop.eup %12325  ;;  %v1924_v44 = vmul.f32 %v12324_v49, %v12324_v49  ;;  %v1964_v46 = vmul.f32 2.0, %v12324_v49  ;;  %v931_v59 = vmul.f32 1.442695, %v879_v13  ;;  %v1866_v25 = vsub.f32 0.0, %v1846_v9  ;;  %v10829_v49 = vld [vmem:[%s15891_s6 + $0x98] sm:$0xff] }
 0x1b4   : > { %v2196_v34 = vmul.f32 %v2176_v22, %v13419_v28  ;;  %v1917_v35 = vmul.f32 %v12326_v18, %v12326_v18  ;;  %v1957_v50 = vmul.f32 2.0, %v12326_v18  ;;  %12331 = vpow2.f32 %v1896_v54  ;;  %v1816_v29 = vpop.f32.mrf.mxu2  ;;  %v10835_v18 = vld [vmem:[%s15891_s6 + $0xc8] sm:$0xff]  ;;  %2942 = vmatpush.bf16.msrb.mxu1 %v10829_v49 }
 0x1b5   : > { %v12328_v21 = vpop.eup %12327  ;;  %v1984_v16 = vadd.f32 1.0, %v1964_v46  ;;  %v2004_v61 = vadd.f32 %v1964_v46, %v1924_v44  ;;  %v2044_v42 = vmul.f32 2.0, %v1924_v44  ;;  %v2084_v45 = vadd.f32 2.0, %v1964_v46 }
 0x1b6   : > { %v13557_v30 = vpack.c.bf16 %v2196_v34, %v2195_v32  ;;  %v1977_v12 = vadd.f32 1.0, %v1957_v50  ;;  %v1997_v33 = vadd.f32 %v1957_v50, %v1917_v35  ;;  %v2037_v2 = vmul.f32 2.0, %v1917_v35  ;;  %3270 = vmatpush.bf16.msrb.mxu2 %v10835_v18 }
 0x1b7   : > { %v12330_v51 = vpop.eup %12329  ;;  %v2024_v52 = vsel %vm1944_vm2, %v1984_v16, %v2004_v61  ;;  %v2064_v20 = vadd.f32 %v2044_v42, %v1984_v16  ;;  %v2104_v56 = vadd.f32 %v2084_v45, %v1924_v44  ;;  %v2077_v62 = vadd.f32 2.0, %v1957_v50  ;;  %v13583_v50 = vld [vmem:[#allocation2 + $0x4] sm:$0xf] }
 0x1b8   : > { %11694 = vst [vmem:[#allocation2 + $0x10] sm:$0xff] %v13557_v30   ;;  %v2057_v40 = vadd.f32 %v2037_v2, %v1977_v12  ;;  %v997_v17 = vmul.f32 %v12328_v21, %v12328_v21  ;;  %vm1945_vm5 = vcmp.ge.f32.partialorder %v13514_v47, 0.0  ;;  %v1898_v6 = vmul.f32 1.442695, %v1866_v25 }
 0x1b9   : > { %v881_v7 = vsub.f32 0.0, %v841_v0  ;;  %v2124_v3 = vsel %vm1944_vm2, %v2064_v20, %v2104_v56  ;;  %v2144_v9 = vmul.f32 %v2024_v52, %v13489_v5  ;;  %v2097_v53 = vadd.f32 %v2077_v62, %v1917_v35  ;;  %v10834_v52 = vld [vmem:[%s15891_s6 + $0xc0] sm:$0xff]  ;;  %v13601_v62 = vpop.permute.xlu0 %474 }
 0x1ba   : > { %v1077_v27 = vmul.f32 2.0, %v12328_v21  ;;  %v12332_v13 = vpop.eup %12331  ;;  %12333 = vrcp.f32 %v2124_v3  ;;  %v2017_v37 = vsel %vm1937_vm3, %v1977_v12, %v1997_v33  ;;  %v1237_v4 = vmul.f32 2.0, %v997_v17  ;;  %v10849_v21 = vld [vmem:[%s15891_s6 + $0x138] sm:$0xff]  ;;  %v10828_v12 = vld [vmem:[%s15891_s6 + $0x90] sm:$0xff]  ;;  %15926 = vst [vmem:[#allocation4_spill] sm:$0xff] %v13601_v62  ;;  %3271 = vmatpush.bf16.msrb.mxu2 %v10834_v52 }
 0x1bb   : > { %v13572_v32 = vadd.f32 %v13331_v38, %v1816_v29  ;;  %v2117_v22 = vsel %vm1937_vm3, %v2057_v40, %v2097_v53  ;;  %v1925_v44 = vmul.f32 %v12332_v13, %v12332_v13  ;;  %v1965_v46 = vmul.f32 2.0, %v12332_v13  ;;  %3428 = vmatpush.bf16.msra.mxu3 %v10849_v21  ;;  %2943 = vmatpush.bf16.msrb.mxu1 %v10828_v12  ;;  %v10826_v21 = vld [vmem:[%s15891_s6 + $0x80] sm:$0xff] }
 0x1bc   : > { %v1117_v5 = vadd.f32 1.0, %v1077_v27  ;;  %v1157_v54 = vadd.f32 %v1077_v27, %v997_v17  ;;  %v1317_v0 = vadd.f32 2.0, %v1077_v27  ;;  %12335 = vrcp.f32 %v2117_v22  ;;  %v738_v22 = vpop.f32.mrf.mxu3  ;;  %v1819_v52 = vpop.f32.mrf.mxu2 }
 0x1bd   : > { %v1847_v25 = vand.u32 2147483647, %v13572_v32  ;;  %12337 = vpow2.f32 %v931_v59  ;;  %v935_v35 = vmul.f32 1.442695, %v881_v7  ;;  %v2183_v16 = vmul.f32 %v12330_v51, %v13540_v11  ;;  %v13603_v7 = vpop.permute.xlu1 %479 }
 0x1be   : > { %v1277_v26 = vadd.f32 %v1237_v4, %v1117_v5  ;;  %v1357_v34 = vadd.f32 %v1317_v0, %v997_v17  ;;  %v1985_v61 = vadd.f32 1.0, %v1965_v46  ;;  %v2005_v42 = vadd.f32 %v1965_v46, %v1925_v44  ;;  %v2254_v17 = vld [vmem:[#allocation2] sm:$0x8]  ;;  %15927 = vst [vmem:[#allocation5_spill] sm:$0xff] %v13603_v7 }
 0x1bf   : > { %v2045_v45 = vmul.f32 2.0, %v1925_v44  ;;  %v2085_v33 = vadd.f32 2.0, %v1965_v46  ;;  %12339 = vpow2.f32 %v1898_v6  ;;  %v1867_v2 = vsub.f32 0.0, %v1847_v25 }
 0x1c0   : > { %v1397_v59 = vsel %vm1037_vm4, %v1277_v26, %v1357_v34  ;;  %v12334_v20 = vpop.eup %12333  ;;  %v2137_v11 = vmul.f32 %v2017_v37, %v13477_v58  ;;  %v1197_v51 = vsel %vm1037_vm4, %v1117_v5, %v1157_v54  ;;  %v2328_v56 = vunpack.c.l.b16 %v13583_v50 }
 0x1c1   : > { %12341 = vrcp.f32 %v1397_v59  ;;  %v2184_v29 = vmul.f32 %v12334_v20, %v2144_v9  ;;  %v2065_v1 = vadd.f32 %v2045_v45, %v1985_v61  ;;  %v2105_v40 = vadd.f32 %v2085_v33, %v1925_v44  ;;  %v10827_v9 = vld [vmem:[%s15891_s6 + $0x88] sm:$0xff] }
 0x1c2   : > { %12343 = vpow2.f32 %v935_v35  ;;  %v12336_v6 = vpop.eup %12335  ;;  %v2203_v58 = vmul.f32 %v2183_v16, %v13601_v62  ;;  %vm1039_vm6 = vcmp.ge.f32.partialorder %v13517_v41, 0.0  ;;  %v1900_v3 = vmul.f32 1.442695, %v1867_v2  ;;  %2944 = vmatpush.bf16.msrb.mxu1 %v10827_v9 }
 0x1c3   : > { %v2348_v53 = vpack.c.b16 %v11187_v31, %v2328_v56  ;;  %v12338_v27 = vpop.eup %12337  ;;  %v2177_v13 = vmul.f32 %v12336_v6, %v2137_v11  ;;  %v2204_v37 = vmul.f32 %v2184_v29, %v13603_v7  ;;  %v1437_v4 = vmul.f32 %v1197_v51, %v13443_v57 }
 0x1c4   : > { %v2025_v49 = vsel %vm1945_vm5, %v1985_v61, %v2005_v42  ;;  %vm1946_vm7 = vcmp.ge.f32.partialorder %v13523_v63, 0.0  ;;  %v999_v5 = vmul.f32 %v12338_v27, %v12338_v27  ;;  %v1079_v54 = vmul.f32 2.0, %v12338_v27 }
 0x1c5   : > { %2424 = vmatmul.bf16.vlgmr.msrb.gmra.mxu3 %v2348_v53  ;;  %v2476_v31 = vunpack.c.l.b16 %v2254_v17  ;;  %v13618_v0 = vadd.f32 %v738_v22, %v12965_v60  ;;  %v12340_v18 = vpop.eup %12339  ;;  %v2197_v44 = vmul.f32 %v2177_v13, %v13470_v24  ;;  %v11163_v46 = vpack.c.bf16 %v2204_v37, %v2203_v58 }
 0x1c6   : > { %v2125_v57 = vsel %vm1945_vm5, %v2065_v1, %v2105_v40  ;;  %12345 = vpow2.f32 %v1900_v3  ;;  %v1119_v26 = vadd.f32 1.0, %v1079_v54  ;;  %v1159_v34 = vadd.f32 %v1079_v54, %v999_v5  ;;  %2945 = vmatpush.bf16.msrb.mxu1 %v10826_v21 }
 0x1c7   : > { %v12342_v25 = vpop.eup %12341  ;;  %v1239_v35 = vmul.f32 2.0, %v999_v5  ;;  %v1319_v50 = vadd.f32 2.0, %v1079_v54  ;;  %vm1041_vm8 = vcmp.ge.f32.partialorder %v13530_v14, 0.0  ;;  %v11148_v61 = vpack.c.bf16 %v13457_v8, %v2197_v44  ;;  %11698 = vst [vmem:[#allocation2 + $0x30] sm:$0xff] %v11163_v46  }
 0x1c8   : > { %v12344_v16 = vpop.eup %12343  ;;  %v1517_v42 = vmul.f32 %v12342_v25, %v1437_v4  ;;  %v1926_v45 = vmul.f32 %v12340_v18, %v12340_v18  ;;  %v1966_v12 = vmul.f32 2.0, %v12340_v18  ;;  %12347 = vrcp.f32 %v2125_v57 }
 0x1c9   : > { %v1279_v59 = vadd.f32 %v1239_v35, %v1119_v26  ;;  %v1359_v33 = vadd.f32 %v1319_v50, %v999_v5  ;;  %v1001_v2 = vmul.f32 %v12344_v16, %v12344_v16  ;;  %11695 = vst [vmem:[#allocation2 + $0x18] sm:$0xff] %v11148_v61   ;;  %v2477_v29 = vpack.c.b16 %v2328_v56, %v2476_v31  ;;  %v740_v5 = vpop.f32.mrf.mxu3 }
 0x1ca   : > { %v11053_v20 = vpack.c.bf16 %v1517_v42, %v13547_v19  ;;  %v1986_v11 = vadd.f32 1.0, %v1966_v12  ;;  %v2006_v51 = vadd.f32 %v1966_v12, %v1926_v45  ;;  %v2046_v1 = vmul.f32 2.0, %v1926_v45 }
 0x1cb   : > { %v1399_v8 = vsel %vm1039_vm6, %v1279_v59, %v1359_v33  ;;  %v2086_v40 = vadd.f32 2.0, %v1966_v12  ;;  %v1081_v17 = vmul.f32 2.0, %v12344_v16  ;;  %v2145_v58 = vmul.f32 %v2025_v49, %v13514_v47  ;;  %v1821_v59 = vpop.f32.mrf.mxu2  ;;  %v12141_v33 = vld [vmem:[#allocation2 + $0xc] sm:$0xff]  }
 0x1cc   : > { %v12346_v6 = vpop.eup %12345  ;;  %11677 = vst [vmem:[%s13054_s21 + $0x10] sm:$0xff] %v11053_v20   ;;  %v1199_v3 = vsel %vm1039_vm6, %v1119_v26, %v1159_v34  ;;  %v1241_v53 = vmul.f32 2.0, %v1001_v2  ;;  %v843_v9 = vand.u32 2147483647, %v13618_v0  ;;  %12349 = vrcp.f32 %v1399_v8 }
 0x1cd   : > { %v2066_v19 = vadd.f32 %v2046_v1, %v1986_v11  ;;  %v2106_v27 = vadd.f32 %v2086_v40, %v1926_v45  ;;  %v1121_v56 = vadd.f32 1.0, %v1081_v17  ;;  %vm1947_vm9 = vcmp.ge.f32.partialorder %v13572_v32, 0.0 }
 0x1ce   : > { %v1161_v13 = vadd.f32 %v1081_v17, %v1001_v2  ;;  %v1321_v37 = vadd.f32 2.0, %v1081_v17  ;;  %v1927_v4 = vmul.f32 %v12346_v6, %v12346_v6  ;;  %v1967_v22 = vmul.f32 2.0, %v12346_v6  ;;  %v12348_v54 = vpop.eup %12347  ;;  %v13661_v6 = vpop.permute.xlu0 %489 }
 0x1cf   : > { %v2026_v47 = vsel %vm1946_vm7, %v1986_v11, %v2006_v51  ;;  %v2126_v49 = vsel %vm1946_vm7, %v2066_v19, %v2106_v27  ;;  %v1281_v31 = vadd.f32 %v1241_v53, %v1121_v56  ;;  %v2490_v18 = vshrl.u32 %v2477_v29, 16  ;;  %15928 = vst [vmem:[#allocation6_spill] sm:$0xff] %v13661_v6 }
 0x1d0   : > { %12351 = vrcp.f32 %v2126_v49  ;;  %v1201_v44 = vsel %vm1041_vm8, %v1121_v56, %v1161_v13  ;;  %v1361_v46 = vadd.f32 %v1321_v37, %v1001_v2  ;;  %v1987_v57 = vadd.f32 1.0, %v1967_v22 }
 0x1d1   : > { %v2047_v25 = vmul.f32 2.0, %v1927_v4  ;;  %v2087_v26 = vadd.f32 2.0, %v1967_v22  ;;  %v2493_v34 = vshll.u32 %v2477_v29, 16  ;;  %vm2488_vm10 = vsmask.f32 4352  ;;  %v743_v56 = vpop.f32.mrf.mxu3 }
 0x1d2   : > { %v1439_v35 = vmul.f32 %v1199_v3, %v13517_v41  ;;  %v2146_v50 = vmul.f32 %v2026_v47, %v13523_v63  ;;  %v1401_v21 = vsel %vm1041_vm8, %v1281_v31, %v1361_v46  ;;  %v883_v16 = vsub.f32 0.0, %v843_v9  ;;  %v12350_v61 = vpop.eup %12349 }
 0x1d3   : > { %v1441_v42 = vmul.f32 %v1201_v44, %v13530_v14  ;;  %12353 = vrcp.f32 %v1401_v21  ;;  %v2067_v45 = vadd.f32 %v2047_v25, %v1987_v57  ;;  %v2185_v12 = vmul.f32 %v12348_v54, %v2145_v58  ;;  %v10848_v21 = vld [vmem:[%s15891_s6 + $0x130] sm:$0xff] }
 0x1d4   : > { %v2007_v2 = vadd.f32 %v1967_v22, %v1927_v4  ;;  %v2107_v20 = vadd.f32 %v2087_v26, %v1927_v4  ;;  %v939_v11 = vmul.f32 1.442695, %v883_v16  ;;  %v2492_v51 = vrot.slane %v2490_v18, 3  ;;  %3429 = vmatpush.bf16.msra.mxu3 %v10848_v21 }
 0x1d5   : > { %v2495_v29 = vrot.slane %v2493_v34, 4  ;;  %v2498_v41 = vshrl.u32 %v13534_v10, 16  ;;  %v2501_v63 = vshll.u32 %v13534_v10, 16  ;;  %v13651_v8 = vadd.f32 %v13331_v38, %v1819_v52  ;;  %2429 = vmatmul.bf16.gmra.mxu3 %v12141_v33  ;;  %v13663_v52 = vpop.permute.xlu2 %484 }
 0x1d6   : > { %v12352_v1 = vpop.eup %12351  ;;  %v2127_v14 = vsel %vm1947_vm9, %v2067_v45, %v2107_v20  ;;  %12355 = vpow2.f32 %v939_v11  ;;  %v13656_v40 = vadd.f32 %v740_v5, %v12965_v60  ;;  %v13659_v17 = vadd.f32 %v13331_v38, %v1821_v59  ;;  %15929 = vst [vmem:[#allocation7_spill] sm:$0xff] %v13663_v52 }
 0x1d7   : > { %v1519_v58 = vmul.f32 %v12350_v61, %v1439_v35  ;;  %v2186_v3 = vmul.f32 %v12352_v1, %v2146_v50  ;;  %12357 = vrcp.f32 %v2127_v14  ;;  %v2500_v10 = vrot.slane %v2498_v41, 3  ;;  %v13690_v14 = vld [vmem:[#allocation2 + $0x4] sm:$0xff] }
 0x1d8   : > { %v2496_v53 = vor.u32 %v2495_v29, %v2492_v51  ;;  %v2503_v9 = vrot.slane %v2501_v63, 4  ;;  %v1848_v19 = vand.u32 2147483647, %v13651_v8  ;;  %v845_v27 = vand.u32 2147483647, %v13656_v40 }
 0x1d9   : > { %v12354_v13 = vpop.eup %12353  ;;  %v2206_v37 = vmul.f32 %v2186_v3, %v13661_v6  ;;  %v2205_v38 = vmul.f32 %v2185_v12, %v13663_v52  ;;  %v1849_v4 = vand.u32 2147483647, %v13659_v17  ;;  %v13671_v22 = vadd.f32 %v743_v56, %v12965_v60  ;;  %v13694_v3 = vpop.permute.xlu1 %494 }
 0x1da   : > { %v1521_v5 = vmul.f32 %v12354_v13, %v1441_v42  ;;  %v13673_v54 = vor.u32 %v2503_v9, %v2500_v10  ;;  %v1868_v47 = vsub.f32 0.0, %v1848_v19  ;;  %v885_v49 = vsub.f32 0.0, %v845_v27  ;;  %15930 = vst [vmem:[#allocation8_spill] sm:$0xff] %v13694_v3 }
 0x1db   : > { %v2027_v31 = vsel %vm1947_vm9, %v1987_v57, %v2007_v2  ;;  %v11168_v18 = vpack.c.bf16 %v2206_v37, %v2205_v38  ;;  %v1869_v44 = vsub.f32 0.0, %v1849_v4  ;;  %v847_v46 = vand.u32 2147483647, %v13671_v22  ;;  %v3017_v37 = vld [vmem:[#allocation2 + $0x8] sm:$0x8]  ;;  %v12143_v38 = vld [vmem:[#allocation2 + $0x14] sm:$0xff]  }
 0x1dc   : > { %v12356_v25 = vpop.eup %12355  ;;  %v11058_v26 = vpack.c.bf16 %v1521_v5, %v1519_v58  ;;  %v2505_v34 = vsel %vm2488_vm10, %v2496_v53, %v13673_v54  ;;  %v1902_v35 = vmul.f32 1.442695, %v1868_v47  ;;  %v943_v50 = vmul.f32 1.442695, %v885_v49  ;;  %v13692_v58 = vld [vmem:[#allocation2 + $0xc] sm:$0xff] }
 0x1dd   : > { %v12358_v16 = vpop.eup %12357  ;;  %11699 = vst [vmem:[#allocation2 + $0x38] sm:$0xff] %v11168_v18   ;;  %v1003_v61 = vmul.f32 %v12356_v25, %v12356_v25  ;;  %v1083_v57 = vmul.f32 2.0, %v12356_v25  ;;  %2653 = vmatmul.bf16.vlgmr.msrb.gmra.mxu0 %v2505_v34  ;;  %v1904_v42 = vmul.f32 1.442695, %v1869_v44  ;;  %v887_v45 = vsub.f32 0.0, %v847_v46 }
 0x1de   : > { %11678 = vst [vmem:[%s13054_s21 + $0x18] sm:$0xff] %v11058_v26   ;;  %v2147_v12 = vmul.f32 %v2027_v31, %v13572_v32  ;;  %vm1043_vm11 = vcmp.ge.f32.partialorder %v13618_v0, 0.0  ;;  %12359 = vpow2.f32 %v1902_v35  ;;  %v2507_v29 = vshrl.u32 %v13557_v30, 16  ;;  %v13709_v49 = vld [vmem:[#allocation2 + $0xc] sm:$0xf]  ;;  %v1824_v31 = vpop.f32.mrf.mxu2 }
 0x1df   : > { %v1123_v59 = vadd.f32 1.0, %v1083_v57  ;;  %v1163_v33 = vadd.f32 %v1083_v57, %v1003_v61  ;;  %v1243_v2 = vmul.f32 2.0, %v1003_v61  ;;  %v1323_v20 = vadd.f32 2.0, %v1083_v57 }
 0x1e0   : > { %v2187_v11 = vmul.f32 %v12358_v16, %v2147_v12  ;;  %12361 = vpow2.f32 %v943_v50  ;;  %v947_v51 = vmul.f32 1.442695, %v887_v45  ;;  %v2510_v32 = vshll.u32 %v13557_v30, 16 }
 0x1e1   : > { %v1203_v41 = vsel %vm1043_vm11, %v1123_v59, %v1163_v33  ;;  %v1283_v63 = vadd.f32 %v1243_v2, %v1123_v59  ;;  %v1363_v1 = vadd.f32 %v1323_v20, %v1003_v61  ;;  %12363 = vpow2.f32 %v1904_v42 }
 0x1e2   : > { %vm1948_vm12 = vcmp.ge.f32.partialorder %v13651_v8, 0.0  ;;  %v13700_v9 = vmul.f32 %v1203_v41, %v13618_v0  ;;  %v13703_v19 = vmul.f32 %v2187_v11, %v13694_v3  ;;  %vm1045_vm13 = vcmp.ge.f32.partialorder %v13656_v40, 0.0 }
 0x1e3   : > { %v1403_v10 = vsel %vm1043_vm11, %v1283_v63, %v1363_v1  ;;  %v2509_v30 = vrot.slane %v2507_v29, 3  ;;  %12365 = vpow2.f32 %v947_v51  ;;  %v2797_v13 = vshrl.u32 %v13690_v14, 16 }
 0x1e4   : > { %v12360_v53 = vpop.eup %12359  ;;  %12367 = vrcp.f32 %v1403_v10  ;;  %v2512_v5 = vrot.slane %v2510_v32, 4  ;;  %v2799_v47 = vshll.u32 %v13690_v14, 16  ;;  %v2804_v0 = vshll.u32 %v13692_v58, 16  ;;  %v745_v10 = vpop.f32.mrf.mxu3 }
 0x1e5   : > { %v1928_v27 = vmul.f32 %v12360_v53, %v12360_v53  ;;  %v1968_v56 = vmul.f32 2.0, %v12360_v53  ;;  %2434 = vmatmul.bf16.gmra.mxu3 %v12143_v38  ;;  %vm1949_vm14 = vcmp.ge.f32.partialorder %v13659_v17, 0.0  ;;  %vm2795_vm15 = vsmask.f32 7424 }
 0x1e6   : > { %v12362_v4 = vpop.eup %12361  ;;  %v3076_v21 = vunpack.c.l.b16 %v3017_v37  ;;  %v3077_v42 = vunpack.c.l.b16 %v13709_v49  ;;  %v13715_v33 = vor.u32 %v2512_v5, %v2509_v30  ;;  %v2801_v1 = vrot.slane %v2799_v47, 1  ;;  %v13723_v37 = vld [vmem:[#allocation2 + $0x18] sm:$0xff]   ;;  %v10880_v49 = vld [vmem:[%s15891_s6 + $0x1e0] sm:$0xff] }
 0x1e7   : > { %v12364_v18 = vpop.eup %12363  ;;  %v1988_v44 = vadd.f32 1.0, %v1968_v56  ;;  %v2008_v46 = vadd.f32 %v1968_v56, %v1928_v27  ;;  %v2048_v25 = vmul.f32 2.0, %v1928_v27  ;;  %v2088_v26 = vadd.f32 2.0, %v1968_v56 }
 0x1e8   : > { %v1005_v34 = vmul.f32 %v12362_v4, %v12362_v4  ;;  %v1085_v35 = vmul.f32 2.0, %v12362_v4  ;;  %v1969_v50 = vmul.f32 2.0, %v12364_v18  ;;  %v1929_v57 = vmul.f32 %v12364_v18, %v12364_v18 }
 0x1e9   : > { %v2068_v16 = vadd.f32 %v2048_v25, %v1988_v44  ;;  %v2108_v61 = vadd.f32 %v2088_v26, %v1928_v27  ;;  %v2028_v45 = vsel %vm1948_vm12, %v1988_v44, %v2008_v46  ;;  %v12366_v2 = vpop.eup %12365  ;;  %v13719_v32 = vrot.slane %v2804_v0, 1 }
 0x1ea   : > { %v1125_v12 = vadd.f32 1.0, %v1085_v35  ;;  %v1245_v59 = vmul.f32 2.0, %v1005_v34  ;;  %v1165_v11 = vadd.f32 %v1085_v35, %v1005_v34  ;;  %v1325_v51 = vadd.f32 2.0, %v1085_v35  ;;  %v12368_v41 = vpop.eup %12367 }
 0x1eb   : > { %v2128_v20 = vsel %vm1948_vm12, %v2068_v16, %v2108_v61  ;;  %v1989_v29 = vadd.f32 1.0, %v1969_v50  ;;  %v2049_v27 = vmul.f32 2.0, %v1929_v57  ;;  %v2089_v56 = vadd.f32 2.0, %v1969_v50 }
 0x1ec   : > { %12369 = vrcp.f32 %v2128_v20  ;;  %v1285_v63 = vadd.f32 %v1245_v59, %v1125_v12  ;;  %v1365_v53 = vadd.f32 %v1325_v51, %v1005_v34  ;;  %v3097_v30 = vpack.c.b16 %v3077_v42, %v3076_v21  ;;  %v13750_v51 = vpop.permute.xlu2 %499 }
 0x1ed   : > { %v2148_v38 = vmul.f32 %v2028_v45, %v13651_v8  ;;  %v1007_v4 = vmul.f32 %v12366_v2, %v12366_v2  ;;  %v1087_v5 = vmul.f32 2.0, %v12366_v2  ;;  %v2514_v18 = vsel %vm2488_vm10, %v13673_v54, %v13715_v33  ;;  %v13736_v8 = vld [vmem:[%s15890_s5] ss:$0 sm:$0xff]  ;;  %v1826_v54 = vpop.f32.mrf.mxu2  ;;  %15931 = vst [vmem:[#allocation9_spill] sm:$0xff] %v13750_v51 }
 0x1ee   : > { %v1205_v47 = vsel %vm1045_vm13, %v1125_v12, %v1165_v11  ;;  %v1405_v0 = vsel %vm1045_vm13, %v1285_v63, %v1365_v53  ;;  %v2069_v44 = vadd.f32 %v2049_v27, %v1989_v29  ;;  %v2109_v46 = vadd.f32 %v2089_v56, %v1929_v57  ;;  %2658 = vmatmul.bf16.gmra.mxu0 %v2514_v18  ;;  %v748_v63 = vpop.f32.mrf.mxu3 }
 0x1ef   : > { %12371 = vrcp.f32 %v1405_v0  ;;  %v2009_v25 = vadd.f32 %v1969_v50, %v1929_v57  ;;  %v13739_v26 = vadd.f32 %v13736_v8, %v1824_v31  ;;  %v2516_v34 = vshrl.u32 %v13723_v37, 16 }
 0x1f0   : > { %v2129_v35 = vsel %vm1949_vm14, %v2069_v44, %v2109_v46  ;;  %v2802_v21 = vor.u32 %v2801_v1, %v2797_v13  ;;  %v3109_v16 = vshrl.u32 %v3097_v30, 16  ;;  %v3112_v61 = vshll.u32 %v3097_v30, 16 }
 0x1f1   : > { %v1445_v57 = vmul.f32 %v1205_v47, %v13656_v40  ;;  %v1127_v45 = vadd.f32 1.0, %v1087_v5  ;;  %v1247_v12 = vmul.f32 2.0, %v1007_v4  ;;  %v1327_v59 = vadd.f32 2.0, %v1087_v5 }
 0x1f2   : > { %v12370_v50 = vpop.eup %12369  ;;  %12373 = vrcp.f32 %v2129_v35  ;;  %v2807_v31 = vsel %vm2795_vm15, %v2802_v21, %v13719_v32  ;;  %v3111_v20 = vrot.slane %v3109_v16, 3  ;;  %v1523_v11 = vmul.f32 %v12368_v41, %v13700_v9  ;;  %v12145_v9 = vld [vmem:[#allocation2 + $0x1c] sm:$0xff]  }
 0x1f3   : > { %v2188_v2 = vmul.f32 %v12370_v50, %v2148_v38  ;;  %v2029_v14 = vsel %vm1949_vm14, %v1989_v29, %v2009_v25  ;;  %2946 = vmatmul.bf16.vlgmr.msrb.gmra.mxu1 %v2807_v31  ;;  %v3114_v13 = vrot.slane %v3112_v61, 4  ;;  %v1850_v40 = vand.u32 2147483647, %v13739_v26 }
 0x1f4   : > { %v1167_v53 = vadd.f32 %v1087_v5, %v1007_v4  ;;  %v13757_v27 = vadd.f32 %v745_v10, %v12965_v60  ;;  %v13760_v56 = vadd.f32 %v13736_v8, %v1826_v54  ;;  %v1287_v30 = vadd.f32 %v1247_v12, %v1127_v45 }
 0x1f5   : > { %v2208_v1 = vmul.f32 %v2188_v2, %v13750_v51  ;;  %v12372_v41 = vpop.eup %12371  ;;  %v3115_v38 = vor.u32 %v3114_v13, %v3111_v20  ;;  %v1870_v18 = vsub.f32 0.0, %v1850_v40  ;;  %v2519_v29 = vshll.u32 %v13723_v37, 16  ;;  %2439 = vmatmul.bf16.gmra.mxu3 %v12145_v9 }
 0x1f6   : > { %v1525_v0 = vmul.f32 %v12372_v41, %v1445_v57  ;;  %v1367_v44 = vadd.f32 %v1327_v59, %v1007_v4  ;;  %v849_v46 = vand.u32 2147483647, %v13757_v27  ;;  %v1851_v25 = vand.u32 2147483647, %v13760_v56  ;;  %v13772_v4 = vld [vmem:[#allocation2 + $0x14] sm:$0xff]  ;;  %v1829_v57 = vpop.f32.mrf.mxu2  ;;  %v750_v13 = vpop.f32.mrf.mxu3 }
 0x1f7   : > { %v11173_v47 = vpack.c.bf16 %v2208_v1, %v13703_v19  ;;  %v3124_v10 = vsel %vm2488_vm10, %v3115_v38, %v13715_v33  ;;  %v1906_v5 = vmul.f32 1.442695, %v1870_v18  ;;  %v2518_v54 = vrot.slane %v2516_v34, 3  ;;  %v13799_v18 = vpop.permute.xlu0 %504 }
 0x1f8   : > { %v12374_v35 = vpop.eup %12373  ;;  %v11063_v21 = vpack.c.bf16 %v1525_v0, %v1523_v11  ;;  %vm1047_vm0 = vcmp.ge.f32.partialorder %v13671_v22, 0.0  ;;  %3272 = vmatmul.bf16.vlgmr.msrb.gmra.mxu2 %v3124_v10  ;;  %v889_v19 = vsub.f32 0.0, %v849_v46  ;;  %v13770_v37 = vadd.f32 %v748_v63, %v12965_v60  ;;  %15932 = vst [vmem:[#allocation10_spill] sm:$0xff] %v13799_v18 }
 0x1f9   : > { %11700 = vst [vmem:[#allocation2 + $0x40] sm:$0xff] %v11173_v47   ;;  %v2149_v16 = vmul.f32 %v2029_v14, %v13659_v17  ;;  %12375 = vpow2.f32 %v1906_v5  ;;  %v1871_v61 = vsub.f32 0.0, %v1851_v25  ;;  %v2521_v50 = vrot.slane %v2519_v29, 4 }
 0x1fa   : > { %11679 = vst [vmem:[%s13054_s21 + $0x20] sm:$0xff] %v11063_v21   ;;  %v1207_v34 = vsel %vm1047_vm0, %v1127_v45, %v1167_v53  ;;  %v951_v12 = vmul.f32 1.442695, %v889_v19  ;;  %v851_v59 = vand.u32 2147483647, %v13770_v37  ;;  %v1407_v31 = vsel %vm1047_vm0, %v1287_v30, %v1367_v44 }
 0x1fb   : > { %v2189_v2 = vmul.f32 %v12374_v35, %v2149_v16  ;;  %v1908_v20 = vmul.f32 1.442695, %v1871_v61  ;;  %v13777_v11 = vor.u32 %v2521_v50, %v2518_v54  ;;  %v2812_v63 = vshll.u32 %v13772_v4, 16 }
 0x1fc   : > { %12377 = vpow2.f32 %v951_v12  ;;  %v891_v40 = vsub.f32 0.0, %v851_v59  ;;  %v13781_v17 = vadd.f32 %v13736_v8, %v1829_v57  ;;  %v2808_v14 = vshrl.u32 %v13692_v58, 16 }
 0x1fd   : > { %12379 = vpow2.f32 %v1908_v20  ;;  %v2523_v45 = vsel %vm2488_vm10, %v13715_v33, %v13777_v11  ;;  %v13788_v1 = vadd.f32 %v750_v13, %v12965_v60  ;;  %v13791_v53 = vmul.f32 %v1207_v34, %v13671_v22  ;;  %v13802_v22 = vld [vmem:[#allocation2 + $0x20] sm:$0xff]  }
 0x1fe   : > { %v955_v9 = vmul.f32 1.442695, %v891_v40  ;;  %2663 = vmatmul.bf16.gmra.mxu0 %v2523_v45  ;;  %v13793_v41 = vrot.slane %v2812_v63, 1  ;;  %v1852_v30 = vand.u32 2147483647, %v13781_v17  ;;  %12381 = vrcp.f32 %v1407_v31 }
 0x1ff   : > { %v12376_v38 = vpop.eup %12375  ;;  %vm1950_vm1 = vcmp.ge.f32.partialorder %v13739_v26, 0.0  ;;  %v2810_v33 = vor.u32 %v2808_v14, %v13719_v32  ;;  %v853_v58 = vand.u32 2147483647, %v13788_v1  ;;  %vm1049_vm2 = vcmp.ge.f32.partialorder %v13757_v27, 0.0  ;;  %v10847_v14 = vld [vmem:[%s15891_s6 + $0x128] sm:$0xff] }
 0x200   : > { %v1930_v29 = vmul.f32 %v12376_v38, %v12376_v38  ;;  %v1970_v47 = vmul.f32 2.0, %v12376_v38  ;;  %12383 = vpow2.f32 %v955_v9  ;;  %v13805_v0 = vmul.f32 %v2189_v2, %v13799_v18  ;;  %v12147_v2 = vld [vmem:[#allocation2 + $0x24] sm:$0xff]   ;;  %v1831_v9 = vpop.f32.mrf.mxu2  ;;  %3430 = vmatpush.bf16.msra.mxu3 %v10847_v14 }
 0x201   : > { %v2815_v44 = vsel %vm2795_vm15, %v2810_v33, %v13793_v41  ;;  %v1872_v46 = vsub.f32 0.0, %v1852_v30  ;;  %v893_v10 = vsub.f32 0.0, %v853_v58  ;;  %v2525_v50 = vshrl.u32 %v13802_v22, 16 }
 0x202   : > { %v12378_v32 = vpop.eup %12377  ;;  %v1990_v5 = vadd.f32 1.0, %v1970_v47  ;;  %v2010_v25 = vadd.f32 %v1970_v47, %v1930_v29  ;;  %v2050_v54 = vmul.f32 2.0, %v1930_v29  ;;  %v2090_v35 = vadd.f32 2.0, %v1970_v47 }
 0x203   : > { %v12380_v21 = vpop.eup %12379  ;;  %v1009_v19 = vmul.f32 %v12378_v32, %v12378_v32  ;;  %v1089_v16 = vmul.f32 2.0, %v12378_v32  ;;  %2951 = vmatmul.bf16.gmra.mxu1 %v2815_v44  ;;  %v1910_v61 = vmul.f32 1.442695, %v1872_v46  ;;  %vm1951_vm3 = vcmp.ge.f32.partialorder %v13760_v56, 0.0 }
 0x204   : > { %v2070_v57 = vadd.f32 %v2050_v54, %v1990_v5  ;;  %v2110_v34 = vadd.f32 %v2090_v35, %v1930_v29  ;;  %v1931_v12 = vmul.f32 %v12380_v21, %v12380_v21  ;;  %v959_v59 = vmul.f32 1.442695, %v893_v10  ;;  %v12382_v31 = vpop.eup %12381 }
 0x205   : > { %v2030_v20 = vsel %vm1950_vm1, %v1990_v5, %v2010_v25  ;;  %v1129_v13 = vadd.f32 1.0, %v1089_v16  ;;  %v1169_v40 = vadd.f32 %v1089_v16, %v1009_v19  ;;  %v1249_v63 = vmul.f32 2.0, %v1009_v19  ;;  %2444 = vmatmul.bf16.gmra.mxu3 %v12147_v2 }
 0x206   : > { %v12384_v30 = vpop.eup %12383  ;;  %v2130_v38 = vsel %vm1950_vm1, %v2070_v57, %v2110_v34  ;;  %v1329_v33 = vadd.f32 2.0, %v1089_v16  ;;  %v1971_v58 = vmul.f32 2.0, %v12380_v21  ;;  %v2051_v29 = vmul.f32 2.0, %v1931_v12  ;;  %v753_v21 = vpop.f32.mrf.mxu3 }
 0x207   : > { %12385 = vrcp.f32 %v2130_v38  ;;  %v1289_v47 = vadd.f32 %v1249_v63, %v1129_v13  ;;  %v1011_v44 = vmul.f32 %v12384_v30, %v12384_v30  ;;  %v2528_v46 = vshll.u32 %v13802_v22, 16 }
 0x208   : > { %v2150_v10 = vmul.f32 %v2030_v20, %v13739_v26  ;;  %v1369_v32 = vadd.f32 %v1329_v33, %v1009_v19  ;;  %v1991_v5 = vadd.f32 1.0, %v1971_v58  ;;  %3277 = vmatmul.bf16.gmra.mxu2 %v2523_v45  ;;  %v13821_v25 = vadd.f32 %v13736_v8, %v1831_v9  ;;  %v13837_v9 = vpop.permute.xlu1 %509 }
 0x209   : > { %v2091_v54 = vadd.f32 2.0, %v1971_v58  ;;  %v1091_v35 = vmul.f32 2.0, %v12384_v30  ;;  %v1251_v16 = vmul.f32 2.0, %v1011_v44  ;;  %12387 = vpow2.f32 %v1910_v61  ;;  %15933 = vst [vmem:[#allocation11_spill] sm:$0xff] %v13837_v9 }
 0x20a   : > { %v1209_v57 = vsel %vm1049_vm2, %v1129_v13, %v1169_v40  ;;  %v1409_v34 = vsel %vm1049_vm2, %v1289_v47, %v1369_v32  ;;  %v2071_v22 = vadd.f32 %v2051_v29, %v1991_v5  ;;  %12389 = vpow2.f32 %v959_v59 }
 0x20b   : > { %12391 = vrcp.f32 %v1409_v34  ;;  %v2011_v26 = vadd.f32 %v1971_v58, %v1931_v12  ;;  %v2111_v19 = vadd.f32 %v2091_v54, %v1931_v12  ;;  %v1131_v45 = vadd.f32 1.0, %v1091_v35 }
 0x20c   : > { %v1527_v8 = vmul.f32 %v12382_v31, %v13791_v53  ;;  %vm1051_vm4 = vcmp.ge.f32.partialorder %v13770_v37, 0.0  ;;  %v1331_v2 = vadd.f32 2.0, %v1091_v35  ;;  %v1853_v61 = vand.u32 2147483647, %v13821_v25 }
 0x20d   : > { %v12386_v20 = vpop.eup %12385  ;;  %v2131_v13 = vsel %vm1951_vm3, %v2071_v22, %v2111_v19  ;;  %v1291_v40 = vadd.f32 %v1251_v16, %v1131_v45  ;;  %vm1952_vm5 = vcmp.ge.f32.partialorder %v13781_v17, 0.0  ;;  %v13834_v59 = vadd.f32 %v753_v21, %v12965_v60 }
 0x20e   : > { %v2190_v63 = vmul.f32 %v12386_v20, %v2150_v10  ;;  %v1449_v12 = vmul.f32 %v1209_v57, %v13757_v27  ;;  %v1371_v14 = vadd.f32 %v1331_v2, %v1011_v44  ;;  %v2527_v53 = vrot.slane %v2525_v50, 3  ;;  %v755_v19 = vpop.f32.mrf.mxu3 }
 0x20f   : > { %v12388_v31 = vpop.eup %12387  ;;  %v2031_v30 = vsel %vm1951_vm3, %v1991_v5, %v2011_v26  ;;  %v1171_v38 = vadd.f32 %v1091_v35, %v1011_v44  ;;  %v1873_v33 = vsub.f32 0.0, %v1853_v61  ;;  %v2530_v58 = vrot.slane %v2528_v46, 4 }
 0x210   : > { %v12390_v29 = vpop.eup %12389  ;;  %v2210_v47 = vmul.f32 %v2190_v63, %v13837_v9  ;;  %12393 = vrcp.f32 %v2131_v13  ;;  %v1932_v32 = vmul.f32 %v12388_v31, %v12388_v31  ;;  %v1972_v54 = vmul.f32 2.0, %v12388_v31 }
 0x211   : > { %v12392_v10 = vpop.eup %12391  ;;  %v1411_v27 = vsel %vm1051_vm4, %v1291_v40, %v1371_v14  ;;  %v1013_v50 = vmul.f32 %v12390_v29, %v12390_v29  ;;  %v1093_v16 = vmul.f32 2.0, %v12390_v29  ;;  %v855_v21 = vand.u32 2147483647, %v13834_v59  ;;  %v12149_v40 = vld [vmem:[#allocation2 + $0x2c] sm:$0xff]   ;;  %v13852_v29 = vld [vmem:[#allocation2 + $0x1c] sm:$0xff] }
 0x212   : > { %v13846_v57 = vpack.c.bf16 %v2210_v47, %v13805_v0  ;;  %v1529_v44 = vmul.f32 %v12392_v10, %v1449_v12  ;;  %v1992_v5 = vadd.f32 1.0, %v1972_v54  ;;  %v1912_v46 = vmul.f32 1.442695, %v1873_v33 }
 0x213   : > { %v2012_v35 = vadd.f32 %v1972_v54, %v1932_v32  ;;  %v2052_v34 = vmul.f32 2.0, %v1932_v32  ;;  %v2092_v22 = vadd.f32 2.0, %v1972_v54  ;;  %v1133_v26 = vadd.f32 1.0, %v1093_v16 }
 0x214   : > { %11701 = vst [vmem:[#allocation2 + $0x48] sm:$0xff] %v13846_v57   ;;  %v11068_v2 = vpack.c.bf16 %v1529_v44, %v1527_v8  ;;  %v1173_v61 = vadd.f32 %v1093_v16, %v1013_v50  ;;  %v1253_v20 = vmul.f32 2.0, %v1013_v50  ;;  %v1333_v13 = vadd.f32 2.0, %v1093_v16 }
 0x215   : > { %12395 = vrcp.f32 %v1411_v27  ;;  %v2072_v63 = vadd.f32 %v2052_v34, %v1992_v5  ;;  %v2112_v0 = vadd.f32 %v2092_v22, %v1932_v32  ;;  %vm1053_vm6 = vcmp.ge.f32.partialorder %v13788_v1, 0.0  ;;  %2449 = vmatmul.bf16.gmra.mxu3 %v12149_v40 }
 0x216   : > { %v12394_v12 = vpop.eup %12393  ;;  %11680 = vst [vmem:[%s13054_s21 + $0x28] sm:$0xff] %v11068_v2   ;;  %v2151_v14 = vmul.f32 %v2031_v30, %v13760_v56  ;;  %v1293_v31 = vadd.f32 %v1253_v20, %v1133_v26  ;;  %v1373_v33 = vadd.f32 %v1333_v13, %v1013_v50  ;;  %12397 = vpow2.f32 %v1912_v46  ;;  %v758_v2 = vpop.f32.mrf.mxu3 }
 0x217   : > { %v1211_v8 = vsel %vm1051_vm4, %v1131_v45, %v1171_v38  ;;  %v2132_v47 = vsel %vm1952_vm5, %v2072_v63, %v2112_v0  ;;  %v895_v54 = vsub.f32 0.0, %v855_v21  ;;  %v13858_v32 = vor.u32 %v2530_v58, %v2527_v53  ;;  %v11707_v53 = vld [vmem:[#allocation2 + $0x28] sm:$0xff]   ;;  %v13883_v20 = vpop.permute.xlu2 %514 }
 0x218   : > { %v2032_v10 = vsel %vm1952_vm5, %v1992_v5, %v2012_v35  ;;  %12399 = vrcp.f32 %v2132_v47  ;;  %v1213_v56 = vsel %vm1053_vm6, %v1133_v26, %v1173_v61  ;;  %v1413_v30 = vsel %vm1053_vm6, %v1293_v31, %v1373_v33  ;;  %15934 = vst [vmem:[#allocation12_spill] sm:$0xff] %v13883_v20  ;;  %v13890_v33 = vpop.permute.xlu0 %519 }
 0x219   : > { %12401 = vrcp.f32 %v1413_v30  ;;  %v963_v27 = vmul.f32 1.442695, %v895_v54  ;;  %v2532_v45 = vsel %vm2488_vm10, %v13777_v11, %v13858_v32  ;;  %v2816_v38 = vshrl.u32 %v13772_v4, 16  ;;  %15935 = vst [vmem:[#allocation13_spill] sm:$0xff] %v13890_v33 }
 0x21a   : > { %v1451_v58 = vmul.f32 %v1211_v8, %v13770_v37  ;;  %2668 = vmatmul.bf16.gmra.mxu0 %v2532_v45  ;;  %v2820_v50 = vshll.u32 %v13852_v29, 16  ;;  %3282 = vmatmul.bf16.gmra.mxu2 %v2532_v45  ;;  %v13873_v16 = vadd.f32 %v755_v19, %v12965_v60  ;;  %v2191_v44 = vmul.f32 %v12394_v12, %v2151_v14  ;;  %v10846_v19 = vld [vmem:[%s15891_s6 + $0x120] sm:$0xff] }
 0x21b   : > { %v12396_v21 = vpop.eup %12395  ;;  %v2152_v5 = vmul.f32 %v2032_v10, %v13781_v17  ;;  %12403 = vpow2.f32 %v963_v27  ;;  %v2818_v46 = vor.u32 %v2816_v38, %v13793_v41  ;;  %v1453_v4 = vmul.f32 %v1213_v56, %v13788_v1  ;;  %3431 = vmatpush.bf16.msra.mxu3 %v10846_v19  ;;  %v13893_v56 = vld [vmem:[#allocation2 + $0x24] sm:$0xff] }
 0x21c   : > { %v12398_v11 = vpop.eup %12397  ;;  %v2822_v35 = vrot.slane %v2820_v50, 1  ;;  %v857_v37 = vand.u32 2147483647, %v13873_v16  ;;  %v2534_v34 = vshrl.u32 %v11707_v53, 16  ;;  %vm1953_vm7 = vcmp.ge.f32.partialorder %v13821_v25, 0.0 }
 0x21d   : > { %v1933_v22 = vmul.f32 %v12398_v11, %v12398_v11  ;;  %v1973_v26 = vmul.f32 2.0, %v12398_v11  ;;  %v2537_v17 = vshll.u32 %v11707_v53, 16  ;;  %v1531_v41 = vmul.f32 %v12396_v21, %v1451_v58 }
 0x21e   : > { %v12400_v61 = vpop.eup %12399  ;;  %v2823_v1 = vsel %vm2795_vm15, %v2818_v46, %v2822_v35  ;;  %v897_v13 = vsub.f32 0.0, %v857_v37  ;;  %v13887_v40 = vadd.f32 %v758_v2, %v12965_v60  ;;  %v2211_v0 = vmul.f32 %v2191_v44, %v13883_v20 }
 0x21f   : > { %v12402_v63 = vpop.eup %12401  ;;  %v2192_v12 = vmul.f32 %v12400_v61, %v2152_v5  ;;  %v1993_v14 = vadd.f32 1.0, %v1973_v26  ;;  %v2053_v31 = vmul.f32 2.0, %v1933_v22  ;;  %2956 = vmatmul.bf16.gmra.mxu1 %v2823_v1  ;;  %v2093_v47 = vadd.f32 2.0, %v1973_v26  ;;  %v11708_v1 = vld [vmem:[#allocation2 + $0x30] sm:$0xff]  }
 0x220   : > { %v1533_v8 = vmul.f32 %v12402_v63, %v1453_v4  ;;  %v967_v54 = vmul.f32 1.442695, %v897_v13  ;;  %v859_v10 = vand.u32 2147483647, %v13887_v40  ;;  %v2536_v38 = vrot.slane %v2534_v34, 3 }
 0x221   : > { %v12404_v30 = vpop.eup %12403  ;;  %v2212_v27 = vmul.f32 %v2192_v12, %v13890_v33  ;;  %v2073_v45 = vadd.f32 %v2053_v31, %v1993_v14  ;;  %v2539_v53 = vrot.slane %v2537_v17, 4  ;;  %v2013_v50 = vadd.f32 %v1973_v26, %v1933_v22  ;;  %v760_v17 = vpop.f32.mrf.mxu3  ;;  %v12151_v12 = vld [vmem:[#allocation2 + $0x34] sm:$0xff]  }
 0x222   : > { %v11073_v58 = vpack.c.bf16 %v1533_v8, %v1531_v41  ;;  %v2113_v21 = vadd.f32 %v2093_v47, %v1933_v22  ;;  %v1015_v44 = vmul.f32 %v12404_v30, %v12404_v30  ;;  %v1095_v46 = vmul.f32 2.0, %v12404_v30 }
 0x223   : > { %v13896_v5 = vpack.c.bf16 %v2212_v27, %v2211_v0  ;;  %12405 = vpow2.f32 %v967_v54  ;;  %v899_v11 = vsub.f32 0.0, %v859_v10  ;;  %v2824_v19 = vshrl.u32 %v13852_v29, 16 }
 0x224   : > { %11681 = vst [vmem:[%s13054_s21 + $0x30] sm:$0xff] %v11073_v58   ;;  %v2133_v4 = vsel %vm1953_vm7, %v2073_v45, %v2113_v21  ;;  %v1255_v37 = vmul.f32 2.0, %v1015_v44  ;;  %v2828_v2 = vshll.u32 %v13893_v56, 16  ;;  %v1135_v34 = vadd.f32 1.0, %v1095_v46  ;;  %v10845_v45 = vld [vmem:[%s15891_s6 + $0x118] sm:$0xff] }
 0x225   : > { %11702 = vst [vmem:[#allocation2 + $0x50] sm:$0xff] %v13896_v5   ;;  %12407 = vrcp.f32 %v2133_v4  ;;  %v1335_v22 = vadd.f32 2.0, %v1095_v46  ;;  %v13904_v26 = vor.u32 %v2539_v53, %v2536_v38  ;;  %v971_v61 = vmul.f32 1.442695, %v899_v11  ;;  %2454 = vmatmul.bf16.gmra.mxu3 %v12151_v12  ;;  %v13927_v4 = vpop.permute.xlu1 %524 }
 0x226   : > { %v13907_v41 = vadd.f32 %v760_v17, %v12965_v60  ;;  %v2033_v13 = vsel %vm1953_vm7, %v1993_v14, %v2013_v50  ;;  %v1295_v63 = vadd.f32 %v1255_v37, %v1135_v34  ;;  %v2826_v0 = vor.u32 %v2824_v19, %v2822_v35  ;;  %3432 = vmatpush.bf16.msra.mxu3 %v10845_v45 }
 0x227   : > { %v1375_v29 = vadd.f32 %v1335_v22, %v1015_v44  ;;  %vm1055_vm8 = vcmp.ge.f32.partialorder %v13834_v59, 0.0  ;;  %12409 = vpow2.f32 %v971_v61  ;;  %v2541_v47 = vsel %vm2488_vm10, %v13858_v32, %v13904_v26  ;;  %15936 = vst [vmem:[#allocation14_spill] sm:$0xff] %v13927_v4 }
 0x228   : > { %v861_v31 = vand.u32 2147483647, %v13907_v41  ;;  %v13916_v54 = vrot.slane %v2828_v2, 1  ;;  %v2543_v10 = vshrl.u32 %v11708_v1, 16  ;;  %v2153_v14 = vmul.f32 %v2033_v13, %v13821_v25 }
 0x229   : > { %v12406_v8 = vpop.eup %12405  ;;  %v1175_v53 = vadd.f32 %v1095_v46, %v1015_v44  ;;  %v1415_v32 = vsel %vm1055_vm8, %v1295_v63, %v1375_v29  ;;  %vm1057_vm9 = vcmp.ge.f32.partialorder %v13873_v16, 0.0  ;;  %v2546_v11 = vshll.u32 %v11708_v1, 16  ;;  %v763_v22 = vpop.f32.mrf.mxu3 }
 0x22a   : > { %v1017_v30 = vmul.f32 %v12406_v8, %v12406_v8  ;;  %v1097_v27 = vmul.f32 2.0, %v12406_v8  ;;  %2673 = vmatmul.bf16.gmra.mxu0 %v2541_v47  ;;  %3287 = vmatmul.bf16.gmra.mxu2 %v2541_v47  ;;  %v901_v35 = vsub.f32 0.0, %v861_v31  ;;  %v2831_v58 = vsel %vm2795_vm15, %v2826_v0, %v13916_v54 }
 0x22b   : > { %v12408_v38 = vpop.eup %12407  ;;  %v2545_v44 = vrot.slane %v2543_v10, 3  ;;  %12411 = vrcp.f32 %v1415_v32  ;;  %v13931_v13 = vadd.f32 %v763_v22, %v12965_v60  ;;  %v1215_v63 = vsel %vm1055_vm8, %v1135_v34, %v1175_v53 }
 0x22c   : > { %v2193_v25 = vmul.f32 %v12408_v38, %v2153_v14  ;;  %v1137_v50 = vadd.f32 1.0, %v1097_v27  ;;  %v1257_v21 = vmul.f32 2.0, %v1017_v30  ;;  %v1177_v37 = vadd.f32 %v1097_v27, %v1017_v30 }
 0x22d   : > { %v1337_v19 = vadd.f32 2.0, %v1097_v27  ;;  %v975_v2 = vmul.f32 1.442695, %v901_v35  ;;  %v12410_v46 = vpop.eup %12409  ;;  %v863_v31 = vand.u32 2147483647, %v13931_v13  ;;  %v2548_v8 = vrot.slane %v2546_v11, 4 }
 0x22e   : > { %v2213_v17 = vmul.f32 %v2193_v25, %v13927_v4  ;;  %v1297_v61 = vadd.f32 %v1257_v21, %v1137_v50  ;;  %v1019_v1 = vmul.f32 %v12410_v46, %v12410_v46  ;;  %v1099_v0 = vmul.f32 2.0, %v12410_v46  ;;  %v13940_v35 = vld [vmem:[#allocation2 + $0x2c] sm:$0xff] }
 0x22f   : > { %v1377_v29 = vadd.f32 %v1337_v19, %v1017_v30  ;;  %2961 = vmatmul.bf16.gmra.mxu1 %v2831_v58  ;;  %12413 = vpow2.f32 %v975_v2  ;;  %v1217_v47 = vsel %vm1057_vm9, %v1137_v50, %v1177_v37  ;;  %v903_v30 = vsub.f32 0.0, %v863_v31  ;;  %v11709_v31 = vld [vmem:[#allocation2 + $0x38] sm:$0xff]  }
 0x230   : > { %v2233_v12 = vpack.c.bf16 %v2213_v17, %v2213_v17  ;;  %v1139_v14 = vadd.f32 1.0, %v1099_v0  ;;  %v1259_v27 = vmul.f32 2.0, %v1019_v1  ;;  %v1339_v34 = vadd.f32 2.0, %v1099_v0 }
 0x231   : > { %v1417_v10 = vsel %vm1057_vm9, %v1297_v61, %v1377_v29  ;;  %v1455_v45 = vmul.f32 %v1215_v63, %v13834_v59  ;;  %v12412_v38 = vpop.eup %12411  ;;  %v979_v58 = vmul.f32 1.442695, %v903_v30  ;;  %v13943_v25 = vor.u32 %v2548_v8, %v2545_v44  ;;  %v765_v21 = vpop.f32.mrf.mxu3  ;;  %v10844_v44 = vld [vmem:[%s15891_s6 + $0x110] sm:$0xff]  ;;  %v12153_v8 = vld [vmem:[#allocation2 + $0x3c] sm:$0xff]  }
 0x232   : > { %2253 = vst [vmem:[#allocation2 + $0x58] sm:$0xf] %v2233_v12  ;;  %12415 = vrcp.f32 %v1417_v10  ;;  %v1299_v53 = vadd.f32 %v1259_v27, %v1139_v14  ;;  %v1379_v32 = vadd.f32 %v1339_v34, %v1019_v1  ;;  %v1457_v50 = vmul.f32 %v1217_v47, %v13873_v16  ;;  %3433 = vmatpush.bf16.msra.mxu3 %v10844_v44 }
 0x233   : > { %vm1059_vm11 = vcmp.ge.f32.partialorder %v13887_v40, 0.0  ;;  %12417 = vpow2.f32 %v979_v58  ;;  %v2836_v37 = vshll.u32 %v13940_v35, 16  ;;  %v13949_v19 = vadd.f32 %v765_v21, %v12965_v60 }
 0x234   : > { %v1535_v2 = vmul.f32 %v12412_v38, %v1455_v45  ;;  %v1419_v16 = vsel %vm1059_vm11, %v1299_v53, %v1379_v32  ;;  %vm1061_vm12 = vcmp.ge.f32.partialorder %v13907_v41, 0.0  ;;  %v2550_v17 = vsel %vm2488_vm10, %v13904_v26, %v13943_v25 }
 0x235   : > { %v12414_v11 = vpop.eup %12413  ;;  %v865_v60 = vand.u32 2147483647, %v13949_v19  ;;  %v1179_v63 = vadd.f32 %v1099_v0, %v1019_v1  ;;  %v2832_v10 = vshrl.u32 %v13893_v56, 16  ;;  %v13962_v27 = vrot.slane %v2836_v37, 1  ;;  %2459 = vmatmul.bf16.gmra.mxu3 %v12153_v8 }
 0x236   : > { %v1021_v59 = vmul.f32 %v12414_v11, %v12414_v11  ;;  %v1101_v22 = vmul.f32 2.0, %v12414_v11  ;;  %12419 = vrcp.f32 %v1419_v16  ;;  %v2552_v32 = vshrl.u32 %v11709_v31, 16 }
 0x237   : > { %v905_v34 = vsub.f32 0.0, %v865_v60  ;;  %v2834_v38 = vor.u32 %v2832_v10, %v13916_v54  ;;  %v1219_v58 = vsel %vm1059_vm11, %v1139_v14, %v1179_v63  ;;  %v2555_v21 = vshll.u32 %v11709_v31, 16  ;;  %v10843_v14 = vld [vmem:[%s15891_s6 + $0x108] sm:$0xff] }
 0x238   : > { %v12416_v46 = vpop.eup %12415  ;;  %v1141_v29 = vadd.f32 1.0, %v1101_v22  ;;  %v1261_v12 = vmul.f32 2.0, %v1021_v59  ;;  %v1341_v47 = vadd.f32 2.0, %v1101_v22  ;;  %v1181_v26 = vadd.f32 %v1101_v22, %v1021_v59  ;;  %3434 = vmatpush.bf16.msra.mxu3 %v10843_v14 }
 0x239   : > { %v1537_v61 = vmul.f32 %v12416_v46, %v1457_v50  ;;  %v12418_v1 = vpop.eup %12417  ;;  %v983_v53 = vmul.f32 1.442695, %v905_v34  ;;  %v2839_v37 = vsel %vm2795_vm15, %v2834_v38, %v13962_v27  ;;  %v1459_v22 = vmul.f32 %v1219_v58, %v13887_v40 }
 0x23a   : > { %2678 = vmatmul.bf16.gmra.mxu0 %v2550_v17  ;;  %3292 = vmatmul.bf16.gmra.mxu2 %v2550_v17  ;;  %v1301_v45 = vadd.f32 %v1261_v12, %v1141_v29  ;;  %v1381_v0 = vadd.f32 %v1341_v47, %v1021_v59  ;;  %v1023_v56 = vmul.f32 %v12418_v1, %v12418_v1  ;;  %v1103_v50 = vmul.f32 2.0, %v12418_v1 }
 0x23b   : > { %v11078_v30 = vpack.c.bf16 %v1537_v61, %v1535_v2  ;;  %12421 = vpow2.f32 %v983_v53  ;;  %v1221_v2 = vsel %vm1061_vm12, %v1141_v29, %v1181_v26  ;;  %v2554_v17 = vrot.slane %v2552_v32, 3  ;;  %v13980_v29 = vld [vmem:[#allocation2 + $0x34] sm:$0xff] }
 0x23c   : > { %v1421_v11 = vsel %vm1061_vm12, %v1301_v45, %v1381_v0  ;;  %v1143_v54 = vadd.f32 1.0, %v1103_v50  ;;  %v1263_v59 = vmul.f32 2.0, %v1023_v56  ;;  %v1343_v44 = vadd.f32 2.0, %v1103_v50  ;;  %v12420_v46 = vpop.eup %12419 }
 0x23d   : > { %11682 = vst [vmem:[%s13054_s21 + $0x38] sm:$0xff] %v11078_v30   ;;  %12423 = vrcp.f32 %v1421_v11  ;;  %v2557_v60 = vrot.slane %v2555_v21, 4  ;;  %v1461_v61 = vmul.f32 %v1221_v2, %v13907_v41  ;;  %vm1063_vm13 = vcmp.ge.f32.partialorder %v13931_v13, 0.0 }
 0x23e   : > { %v1303_v16 = vadd.f32 %v1263_v59, %v1143_v54  ;;  %v1383_v63 = vadd.f32 %v1343_v44, %v1023_v56  ;;  %v1539_v31 = vmul.f32 %v12420_v46, %v1459_v22  ;;  %v1183_v26 = vadd.f32 %v1103_v50, %v1023_v56  ;;  %v11710_v59 = vld [vmem:[#allocation2 + $0x40] sm:$0xff]  }
 0x23f   : > { %2966 = vmatmul.bf16.gmra.mxu1 %v2839_v37  ;;  %v2558_v34 = vor.u32 %v2557_v60, %v2554_v17  ;;  %v2844_v45 = vshll.u32 %v13980_v29, 16  ;;  %vm1065_vm14 = vcmp.ge.f32.partialorder %v13949_v19, 0.0  ;;  %v12154_v37 = vld [vmem:[#allocation2 + $0x44] sm:$0xff]   ;;  %v2840_v50 = vshrl.u32 %v13940_v35, 16  ;;  %v10867_v35 = vld [vmem:[%s15891_s6 + $0x178] sm:$0xff] }
 0x240   : > { %v1423_v47 = vsel %vm1063_vm13, %v1303_v16, %v1383_v63  ;;  %v1223_v56 = vsel %vm1063_vm13, %v1143_v54, %v1183_v26  ;;  %v2561_v16 = vshrl.u32 %v11710_v59, 16  ;;  %v2564_v17 = vshll.u32 %v11710_v59, 16  ;;  %3740 = vmatpush.bf16.msra.mxu0 %v10867_v35  ;;  %v10882_v35 = vld [vmem:[%s15891_s6 + $0x1f0] sm:$0xff] }
 0x241   : > { %v12422_v12 = vpop.eup %12421  ;;  %12425 = vrcp.f32 %v1423_v47  ;;  %v13988_v11 = vsel %vm2488_vm10, %v13943_v25, %v2558_v34  ;;  %v2846_v2 = vrot.slane %v2844_v45, 1  ;;  %v2842_v44 = vor.u32 %v2840_v50, %v13962_v27  ;;  %v10842_v27 = vld [vmem:[%s15891_s6 + $0x100] sm:$0xff]  ;;  %v10865_v45 = vld [vmem:[%s15891_s6 + $0x168] sm:$0xff] }
 0x242   : > { %v1025_v40 = vmul.f32 %v12422_v12, %v12422_v12  ;;  %v1105_v10 = vmul.f32 2.0, %v12422_v12  ;;  %v1463_v46 = vmul.f32 %v1223_v56, %v13931_v13  ;;  %v2563_v13 = vrot.slane %v2561_v16, 3  ;;  %3435 = vmatpush.bf16.msra.mxu3 %v10842_v27  ;;  %v14011_v47 = vld [vmem:[#allocation2 + $0x3c] sm:$0xff] }
 0x243   : > { %v12424_v8 = vpop.eup %12423  ;;  %v2847_v54 = vsel %vm2795_vm15, %v2842_v44, %v2846_v2  ;;  %v2848_v56 = vshrl.u32 %v13980_v29, 16  ;;  %v10875_v29 = vld [vmem:[%s15891_s6 + $0x1b8] sm:$0xff] }
 0x244   : > { %v1541_v30 = vmul.f32 %v12424_v8, %v1461_v61  ;;  %v1145_v41 = vadd.f32 1.0, %v1105_v10  ;;  %v1265_v1 = vmul.f32 2.0, %v1025_v40  ;;  %v1345_v0 = vadd.f32 2.0, %v1105_v10  ;;  %4066 = vmatpush.bf16.msra.mxu1 %v10875_v29  ;;  %v10871_v29 = vld [vmem:[%s15891_s6 + $0x198] sm:$0xff] }
 0x245   : > { %v1185_v32 = vadd.f32 %v1105_v10, %v1025_v40  ;;  %2464 = vmatmul.bf16.gmra.mxu3 %v12154_v37  ;;  %v10864_v37 = vld [vmem:[%s15891_s6 + $0x160] sm:$0xff] }
 0x246   : > { %v11083_v53 = vpack.c.bf16 %v1541_v30, %v1539_v31  ;;  %v1305_v58 = vadd.f32 %v1265_v1, %v1145_v41  ;;  %v1385_v21 = vadd.f32 %v1345_v0, %v1025_v40  ;;  %v2566_v31 = vrot.slane %v2564_v17, 4  ;;  %v2274_v40 = vld [vmem:[#allocation2 + $0x50] sm:$0xf] }
 0x247   : > { %v1225_v22 = vsel %vm1065_vm14, %v1145_v41, %v1185_v32  ;;  %v12426_v60 = vpop.eup %12425  ;;  %v2347_v41 = vunpack.c.l.b16 %v2274_v40  ;;  %v2852_v1 = vshll.u32 %v14011_v47, 16  ;;  %v11220_v0 = vunpack.c.h.b16 %v13846_v57 }
 0x248   : > { %v2425_v38 = vpop.f32.mrf.mxu3  ;;  %11683 = vst [vmem:[%s13054_s21 + $0x40] sm:$0xff] %v11083_v53   ;;  %v1425_v14 = vsel %vm1065_vm14, %v1305_v58, %v1385_v21  ;;  %v1465_v61 = vmul.f32 %v1225_v22, %v13949_v19  ;;  %v1543_v12 = vmul.f32 %v12426_v60, %v1463_v46  ;;  %v10866_v19 = vld [vmem:[%s15891_s6 + $0x170] sm:$0xff]  ;;  %v14013_v26 = vor.u32 %v2566_v31, %v2563_v13  ;;  %v10863_v46 = vld [vmem:[%s15891_s6 + $0x158] sm:$0xff]  ;;  %v10873_v13 = vld [vmem:[%s15891_s6 + $0x1a8] sm:$0xff] }
 0x249   : > { %12427 = vrcp.f32 %v1425_v14  ;;  %3741 = vmatpush.bf16.msra.mxu0 %v10866_v19  ;;  %v2357_v21 = vpack.c.b16 %v2347_v41, %v11220_v0  ;;  %v2854_v50 = vrot.slane %v2852_v1, 1  ;;  %v2850_v14 = vor.u32 %v2848_v56, %v2846_v2  ;;  %v10862_v60 = vld [vmem:[%s15891_s6 + $0x150] sm:$0xff]  ;;  %v10860_v0 = vld [vmem:[%s15891_s6 + $0x140] sm:$0xff] }
 0x24a   : > { %2683 = vmatmul.bf16.gmra.mxu0 %v13988_v11  ;;  %3297 = vmatmul.bf16.gmra.mxu2 %v13988_v11  ;;  %v14023_v32 = vsel %vm2488_vm10, %v2558_v34, %v14013_v26  ;;  %v2570_v34 = vshrl.u32 %v13846_v57, 16  ;;  %v2573_v22 = vshll.u32 %v13846_v57, 16  ;;  %v12750_v31 = vld [vmem:[#allocation2 + $0x10] sm:$0xff] }
 0x24b   : > { %v2855_v44 = vsel %vm2795_vm15, %v2850_v14, %v2854_v50  ;;  %v11223_v19 = vunpack.c.l.b16 %v12750_v31  ;;  %v10878_v31 = vld [vmem:[%s15891_s6 + $0x1d0] sm:$0xff] }
 0x24c   : > { %v2572_v16 = vrot.slane %v2570_v34, 3  ;;  %v2575_v57 = vrot.slane %v2573_v22, 4  ;;  %v3189_v34 = vshrl.u32 %v13896_v5, 16 }
 0x24d   : > { %3742 = vmatpush.bf16.msra.mxu0 %v10865_v45  ;;  %v2487_v45 = vpack.c.b16 %v2347_v41, %v2347_v41  ;;  %v3360_v1 = vpack.c.b16 %v11223_v19, %v3077_v42 }
 0x24e   : > { %v14060_v27 = vor.u32 %v2575_v57, %v2572_v16 }
 0x24f   : > { %2971 = vmatmul.bf16.gmra.mxu1 %v2847_v54  ;;  %v12428_v8 = vpop.eup %12427  ;;  %v10874_v54 = vld [vmem:[%s15891_s6 + $0x1b0] sm:$0xff]  ;;  %v2579_v22 = vshrl.u32 %v2487_v45, 16 }
 0x250   : > { %v14003_v63 = vpop.f32.mrf.mxu3  ;;  %v1545_v10 = vmul.f32 %v12428_v8, %v1465_v61  ;;  %v14055_v61 = vld [vmem:[#allocation2 + $0x44] sm:$0xff]  ;;  %4067 = vmatpush.bf16.msra.mxu1 %v10874_v54  ;;  %v10901_v8 = vld [vmem:[%s15891_s6 + $0x238] sm:$0xff]  ;;  %v10870_v54 = vld [vmem:[%s15891_s6 + $0x190] sm:$0xff] }
 0x251   : > { %3743 = vmatpush.bf16.msra.mxu0 %v10864_v37  ;;  %v2860_v40 = vshll.u32 %v14055_v61, 16  ;;  %4542 = vmatpush.bf16.msrb.mxu3 %v10901_v8  ;;  %v2856_v37 = vshrl.u32 %v14011_v47, 16  ;;  %v2581_v57 = vrot.slane %v2579_v22, 3 }
 0x252   : > { %v11088_v30 = vpack.c.bf16 %v1545_v10, %v1543_v12  ;;  %v10861_v12 = vld [vmem:[%s15891_s6 + $0x148] sm:$0xff] }
 0x253   : > { %v10881_v10 = vld [vmem:[%s15891_s6 + $0x1e8] sm:$0xff]  ;;  %v2862_v56 = vrot.slane %v2860_v40, 1  ;;  %v2858_v42 = vor.u32 %v2856_v37, %v2854_v50 }
 0x254   : > { %11684 = vst [vmem:[%s13054_s21 + $0x48] sm:$0xff] %v11088_v30   ;;  %v2577_v30 = vsel %vm2488_vm10, %v14013_v26, %v14060_v27  ;;  %4068 = vmatpush.bf16.msra.mxu1 %v10873_v13 }
 0x255   : > { %2469 = vmatmul.bf16.gmra.mxu3 %v2357_v21  ;;  %3744 = vmatpush.bf16.msra.mxu0 %v10863_v46  ;;  %v3192_v46 = vshll.u32 %v13896_v5, 16  ;;  %v2863_v47 = vsel %vm2795_vm15, %v2858_v42, %v2862_v56 }
 0x258   : > { %v2430_v53 = vpop.f32.mrf.mxu3 }
 0x259   : > { %3745 = vmatpush.bf16.msra.mxu0 %v10862_v60  ;;  %v3194_v60 = vrot.slane %v3192_v46, 4  ;;  %v10850_v46 = vld [vmem:[#allocation2 + $0xc] sm:$0xff] }
 0x25a   : > { %v2654_v58 = vpop.f32.mrf.mxu0  ;;  %2688 = vmatmul.bf16.gmra.mxu0 %v14023_v32  ;;  %3302 = vmatmul.bf16.gmra.mxu2 %v14023_v32 }
 0x25b   : > { %v14031_v59 = vadd.f32 %v2654_v58, %v2425_v38  ;;  %v10883_v38 = vld [vmem:[%s15891_s6 + $0x1f8] sm:$0xff]  ;;  %v10872_v58 = vld [vmem:[%s15891_s6 + $0x1a0] sm:$0xff] }
 0x25c   : > { %4230 = vmatpush.bf16.msra.mxu2 %v10883_v38  ;;  %4069 = vmatpush.bf16.msra.mxu1 %v10872_v58  ;;  %v3191_v38 = vrot.slane %v3189_v34, 3 }
 0x25d   : > { %3746 = vmatpush.bf16.msra.mxu0 %v10861_v12  ;;  %v3037_v12 = vld [vmem:[#allocation2 + $0x58] sm:$0xf] }
 0x25e   : > { %v3195_v8 = vor.u32 %v3194_v60, %v3191_v38  ;;  %v14114_v40 = vunpack.c.l.b16 %v3037_v12  ;;  %v14134_v38 = vld [vmem:[#allocation2 + $0x14] sm:$0xff]  ;;  %v3601_v60 = vshll.u32 %v10850_v46, 16 }
 0x25f   : > { %2976 = vmatmul.bf16.gmra.mxu1 %v2855_v44  ;;  %v2582_v44 = vshll.u32 %v2487_v45, 16  ;;  %v10877_v45 = vld [vmem:[%s15891_s6 + $0x1c8] sm:$0xff] }
 0x260   : > { %v14045_v2 = vpop.f32.mrf.mxu3  ;;  %4231 = vmatpush.bf16.msra.mxu2 %v10882_v35  ;;  %4070 = vmatpush.bf16.msra.mxu1 %v10871_v29  ;;  %v14105_v35 = vld [vmem:[#allocation2 + $0x4c] sm:$0xff]  ;;  %v3196_v58 = vsel %vm2488_vm10, %v14060_v27, %v3195_v8  ;;  %v3107_v37 = vpack.c.b16 %v14114_v40, %v14114_v40 }
 0x261   : > { %3747 = vmatpush.bf16.msra.mxu0 %v10860_v0  ;;  %v2584_v5 = vrot.slane %v2582_v44, 4  ;;  %v2724_v44 = vld [vmem:[#allocation2 + $0x54] sm:$0x1] }
 0x262   : > { %v14047_v17 = vpop.f32.mrf.mxu0 }
 0x264   : > { %4232 = vmatpush.bf16.msra.mxu2 %v10881_v10  ;;  %4071 = vmatpush.bf16.msra.mxu1 %v10870_v54  ;;  %v10869_v10 = vld [vmem:[%s15891_s6 + $0x188] sm:$0xff]  ;;  %v10900_v54 = vld [vmem:[%s15891_s6 + $0x230] sm:$0xff] }
 0x265   : > { %3436 = vmatmul.bf16.vlgmr.msra.gmra.mxu3 %v3360_v1 }
 0x266   : > { %4543 = vmatpush.bf16.msrb.mxu3 %v10900_v54 }
 0x268   : > { %v2435_v21 = vpop.f32.mrf.mxu3  ;;  %4233 = vmatpush.bf16.msra.mxu2 %v10880_v49  ;;  %4072 = vmatpush.bf16.msra.mxu1 %v10869_v10  ;;  %v2864_v49 = vshrl.u32 %v14055_v61, 16  ;;  %v10868_v61 = vld [vmem:[%s15891_s6 + $0x180] sm:$0xff] }
 0x26a   : > { %2693 = vmatmul.bf16.gmra.mxu0 %v2577_v30  ;;  %3307 = vmatmul.bf16.gmra.mxu2 %v2577_v30  ;;  %v2868_v30 = vshll.u32 %v14105_v35, 16 }
 0x26b   : > { %v2659_v41 = vpop.f32.mrf.mxu0 }
 0x26c   : > { %v14090_v14 = vadd.f32 %v2659_v41, %v2430_v53  ;;  %v10879_v53 = vld [vmem:[%s15891_s6 + $0x1d8] sm:$0xff]  ;;  %v2870_v42 = vrot.slane %v2868_v30, 1  ;;  %4073 = vmatpush.bf16.msra.mxu1 %v10868_v61 }
 0x26d   : > { %4234 = vmatpush.bf16.msra.mxu2 %v10879_v53  ;;  %v12013_v41 = vld [vmem:[#allocation2 + $0x14] sm:$0xff]   ;;  %v3198_v53 = vshrl.u32 %v3107_v37, 16  ;;  %v12015_v61 = vld [vmem:[#allocation2 + $0x1c] sm:$0xff]  }
 0x26f   : > { %2981 = vmatmul.bf16.gmra.mxu1 %v2863_v47  ;;  %v2866_v47 = vor.u32 %v2864_v49, %v2862_v56  ;;  %v2657_v56 = vadd.f32 %v14047_v17, %v14003_v63  ;;  %v3200_v10 = vrot.slane %v3198_v53, 3  ;;  %v3819_v53 = vld [vmem:[#allocation2 + $0x10] sm:$0x8] }
 0x270   : > { %v2947_v50 = vpop.f32.mrf.mxu1  ;;  %v14112_v19 = vpop.f32.mrf.mxu3 }
 0x271   : > { %v2997_v16 = vadd.f32 %v2947_v50, %v14031_v59  ;;  %v2585_v59 = vor.u32 %v2584_v5, %v2581_v57  ;;  %4235 = vmatpush.bf16.msra.mxu2 %v10878_v31  ;;  %v3201_v50 = vshll.u32 %v3107_v37, 16  ;;  %v10876_v57 = vld [vmem:[%s15891_s6 + $0x1c0] sm:$0xff] }
 0x273   : > { %v14107_v13 = vpop.f32.mrf.mxu0  ;;  %v2586_v0 = vsel %vm2488_vm10, %v14060_v27, %v2585_v59  ;;  %v3203_v30 = vrot.slane %v3201_v50, 4  ;;  %v3820_v50 = vld [vmem:[#allocation2 + $0x14] sm:$0xf] }
 0x274   : > { %v3879_v54 = vunpack.c.l.b16 %v3820_v50 }
 0x275   : > { %4236 = vmatpush.bf16.msra.mxu2 %v10877_v45  ;;  %3441 = vmatmul.bf16.gmra.mxu3 %v12013_v41  ;;  %v3606_v45 = vshll.u32 %v14134_v38, 16  ;;  %v3204_v37 = vor.u32 %v3203_v30, %v3200_v10  ;;  %v3599_v41 = vshrl.u32 %v10850_v46, 16  ;;  %v10852_v10 = vld [vmem:[#allocation2 + $0x1c] sm:$0xff] }
 0x277   : > { %v3608_v49 = vrot.slane %v3606_v45, 1 }
 0x278   : > { %v2949_v1 = vpop.f32.mrf.mxu1  ;;  %v14142_v5 = vpop.f32.mrf.mxu3 }
 0x279   : > { %4237 = vmatpush.bf16.msra.mxu2 %v10876_v57  ;;  %v2998_v12 = vadd.f32 %v2949_v1, %v2657_v56 }
 0x27a   : > { %2698 = vmatmul.bf16.gmra.mxu0 %v2586_v0  ;;  %3312 = vmatmul.bf16.gmra.mxu2 %v3196_v58  ;;  %v3603_v0 = vrot.slane %v3601_v60, 1  ;;  %v3878_v60 = vunpack.c.l.b16 %v3819_v53 }
 0x27b   : > { %v3273_v34 = vpop.f32.mrf.mxu2  ;;  %v2664_v22 = vpop.f32.mrf.mxu0 }
 0x27c   : > { %v14130_v29 = vadd.f32 %v3273_v34, %v2997_v16  ;;  %v14132_v27 = vadd.f32 %v2664_v22, %v2435_v21  ;;  %v2871_v21 = vsel %vm2795_vm15, %v2866_v47, %v2870_v42  ;;  %v2783_v16 = vunpack.c.l.b16 %v2724_v44 }
 0x27d   : > { %v3604_v22 = vor.u32 %v3603_v0, %v3599_v41  ;;  %v2872_v44 = vshrl.u32 %v14105_v35, 16  ;;  %v3899_v45 = vpack.c.b16 %v3879_v54, %v3878_v60 }
 0x27e   : > { %v2794_v63 = vpack.c.b16 %v2783_v16, %v2783_v16 }
 0x27f   : > { %2986 = vmatmul.bf16.gmra.mxu1 %v2871_v21  ;;  %v3609_v47 = vsel %vm2795_vm15, %v3604_v22, %v3608_v49  ;;  %v2874_v57 = vor.u32 %v2872_v44, %v2870_v42  ;;  %v11761_v42 = vld [vmem:[#allocation2 + $0x18] sm:$0xff]   ;;  %v3914_v22 = vshll.u32 %v3899_v45, 16 }
 0x280   : > { %v2952_v31 = vpop.f32.mrf.mxu1  ;;  %v14154_v34 = vpop.f32.mrf.mxu3  ;;  %v2876_v1 = vshll.u32 %v2794_v63, 16  ;;  %v3919_v63 = vshrl.u32 %v11761_v42, 16  ;;  %v11259_v44 = vunpack.c.l.b16 %v11761_v42 }
 0x281   : > { %v2999_v59 = vadd.f32 %v2952_v31, %v14090_v14  ;;  %v3205_v14 = vsel %vm2488_vm10, %v3195_v8, %v3204_v37  ;;  %v2662_v8 = vadd.f32 %v14107_v13, %v14045_v2  ;;  %v3614_v37 = vshll.u32 %v10852_v10, 16  ;;  %v10899_v2 = vld [vmem:[%s15891_s6 + $0x228] sm:$0xff] }
 0x282   : > { %v2878_v56 = vrot.slane %v2876_v1, 1  ;;  %v3911_v1 = vshrl.u32 %v3899_v45, 16  ;;  %4544 = vmatpush.bf16.msrb.mxu3 %v10899_v2 }
 0x283   : > { %v3275_v17 = vpop.f32.mrf.mxu2  ;;  %v2666_v16 = vpop.f32.mrf.mxu0 }
 0x284   : > { %v14152_v58 = vadd.f32 %v3275_v17, %v2998_v12  ;;  %v2879_v31 = vsel %vm2795_vm15, %v2874_v57, %v2878_v56  ;;  %v3922_v17 = vshll.u32 %v11761_v42, 16  ;;  %v3913_v57 = vrot.slane %v3911_v1, 3 }
 0x285   : > { %3446 = vmatmul.bf16.gmra.mxu3 %v12015_v61  ;;  %v3616_v61 = vrot.slane %v3614_v37, 1  ;;  %v3916_v56 = vrot.slane %v3914_v22, 4  ;;  %v2667_v37 = vadd.f32 %v2666_v16, %v14112_v19  ;;  %v3618_v1 = vshrl.u32 %v10852_v10, 16  ;;  %v12029_v10 = vld [vmem:[#allocation2 + $0x1c] sm:$0xff]  }
 0x286   : > { %v3924_v53 = vrot.slane %v3922_v17, 4 }
 0x288   : > { %v2954_v12 = vpop.f32.mrf.mxu1  ;;  %v2445_v35 = vpop.f32.mrf.mxu3 }
 0x289   : > { %v3000_v30 = vadd.f32 %v2954_v12, %v2662_v8  ;;  %v12017_v12 = vld [vmem:[#allocation2 + $0x24] sm:$0xff]  }
 0x28a   : > { %3317 = vmatmul.bf16.gmra.mxu2 %v3205_v14  ;;  %3748 = vmatmul.bf16.vlgmr.msra.gmra.mxu0 %v3609_v47  ;;  %v3921_v47 = vrot.slane %v3919_v63, 3 }
 0x28b   : > { %v3278_v21 = vpop.f32.mrf.mxu2 }
 0x28c   : > { %v14159_v46 = vadd.f32 %v3278_v21, %v2999_v59  ;;  %v3610_v59 = vshrl.u32 %v14134_v38, 16  ;;  %v4162_v21 = vpack.c.b16 %v11259_v44, %v3879_v54  ;;  %v10853_v54 = vld [vmem:[#allocation2 + $0x24] sm:$0xff] }
 0x28d   : > { %v3622_v22 = vshll.u32 %v10853_v54, 16 }
 0x28e   : > { %v3612_v14 = vor.u32 %v3610_v59, %v3608_v49  ;;  %v3925_v49 = vor.u32 %v3924_v53, %v3921_v47  ;;  %v11762_v59 = vld [vmem:[#allocation2 + $0x20] sm:$0xff]   ;;  %v3620_v53 = vor.u32 %v3618_v1, %v3616_v61  ;;  %v11763_v1 = vld [vmem:[#allocation2 + $0x28] sm:$0xff]  }
 0x28f   : > { %2991 = vmatmul.bf16.gmra.mxu1 %v2879_v31  ;;  %v3917_v31 = vor.u32 %v3916_v56, %v3913_v57  ;;  %v3931_v2 = vshll.u32 %v11762_v59, 16  ;;  %v10898_v57 = vld [vmem:[%s15891_s6 + $0x220] sm:$0xff] }
 0x290   : > { %v14170_v13 = vpop.f32.mrf.mxu3  ;;  %v3617_v60 = vsel %vm2795_vm15, %v3612_v14, %v3616_v61  ;;  %v3928_v14 = vshrl.u32 %v11762_v59, 16  ;;  %4545 = vmatpush.bf16.msrb.mxu3 %v10898_v57  ;;  %v3626_v57 = vshrl.u32 %v10853_v54, 16 }
 0x291   : > { %v3926_v63 = vsel %vm2488_vm10, %v3917_v31, %v3925_v49  ;;  %v3933_v16 = vrot.slane %v3931_v2, 4  ;;  %v3940_v2 = vshll.u32 %v11763_v1, 16 }
 0x292   : > { %v3930_v19 = vrot.slane %v3928_v14, 3  ;;  %v3937_v14 = vshrl.u32 %v11763_v1, 16  ;;  %v10897_v1 = vld [vmem:[%s15891_s6 + $0x218] sm:$0xff] }
 0x293   : > { %v3280_v0 = vpop.f32.mrf.mxu2 }
 0x294   : > { %v14165_v41 = vadd.f32 %v3280_v0, %v3000_v30  ;;  %v3934_v31 = vor.u32 %v3933_v16, %v3930_v19  ;;  %v3939_v19 = vrot.slane %v3937_v14, 3  ;;  %v3942_v16 = vrot.slane %v3940_v2, 4  ;;  %4546 = vmatpush.bf16.msrb.mxu3 %v10897_v1 }
 0x295   : > { %3451 = vmatmul.bf16.gmra.mxu3 %v12017_v12 }
 0x296   : > { %v3935_v59 = vsel %vm2488_vm10, %v3925_v49, %v3934_v31 }
 0x297   : > { %v2669_v50 = vpop.f32.mrf.mxu0 }
 0x298   : > { %v2670_v38 = vadd.f32 %v2669_v50, %v14142_v5  ;;  %v2450_v45 = vpop.f32.mrf.mxu3 }
 0x29a   : > { %3753 = vmatmul.bf16.gmra.mxu0 %v3617_v60  ;;  %4238 = vmatmul.bf16.vlgmr.msra.gmra.mxu2 %v4162_v21 }
 0x29c   : > { %v2957_v8 = vpop.f32.mrf.mxu1 }
 0x29d   : > { %v3001_v42 = vadd.f32 %v2957_v8, %v14132_v27  ;;  %v3283_v30 = vpop.f32.mrf.mxu2  ;;  %v12019_v8 = vld [vmem:[#allocation2 + $0x2c] sm:$0xff]  }
 0x29f   : > { %4074 = vmatmul.bf16.vlgmr.msra.gmra.mxu1 %v3926_v63  ;;  %v14176_v5 = vadd.f32 %v3283_v30, %v3001_v42  ;;  %v2671_v17 = vpop.f32.mrf.mxu0  ;;  %v10854_v63 = vld [vmem:[#allocation2 + $0x2c] sm:$0xff] }
 0x2a0   : > { %v2672_v0 = vadd.f32 %v2671_v17, %v14154_v34  ;;  %v2452_v50 = vpop.f32.mrf.mxu3  ;;  %v3624_v34 = vrot.slane %v3622_v22, 1 }
 0x2a2   : > { %v3625_v12 = vsel %vm2795_vm15, %v3620_v53, %v3624_v34 }
 0x2a4   : > { %v2959_v44 = vpop.f32.mrf.mxu1 }
 0x2a5   : > { %v3002_v27 = vadd.f32 %v2959_v44, %v2667_v37  ;;  %v3285_v47 = vpop.f32.mrf.mxu2  ;;  %3456 = vmatmul.bf16.gmra.mxu3 %v12019_v8  ;;  %v3630_v44 = vshll.u32 %v10854_v63, 16 }
 0x2a7   : > { %v14183_v56 = vadd.f32 %v3285_v47, %v3002_v27  ;;  %v2674_v21 = vpop.f32.mrf.mxu0 }
 0x2a8   : > { %v2675_v60 = vadd.f32 %v2674_v21, %v2445_v35  ;;  %v2455_v17 = vpop.f32.mrf.mxu3 }
 0x2aa   : > { %3758 = vmatmul.bf16.gmra.mxu0 %v3625_v12  ;;  %4243 = vmatmul.bf16.gmra.mxu2 %v12029_v10  ;;  %v3628_v12 = vor.u32 %v3626_v57, %v3624_v34 }
 0x2ac   : > { %v2962_v61 = vpop.f32.mrf.mxu1 }
 0x2ad   : > { %v3003_v42 = vadd.f32 %v2962_v61, %v2670_v38  ;;  %v3288_v30 = vpop.f32.mrf.mxu2  ;;  %v3632_v38 = vrot.slane %v3630_v44, 1  ;;  %v12031_v61 = vld [vmem:[#allocation2 + $0x24] sm:$0xff]  }
 0x2af   : > { %4079 = vmatmul.bf16.gmra.mxu1 %v3935_v59  ;;  %v14187_v37 = vadd.f32 %v3288_v30, %v3003_v42  ;;  %v2676_v35 = vpop.f32.mrf.mxu0  ;;  %v3633_v42 = vsel %vm2795_vm15, %v3628_v12, %v3632_v38  ;;  %v3943_v30 = vor.u32 %v3942_v16, %v3939_v19 }
 0x2b0   : > { %v2677_v22 = vadd.f32 %v2676_v35, %v14170_v13  ;;  %v2457_v21 = vpop.f32.mrf.mxu3  ;;  %v12021_v13 = vld [vmem:[#allocation2 + $0x34] sm:$0xff]  }
 0x2b1   : > { %v10855_v35 = vld [vmem:[#allocation2 + $0x34] sm:$0xff]  ;;  %v3944_v44 = vsel %vm2488_vm10, %v3934_v31, %v3943_v30  ;;  %v12033_v31 = vld [vmem:[#allocation2 + $0x2c] sm:$0xff]  }
 0x2b4   : > { %v2964_v27 = vpop.f32.mrf.mxu1 }
 0x2b5   : > { %v3004_v47 = vadd.f32 %v2964_v27, %v2672_v0  ;;  %v3290_v53 = vpop.f32.mrf.mxu2  ;;  %3461 = vmatmul.bf16.gmra.mxu3 %v12021_v13  ;;  %v3638_v27 = vshll.u32 %v10855_v35, 16 }
 0x2b7   : > { %v14190_v10 = vadd.f32 %v3290_v53, %v3004_v47  ;;  %v2679_v49 = vpop.f32.mrf.mxu0  ;;  %v3640_v19 = vrot.slane %v3638_v27, 1 }
 0x2b8   : > { %v2680_v8 = vadd.f32 %v2679_v49, %v2450_v45  ;;  %v2460_v34 = vpop.f32.mrf.mxu3 }
 0x2ba   : > { %3763 = vmatmul.bf16.gmra.mxu0 %v3633_v42  ;;  %4248 = vmatmul.bf16.gmra.mxu2 %v12031_v61 }
 0x2bc   : > { %v2967_v0 = vpop.f32.mrf.mxu1 }
 0x2bd   : > { %v3005_v59 = vadd.f32 %v2967_v0, %v2675_v60  ;;  %v3293_v54 = vpop.f32.mrf.mxu2  ;;  %v3634_v60 = vshrl.u32 %v10854_v63, 16  ;;  %v12023_v0 = vld [vmem:[#allocation2 + $0x3c] sm:$0xff]   ;;  %v3953_v63 = vsel %vm2488_vm10, %v3943_v30, %v13943_v25 }
 0x2bf   : > { %4084 = vmatmul.bf16.gmra.mxu1 %v3944_v44  ;;  %v14197_v45 = vadd.f32 %v3293_v54, %v3005_v59  ;;  %v2681_v14 = vpop.f32.mrf.mxu0  ;;  %v3636_v61 = vor.u32 %v3634_v60, %v3632_v38 }
 0x2c0   : > { %v2682_v2 = vadd.f32 %v2681_v14, %v2452_v50  ;;  %v2462_v16 = vpop.f32.mrf.mxu3 }
 0x2c1   : > { %v3641_v13 = vsel %vm2795_vm15, %v3636_v61, %v3640_v19 }
 0x2c4   : > { %v2969_v47 = vpop.f32.mrf.mxu1 }
 0x2c5   : > { %v3006_v53 = vadd.f32 %v2969_v47, %v2677_v22  ;;  %v3295_v57 = vpop.f32.mrf.mxu2  ;;  %3466 = vmatmul.bf16.gmra.mxu3 %v12023_v0  ;;  %v10856_v22 = vld [vmem:[#allocation2 + $0x3c] sm:$0xff] }
 0x2c6   : > { %v3646_v27 = vshll.u32 %v10856_v22, 16 }
 0x2c7   : > { %v14199_v49 = vadd.f32 %v3295_v57, %v3006_v53  ;;  %v2684_v12 = vpop.f32.mrf.mxu0  ;;  %v3642_v57 = vshrl.u32 %v10855_v35, 16 }
 0x2c8   : > { %v2685_v42 = vadd.f32 %v2684_v12, %v2455_v17  ;;  %v2465_v1 = vpop.f32.mrf.mxu3  ;;  %v10896_v17 = vld [vmem:[%s15891_s6 + $0x210] sm:$0xff]  ;;  %v3648_v60 = vrot.slane %v3646_v27, 1 }
 0x2c9   : > { %4547 = vmatpush.bf16.msrb.mxu3 %v10896_v17  ;;  %v3644_v61 = vor.u32 %v3642_v57, %v3640_v19  ;;  %v10895_v57 = vld [vmem:[%s15891_s6 + $0x208] sm:$0xff] }
 0x2ca   : > { %3768 = vmatmul.bf16.gmra.mxu0 %v3641_v13  ;;  %4253 = vmatmul.bf16.gmra.mxu2 %v12033_v31  ;;  %v12035_v13 = vld [vmem:[#allocation2 + $0x34] sm:$0xff]  }
 0x2cb   : > { %v3649_v0 = vsel %vm2795_vm15, %v3644_v61, %v3648_v60 }
 0x2cc   : > { %v2972_v50 = vpop.f32.mrf.mxu1 }
 0x2cd   : > { %v3007_v59 = vadd.f32 %v2972_v50, %v2680_v8  ;;  %v3298_v54 = vpop.f32.mrf.mxu2  ;;  %v12025_v50 = vld [vmem:[#allocation2 + $0x44] sm:$0xff]   ;;  %4548 = vmatpush.bf16.msrb.mxu3 %v10895_v57 }
 0x2cf   : > { %4089 = vmatmul.bf16.gmra.mxu1 %v3953_v63  ;;  %v14204_v44 = vadd.f32 %v3298_v54, %v3007_v59  ;;  %v2686_v38 = vpop.f32.mrf.mxu0  ;;  %v10857_v54 = vld [vmem:[#allocation2 + $0x44] sm:$0xff] }
 0x2d0   : > { %v2687_v14 = vadd.f32 %v2686_v38, %v2457_v21  ;;  %v14209_v12 = vpop.f32.mrf.mxu3  ;;  %v3654_v19 = vshll.u32 %v10857_v54, 16 }
 0x2d4   : > { %v2974_v47 = vpop.f32.mrf.mxu1 }
 0x2d5   : > { %v3008_v53 = vadd.f32 %v2974_v47, %v2682_v2  ;;  %v3300_v8 = vpop.f32.mrf.mxu2  ;;  %3471 = vmatmul.bf16.gmra.mxu3 %v12025_v50  ;;  %v12026_v50 = vld [vmem:[#allocation2 + $0x4c] sm:$0xff]  }
 0x2d7   : > { %v14211_v25 = vadd.f32 %v3300_v8, %v3008_v53  ;;  %v2689_v30 = vpop.f32.mrf.mxu0  ;;  %v3650_v53 = vshrl.u32 %v10856_v22, 16  ;;  %v3656_v8 = vrot.slane %v3654_v19, 1 }
 0x2d8   : > { %v2690_v31 = vadd.f32 %v2689_v30, %v2460_v34  ;;  %v2470_v35 = vpop.f32.mrf.mxu3 }
 0x2da   : > { %3773 = vmatmul.bf16.gmra.mxu0 %v3649_v0  ;;  %4258 = vmatmul.bf16.gmra.mxu2 %v12035_v13  ;;  %v12037_v0 = vld [vmem:[#allocation2 + $0x3c] sm:$0xff]  }
 0x2dc   : > { %v2977_v21 = vpop.f32.mrf.mxu1 }
 0x2dd   : > { %v3009_v59 = vadd.f32 %v2977_v21, %v2685_v42  ;;  %v3303_v2 = vpop.f32.mrf.mxu2 }
 0x2df   : > { %4094 = vmatmul.bf16.gmra.mxu1 %v13988_v11  ;;  %v14215_v63 = vadd.f32 %v3303_v2, %v3009_v59  ;;  %v2691_v38 = vpop.f32.mrf.mxu0  ;;  %v3652_v11 = vor.u32 %v3650_v53, %v3648_v60  ;;  %v14225_v59 = vld [vmem:[#allocation2 + $0x4c] sm:$0xff] }
 0x2e0   : > { %v2692_v17 = vadd.f32 %v2691_v38, %v2462_v16  ;;  %v14220_v42 = vpop.f32.mrf.mxu3 }
 0x2e1   : > { %15937 = vst [vmem:[#allocation15_spill] sm:$0xff] %v14220_v42  ;;  %v3657_v16 = vsel %vm2795_vm15, %v3652_v11, %v3656_v8 }
 0x2e4   : > { %v2979_v34 = vpop.f32.mrf.mxu1 }
 0x2e5   : > { %v3010_v27 = vadd.f32 %v2979_v34, %v2687_v14  ;;  %v3305_v47 = vpop.f32.mrf.mxu2  ;;  %3476 = vmatmul.bf16.gmra.mxu3 %v12026_v50  ;;  %v3662_v34 = vshll.u32 %v14225_v59, 16 }
 0x2e7   : > { %v14222_v30 = vadd.f32 %v3305_v47, %v3010_v27  ;;  %v2694_v61 = vpop.f32.mrf.mxu0  ;;  %v3664_v11 = vrot.slane %v3662_v34, 1 }
 0x2e8   : > { %v2695_v13 = vadd.f32 %v2694_v61, %v2465_v1  ;;  %v3437_v2 = vpop.f32.mrf.mxu3  ;;  %v11767_v1 = vld [vmem:[#allocation2 + $0x48] sm:$0xff]   ;;  %v3658_v61 = vshrl.u32 %v10857_v54, 16 }
 0x2e9   : > { %v14233_v19 = vadd.f32 %v3437_v2, %v14130_v29  ;;  %v3973_v27 = vshrl.u32 %v11767_v1, 16  ;;  %v3976_v47 = vshll.u32 %v11767_v1, 16  ;;  %v12751_v2 = vld [vmem:[#allocation2 + $0x50] sm:$0xff]  ;;  %v12039_v54 = vld [vmem:[#allocation2 + $0x44] sm:$0xff]  }
 0x2ea   : > { %3778 = vmatmul.bf16.gmra.mxu0 %v3657_v16  ;;  %4263 = vmatmul.bf16.gmra.mxu2 %v12037_v0 }
 0x2eb   : > { %v3975_v0 = vrot.slane %v3973_v27, 3  ;;  %v3978_v16 = vrot.slane %v3976_v47, 4  ;;  %v10884_v47 = vld [vmem:[#allocation2 + $0x14] sm:$0xff] }
 0x2ec   : > { %v2982_v22 = vpop.f32.mrf.mxu1 }
 0x2ed   : > { %v3011_v14 = vadd.f32 %v2982_v22, %v2690_v31  ;;  %v3308_v21 = vpop.f32.mrf.mxu2  ;;  %v3979_v27 = vor.u32 %v3978_v16, %v3975_v0  ;;  %v10885_v0 = vld [vmem:[#allocation2 + $0x1c] sm:$0xff] }
 0x2ef   : > { %4099 = vmatmul.bf16.gmra.mxu1 %v14023_v32  ;;  %v14228_v38 = vadd.f32 %v3308_v21, %v3011_v14  ;;  %v14230_v60 = vpop.f32.mrf.mxu0  ;;  %v10894_v32 = vld [vmem:[%s15891_s6 + $0x200] sm:$0xff]  ;;  %v3660_v14 = vor.u32 %v3658_v61, %v3656_v8  ;;  %v10859_v61 = vld [vmem:[#allocation2 + $0x54] sm:$0xff] }
 0x2f0   : > { %v3439_v50 = vpop.f32.mrf.mxu3  ;;  %4549 = vmatpush.bf16.msrb.mxu3 %v10894_v32  ;;  %v3670_v16 = vshll.u32 %v10859_v61, 16 }
 0x2f1   : > { %v14242_v21 = vadd.f32 %v3439_v50, %v14152_v58  ;;  %v3665_v34 = vsel %vm2795_vm15, %v3660_v14, %v3664_v11  ;;  %v3980_v58 = vsel %vm2488_vm10, %v14013_v26, %v3979_v27  ;;  %v4403_v50 = vshll.u32 %v10884_v47, 16 }
 0x2f2   : > { %v3666_v26 = vshrl.u32 %v14225_v59, 16 }
 0x2f4   : > { %v2984_v53 = vpop.f32.mrf.mxu1 }
 0x2f5   : > { %v3012_v31 = vadd.f32 %v2984_v53, %v2692_v17  ;;  %v3310_v57 = vpop.f32.mrf.mxu2  ;;  %v11256_v17 = vunpack.c.h.b16 %v12751_v2 }
 0x2f7   : > { %v14239_v22 = vadd.f32 %v3310_v57, %v3012_v31  ;;  %v2699_v29 = vpop.f32.mrf.mxu0  ;;  %v3369_v53 = vpack.c.b16 %v14114_v40, %v11256_v17  ;;  %v4405_v17 = vrot.slane %v4403_v50, 1 }
 0x2f8   : > { %v2700_v1 = vadd.f32 %v2699_v29, %v2470_v35  ;;  %v3442_v32 = vpop.f32.mrf.mxu3  ;;  %v11768_v29 = vld [vmem:[#allocation2 + $0x50] sm:$0xff]  }
 0x2f9   : > { %3481 = vmatmul.bf16.gmra.mxu3 %v3369_v53  ;;  %v14251_v40 = vadd.f32 %v3442_v32, %v14159_v46  ;;  %v3982_v14 = vshrl.u32 %v11768_v29, 16  ;;  %v3985_v2 = vshll.u32 %v11768_v29, 16  ;;  %v3668_v32 = vor.u32 %v3666_v26, %v3664_v11  ;;  %v12041_v29 = vld [vmem:[#allocation2 + $0x4c] sm:$0xff]  }
 0x2fa   : > { %3783 = vmatmul.bf16.gmra.mxu0 %v3665_v34  ;;  %4268 = vmatmul.bf16.gmra.mxu2 %v12039_v54  ;;  %v4401_v54 = vshrl.u32 %v10884_v47, 16  ;;  %v4408_v34 = vshll.u32 %v10885_v0, 16 }
 0x2fc   : > { %v2987_v31 = vpop.f32.mrf.mxu1  ;;  %v4406_v46 = vor.u32 %v4405_v17, %v4401_v54  ;;  %v4410_v50 = vrot.slane %v4408_v34, 1 }
 0x2fd   : > { %v3013_v57 = vadd.f32 %v2987_v31, %v2695_v13  ;;  %v3313_v8 = vpop.f32.mrf.mxu2  ;;  %v3672_v31 = vrot.slane %v3670_v16, 1 }
 0x2fe   : > { %v4411_v59 = vsel %vm2795_vm15, %v4406_v46, %v4410_v50  ;;  %v4412_v46 = vshrl.u32 %v10885_v0, 16 }
 0x2ff   : > { %4104 = vmatmul.bf16.gmra.mxu1 %v3980_v58  ;;  %v14248_v35 = vadd.f32 %v3313_v8, %v3013_v57  ;;  %v3984_v57 = vrot.slane %v3982_v14, 3  ;;  %v3987_v8 = vrot.slane %v3985_v2, 4  ;;  %v3527_v58 = vld [vmem:[#allocation2 + $0x5c] sm:$0x1]  ;;  %v3673_v20 = vsel %vm2795_vm15, %v3668_v32, %v3672_v31 }
 0x300   : > { %v3444_v4 = vpop.f32.mrf.mxu3  ;;  %v3586_v47 = vunpack.c.l.b16 %v3527_v58  ;;  %v3674_v58 = vshrl.u32 %v10859_v61, 16 }
 0x301   : > { %v14259_v33 = vadd.f32 %v3444_v4, %v14165_v41  ;;  %v3988_v9 = vor.u32 %v3987_v8, %v3984_v57  ;;  %v11769_v41 = vld [vmem:[#allocation2 + $0x58] sm:$0xff]  }
 0x302   : > { %v3597_v2 = vpack.c.b16 %v3586_v47, %v3586_v47  ;;  %v3991_v57 = vshrl.u32 %v11769_v41, 16  ;;  %v3994_v8 = vshll.u32 %v11769_v41, 16 }
 0x303   : > { %v3989_v17 = vsel %vm2488_vm10, %v3979_v27, %v3988_v9 }
 0x304   : > { %v14253_v13 = vpop.f32.mrf.mxu1  ;;  %v3678_v26 = vshll.u32 %v3597_v2, 16  ;;  %v3993_v47 = vrot.slane %v3991_v57, 3  ;;  %v3996_v27 = vrot.slane %v3994_v8, 4 }
 0x305   : > { %v14255_v53 = vpop.f32.mrf.mxu2 }
 0x306   : > { %v3997_v2 = vor.u32 %v3996_v27, %v3993_v47 }
 0x308   : > { %v3447_v54 = vpop.f32.mrf.mxu3 }
 0x309   : > { %4550 = vmatmul.bf16.vlgmr.msrb.gmra.mxu3 %v4411_v59  ;;  %v14267_v34 = vadd.f32 %v3447_v54, %v14176_v5 }
 0x30a   : > { %3788 = vmatmul.bf16.gmra.mxu0 %v3673_v20  ;;  %4273 = vmatmul.bf16.gmra.mxu2 %v12041_v29  ;;  %v10886_v20 = vld [vmem:[#allocation2 + $0x24] sm:$0xff]  ;;  %v3680_v29 = vrot.slane %v3678_v26, 1 }
 0x30b   : > { %v4416_v32 = vshll.u32 %v10886_v20, 16 }
 0x30c   : > { %v2992_v16 = vpop.f32.mrf.mxu1 }
 0x30d   : > { %v3015_v14 = vadd.f32 %v2992_v16, %v2700_v1  ;;  %v3318_v11 = vpop.f32.mrf.mxu2  ;;  %v3676_v1 = vor.u32 %v3674_v58, %v3672_v31  ;;  %v4414_v16 = vor.u32 %v4412_v46, %v4410_v50  ;;  %v4418_v5 = vrot.slane %v4416_v32, 1  ;;  %v10887_v50 = vld [vmem:[#allocation2 + $0x2c] sm:$0xff] }
 0x30e   : > { %v3998_v31 = vsel %vm2488_vm10, %v3988_v9, %v3997_v2  ;;  %v4424_v46 = vshll.u32 %v10887_v50, 16  ;;  %v11292_v32 = vunpack.c.h.b16 %v11769_v41 }
 0x30f   : > { %4109 = vmatmul.bf16.gmra.mxu1 %v3989_v17  ;;  %v14264_v4 = vadd.f32 %v3318_v11, %v3015_v14  ;;  %v3839_v17 = vld [vmem:[#allocation2 + $0x60] sm:$0xf]  ;;  %v12042_v11 = vld [vmem:[#allocation2 + $0x54] sm:$0xff]   ;;  %v3681_v54 = vsel %vm2795_vm15, %v3676_v1, %v3680_v29  ;;  %v4419_v0 = vsel %vm2795_vm15, %v4414_v16, %v4418_v5 }
 0x310   : > { %v3449_v59 = vpop.f32.mrf.mxu3  ;;  %v3898_v61 = vunpack.c.l.b16 %v3839_v17  ;;  %v10919_v1 = vld [vmem:[%s15889_s4 + $0x78] sm:$0xff]  ;;  %v4426_v9 = vrot.slane %v4424_v46, 1 }
 0x311   : > { %v14270_v14 = vadd.f32 %v3449_v59, %v14183_v56  ;;  %v4420_v59 = vshrl.u32 %v10886_v20, 16  ;;  %5275 = vmatpush.bf16.msrb.mxu0 %v10919_v1 }
 0x312   : > { %v3909_v26 = vpack.c.b16 %v3898_v61, %v3898_v61  ;;  %v4171_v17 = vpack.c.b16 %v3898_v61, %v11292_v32  ;;  %v10889_v32 = vld [vmem:[#allocation2 + $0x3c] sm:$0xff] }
 0x313   : > { %v4440_v1 = vshll.u32 %v10889_v32, 16 }
 0x314   : > { %v4000_v8 = vshrl.u32 %v3909_v26, 16  ;;  %v4003_v58 = vshll.u32 %v3909_v26, 16 }
 0x316   : > { %v4002_v29 = vrot.slane %v4000_v8, 3  ;;  %v4005_v47 = vrot.slane %v4003_v58, 4 }
 0x318   : > { %v3452_v57 = vpop.f32.mrf.mxu3 }
 0x319   : > { %4555 = vmatmul.bf16.gmra.mxu3 %v4419_v0  ;;  %v14276_v56 = vadd.f32 %v3452_v57, %v14187_v37  ;;  %v4422_v37 = vor.u32 %v4420_v59, %v4418_v5 }
 0x31a   : > { %3793 = vmatmul.bf16.gmra.mxu0 %v3681_v54  ;;  %4278 = vmatmul.bf16.gmra.mxu2 %v12042_v11  ;;  %v4006_v11 = vor.u32 %v4005_v47, %v4002_v29  ;;  %v4442_v47 = vrot.slane %v4440_v1, 1 }
 0x31b   : > { %v4427_v54 = vsel %vm2795_vm15, %v4422_v37, %v4426_v9  ;;  %v10890_v37 = vld [vmem:[#allocation2 + $0x44] sm:$0xff] }
 0x31c   : > { %v4007_v41 = vsel %vm2488_vm10, %v3997_v2, %v4006_v11  ;;  %v10918_v2 = vld [vmem:[%s15889_s4 + $0x70] sm:$0xff]  ;;  %v4448_v11 = vshll.u32 %v10890_v37, 16 }
 0x31d   : > { %5276 = vmatpush.bf16.msrb.mxu0 %v10918_v2  ;;  %v10916_v2 = vld [vmem:[%s15889_s4 + $0x60] sm:$0xff] }
 0x31f   : > { %4114 = vmatmul.bf16.gmra.mxu1 %v3998_v31  ;;  %v10888_v31 = vld [vmem:[#allocation2 + $0x34] sm:$0xff] }
 0x320   : > { %v3454_v27 = vpop.f32.mrf.mxu3  ;;  %v4432_v20 = vshll.u32 %v10888_v31, 16  ;;  %v4436_v29 = vshrl.u32 %v10888_v31, 16 }
 0x321   : > { %v14282_v16 = vadd.f32 %v3454_v27, %v14190_v10  ;;  %v4428_v10 = vshrl.u32 %v10887_v50, 16 }
 0x322   : > { %v4434_v8 = vrot.slane %v4432_v20, 1 }
 0x323   : > { %v4430_v5 = vor.u32 %v4428_v10, %v4426_v9  ;;  %v10917_v9 = vld [vmem:[%s15889_s4 + $0x68] sm:$0xff] }
 0x324   : > { %v4438_v27 = vor.u32 %v4436_v29, %v4434_v8  ;;  %5277 = vmatpush.bf16.msrb.mxu0 %v10917_v9  ;;  %v10891_v10 = vld [vmem:[#allocation2 + $0x4c] sm:$0xff] }
 0x325   : > { %v4435_v58 = vsel %vm2795_vm15, %v4430_v5, %v4434_v8  ;;  %v14316_v5 = vpop.f32.mrf.mxu0 }
 0x326   : > { %v4443_v59 = vsel %vm2795_vm15, %v4438_v27, %v4442_v47  ;;  %15938 = vst [vmem:[#allocation16_spill] sm:$0xff] %v14316_v5 }
 0x328   : > { %v3457_v0 = vpop.f32.mrf.mxu3  ;;  %5278 = vmatpush.bf16.msrb.mxu0 %v10916_v2 }
 0x329   : > { %4560 = vmatmul.bf16.gmra.mxu3 %v4427_v54  ;;  %v14287_v26 = vadd.f32 %v3457_v0, %v14197_v45  ;;  %v4450_v0 = vrot.slane %v4448_v11, 1 }
 0x32a   : > { %4283 = vmatmul.bf16.gmra.mxu2 %v4171_v17 }
 0x32d   : > { %v3749_v29 = vpop.f32.mrf.mxu0 }
 0x32f   : > { %4119 = vmatmul.bf16.gmra.mxu1 %v4007_v41  ;;  %v4444_v41 = vshrl.u32 %v10889_v32, 16 }
 0x330   : > { %v3459_v57 = vpop.f32.mrf.mxu3 }
 0x331   : > { %v14290_v61 = vadd.f32 %v3459_v57, %v14199_v49  ;;  %v4446_v31 = vor.u32 %v4444_v41, %v4442_v47 }
 0x333   : > { %v4451_v20 = vsel %vm2795_vm15, %v4446_v31, %v4450_v0 }
 0x338   : > { %v3462_v46 = vpop.f32.mrf.mxu3 }
 0x339   : > { %4565 = vmatmul.bf16.gmra.mxu3 %v4435_v58  ;;  %v14297_v45 = vadd.f32 %v3462_v46, %v14204_v44  ;;  %v14318_v58 = vpop.f32.mrf.mxu1  ;;  %v4452_v46 = vshrl.u32 %v10890_v37, 16  ;;  %v10915_v37 = vld [vmem:[%s15889_s4 + $0x58] sm:$0xff] }
 0x33a   : > { %15939 = vst [vmem:[#allocation17_spill] sm:$0xff] %v14318_v58  ;;  %5279 = vmatpush.bf16.msrb.mxu0 %v10915_v37  ;;  %v3799_v37 = vadd.f32 %v3749_v29, %v14233_v19 }
 0x33b   : > { %v4454_v1 = vor.u32 %v4452_v46, %v4450_v0  ;;  %v4460_v0 = vshrl.u32 %v10891_v10, 16  ;;  %v10893_v46 = vld [vmem:[#allocation2 + $0x5c] sm:$0xff] }
 0x33c   : > { %v4472_v18 = vshll.u32 %v10893_v46, 16 }
 0x340   : > { %v3464_v50 = vpop.f32.mrf.mxu3 }
 0x341   : > { %v14300_v49 = vadd.f32 %v3464_v50, %v14211_v25  ;;  %v14325_v50 = vpop.f32.mrf.mxu2  ;;  %v4075_v47 = vpop.f32.mrf.mxu1 }
 0x342   : > { %15940 = vst [vmem:[#allocation18_spill] sm:$0xff] %v14325_v50 }
 0x348   : > { %v3467_v17 = vpop.f32.mrf.mxu3 }
 0x349   : > { %4570 = vmatmul.bf16.gmra.mxu3 %v4443_v59  ;;  %v14307_v44 = vadd.f32 %v3467_v17, %v14215_v63  ;;  %v4456_v63 = vshll.u32 %v10891_v10, 16  ;;  %v10892_v59 = vld [vmem:[#allocation2 + $0x54] sm:$0xff]  ;;  %v4239_v11 = vpop.f32.mrf.mxu2 }
 0x34a   : > { %v4464_v17 = vshll.u32 %v10892_v59, 16  ;;  %v4468_v51 = vshrl.u32 %v10892_v59, 16  ;;  %v14350_v59 = vld [vmem:[%s15892_s7] ss:$0 sm:$0xff] }
 0x34b   : > { %v4458_v32 = vrot.slane %v4456_v63, 1 }
 0x34c   : > { %v4466_v31 = vrot.slane %v4464_v17, 1  ;;  %v4474_v17 = vrot.slane %v4472_v18, 1 }
 0x34e   : > { %v4470_v10 = vor.u32 %v4468_v51, %v4466_v31 }
 0x350   : > { %v3469_v54 = vpop.f32.mrf.mxu3 }
 0x351   : > { %v14310_v25 = vadd.f32 %v3469_v54, %v14222_v30  ;;  %v3751_v54 = vpop.f32.mrf.mxu0  ;;  %v4241_v2 = vpop.f32.mrf.mxu2 }
 0x352   : > { %v3800_v18 = vadd.f32 %v3751_v54, %v14242_v21 }
 0x358   : > { %v3472_v57 = vpop.f32.mrf.mxu3 }
 0x359   : > { %4575 = vmatmul.bf16.gmra.mxu3 %v4451_v20  ;;  %v14314_v8 = vadd.f32 %v3472_v57, %v14228_v38  ;;  %v4459_v38 = vsel %vm2795_vm15, %v4454_v1, %v4458_v32  ;;  %v4077_v20 = vpop.f32.mrf.mxu1  ;;  %v4462_v57 = vor.u32 %v4460_v0, %v4458_v32  ;;  %v4244_v32 = vpop.f32.mrf.mxu2  ;;  %v4125_v0 = vadd.f32 %v4075_v47, %v3799_v37 }
 0x35a   : > { %v4126_v29 = vadd.f32 %v4077_v20, %v3800_v18 }
 0x35b   : > { %v4467_v63 = vsel %vm2795_vm15, %v4462_v57, %v4466_v31  ;;  %v4289_v58 = vadd.f32 %v4239_v11, %v4125_v0 }
 0x360   : > { %v14323_v30 = vpop.f32.mrf.mxu3 }
 0x361   : > { %v4246_v47 = vpop.f32.mrf.mxu2 }
 0x368   : > { %v3477_v27 = vpop.f32.mrf.mxu3 }
 0x369   : > { %4580 = vmatmul.bf16.gmra.mxu3 %v4459_v38  ;;  %v14329_v9 = vadd.f32 %v3477_v27, %v14248_v35  ;;  %v3754_v38 = vpop.f32.mrf.mxu0  ;;  %v4080_v27 = vpop.f32.mrf.mxu1 }
 0x36a   : > { %v14365_v20 = vpop.f32.mrf.mxu2 }
 0x370   : > { %v14334_v41 = vpop.f32.mrf.mxu3 }
 0x371   : > { %15941 = vst [vmem:[#allocation19_spill] sm:$0xff] %v14334_v41  ;;  %v3756_v57 = vpop.f32.mrf.mxu0  ;;  %v4082_v3 = vpop.f32.mrf.mxu1 }
 0x379   : > { %4585 = vmatmul.bf16.gmra.mxu3 %v4467_v63  ;;  %v4475_v63 = vsel %vm2795_vm15, %v4470_v10, %v4474_v17  ;;  %v4290_v10 = vadd.f32 %v4241_v2, %v4126_v29  ;;  %v14359_v37 = vpop.f32.mrf.mxu1 }
 0x37c   : > { %v3482_v35 = vpop.f32.mrf.mxu3 }
 0x37d   : > { %v14338_v1 = vadd.f32 %v3482_v35, %v14264_v4  ;;  %v10914_v4 = vld [vmem:[%s15889_s4 + $0x50] sm:$0xff]  ;;  %v14357_v35 = vpop.f32.mrf.mxu0 }
 0x37e   : > { %5280 = vmatpush.bf16.msrb.mxu0 %v10914_v4 }
 0x37f   : > { %15942 = vst [vmem:[#allocation20_spill] sm:$0xff] %v14338_v1 }
 0x381   : > { %v14370_v6 = vpop.f32.mrf.mxu1 }
 0x384   : > { %v14340_v50 = vpop.f32.mrf.mxu3 }
 0x385   : > { %15943 = vst [vmem:[#allocation21_spill] sm:$0xff] %v14340_v50  ;;  %v3801_v50 = vadd.f32 %v3754_v38, %v14251_v40  ;;  %v14368_v2 = vpop.f32.mrf.mxu0 }
 0x387   : > { %v4127_v54 = vadd.f32 %v4080_v27, %v3801_v50  ;;  %v4476_v50 = vshrl.u32 %v10893_v46, 16  ;;  %v3802_v27 = vadd.f32 %v3756_v57, %v14259_v33  ;;  %v10913_v46 = vld [vmem:[%s15889_s4 + $0x48] sm:$0xff] }
 0x388   : > { %5281 = vmatpush.bf16.msrb.mxu0 %v10913_v46  ;;  %v3803_v46 = vadd.f32 %v14357_v35, %v14267_v34 }
 0x389   : > { %4590 = vmatmul.bf16.gmra.mxu3 %v4475_v63  ;;  %v4478_v42 = vor.u32 %v4476_v50, %v4474_v17 }
 0x38c   : > { %v4551_v51 = vpop.f32.mrf.mxu3 }
 0x38d   : > { %v4601_v19 = vadd.f32 %v4551_v51, %v4289_v58  ;;  %v4291_v51 = vadd.f32 %v4244_v32, %v4127_v54 }
 0x38f   : > { %v14354_v31 = vadd.f32 %v14350_v59, %v4601_v19  ;;  %v4329_v19 = vld [vmem:[#allocation2 + $0x64] sm:$0x1] }
 0x390   : > { %v4388_v38 = vunpack.c.l.b16 %v4329_v19 }
 0x391   : > { %v4645_v11 = vand.u32 2147483647, %v14354_v31  ;;  %vm4745_vm0 = vcmp.ge.f32.partialorder %v14354_v31, 0.0 }
 0x393   : > { %v4665_v0 = vsub.f32 0.0, %v4645_v11 }
 0x394   : > { %v4553_v63 = vpop.f32.mrf.mxu3 }
 0x395   : > { %v4685_v1 = vmul.f32 1.442695, %v4665_v0  ;;  %v4602_v21 = vadd.f32 %v4553_v63, %v4290_v10  ;;  %v4399_v63 = vpack.c.b16 %v4388_v38, %v4388_v38 }
 0x397   : > { %12429 = vpow2.f32 %v4685_v1  ;;  %v14363_v58 = vadd.f32 %v14350_v59, %v4602_v21  ;;  %v4128_v21 = vadd.f32 %v4082_v3, %v3802_v27  ;;  %v4480_v41 = vshll.u32 %v4399_v63, 16  ;;  %v14386_v27 = vpop.f32.mrf.mxu0 }
 0x399   : > { %v4646_v4 = vand.u32 2147483647, %v14363_v58  ;;  %v4482_v19 = vrot.slane %v4480_v41, 1  ;;  %v4292_v3 = vadd.f32 %v4246_v47, %v4128_v21  ;;  %v14388_v41 = vpop.f32.mrf.mxu1  ;;  %vm4746_vm1 = vcmp.ge.f32.partialorder %v14363_v58, 0.0 }
 0x39b   : > { %v4666_v18 = vsub.f32 0.0, %v4646_v4  ;;  %v4483_v50 = vsel %vm2795_vm15, %v4478_v42, %v4482_v19 }
 0x39c   : > { %v4556_v29 = vpop.f32.mrf.mxu3  ;;  %4595 = vmatmul.bf16.gmra.mxu3 %v4483_v50 }
 0x39d   : > { %v12430_v11 = vpop.eup %12429  ;;  %v4687_v40 = vmul.f32 1.442695, %v4666_v18  ;;  %v4603_v1 = vadd.f32 %v4556_v29, %v4291_v51  ;;  %v14380_v51 = vpop.f32.mrf.mxu2 }
 0x39e   : > { %v4725_v10 = vmul.f32 %v12430_v11, %v12430_v11  ;;  %v4765_v0 = vmul.f32 2.0, %v12430_v11 }
 0x39f   : > { %12431 = vpow2.f32 %v4687_v40  ;;  %v14374_v32 = vadd.f32 %v14350_v59, %v4603_v1 }
 0x3a0   : > { %v4785_v54 = vadd.f32 1.0, %v4765_v0  ;;  %v4845_v4 = vmul.f32 2.0, %v4725_v10  ;;  %v4885_v5 = vadd.f32 2.0, %v4765_v0  ;;  %v4805_v38 = vadd.f32 %v4765_v0, %v4725_v10 }
 0x3a1   : > { %v4647_v18 = vand.u32 2147483647, %v14374_v32  ;;  %vm4747_vm2 = vcmp.ge.f32.partialorder %v14374_v32, 0.0 }
 0x3a2   : > { %v4865_v33 = vadd.f32 %v4845_v4, %v4785_v54  ;;  %v4905_v57 = vadd.f32 %v4885_v5, %v4725_v10  ;;  %v4825_v42 = vsel %vm4745_vm0, %v4785_v54, %v4805_v38 }
 0x3a3   : > { %v4667_v29 = vsub.f32 0.0, %v4647_v18  ;;  %v4945_v34 = vmul.f32 %v4825_v42, %v14354_v31 }
 0x3a4   : > { %v4925_v17 = vsel %vm4745_vm0, %v4865_v33, %v4905_v57  ;;  %v4558_v11 = vpop.f32.mrf.mxu3  ;;  %v4129_v57 = vadd.f32 %v14359_v37, %v3803_v46 }
 0x3a5   : > { %v12432_v40 = vpop.eup %12431  ;;  %v4689_v1 = vmul.f32 1.442695, %v4667_v29  ;;  %12433 = vrcp.f32 %v4925_v17  ;;  %v4604_v4 = vadd.f32 %v4558_v11, %v4292_v3 }
 0x3a6   : > { %v4726_v5 = vmul.f32 %v12432_v40, %v12432_v40  ;;  %v4766_v63 = vmul.f32 2.0, %v12432_v40  ;;  %v14400_v40 = vpop.f32.mrf.mxu2  ;;  %v4293_v38 = vadd.f32 %v14365_v20, %v4129_v57 }
 0x3a7   : > { %12435 = vpow2.f32 %v4689_v1  ;;  %v14393_v10 = vadd.f32 %v14350_v59, %v4604_v4 }
 0x3a8   : > { %v4786_v47 = vadd.f32 1.0, %v4766_v63  ;;  %v4846_v21 = vmul.f32 2.0, %v4726_v5  ;;  %v4886_v18 = vadd.f32 2.0, %v4766_v63  ;;  %v4806_v19 = vadd.f32 %v4766_v63, %v4726_v5  ;;  %v14404_v63 = vpop.f32.mrf.mxu0 }
 0x3a9   : > { %v4648_v29 = vand.u32 2147483647, %v14393_v10  ;;  %vm4748_vm3 = vcmp.ge.f32.partialorder %v14393_v10, 0.0 }
 0x3aa   : > { %v4866_v0 = vadd.f32 %v4846_v21, %v4786_v47  ;;  %v4906_v33 = vadd.f32 %v4886_v18, %v4726_v5  ;;  %v4826_v1 = vsel %vm4746_vm1, %v4786_v47, %v4806_v19  ;;  %v3804_v21 = vadd.f32 %v14368_v2, %v14270_v14  ;;  %v10912_v2 = vld [vmem:[%s15889_s4 + $0x40] sm:$0xff] }
 0x3ab   : > { %v12434_v3 = vpop.eup %12433  ;;  %v4668_v35 = vsub.f32 0.0, %v4648_v29  ;;  %v11294_v29 = vld [vmem:[%s13061_s25] sm:$0xff]   ;;  %v4946_v20 = vmul.f32 %v4826_v1, %v14363_v58  ;;  %5282 = vmatpush.bf16.msrb.mxu0 %v10912_v2 }
 0x3ac   : > { %v4926_v17 = vsel %vm4746_vm1, %v4866_v0, %v4906_v33  ;;  %v4985_v37 = vmul.f32 %v12434_v3, %v4945_v34  ;;  %v4561_v5 = vpop.f32.mrf.mxu3  ;;  %v14408_v0 = vpop.f32.mrf.mxu1  ;;  %v4130_v33 = vadd.f32 %v14370_v6, %v3804_v21 }
 0x3ad   : > { %v12436_v11 = vpop.eup %12435  ;;  %12437 = vrcp.f32 %v4926_v17  ;;  %v4691_v4 = vmul.f32 1.442695, %v4668_v35  ;;  %v4605_v42 = vadd.f32 %v4561_v5, %v4293_v38  ;;  %v11296_v35 = vunpack.c.h.bf16 %v11294_v29 }
 0x3ae   : > { %v4727_v50 = vmul.f32 %v12436_v11, %v12436_v11  ;;  %v4767_v54 = vmul.f32 2.0, %v12436_v11  ;;  %v5005_v19 = vmul.f32 %v4985_v37, %v13365_v15  ;;  %v11295_v11 = vunpack.c.l.bf16 %v11294_v29  ;;  %v4256_v1 = vpop.f32.mrf.mxu2 }
 0x3af   : > { %12439 = vpow2.f32 %v4691_v4  ;;  %v14415_v17 = vadd.f32 %v14350_v59, %v4605_v42  ;;  %v4294_v58 = vadd.f32 %v14380_v51, %v4130_v33  ;;  %v3805_v51 = vadd.f32 %v14386_v27, %v14276_v56 }
 0x3b0   : > { %v4787_v18 = vadd.f32 1.0, %v4767_v54  ;;  %v4847_v46 = vmul.f32 2.0, %v4727_v50  ;;  %v4887_v31 = vadd.f32 2.0, %v4767_v54  ;;  %v5065_v4 = vadd.f32 %v11295_v11, %v5005_v19 }
 0x3b1   : > { %v4649_v6 = vand.u32 2147483647, %v14415_v17  ;;  %v4807_v33 = vadd.f32 %v4767_v54, %v4727_v50  ;;  %v4131_v2 = vadd.f32 %v14388_v41, %v3805_v51  ;;  %vm4749_vm4 = vcmp.ge.f32.partialorder %v14415_v17, 0.0 }
 0x3b2   : > { %v4867_v47 = vadd.f32 %v4847_v46, %v4787_v18  ;;  %v4907_v3 = vadd.f32 %v4887_v31, %v4727_v50 }
 0x3b3   : > { %v12438_v57 = vpop.eup %12437  ;;  %v4669_v5 = vsub.f32 0.0, %v4649_v6  ;;  %v4827_v56 = vsel %vm4747_vm2, %v4787_v18, %v4807_v33  ;;  %v4295_v41 = vadd.f32 %v14400_v40, %v4131_v2 }
 0x3b4   : > { %v4986_v14 = vmul.f32 %v12438_v57, %v4946_v20  ;;  %v4927_v38 = vsel %vm4747_vm2, %v4867_v47, %v4907_v3  ;;  %v4563_v21 = vpop.f32.mrf.mxu3  ;;  %v3769_v57 = vpop.f32.mrf.mxu0 }
 0x3b5   : > { %v12440_v37 = vpop.eup %12439  ;;  %v4606_v20 = vadd.f32 %v4563_v21, %v4294_v58  ;;  %12441 = vrcp.f32 %v4927_v38  ;;  %v4693_v29 = vmul.f32 1.442695, %v4669_v5  ;;  %v14429_v19 = vpop.f32.mrf.mxu1  ;;  %v3806_v21 = vadd.f32 %v14404_v63, %v14282_v16  ;;  %v11810_v16 = vld [vmem:[%s13061_s25 + $0x8] sm:$0xff]  }
 0x3b6   : > { %v5006_v34 = vmul.f32 %v4986_v14, %v13392_v55  ;;  %v4728_v31 = vmul.f32 %v12440_v37, %v12440_v37  ;;  %v4768_v42 = vmul.f32 2.0, %v12440_v37  ;;  %v4947_v37 = vmul.f32 %v4827_v56, %v14374_v32  ;;  %v4259_v18 = vpop.f32.mrf.mxu2 }
 0x3b7   : > { %12443 = vpow2.f32 %v4693_v29  ;;  %v14432_v6 = vadd.f32 %v14350_v59, %v4606_v20  ;;  %v4132_v40 = vadd.f32 %v14408_v0, %v3806_v21 }
 0x3b8   : > { %v5066_v46 = vadd.f32 %v11296_v35, %v5006_v34  ;;  %v4788_v47 = vadd.f32 1.0, %v4768_v42  ;;  %v4848_v3 = vmul.f32 2.0, %v4728_v31  ;;  %v4888_v11 = vadd.f32 2.0, %v4768_v42 }
 0x3b9   : > { %v4650_v50 = vand.u32 2147483647, %v14432_v6  ;;  %v4808_v54 = vadd.f32 %v4768_v42, %v4728_v31  ;;  %vm4750_vm5 = vcmp.ge.f32.partialorder %v14432_v6, 0.0 }
 0x3ba   : > { %v11336_v14 = vpack.c.bf16 %v5066_v46, %v5065_v4  ;;  %v4868_v58 = vadd.f32 %v4848_v3, %v4788_v47  ;;  %v4908_v27 = vadd.f32 %v4888_v11, %v4728_v31 }
 0x3bb   : > { %v12442_v34 = vpop.eup %12441  ;;  %v4670_v38 = vsub.f32 0.0, %v4650_v50  ;;  %v4828_v33 = vsel %vm4748_vm3, %v4788_v47, %v4808_v54  ;;  %v4296_v50 = vadd.f32 %v4256_v1, %v4132_v40 }
 0x3bc   : > { %11337 = vst [vmem:[%s13061_s25] sm:$0xff] %v11336_v14   ;;  %v4928_v35 = vsel %vm4748_vm3, %v4868_v58, %v4908_v27  ;;  %v4566_v4 = vpop.f32.mrf.mxu3  ;;  %v4987_v51 = vmul.f32 %v12442_v34, %v4947_v37  ;;  %v3771_v32 = vpop.f32.mrf.mxu0  ;;  %v4948_v63 = vmul.f32 %v4828_v33, %v14393_v10  ;;  %v3807_v10 = vadd.f32 %v3769_v57, %v14287_v26 }
 0x3bd   : > { %12445 = vrcp.f32 %v4928_v35  ;;  %v12444_v5 = vpop.eup %12443  ;;  %v4695_v46 = vmul.f32 1.442695, %v4670_v38  ;;  %v4607_v20 = vadd.f32 %v4566_v4, %v4295_v41  ;;  %v14447_v11 = vpop.f32.mrf.mxu1  ;;  %v11299_v41 = vunpack.c.l.bf16 %v11810_v16 }
 0x3be   : > { %v4729_v31 = vmul.f32 %v12444_v5, %v12444_v5  ;;  %v4769_v42 = vmul.f32 2.0, %v12444_v5  ;;  %v5007_v56 = vmul.f32 %v4987_v51, %v13419_v28  ;;  %v11300_v35 = vunpack.c.h.bf16 %v11810_v16  ;;  %v4261_v33 = vpop.f32.mrf.mxu2 }
 0x3bf   : > { %12447 = vpow2.f32 %v4695_v46  ;;  %v14445_v29 = vadd.f32 %v14350_v59, %v4607_v20  ;;  %v4133_v16 = vadd.f32 %v14429_v19, %v3807_v10 }
 0x3c0   : > { %v4789_v14 = vadd.f32 1.0, %v4769_v42  ;;  %v4849_v3 = vmul.f32 2.0, %v4729_v31  ;;  %v4889_v2 = vadd.f32 2.0, %v4769_v42  ;;  %v5067_v20 = vadd.f32 %v11299_v41, %v5007_v56 }
 0x3c1   : > { %v4651_v58 = vand.u32 2147483647, %v14445_v29  ;;  %vm4751_vm6 = vcmp.ge.f32.partialorder %v14445_v29, 0.0 }
 0x3c2   : > { %v4869_v27 = vadd.f32 %v4849_v3, %v4789_v14  ;;  %v4909_v0 = vadd.f32 %v4889_v2, %v4729_v31  ;;  %v4809_v3 = vadd.f32 %v4769_v42, %v4729_v31 }
 0x3c3   : > { %v12446_v47 = vpop.eup %12445  ;;  %v4671_v34 = vsub.f32 0.0, %v4651_v58 }
 0x3c4   : > { %v4988_v54 = vmul.f32 %v12446_v47, %v4948_v63  ;;  %v4929_v38 = vsel %vm4749_vm4, %v4869_v27, %v4909_v0  ;;  %v4568_v37 = vpop.f32.mrf.mxu3  ;;  %v3774_v56 = vpop.f32.mrf.mxu0  ;;  %v4829_v31 = vsel %vm4749_vm4, %v4789_v14, %v4809_v3 }
 0x3c5   : > { %v12448_v4 = vpop.eup %12447  ;;  %v4697_v21 = vmul.f32 1.442695, %v4671_v34  ;;  %v4608_v46 = vadd.f32 %v4568_v37, %v4296_v50  ;;  %12449 = vrcp.f32 %v4929_v38  ;;  %v4100_v50 = vpop.f32.mrf.mxu1  ;;  %v4297_v34 = vadd.f32 %v4259_v18, %v4133_v16  ;;  %v10902_v37 = vld [vmem:[%s13061_s25] sm:$0xff]  ;;  %v11811_v16 = vld [vmem:[%s13061_s25 + $0x10] sm:$0xff]  }
 0x3c6   : > { %v5008_v5 = vmul.f32 %v4988_v54, %v13470_v24  ;;  %v4730_v1 = vmul.f32 %v12448_v4, %v12448_v4  ;;  %v4770_v51 = vmul.f32 2.0, %v12448_v4  ;;  %v4949_v10 = vmul.f32 %v4829_v31, %v14415_v17  ;;  %5283 = vmatmul.bf16.vlgmr.msrb.gmra.mxu0 %v10902_v37  ;;  %v4264_v3 = vpop.f32.mrf.mxu2 }
 0x3c7   : > { %12451 = vpow2.f32 %v4697_v21  ;;  %v14459_v2 = vadd.f32 %v14350_v59, %v4608_v46  ;;  %v3808_v46 = vadd.f32 %v3771_v32, %v14290_v61  ;;  %v10935_v61 = vld [vmem:[%s15891_s6 + $0x2b8] sm:$0xff] }
 0x3c8   : > { %v5068_v40 = vadd.f32 %v11300_v35, %v5008_v5  ;;  %v4790_v63 = vadd.f32 1.0, %v4770_v51  ;;  %v4850_v26 = vmul.f32 2.0, %v4730_v1  ;;  %v4890_v57 = vadd.f32 2.0, %v4770_v51  ;;  %5917 = vmatpush.bf16.msrb.mxu1 %v10935_v61 }
 0x3c9   : > { %v4652_v47 = vand.u32 2147483647, %v14459_v2  ;;  %v4810_v42 = vadd.f32 %v4770_v51, %v4730_v1  ;;  %vm4752_vm7 = vcmp.ge.f32.partialorder %v14459_v2, 0.0 }
 0x3ca   : > { %v11341_v58 = vpack.c.bf16 %v5068_v40, %v5067_v20  ;;  %v4870_v27 = vadd.f32 %v4850_v26, %v4790_v63  ;;  %v4910_v0 = vadd.f32 %v4890_v57, %v4730_v1  ;;  %v4134_v40 = vadd.f32 %v14447_v11, %v3808_v46 }
 0x3cb   : > { %v4672_v54 = vsub.f32 0.0, %v4652_v47  ;;  %v12450_v19 = vpop.eup %12449  ;;  %v4830_v20 = vsel %vm4750_vm5, %v4790_v63, %v4810_v42 }
 0x3cc   : > { %11819 = vst [vmem:[%s13061_s25 + $0x8] sm:$0xff] %v11341_v58   ;;  %v4930_v41 = vsel %vm4750_vm5, %v4870_v27, %v4910_v0  ;;  %v4571_v4 = vpop.f32.mrf.mxu3  ;;  %v4989_v18 = vmul.f32 %v12450_v19, %v4949_v10  ;;  %v4950_v57 = vmul.f32 %v4830_v20, %v14432_v6  ;;  %v3776_v27 = vpop.f32.mrf.mxu0  ;;  %v11303_v0 = vunpack.c.l.bf16 %v11811_v16 }
 0x3cd   : > { %v12452_v35 = vpop.eup %12451  ;;  %12453 = vrcp.f32 %v4930_v41  ;;  %v4699_v38 = vmul.f32 1.442695, %v4672_v54  ;;  %v4609_v14 = vadd.f32 %v4571_v4, %v4297_v34  ;;  %v4298_v54 = vadd.f32 %v4261_v33, %v4134_v40  ;;  %v4102_v6 = vpop.f32.mrf.mxu1 }
 0x3ce   : > { %v4731_v5 = vmul.f32 %v12452_v35, %v12452_v35  ;;  %v4771_v21 = vmul.f32 2.0, %v12452_v35  ;;  %v5009_v11 = vmul.f32 %v4989_v18, %v13382_v43  ;;  %v11304_v19 = vunpack.c.h.bf16 %v11811_v16 }
 0x3cf   : > { %12455 = vpow2.f32 %v4699_v38  ;;  %v14477_v17 = vadd.f32 %v14350_v59, %v4609_v14  ;;  %v3809_v38 = vadd.f32 %v3774_v56, %v14297_v45 }
 0x3d0   : > { %v4791_v1 = vadd.f32 1.0, %v4771_v21  ;;  %v4851_v51 = vmul.f32 2.0, %v4731_v5  ;;  %v4891_v26 = vadd.f32 2.0, %v4771_v21  ;;  %v4811_v14 = vadd.f32 %v4771_v21, %v4731_v5 }
 0x3d1   : > { %v4653_v47 = vand.u32 2147483647, %v14477_v17  ;;  %v5069_v18 = vadd.f32 %v11303_v0, %v5009_v11  ;;  %v4135_v16 = vadd.f32 %v4100_v50, %v3809_v38  ;;  %vm4753_vm8 = vcmp.ge.f32.partialorder %v14477_v17, 0.0 }
 0x3d2   : > { %v4871_v58 = vadd.f32 %v4851_v51, %v4791_v1  ;;  %v4911_v63 = vadd.f32 %v4891_v26, %v4731_v5  ;;  %v4831_v5 = vsel %vm4751_vm6, %v4791_v1, %v4811_v14 }
 0x3d3   : > { %v12454_v32 = vpop.eup %12453  ;;  %v4673_v41 = vsub.f32 0.0, %v4653_v47 }
 0x3d4   : > { %v4990_v31 = vmul.f32 %v12454_v32, %v4950_v57  ;;  %v4931_v34 = vsel %vm4751_vm6, %v4871_v58, %v4911_v63  ;;  %v4573_v35 = vpop.f32.mrf.mxu3  ;;  %v4266_v58 = vpop.f32.mrf.mxu2  ;;  %v4299_v63 = vadd.f32 %v4264_v3, %v4135_v16 }
 0x3d5   : > { %v12456_v42 = vpop.eup %12455  ;;  %12457 = vrcp.f32 %v4931_v34  ;;  %v4701_v46 = vmul.f32 1.442695, %v4673_v41  ;;  %v4610_v20 = vadd.f32 %v4573_v35, %v4298_v54  ;;  %v3779_v0 = vpop.f32.mrf.mxu0 }
 0x3d6   : > { %v5010_v37 = vmul.f32 %v4990_v31, %v13424_v36  ;;  %v4732_v4 = vmul.f32 %v12456_v42, %v12456_v42  ;;  %v4772_v10 = vmul.f32 2.0, %v12456_v42  ;;  %v4951_v31 = vmul.f32 %v4831_v5, %v14445_v29  ;;  %v10903_v42 = vld [vmem:[%s13061_s25 + $0x8] sm:$0xff]  ;;  %v4105_v34 = vpop.f32.mrf.mxu1 }
 0x3d7   : > { %12459 = vpow2.f32 %v4701_v46  ;;  %v14491_v57 = vadd.f32 %v14350_v59, %v4610_v20  ;;  %5288 = vmatmul.bf16.gmra.mxu0 %v10903_v42 }
 0x3d8   : > { %v5070_v33 = vadd.f32 %v11304_v19, %v5010_v37  ;;  %v4792_v51 = vadd.f32 1.0, %v4772_v10  ;;  %v4852_v40 = vmul.f32 2.0, %v4732_v4  ;;  %v4892_v26 = vadd.f32 2.0, %v4772_v10 }
 0x3d9   : > { %v4654_v61 = vand.u32 2147483647, %v14491_v57  ;;  %v4812_v32 = vadd.f32 %v4772_v10, %v4732_v4  ;;  %v3810_v19 = vadd.f32 %v3776_v27, %v14300_v49  ;;  %vm4754_vm9 = vcmp.ge.f32.partialorder %v14491_v57, 0.0 }
 0x3da   : > { %v11346_v45 = vpack.c.bf16 %v5070_v33, %v5069_v18  ;;  %v4872_v56 = vadd.f32 %v4852_v40, %v4792_v51  ;;  %v4912_v21 = vadd.f32 %v4892_v26, %v4732_v4  ;;  %v11812_v18 = vld [vmem:[%s13061_s25 + $0x18] sm:$0xff]  }
 0x3db   : > { %v12458_v50 = vpop.eup %12457  ;;  %v4674_v11 = vsub.f32 0.0, %v4654_v61  ;;  %v4832_v3 = vsel %vm4752_vm7, %v4792_v51, %v4812_v32  ;;  %v4136_v10 = vadd.f32 %v4102_v6, %v3810_v19  ;;  %v11307_v5 = vunpack.c.l.bf16 %v11812_v18 }
 0x3dc   : > { %11820 = vst [vmem:[%s13061_s25 + $0x10] sm:$0xff] %v11346_v45   ;;  %v4932_v47 = vsel %vm4752_vm7, %v4872_v56, %v4912_v21  ;;  %v4576_v54 = vpop.f32.mrf.mxu3  ;;  %v4991_v38 = vmul.f32 %v12458_v50, %v4951_v31  ;;  %v4952_v49 = vmul.f32 %v4832_v3, %v14459_v2  ;;  %v4269_v45 = vpop.f32.mrf.mxu2  ;;  %v11308_v21 = vunpack.c.h.bf16 %v11812_v18 }
 0x3dd   : > { %12461 = vrcp.f32 %v4932_v47  ;;  %v12460_v1 = vpop.eup %12459  ;;  %v4703_v41 = vmul.f32 1.442695, %v4674_v11  ;;  %v4611_v35 = vadd.f32 %v4576_v54, %v4299_v63  ;;  %v4300_v26 = vadd.f32 %v4266_v58, %v4136_v10  ;;  %v3781_v31 = vpop.f32.mrf.mxu0 }
 0x3de   : > { %v4733_v37 = vmul.f32 %v12460_v1, %v12460_v1  ;;  %v4773_v4 = vmul.f32 2.0, %v12460_v1  ;;  %v5011_v40 = vmul.f32 %v4991_v38, %v13431_v48  ;;  %v3811_v50 = vadd.f32 %v3779_v0, %v14307_v44  ;;  %v4107_v1 = vpop.f32.mrf.mxu1 }
 0x3df   : > { %12463 = vpow2.f32 %v4703_v41  ;;  %v14506_v29 = vadd.f32 %v14350_v59, %v4611_v35 }
 0x3e0   : > { %v4793_v14 = vadd.f32 1.0, %v4773_v4  ;;  %v4853_v46 = vmul.f32 2.0, %v4733_v37  ;;  %v4893_v20 = vadd.f32 2.0, %v4773_v4  ;;  %v5071_v58 = vadd.f32 %v11307_v5, %v5011_v40 }
 0x3e1   : > { %v4655_v27 = vand.u32 2147483647, %v14506_v29  ;;  %v4813_v41 = vadd.f32 %v4773_v4, %v4733_v37  ;;  %v4137_v38 = vadd.f32 %v4105_v34, %v3811_v50  ;;  %vm4755_vm11 = vcmp.ge.f32.partialorder %v14506_v29, 0.0 }
 0x3e2   : > { %v4873_v51 = vadd.f32 %v4853_v46, %v4793_v14  ;;  %v4913_v16 = vadd.f32 %v4893_v20, %v4733_v37 }
 0x3e3   : > { %v12462_v33 = vpop.eup %12461  ;;  %v4675_v56 = vsub.f32 0.0, %v4655_v27 }
 0x3e4   : > { %v4992_v6 = vmul.f32 %v12462_v33, %v4952_v49  ;;  %v4933_v61 = vsel %vm4753_vm8, %v4873_v51, %v4913_v16  ;;  %v4578_v32 = vpop.f32.mrf.mxu3  ;;  %v4833_v49 = vsel %vm4753_vm8, %v4793_v14, %v4813_v41  ;;  %v4301_v33 = vadd.f32 %v4269_v45, %v4137_v38  ;;  %v4271_v51 = vpop.f32.mrf.mxu2 }
 0x3e5   : > { %v12464_v2 = vpop.eup %12463  ;;  %v4705_v47 = vmul.f32 1.442695, %v4675_v56  ;;  %v4612_v11 = vadd.f32 %v4578_v32, %v4300_v26  ;;  %12465 = vrcp.f32 %v4933_v61  ;;  %v10904_v26 = vld [vmem:[%s13061_s25 + $0x10] sm:$0xff]  ;;  %v4953_v14 = vmul.f32 %v4833_v49, %v14477_v17 }
 0x3e6   : > { %v5012_v63 = vmul.f32 %v4992_v6, %v13495_v23  ;;  %v4734_v42 = vmul.f32 %v12464_v2, %v12464_v2  ;;  %v4774_v54 = vmul.f32 2.0, %v12464_v2  ;;  %v10934_v6 = vld [vmem:[%s15891_s6 + $0x2b0] sm:$0xff]  ;;  %v3812_v45 = vadd.f32 %v3781_v31, %v14310_v25  ;;  %v3784_v2 = vpop.f32.mrf.mxu0 }
 0x3e7   : > { %12467 = vpow2.f32 %v4705_v47  ;;  %v14518_v35 = vadd.f32 %v14350_v59, %v4612_v11  ;;  %5293 = vmatmul.bf16.gmra.mxu0 %v10904_v26  ;;  %5918 = vmatpush.bf16.msrb.mxu1 %v10934_v6 }
 0x3e8   : > { %v5072_v19 = vadd.f32 %v11308_v21, %v5012_v63  ;;  %v4794_v3 = vadd.f32 1.0, %v4774_v54  ;;  %v4854_v44 = vmul.f32 2.0, %v4734_v42  ;;  %v4894_v0 = vadd.f32 2.0, %v4774_v54 }
 0x3e9   : > { %v4656_v46 = vand.u32 2147483647, %v14518_v35  ;;  %v4814_v37 = vadd.f32 %v4774_v54, %v4734_v42  ;;  %v4138_v11 = vadd.f32 %v4107_v1, %v3812_v45  ;;  %vm4756_vm12 = vcmp.ge.f32.partialorder %v14518_v35, 0.0 }
 0x3ea   : > { %v11351_v10 = vpack.c.bf16 %v5072_v19, %v5071_v58  ;;  %v4874_v20 = vadd.f32 %v4854_v44, %v4794_v3  ;;  %v4914_v18 = vadd.f32 %v4894_v0, %v4734_v42  ;;  %v4110_v58 = vpop.f32.mrf.mxu1  ;;  %v11813_v42 = vld [vmem:[%s13061_s25 + $0x20] sm:$0xff]  }
 0x3eb   : > { %v4676_v4 = vsub.f32 0.0, %v4656_v46  ;;  %v12466_v27 = vpop.eup %12465  ;;  %v4834_v32 = vsel %vm4754_vm9, %v4794_v3, %v4814_v37  ;;  %v11311_v44 = vunpack.c.l.bf16 %v11813_v42  ;;  %v11312_v46 = vunpack.c.h.bf16 %v11813_v42 }
 0x3ec   : > { %11821 = vst [vmem:[%s13061_s25 + $0x18] sm:$0xff] %v11351_v10   ;;  %v4934_v34 = vsel %vm4754_vm9, %v4874_v20, %v4914_v18  ;;  %v4581_v56 = vpop.f32.mrf.mxu3  ;;  %v4993_v50 = vmul.f32 %v12466_v27, %v4953_v14  ;;  %v4954_v19 = vmul.f32 %v4834_v32, %v14491_v57  ;;  %v4302_v10 = vadd.f32 %v4271_v51, %v4138_v11 }
 0x3ed   : > { %v12468_v40 = vpop.eup %12467  ;;  %12469 = vrcp.f32 %v4934_v34  ;;  %v4707_v16 = vmul.f32 1.442695, %v4676_v4  ;;  %v4613_v61 = vadd.f32 %v4581_v56, %v4301_v33  ;;  %v3813_v57 = vadd.f32 %v3784_v2, %v14314_v8  ;;  %v4274_v33 = vpop.f32.mrf.mxu2 }
 0x3ee   : > { %v4735_v5 = vmul.f32 %v12468_v40, %v12468_v40  ;;  %v4775_v21 = vmul.f32 2.0, %v12468_v40  ;;  %v5013_v3 = vmul.f32 %v4993_v50, %v13506_v39  ;;  %v3786_v8 = vpop.f32.mrf.mxu0 }
 0x3ef   : > { %12471 = vpow2.f32 %v4707_v16  ;;  %v14537_v17 = vadd.f32 %v14350_v59, %v4613_v61  ;;  %v4139_v14 = vadd.f32 %v4110_v58, %v3813_v57 }
 0x3f0   : > { %v4795_v63 = vadd.f32 1.0, %v4775_v21  ;;  %v4855_v47 = vmul.f32 2.0, %v4735_v5  ;;  %v4895_v54 = vadd.f32 2.0, %v4775_v21  ;;  %v4815_v34 = vadd.f32 %v4775_v21, %v4735_v5 }
 0x3f1   : > { %v4657_v38 = vand.u32 2147483647, %v14537_v17  ;;  %v5073_v26 = vadd.f32 %v11311_v44, %v5013_v3  ;;  %vm4757_vm13 = vcmp.ge.f32.partialorder %v14537_v17, 0.0 }
 0x3f2   : > { %v4875_v25 = vadd.f32 %v4855_v47, %v4795_v63  ;;  %v4915_v41 = vadd.f32 %v4895_v54, %v4735_v5  ;;  %v3502_v5 = vadd.f32 %v14323_v30, %v14239_v22  ;;  %v4112_v21 = vpop.f32.mrf.mxu1  ;;  %v4835_v50 = vsel %vm4755_vm11, %v4795_v63, %v4815_v34  ;;  %v10933_v30 = vld [vmem:[%s15891_s6 + $0x2a8] sm:$0xff] }
 0x3f3   : > { %v12470_v31 = vpop.eup %12469  ;;  %v4677_v18 = vsub.f32 0.0, %v4657_v38  ;;  %v4303_v54 = vadd.f32 %v4274_v33, %v4139_v14  ;;  %v10905_v22 = vld [vmem:[%s13061_s25 + $0x18] sm:$0xff]  ;;  %v2697_v38 = vadd.f32 %v14230_v60, %v14209_v12  ;;  %5919 = vmatpush.bf16.msrb.mxu1 %v10933_v30 }
 0x3f4   : > { %v4994_v0 = vmul.f32 %v12470_v31, %v4954_v19  ;;  %v4935_v20 = vsel %vm4755_vm11, %v4875_v25, %v4915_v41  ;;  %v4583_v49 = vpop.f32.mrf.mxu3  ;;  %v4955_v31 = vmul.f32 %v4835_v50, %v14506_v29  ;;  %v3814_v3 = vadd.f32 %v3786_v8, %v3502_v5 }
 0x3f5   : > { %v12472_v1 = vpop.eup %12471  ;;  %12473 = vrcp.f32 %v4935_v20  ;;  %v4709_v40 = vmul.f32 1.442695, %v4677_v18  ;;  %v4614_v16 = vadd.f32 %v4583_v49, %v4302_v10  ;;  %v4276_v18 = vpop.f32.mrf.mxu2  ;;  %v3014_v12 = vadd.f32 %v14253_v13, %v2697_v38 }
 0x3f6   : > { %v5014_v37 = vmul.f32 %v4994_v0, %v13601_v62  ;;  %v4736_v4 = vmul.f32 %v12472_v1, %v12472_v1  ;;  %v4776_v27 = vmul.f32 2.0, %v12472_v1  ;;  %v4140_v20 = vadd.f32 %v4112_v21, %v3814_v3  ;;  %v15944_v3 = vld [vmem:[#allocation19_spill] sm:$0xff] }
 0x3f7   : > { %12475 = vpow2.f32 %v4709_v40  ;;  %v14548_v45 = vadd.f32 %v14350_v59, %v4614_v16  ;;  %5298 = vmatmul.bf16.gmra.mxu0 %v10905_v22  ;;  %v3789_v40 = vpop.f32.mrf.mxu0 }
 0x3f8   : > { %v5074_v51 = vadd.f32 %v11312_v46, %v5014_v37  ;;  %v4796_v6 = vadd.f32 1.0, %v4776_v27  ;;  %v4856_v56 = vmul.f32 2.0, %v4736_v4  ;;  %v4896_v61 = vadd.f32 2.0, %v4776_v27 }
 0x3f9   : > { %v4658_v11 = vand.u32 2147483647, %v14548_v45  ;;  %v4816_v58 = vadd.f32 %v4776_v27, %v4736_v4  ;;  %v3815_v21 = vadd.f32 %v3789_v40, %v14329_v9  ;;  %vm4758_vm14 = vcmp.ge.f32.partialorder %v14548_v45, 0.0 }
 0x3fa   : > { %v11356_v32 = vpack.c.bf16 %v5074_v51, %v5073_v26  ;;  %v4876_v2 = vadd.f32 %v4856_v56, %v4796_v6  ;;  %v4916_v47 = vadd.f32 %v4896_v61, %v4736_v4  ;;  %v11814_v4 = vld [vmem:[%s13061_s25 + $0x28] sm:$0xff]   ;;  %v4115_v56 = vpop.f32.mrf.mxu1  ;;  %v3340_v61 = vadd.f32 %v14255_v53, %v3014_v12 }
 0x3fb   : > { %v12474_v42 = vpop.eup %12473  ;;  %v4678_v25 = vsub.f32 0.0, %v4658_v11  ;;  %v4836_v10 = vsel %vm4756_vm12, %v4796_v6, %v4816_v58  ;;  %v4304_v6 = vadd.f32 %v4276_v18, %v4140_v20  ;;  %v11315_v8 = vunpack.c.l.bf16 %v11814_v4 }
 0x3fc   : > { %11822 = vst [vmem:[%s13061_s25 + $0x20] sm:$0xff] %v11356_v32   ;;  %v4936_v19 = vsel %vm4756_vm12, %v4876_v2, %v4916_v47  ;;  %v4586_v63 = vpop.f32.mrf.mxu3  ;;  %v4995_v1 = vmul.f32 %v12474_v42, %v4955_v31  ;;  %v4956_v27 = vmul.f32 %v4836_v10, %v14518_v35  ;;  %v11316_v32 = vunpack.c.h.bf16 %v11814_v4 }
 0x3fd   : > { %12477 = vrcp.f32 %v4936_v19  ;;  %v12476_v41 = vpop.eup %12475  ;;  %v4711_v44 = vmul.f32 1.442695, %v4678_v25  ;;  %v4615_v0 = vadd.f32 %v4586_v63, %v4303_v54  ;;  %v4141_v31 = vadd.f32 %v4115_v56, %v3815_v21  ;;  %v4279_v9 = vpop.f32.mrf.mxu2  ;;  %v11815_v56 = vld [vmem:[%s13061_s25 + $0x30] sm:$0xff]  }
 0x3fe   : > { %v4737_v29 = vmul.f32 %v12476_v41, %v12476_v41  ;;  %v4777_v46 = vmul.f32 2.0, %v12476_v41  ;;  %v5015_v16 = vmul.f32 %v4995_v1, %v13603_v7 }
 0x3ff   : > { %12479 = vpow2.f32 %v4711_v44  ;;  %v14569_v49 = vadd.f32 %v14350_v59, %v4615_v0  ;;  %v3504_v44 = vadd.f32 %v15944_v3, %v3340_v61  ;;  %v3791_v20 = vpop.f32.mrf.mxu0  ;;  %v4305_v18 = vadd.f32 %v4279_v9, %v4141_v31  ;;  %v15948_v3 = vld [vmem:[#allocation17_spill] sm:$0xff] }
 0x400   : > { %v4797_v60 = vadd.f32 1.0, %v4777_v46  ;;  %v4857_v57 = vmul.f32 2.0, %v4737_v29  ;;  %v4897_v37 = vadd.f32 2.0, %v4777_v46  ;;  %v5075_v58 = vadd.f32 %v11315_v8, %v5015_v16 }
 0x401   : > { %v4659_v33 = vand.u32 2147483647, %v14569_v49  ;;  %v4817_v53 = vadd.f32 %v4777_v46, %v4737_v29  ;;  %vm4759_vm0 = vcmp.ge.f32.partialorder %v14569_v49, 0.0 }
 0x402   : > { %v4877_v26 = vadd.f32 %v4857_v57, %v4797_v60  ;;  %v4917_v51 = vadd.f32 %v4897_v37, %v4737_v29  ;;  %v4117_v37 = vpop.f32.mrf.mxu1 }
 0x403   : > { %v12478_v34 = vpop.eup %12477  ;;  %v4679_v13 = vsub.f32 0.0, %v4659_v33  ;;  %v4837_v10 = vsel %vm4757_vm13, %v4797_v60, %v4817_v53  ;;  %v15947_v53 = vld [vmem:[#allocation6_spill] sm:$0xff] }
 0x404   : > { %v4996_v14 = vmul.f32 %v12478_v34, %v4956_v27  ;;  %v4937_v35 = vsel %vm4757_vm13, %v4877_v26, %v4917_v51  ;;  %v4588_v2 = vpop.f32.mrf.mxu3  ;;  %v10906_v27 = vld [vmem:[%s13061_s25 + $0x20] sm:$0xff]  ;;  %v4957_v34 = vmul.f32 %v4837_v10, %v14537_v17  ;;  %v3816_v26 = vadd.f32 %v3791_v20, %v3504_v44 }
 0x405   : > { %v12480_v5 = vpop.eup %12479  ;;  %v4713_v47 = vmul.f32 1.442695, %v4679_v13  ;;  %v4616_v11 = vadd.f32 %v4588_v2, %v4304_v6  ;;  %12481 = vrcp.f32 %v4937_v35 }
 0x406   : > { %v5016_v50 = vmul.f32 %v4996_v14, %v13663_v52  ;;  %v4738_v42 = vmul.f32 %v12480_v5, %v12480_v5  ;;  %v4778_v54 = vmul.f32 2.0, %v12480_v5  ;;  %v4142_v61 = vadd.f32 %v4117_v37, %v3816_v26  ;;  %v10932_v5 = vld [vmem:[%s15891_s6 + $0x2a0] sm:$0xff] }
 0x407   : > { %12483 = vpow2.f32 %v4713_v47  ;;  %v14583_v25 = vadd.f32 %v14350_v59, %v4616_v11  ;;  %5303 = vmatmul.bf16.gmra.mxu0 %v10906_v27  ;;  %v11319_v47 = vunpack.c.l.bf16 %v11815_v56  ;;  %5920 = vmatpush.bf16.msrb.mxu1 %v10932_v5 }
 0x408   : > { %v5076_v19 = vadd.f32 %v11316_v32, %v5016_v50  ;;  %v4798_v22 = vadd.f32 1.0, %v4778_v54  ;;  %v4858_v30 = vmul.f32 2.0, %v4738_v42  ;;  %v4898_v63 = vadd.f32 2.0, %v4778_v54  ;;  %v14601_v32 = vld [vmem:[%s15892_s7] ss:$0 sm:$0xff]  ;;  %v4281_v50 = vpop.f32.mrf.mxu2 }
 0x409   : > { %v4660_v38 = vand.u32 2147483647, %v14583_v25  ;;  %v4818_v59 = vadd.f32 %v4778_v54, %v4738_v42  ;;  %v15946_v54 = vld [vmem:[#allocation16_spill] sm:$0xff]  ;;  %vm4760_vm1 = vcmp.ge.f32.partialorder %v14583_v25, 0.0 }
 0x40a   : > { %v11361_v41 = vpack.c.bf16 %v5076_v19, %v5075_v58  ;;  %v4878_v0 = vadd.f32 %v4858_v30, %v4798_v22  ;;  %v4918_v1 = vadd.f32 %v4898_v63, %v4738_v42  ;;  %v15945_v42 = vld [vmem:[#allocation15_spill] sm:$0xff]  ;;  %v4306_v30 = vadd.f32 %v4281_v50, %v4142_v61 }
 0x40b   : > { %v4680_v29 = vsub.f32 0.0, %v4660_v38  ;;  %v12482_v46 = vpop.eup %12481  ;;  %v4838_v51 = vsel %vm4758_vm14, %v4798_v22, %v4818_v59  ;;  %v2702_v19 = vadd.f32 %v15946_v54, %v15945_v42  ;;  %v11320_v63 = vunpack.c.h.bf16 %v11815_v56 }
 0x40c   : > { %11823 = vst [vmem:[%s13061_s25 + $0x28] sm:$0xff] %v11361_v41   ;;  %v4938_v12 = vsel %vm4758_vm14, %v4878_v0, %v4918_v1  ;;  %v4591_v33 = vpop.f32.mrf.mxu3  ;;  %v4997_v6 = vmul.f32 %v12482_v46, %v4957_v34  ;;  %v4958_v35 = vmul.f32 %v4838_v51, %v14548_v45  ;;  %v3794_v0 = vpop.f32.mrf.mxu0  ;;  %v15949_v1 = vld [vmem:[#allocation8_spill] sm:$0xff] }
 0x40d   : > { %v12484_v57 = vpop.eup %12483  ;;  %12485 = vrcp.f32 %v4938_v12  ;;  %v4715_v4 = vmul.f32 1.442695, %v4680_v29  ;;  %v4617_v16 = vadd.f32 %v4591_v33, %v4305_v18  ;;  %v3016_v44 = vadd.f32 %v15948_v3, %v2702_v19  ;;  %v4120_v46 = vpop.f32.mrf.mxu1  ;;  %v15950_v51 = vld [vmem:[#allocation20_spill] sm:$0xff] }
 0x40e   : > { %v4739_v60 = vmul.f32 %v12484_v57, %v12484_v57  ;;  %v4779_v40 = vmul.f32 2.0, %v12484_v57  ;;  %v5017_v31 = vmul.f32 %v4997_v6, %v15947_v53  ;;  %v3817_v6 = vadd.f32 %v3794_v0, %v15950_v51 }
 0x40f   : > { %12487 = vpow2.f32 %v4715_v4  ;;  %v14604_v17 = vadd.f32 %v14601_v32, %v4617_v16 }
 0x410   : > { %v4799_v14 = vadd.f32 1.0, %v4779_v40  ;;  %v4859_v13 = vmul.f32 2.0, %v4739_v60  ;;  %v4899_v8 = vadd.f32 2.0, %v4779_v40  ;;  %v4819_v20 = vadd.f32 %v4779_v40, %v4739_v60  ;;  %v4284_v5 = vpop.f32.mrf.mxu2 }
 0x411   : > { %v4661_v58 = vand.u32 2147483647, %v14604_v17  ;;  %v5077_v57 = vadd.f32 %v11319_v47, %v5017_v31  ;;  %v15952_v47 = vld [vmem:[#allocation21_spill] sm:$0xff]  ;;  %vm4761_vm2 = vcmp.ge.f32.partialorder %v14604_v17, 0.0 }
 0x412   : > { %v4879_v2 = vadd.f32 %v4859_v13, %v4799_v14  ;;  %v4919_v11 = vadd.f32 %v4899_v8, %v4739_v60  ;;  %v4839_v60 = vsel %vm4759_vm0, %v4799_v14, %v4819_v20  ;;  %v15951_v13 = vld [vmem:[#allocation18_spill] sm:$0xff]  ;;  %v15953_v20 = vld [vmem:[#allocation9_spill] sm:$0xff] }
 0x413   : > { %v12486_v21 = vpop.eup %12485  ;;  %v4681_v41 = vsub.f32 0.0, %v4661_v58  ;;  %v3342_v61 = vadd.f32 %v15951_v13, %v3016_v44  ;;  %v4959_v58 = vmul.f32 %v4839_v60, %v14569_v49  ;;  %v10907_v14 = vld [vmem:[%s13061_s25 + $0x28] sm:$0xff]  ;;  %v11816_v49 = vld [vmem:[%s13061_s25 + $0x38] sm:$0xff]  }
 0x414   : > { %v4998_v22 = vmul.f32 %v12486_v21, %v4958_v35  ;;  %v4939_v9 = vsel %vm4759_vm0, %v4879_v2, %v4919_v11  ;;  %v4593_v38 = vpop.f32.mrf.mxu3  ;;  %v4143_v2 = vadd.f32 %v4120_v46, %v3817_v6  ;;  %v3796_v19 = vpop.f32.mrf.mxu0  ;;  %v11324_v6 = vunpack.c.h.bf16 %v11816_v49 }
 0x415   : > { %v12488_v45 = vpop.eup %12487  ;;  %12489 = vrcp.f32 %v4939_v9  ;;  %v4717_v18 = vmul.f32 1.442695, %v4681_v41  ;;  %v4618_v12 = vadd.f32 %v4593_v38, %v4306_v30  ;;  %v3506_v11 = vadd.f32 %v15952_v47, %v3342_v61  ;;  %v4122_v9 = vpop.f32.mrf.mxu1 }
 0x416   : > { %v5018_v10 = vmul.f32 %v4998_v22, %v15949_v1  ;;  %v4740_v59 = vmul.f32 %v12488_v45, %v12488_v45  ;;  %v4780_v29 = vmul.f32 2.0, %v12488_v45 }
 0x417   : > { %12491 = vpow2.f32 %v4717_v18  ;;  %v14620_v34 = vadd.f32 %v14601_v32, %v4618_v12  ;;  %5308 = vmatmul.bf16.gmra.mxu0 %v10907_v14  ;;  %v3818_v38 = vadd.f32 %v3796_v19, %v3506_v11 }
 0x418   : > { %v5078_v37 = vadd.f32 %v11320_v63, %v5018_v10  ;;  %v4800_v4 = vadd.f32 1.0, %v4780_v29  ;;  %v4860_v27 = vmul.f32 2.0, %v4740_v59  ;;  %v4900_v33 = vadd.f32 2.0, %v4780_v29 }
 0x419   : > { %v4662_v56 = vand.u32 2147483647, %v14620_v34  ;;  %v4820_v8 = vadd.f32 %v4780_v29, %v4740_v59  ;;  %v4307_v63 = vadd.f32 %v4284_v5, %v4143_v2  ;;  %v4144_v46 = vadd.f32 %v4122_v9, %v3818_v38 }
 0x41a   : > { %v11366_v16 = vpack.c.bf16 %v5078_v37, %v5077_v57  ;;  %v4880_v26 = vadd.f32 %v4860_v27, %v4800_v4  ;;  %v4920_v40 = vadd.f32 %v4900_v33, %v4740_v59  ;;  %v11323_v27 = vunpack.c.l.bf16 %v11816_v49 }
 0x41b   : > { %v12490_v35 = vpop.eup %12489  ;;  %v4682_v50 = vsub.f32 0.0, %v4662_v56  ;;  %v4840_v22 = vsel %vm4760_vm1, %v4800_v4, %v4820_v8  ;;  %vm4762_vm3 = vcmp.ge.f32.partialorder %v14620_v34, 0.0 }
 0x41c   : > { %11824 = vst [vmem:[%s13061_s25 + $0x30] sm:$0xff] %v11366_v16   ;;  %v4940_v21 = vsel %vm4760_vm1, %v4880_v26, %v4920_v40  ;;  %v4999_v31 = vmul.f32 %v12490_v35, %v4959_v58  ;;  %v4960_v10 = vmul.f32 %v4840_v22, %v14583_v25  ;;  %v4286_v26 = vpop.f32.mrf.mxu2  ;;  %v15954_v25 = vld [vmem:[#allocation10_spill] sm:$0xff]  ;;  %v10931_v40 = vld [vmem:[%s15891_s6 + $0x298] sm:$0xff] }
 0x41d   : > { %12493 = vrcp.f32 %v4940_v21  ;;  %v12492_v42 = vpop.eup %12491  ;;  %v4719_v54 = vmul.f32 1.442695, %v4682_v50  ;;  %v4308_v56 = vadd.f32 %v4286_v26, %v4144_v46  ;;  %5921 = vmatpush.bf16.msrb.mxu1 %v10931_v40 }
 0x41e   : > { %v4741_v45 = vmul.f32 %v12492_v42, %v12492_v42  ;;  %v4781_v30 = vmul.f32 2.0, %v12492_v42  ;;  %v5019_v18 = vmul.f32 %v4999_v31, %v15953_v20 }
 0x41f   : > { %12495 = vpow2.f32 %v4719_v54  ;;  %v4596_v41 = vpop.f32.mrf.mxu3 }
 0x420   : > { %v4801_v3 = vadd.f32 1.0, %v4781_v30  ;;  %v4861_v44 = vmul.f32 2.0, %v4741_v45  ;;  %v4901_v0 = vadd.f32 2.0, %v4781_v30  ;;  %v4619_v59 = vadd.f32 %v4596_v41, %v4307_v63 }
 0x421   : > { %v5079_v13 = vadd.f32 %v11323_v27, %v5019_v18  ;;  %v4821_v2 = vadd.f32 %v4781_v30, %v4741_v45 }
 0x422   : > { %v4881_v12 = vadd.f32 %v4861_v44, %v4801_v3  ;;  %v4921_v57 = vadd.f32 %v4901_v0, %v4741_v45  ;;  %v14637_v4 = vadd.f32 %v14601_v32, %v4619_v59 }
 0x423   : > { %v12494_v29 = vpop.eup %12493  ;;  %v4841_v31 = vsel %vm4761_vm2, %v4801_v3, %v4821_v2  ;;  %v10908_v49 = vld [vmem:[%s13061_s25 + $0x30] sm:$0xff] }
 0x424   : > { %v5000_v37 = vmul.f32 %v12494_v29, %v4960_v10  ;;  %v4941_v33 = vsel %vm4761_vm2, %v4881_v12, %v4921_v57  ;;  %v4663_v60 = vand.u32 2147483647, %v14637_v4  ;;  %v4961_v41 = vmul.f32 %v4841_v31, %v14604_v17  ;;  %v10930_v10 = vld [vmem:[%s15891_s6 + $0x290] sm:$0xff]  ;;  %v11817_v12 = vld [vmem:[%s13061_s25 + $0x40] sm:$0xff]   ;;  %v15955_v17 = vld [vmem:[#allocation11_spill] sm:$0xff] }
 0x425   : > { %v12496_v16 = vpop.eup %12495  ;;  %12497 = vrcp.f32 %v4941_v33  ;;  %5922 = vmatpush.bf16.msrb.mxu1 %v10930_v10  ;;  %v11327_v26 = vunpack.c.l.bf16 %v11817_v12  ;;  %vm4763_vm4 = vcmp.ge.f32.partialorder %v14637_v4, 0.0 }
 0x426   : > { %v5020_v51 = vmul.f32 %v5000_v37, %v15954_v25  ;;  %v4742_v61 = vmul.f32 %v12496_v16, %v12496_v16  ;;  %v4782_v8 = vmul.f32 2.0, %v12496_v16  ;;  %v4683_v5 = vsub.f32 0.0, %v4663_v60 }
 0x427   : > { %v4598_v21 = vpop.f32.mrf.mxu3  ;;  %5313 = vmatmul.bf16.gmra.mxu0 %v10908_v49  ;;  %v11328_v60 = vunpack.c.h.bf16 %v11817_v12  ;;  %v11818_v49 = vld [vmem:[%s13061_s25 + $0x48] sm:$0xff]  }
 0x428   : > { %v5080_v35 = vadd.f32 %v11324_v6, %v5020_v51  ;;  %v4802_v50 = vadd.f32 1.0, %v4782_v8  ;;  %v4862_v47 = vmul.f32 2.0, %v4742_v61  ;;  %v4902_v11 = vadd.f32 2.0, %v4782_v8  ;;  %v15956_v51 = vld [vmem:[#allocation12_spill] sm:$0xff] }
 0x429   : > { %v4721_v14 = vmul.f32 1.442695, %v4683_v5  ;;  %v4620_v42 = vadd.f32 %v4598_v21, %v4308_v56  ;;  %v4822_v22 = vadd.f32 %v4782_v8, %v4742_v61  ;;  %v11332_v12 = vunpack.c.h.bf16 %v11818_v49 }
 0x42a   : > { %v11371_v58 = vpack.c.bf16 %v5080_v35, %v5079_v13  ;;  %v4882_v54 = vadd.f32 %v4862_v47, %v4802_v50  ;;  %v4922_v19 = vadd.f32 %v4902_v11, %v4742_v61 }
 0x42b   : > { %12499 = vpow2.f32 %v4721_v14  ;;  %v4644_v45 = vadd.f32 %v14601_v32, %v4620_v42  ;;  %v12498_v63 = vpop.eup %12497  ;;  %v4842_v38 = vsel %vm4762_vm3, %v4802_v50, %v4822_v22 }
 0x42c   : > { %11825 = vst [vmem:[%s13061_s25 + $0x38] sm:$0xff] %v11371_v58   ;;  %v4942_v30 = vsel %vm4762_vm3, %v4882_v54, %v4922_v19  ;;  %v5001_v0 = vmul.f32 %v12498_v63, %v4961_v41  ;;  %v4962_v29 = vmul.f32 %v4842_v38, %v14620_v34 }
 0x42d   : > { %12501 = vrcp.f32 %v4942_v30  ;;  %v4664_v9 = vand.u32 2147483647, %v4644_v45  ;;  %vm4764_vm5 = vcmp.ge.f32.partialorder %v4644_v45, 0.0 }
 0x42e   : > { %v5021_v57 = vmul.f32 %v5001_v0, %v15955_v17 }
 0x42f   : > { %v4684_v44 = vsub.f32 0.0, %v4664_v9  ;;  %v14667_v9 = vld [vmem:[%s15890_s5 + $0x1] ss:$0 sm:$0xff] }
 0x430   : > { %v5081_v56 = vadd.f32 %v11327_v26, %v5021_v57 }
 0x431   : > { %v12500_v3 = vpop.eup %12499  ;;  %v4723_v59 = vmul.f32 1.442695, %v4684_v44 }
 0x432   : > { %v4743_v32 = vmul.f32 %v12500_v3, %v12500_v3  ;;  %v4783_v46 = vmul.f32 2.0, %v12500_v3  ;;  %v15957_v3 = vld [vmem:[#allocation13_spill] sm:$0xff] }
 0x433   : > { %v12502_v18 = vpop.eup %12501  ;;  %12503 = vpow2.f32 %v4723_v59  ;;  %v10909_v42 = vld [vmem:[%s13061_s25 + $0x38] sm:$0xff] }
 0x434   : > { %v5002_v37 = vmul.f32 %v12502_v18, %v4962_v29  ;;  %v4803_v27 = vadd.f32 1.0, %v4783_v46  ;;  %v4863_v33 = vmul.f32 2.0, %v4743_v32  ;;  %v4903_v16 = vadd.f32 2.0, %v4783_v46 }
 0x435   : > { %v4823_v21 = vadd.f32 %v4783_v46, %v4743_v32  ;;  %v15958_v46 = vld [vmem:[#allocation14_spill] sm:$0xff] }
 0x436   : > { %v5022_v6 = vmul.f32 %v5002_v37, %v15956_v51  ;;  %v4883_v40 = vadd.f32 %v4863_v33, %v4803_v27  ;;  %v4923_v34 = vadd.f32 %v4903_v16, %v4743_v32  ;;  %v11331_v32 = vunpack.c.l.bf16 %v11818_v49 }
 0x437   : > { %v4843_v54 = vsel %vm4763_vm4, %v4803_v27, %v4823_v21  ;;  %5318 = vmatmul.bf16.gmra.mxu0 %v10909_v42 }
 0x438   : > { %v5082_v13 = vadd.f32 %v11328_v60, %v5022_v6  ;;  %v4943_v8 = vsel %vm4763_vm4, %v4883_v40, %v4923_v34  ;;  %v4963_v30 = vmul.f32 %v4843_v54, %v14637_v4  ;;  %v10929_v6 = vld [vmem:[%s15891_s6 + $0x288] sm:$0xff]  ;;  %v10927_v54 = vld [vmem:[%s15891_s6 + $0x278] sm:$0xff] }
 0x439   : > { %v12504_v61 = vpop.eup %12503  ;;  %12505 = vrcp.f32 %v4943_v8  ;;  %5923 = vmatpush.bf16.msrb.mxu1 %v10929_v6  ;;  %6145 = vmatpush.bf16.msrb.mxu2 %v10927_v54  ;;  %v10924_v54 = vld [vmem:[%s15891_s6 + $0x260] sm:$0xff] }
 0x43a   : > { %v11376_v35 = vpack.c.bf16 %v5082_v13, %v5081_v56  ;;  %v4744_v2 = vmul.f32 %v12504_v61, %v12504_v61  ;;  %v4784_v5 = vmul.f32 2.0, %v12504_v61 }
 0x43c   : > { %11826 = vst [vmem:[%s13061_s25 + $0x40] sm:$0xff] %v11376_v35   ;;  %v4804_v50 = vadd.f32 1.0, %v4784_v5  ;;  %v4864_v47 = vmul.f32 2.0, %v4744_v2  ;;  %v4904_v11 = vadd.f32 2.0, %v4784_v5  ;;  %v4824_v19 = vadd.f32 %v4784_v5, %v4744_v2 }
 0x43e   : > { %v4884_v58 = vadd.f32 %v4864_v47, %v4804_v50  ;;  %v4924_v14 = vadd.f32 %v4904_v11, %v4744_v2  ;;  %v4844_v63 = vsel %vm4764_vm5, %v4804_v50, %v4824_v19 }
 0x43f   : > { %v12506_v22 = vpop.eup %12505  ;;  %v4964_v38 = vmul.f32 %v4844_v63, %v4644_v45 }
 0x440   : > { %v4944_v31 = vsel %vm4764_vm5, %v4884_v58, %v4924_v14  ;;  %v5003_v41 = vmul.f32 %v12506_v22, %v4963_v30 }
 0x441   : > { %12507 = vrcp.f32 %v4944_v31 }
 0x442   : > { %v5023_v59 = vmul.f32 %v5003_v41, %v15957_v3 }
 0x443   : > { %v5284_v44 = vpop.f32.mrf.mxu0  ;;  %v10910_v16 = vld [vmem:[%s13061_s25 + $0x40] sm:$0xff] }
 0x444   : > { %v5285_v10 = vadd.f32 %v14667_v9, %v5284_v44  ;;  %v5083_v37 = vadd.f32 %v11331_v32, %v5023_v59 }
 0x446   : > { %v5334_v4 = vand.u32 2147483647, %v5285_v10  ;;  %vm5434_vm6 = vcmp.ge.f32.partialorder %v5285_v10, 0.0 }
 0x447   : > { %v12508_v0 = vpop.eup %12507  ;;  %5323 = vmatmul.bf16.gmra.mxu0 %v10910_v16 }
 0x448   : > { %v5004_v29 = vmul.f32 %v12508_v0, %v4964_v38  ;;  %v5354_v57 = vsub.f32 0.0, %v5334_v4  ;;  %v10928_v4 = vld [vmem:[%s15891_s6 + $0x280] sm:$0xff] }
 0x449   : > { %5924 = vmatpush.bf16.msrb.mxu1 %v10928_v4 }
 0x44a   : > { %v5024_v18 = vmul.f32 %v5004_v29, %v15958_v46  ;;  %v5374_v33 = vmul.f32 1.442695, %v5354_v57  ;;  %v10926_v29 = vld [vmem:[%s15891_s6 + $0x270] sm:$0xff] }
 0x44b   : > { %v5286_v26 = vpop.f32.mrf.mxu0  ;;  %6146 = vmatpush.bf16.msrb.mxu2 %v10926_v29  ;;  %v10952_v29 = vld [vmem:[%s15891_s6 + $0x2f0] sm:$0xff] }
 0x44c   : > { %v5084_v27 = vadd.f32 %v11332_v12, %v5024_v18  ;;  %12509 = vpow2.f32 %v5374_v33  ;;  %v14678_v60 = vadd.f32 %v14667_v9, %v5286_v26  ;;  %v10925_v12 = vld [vmem:[%s15891_s6 + $0x268] sm:$0xff] }
 0x44e   : > { %v11381_v45 = vpack.c.bf16 %v5084_v27, %v5083_v37  ;;  %v5335_v40 = vand.u32 2147483647, %v14678_v60  ;;  %vm5435_vm7 = vcmp.ge.f32.partialorder %v14678_v60, 0.0 }
 0x44f   : > { %6147 = vmatpush.bf16.msrb.mxu2 %v10925_v12 }
 0x450   : > { %11827 = vst [vmem:[%s13061_s25 + $0x48] sm:$0xff] %v11381_v45   ;;  %v5355_v34 = vsub.f32 0.0, %v5335_v40 }
 0x452   : > { %v12510_v56 = vpop.eup %12509  ;;  %v5376_v13 = vmul.f32 1.442695, %v5355_v34 }
 0x453   : > { %v5414_v61 = vmul.f32 %v12510_v56, %v12510_v56  ;;  %v5454_v8 = vmul.f32 2.0, %v12510_v56  ;;  %6148 = vmatpush.bf16.msrb.mxu2 %v10924_v54 }
 0x454   : > { %12511 = vpow2.f32 %v5376_v13  ;;  %v5289_v35 = vpop.f32.mrf.mxu0 }
 0x455   : > { %v5474_v2 = vadd.f32 1.0, %v5454_v8  ;;  %v5534_v5 = vmul.f32 2.0, %v5414_v61  ;;  %v5574_v21 = vadd.f32 2.0, %v5454_v8  ;;  %v14683_v50 = vadd.f32 %v14667_v9, %v5289_v35 }
 0x456   : > { %v5494_v58 = vadd.f32 %v5454_v8, %v5414_v61 }
 0x457   : > { %v5554_v47 = vadd.f32 %v5534_v5, %v5474_v2  ;;  %v5594_v11 = vadd.f32 %v5574_v21, %v5414_v61  ;;  %v5336_v14 = vand.u32 2147483647, %v14683_v50  ;;  %v10911_v63 = vld [vmem:[%s13061_s25 + $0x48] sm:$0xff]  ;;  %vm5436_vm8 = vcmp.ge.f32.partialorder %v14683_v50, 0.0 }
 0x458   : > { %v5514_v41 = vsel %vm5434_vm6, %v5474_v2, %v5494_v58  ;;  %5328 = vmatmul.bf16.gmra.mxu0 %v10911_v63 }
 0x459   : > { %v5614_v42 = vsel %vm5434_vm6, %v5554_v47, %v5594_v11  ;;  %v5356_v31 = vsub.f32 0.0, %v5336_v14  ;;  %v5634_v18 = vmul.f32 %v5514_v41, %v5285_v10 }
 0x45a   : > { %v12512_v19 = vpop.eup %12511  ;;  %12513 = vrcp.f32 %v5614_v42 }
 0x45b   : > { %v5415_v22 = vmul.f32 %v12512_v19, %v12512_v19  ;;  %v5455_v30 = vmul.f32 2.0, %v12512_v19  ;;  %v5378_v38 = vmul.f32 1.442695, %v5356_v31  ;;  %v10953_v19 = vld [vmem:[%s15891_s6 + $0x2f8] sm:$0xff] }
 0x45c   : > { %v5291_v44 = vpop.f32.mrf.mxu0  ;;  %6437 = vmatpush.bf16.msra.mxu3 %v10953_v19 }
 0x45d   : > { %v5475_v0 = vadd.f32 1.0, %v5455_v30  ;;  %v5535_v49 = vmul.f32 2.0, %v5415_v22  ;;  %v5575_v59 = vadd.f32 2.0, %v5455_v30  ;;  %12515 = vpow2.f32 %v5378_v38  ;;  %v10923_v38 = vld [vmem:[%s15891_s6 + $0x258] sm:$0xff] }
 0x45e   : > { %v14697_v32 = vadd.f32 %v14667_v9, %v5291_v44  ;;  %v5495_v21 = vadd.f32 %v5455_v30, %v5415_v22  ;;  %6149 = vmatpush.bf16.msrb.mxu2 %v10923_v38 }
 0x45f   : > { %v5555_v33 = vadd.f32 %v5535_v49, %v5475_v0  ;;  %v5595_v45 = vadd.f32 %v5575_v59, %v5415_v22  ;;  %v10961_v22 = vld [vmem:[%s15891_s6 + $0x338] sm:$0xff] }
 0x460   : > { %v12514_v57 = vpop.eup %12513  ;;  %v5337_v37 = vand.u32 2147483647, %v14697_v32  ;;  %v5515_v63 = vsel %vm5435_vm7, %v5475_v0, %v5495_v21  ;;  %6763 = vmatpush.bf16.msra.mxu0 %v10961_v22  ;;  %v10960_v0 = vld [vmem:[%s15891_s6 + $0x330] sm:$0xff]  ;;  %6438 = vmatpush.bf16.msra.mxu3 %v10952_v29  ;;  %vm5437_vm9 = vcmp.ge.f32.partialorder %v14697_v32, 0.0 }
 0x461   : > { %v5674_v27 = vmul.f32 %v12514_v57, %v5634_v18  ;;  %v5615_v34 = vsel %vm5435_vm7, %v5555_v33, %v5595_v45  ;;  %v5635_v57 = vmul.f32 %v5515_v63, %v14678_v60 }
 0x462   : > { %v5357_v16 = vsub.f32 0.0, %v5337_v37 }
 0x463   : > { %v5694_v26 = vmul.f32 %v5674_v27, %v13365_v15  ;;  %v12516_v6 = vpop.eup %12515 }
 0x464   : > { %v5380_v10 = vmul.f32 1.442695, %v5357_v16  ;;  %v5416_v56 = vmul.f32 %v12516_v6, %v12516_v6  ;;  %v5456_v13 = vmul.f32 2.0, %v12516_v6  ;;  %v5294_v61 = vpop.f32.mrf.mxu0  ;;  %v10922_v16 = vld [vmem:[%s15891_s6 + $0x250] sm:$0xff]  ;;  %6764 = vmatpush.bf16.msra.mxu0 %v10960_v0  ;;  %v10920_v0 = vld [vmem:[%s15891_s6 + $0x240] sm:$0xff] }
 0x465   : > { %v5714_v40 = vpack.c.bf16 %v5694_v26, %v5694_v26  ;;  %v14708_v8 = vadd.f32 %v14667_v9, %v5294_v61  ;;  %v10951_v26 = vld [vmem:[%s15891_s6 + $0x2e8] sm:$0xff]  ;;  %6150 = vmatpush.bf16.msrb.mxu2 %v10922_v16  ;;  %v10969_v16 = vld [vmem:[%s15891_s6 + $0x378] sm:$0xff] }
 0x466   : > { %12517 = vpow2.f32 %v5380_v10  ;;  %v5476_v35 = vadd.f32 1.0, %v5456_v13  ;;  %v5536_v2 = vmul.f32 2.0, %v5416_v56  ;;  %v5576_v5 = vadd.f32 2.0, %v5456_v13  ;;  %6439 = vmatpush.bf16.msra.mxu3 %v10951_v26  ;;  %6927 = vmatpush.bf16.msra.mxu1 %v10969_v16 }
 0x467   : > { %5734 = vst [vmem:[#allocation2 + $0xc] sm:$0xf] %v5714_v40  ;;  %12519 = vrcp.f32 %v5615_v34  ;;  %v5338_v47 = vand.u32 2147483647, %v14708_v8  ;;  %v5496_v14 = vadd.f32 %v5456_v13, %v5416_v56  ;;  %v10959_v34 = vld [vmem:[%s15891_s6 + $0x328] sm:$0xff]  ;;  %vm5438_vm11 = vcmp.ge.f32.partialorder %v14708_v8, 0.0 }
 0x468   : > { %v5556_v11 = vadd.f32 %v5536_v2, %v5476_v35  ;;  %v5596_v58 = vadd.f32 %v5576_v5, %v5416_v56  ;;  %6765 = vmatpush.bf16.msra.mxu0 %v10959_v34 }
 0x469   : > { %v5358_v42 = vsub.f32 0.0, %v5338_v47  ;;  %v5516_v18 = vsel %vm5436_vm8, %v5476_v35, %v5496_v14 }
 0x46a   : > { %v5616_v31 = vsel %vm5436_vm8, %v5556_v11, %v5596_v58  ;;  %v5636_v10 = vmul.f32 %v5516_v18, %v14683_v50  ;;  %v10921_v50 = vld [vmem:[%s15891_s6 + $0x248] sm:$0xff] }
 0x46b   : > { %12521 = vrcp.f32 %v5616_v31  ;;  %v5382_v41 = vmul.f32 1.442695, %v5358_v42  ;;  %6151 = vmatpush.bf16.msrb.mxu2 %v10921_v50 }
 0x46c   : > { %v12518_v30 = vpop.eup %12517  ;;  %v5296_v59 = vpop.f32.mrf.mxu0 }
 0x46d   : > { %v5417_v44 = vmul.f32 %v12518_v30, %v12518_v30  ;;  %v5457_v49 = vmul.f32 2.0, %v12518_v30  ;;  %v12520_v4 = vpop.eup %12519  ;;  %12523 = vpow2.f32 %v5382_v41  ;;  %v14737_v12 = vadd.f32 %v14667_v9, %v5296_v59  ;;  %v5755_v59 = vld [vmem:[#allocation2 + $0x4] sm:$0xf] }
 0x46e   : > { %v5675_v6 = vmul.f32 %v12520_v4, %v5635_v57  ;;  %v11837_v29 = vld [vmem:[#allocation2 + $0x8] sm:$0xff]  }
 0x46f   : > { %v5477_v37 = vadd.f32 1.0, %v5457_v49  ;;  %v5537_v27 = vmul.f32 2.0, %v5417_v44  ;;  %v5577_v33 = vadd.f32 2.0, %v5457_v49  ;;  %v5339_v45 = vand.u32 2147483647, %v14737_v12  ;;  %6152 = vmatpush.bf16.msrb.mxu2 %v10920_v0 }
 0x470   : > { %v5695_v21 = vmul.f32 %v5675_v6, %v13392_v55  ;;  %v5497_v14 = vadd.f32 %v5457_v49, %v5417_v44  ;;  %vm5439_vm12 = vcmp.ge.f32.partialorder %v14737_v12, 0.0 }
 0x471   : > { %v5557_v40 = vadd.f32 %v5537_v27, %v5477_v37  ;;  %v5597_v60 = vadd.f32 %v5577_v33, %v5417_v44  ;;  %v12522_v56 = vpop.eup %12521  ;;  %v5359_v13 = vsub.f32 0.0, %v5339_v45  ;;  %v11430_v27 = vunpack.c.l.b16 %v11837_v29  ;;  %v10958_v45 = vld [vmem:[%s15891_s6 + $0x320] sm:$0xff] }
 0x472   : > { %v5676_v61 = vmul.f32 %v12522_v56, %v5636_v10  ;;  %v5517_v41 = vsel %vm5437_vm9, %v5477_v37, %v5497_v14  ;;  %v5829_v33 = vunpack.c.l.b16 %v5755_v59  ;;  %v10950_v37 = vld [vmem:[%s15891_s6 + $0x2e0] sm:$0xff]  ;;  %6766 = vmatpush.bf16.msra.mxu0 %v10958_v45  ;;  %v6001_v14 = vshll.u32 %v11837_v29, 16  ;;  %v10956_v59 = vld [vmem:[%s15891_s6 + $0x310] sm:$0xff] }
 0x473   : > { %v12524_v35 = vpop.eup %12523  ;;  %v5617_v2 = vsel %vm5437_vm9, %v5557_v40, %v5597_v60  ;;  %v5384_v5 = vmul.f32 1.442695, %v5359_v13  ;;  %v5637_v6 = vmul.f32 %v5517_v41, %v14697_v32  ;;  %v5754_v60 = vld [vmem:[#allocation2] sm:$0x8]  ;;  %6440 = vmatpush.bf16.msra.mxu3 %v10950_v37 }
 0x474   : > { %v5696_v47 = vmul.f32 %v5676_v61, %v13419_v28  ;;  %v5418_v11 = vmul.f32 %v12524_v35, %v12524_v35  ;;  %v5458_v58 = vmul.f32 2.0, %v12524_v35  ;;  %v5299_v42 = vpop.f32.mrf.mxu0  ;;  %v5849_v56 = vpack.c.b16 %v11430_v27, %v5829_v33  ;;  %v10949_v35 = vld [vmem:[%s15891_s6 + $0x2d8] sm:$0xff] }
 0x475   : > { %12525 = vpow2.f32 %v5384_v5  ;;  %v14762_v30 = vadd.f32 %v14667_v9, %v5299_v42  ;;  %v5977_v13 = vunpack.c.l.b16 %v5754_v60  ;;  %v5998_v61 = vshrl.u32 %v11837_v29, 16  ;;  %v10947_v60 = vld [vmem:[%s15891_s6 + $0x2c8] sm:$0xff] }
 0x476   : > { %v14759_v54 = vpack.c.bf16 %v5696_v47, %v5695_v21  ;;  %12527 = vrcp.f32 %v5617_v2  ;;  %v5478_v19 = vadd.f32 1.0, %v5458_v58  ;;  %v5538_v31 = vmul.f32 2.0, %v5418_v11  ;;  %v10957_v2 = vld [vmem:[%s15891_s6 + $0x318] sm:$0xff]  ;;  %5925 = vmatmul.bf16.vlgmr.msrb.gmra.mxu1 %v5849_v56 }
 0x477   : > { %v5578_v22 = vadd.f32 2.0, %v5458_v58  ;;  %v5340_v44 = vand.u32 2147483647, %v14762_v30  ;;  %v5498_v49 = vadd.f32 %v5458_v58, %v5418_v11  ;;  %v5978_v58 = vpack.c.b16 %v5829_v33, %v5977_v13  ;;  %6441 = vmatpush.bf16.msra.mxu3 %v10949_v35  ;;  %6767 = vmatpush.bf16.msra.mxu0 %v10957_v2 }
 0x478   : > { %11828 = vst [vmem:[#allocation2 + $0x10] sm:$0xff] %v14759_v54   ;;  %v5558_v63 = vadd.f32 %v5538_v31, %v5478_v19  ;;  %vm5440_vm13 = vcmp.ge.f32.partialorder %v14762_v30, 0.0 }
 0x479   : > { %v5598_v38 = vadd.f32 %v5578_v22, %v5418_v11  ;;  %v5360_v57 = vsub.f32 0.0, %v5340_v44  ;;  %v5518_v5 = vsel %vm5438_vm11, %v5478_v19, %v5498_v49  ;;  %v6000_v22 = vrot.slane %v5998_v61, 3  ;;  %v10948_v49 = vld [vmem:[%s15891_s6 + $0x2d0] sm:$0xff] }
 0x47a   : > { %v5638_v41 = vmul.f32 %v5518_v5, %v14708_v8  ;;  %v5993_v44 = vshll.u32 %v5978_v58, 16  ;;  %v6003_v19 = vrot.slane %v6001_v14, 4 }
 0x47b   : > { %v12526_v4 = vpop.eup %12525  ;;  %v5618_v18 = vsel %vm5438_vm11, %v5558_v63, %v5598_v38  ;;  %v5386_v34 = vmul.f32 1.442695, %v5360_v57  ;;  %v5990_v38 = vshrl.u32 %v5978_v58, 16  ;;  %6442 = vmatpush.bf16.msra.mxu3 %v10948_v49  ;;  %6768 = vmatpush.bf16.msra.mxu0 %v10956_v59  ;;  %v10936_v49 = vld [vmem:[#allocation2 + $0x4] sm:$0xff] }
 0x47c   : > { %v12528_v26 = vpop.eup %12527  ;;  %12529 = vrcp.f32 %v5618_v18  ;;  %v5419_v10 = vmul.f32 %v12526_v4, %v12526_v4  ;;  %v5459_v40 = vmul.f32 2.0, %v12526_v4  ;;  %v5301_v32 = vpop.f32.mrf.mxu0  ;;  %v5995_v18 = vrot.slane %v5993_v44, 4 }
 0x47d   : > { %v5677_v11 = vmul.f32 %v12528_v26, %v5637_v6  ;;  %12531 = vpow2.f32 %v5386_v34  ;;  %v14793_v63 = vadd.f32 %v14667_v9, %v5301_v32  ;;  %v5992_v8 = vrot.slane %v5990_v38, 3  ;;  %v10955_v34 = vld [vmem:[%s15891_s6 + $0x308] sm:$0xff] }
 0x47e   : > { %v5479_v50 = vadd.f32 1.0, %v5459_v40  ;;  %v5539_v21 = vmul.f32 2.0, %v5419_v10  ;;  %v5579_v47 = vadd.f32 2.0, %v5459_v40  ;;  %v14807_v33 = vor.u32 %v6003_v19, %v6000_v22  ;;  %v10946_v22 = vld [vmem:[%s15891_s6 + $0x2c0] sm:$0xff] }
 0x47f   : > { %v5341_v0 = vand.u32 2147483647, %v14793_v63  ;;  %v5697_v57 = vmul.f32 %v5677_v11, %v13470_v24  ;;  %v5499_v26 = vadd.f32 %v5459_v40, %v5419_v10  ;;  %v5996_v6 = vor.u32 %v5995_v18, %v5992_v8  ;;  %6443 = vmatpush.bf16.msra.mxu3 %v10947_v60  ;;  %6769 = vmatpush.bf16.msra.mxu0 %v10955_v34  ;;  %v14837_v59 = vld [vmem:[#allocation2 + $0xc] sm:$0xff] }
 0x480   : > { %v5559_v42 = vadd.f32 %v5539_v21, %v5479_v50  ;;  %v5599_v31 = vadd.f32 %v5579_v47, %v5419_v10  ;;  %v6010_v38 = vshll.u32 %v14759_v54, 16  ;;  %v12157_v18 = vld [vmem:[#allocation2 + $0xc] sm:$0xff]   ;;  %v6296_v60 = vshrl.u32 %v10936_v49, 16 }
 0x481   : > { %v5361_v37 = vsub.f32 0.0, %v5341_v0  ;;  %v6005_v10 = vsel %vm2488_vm10, %v5996_v6, %v14807_v33  ;;  %v5519_v47 = vsel %vm5439_vm12, %v5479_v50, %v5499_v26  ;;  %v6007_v50 = vshrl.u32 %v14759_v54, 16 }
 0x482   : > { %v12530_v29 = vpop.eup %12529  ;;  %v5619_v27 = vsel %vm5439_vm12, %v5559_v42, %v5599_v31  ;;  %6153 = vmatmul.bf16.vlgmr.msrb.gmra.mxu2 %v6005_v10  ;;  %v5639_v44 = vmul.f32 %v5519_v47, %v14737_v12  ;;  %v6303_v54 = vshll.u32 %v14837_v59, 16  ;;  %vm5441_vm14 = vcmp.ge.f32.partialorder %v14793_v63, 0.0 }
 0x483   : > { %v5678_v4 = vmul.f32 %v12530_v29, %v5638_v41  ;;  %v12532_v45 = vpop.eup %12531  ;;  %v5388_v61 = vmul.f32 1.442695, %v5361_v37  ;;  %12533 = vrcp.f32 %v5619_v27  ;;  %v10954_v41 = vld [vmem:[%s15891_s6 + $0x300] sm:$0xff]  ;;  %v6516_v29 = vld [vmem:[#allocation2 + $0x8] sm:$0x8]  ;;  %6444 = vmatpush.bf16.msra.mxu3 %v10946_v22  ;;  %v6012_v37 = vrot.slane %v6010_v38, 4 }
 0x484   : > { %v5420_v56 = vmul.f32 %v12532_v45, %v12532_v45  ;;  %v5460_v13 = vmul.f32 2.0, %v12532_v45  ;;  %v5304_v35 = vpop.f32.mrf.mxu0  ;;  %6770 = vmatpush.bf16.msra.mxu0 %v10954_v41  ;;  %v14839_v27 = vld [vmem:[#allocation2 + $0xc] sm:$0xf]  ;;  %v6298_v45 = vshll.u32 %v10936_v49, 16  ;;  %v6575_v12 = vunpack.c.l.b16 %v6516_v29 }
 0x485   : > { %v5698_v16 = vmul.f32 %v5678_v4, %v13382_v43  ;;  %v14821_v40 = vadd.f32 %v14667_v9, %v5304_v35  ;;  %12535 = vpow2.f32 %v5388_v61  ;;  %v6576_v34 = vunpack.c.l.b16 %v14839_v27 }
 0x486   : > { %v5480_v32 = vadd.f32 1.0, %v5460_v13  ;;  %v5540_v5 = vmul.f32 2.0, %v5420_v56  ;;  %v5580_v21 = vadd.f32 2.0, %v5460_v13  ;;  %v5500_v11 = vadd.f32 %v5460_v13, %v5420_v56  ;;  %5930 = vmatmul.bf16.gmra.mxu1 %v12157_v18 }
 0x487   : > { %v14816_v2 = vpack.c.bf16 %v5698_v16, %v5697_v57  ;;  %v5342_v58 = vand.u32 2147483647, %v14821_v40  ;;  %v6009_v57 = vrot.slane %v6007_v50, 3  ;;  %v10968_v16 = vld [vmem:[%s15891_s6 + $0x370] sm:$0xff]  ;;  %v6300_v10 = vrot.slane %v6298_v45, 1 }
 0x488   : > { %v5560_v14 = vadd.f32 %v5540_v5, %v5480_v32  ;;  %v5600_v42 = vadd.f32 %v5580_v21, %v5420_v56  ;;  %v5520_v4 = vsel %vm5440_vm13, %v5480_v32, %v5500_v11  ;;  %6928 = vmatpush.bf16.msra.mxu1 %v10968_v16  ;;  %v14850_v5 = vrot.slane %v6303_v54, 1 }
 0x489   : > { %11829 = vst [vmem:[#allocation2 + $0x18] sm:$0xff] %v14816_v2   ;;  %v5362_v31 = vsub.f32 0.0, %v5342_v58  ;;  %v12534_v0 = vpop.eup %12533  ;;  %v5640_v32 = vmul.f32 %v5520_v4, %v14762_v30  ;;  %v6596_v21 = vpack.c.b16 %v6576_v34, %v6575_v12  ;;  %v6301_v22 = vor.u32 %v6300_v10, %v6296_v60 }
 0x48a   : > { %v5620_v19 = vsel %vm5440_vm13, %v5560_v14, %v5600_v42  ;;  %v5679_v13 = vmul.f32 %v12534_v0, %v5639_v44  ;;  %v14855_v42 = vor.u32 %v6012_v37, %v6009_v57  ;;  %vm5442_vm0 = vcmp.ge.f32.partialorder %v14821_v40, 0.0 }
 0x48b   : > { %12537 = vrcp.f32 %v5620_v19  ;;  %v5390_v8 = vmul.f32 1.442695, %v5362_v31  ;;  %v12536_v6 = vpop.eup %12535  ;;  %v6608_v41 = vshrl.u32 %v6596_v21, 16  ;;  %v6611_v50 = vshll.u32 %v6596_v21, 16 }
 0x48c   : > { %v5306_v26 = vpop.f32.mrf.mxu0  ;;  %v5421_v61 = vmul.f32 %v12536_v6, %v12536_v6  ;;  %v5461_v35 = vmul.f32 2.0, %v12536_v6  ;;  %v5699_v29 = vmul.f32 %v5679_v13, %v13424_v36  ;;  %v6306_v0 = vsel %vm2795_vm15, %v6301_v22, %v14850_v5 }
 0x48d   : > { %12539 = vpow2.f32 %v5390_v8  ;;  %v14847_v56 = vadd.f32 %v14667_v9, %v5306_v26  ;;  %v6610_v4 = vrot.slane %v6608_v41, 3  ;;  %v6613_v8 = vrot.slane %v6611_v50, 4  ;;  %6445 = vmatmul.bf16.vlgmr.msra.gmra.mxu3 %v6306_v0 }
 0x48e   : > { %v5481_v11 = vadd.f32 1.0, %v5461_v35  ;;  %v5541_v58 = vmul.f32 2.0, %v5421_v61  ;;  %v5581_v14 = vadd.f32 2.0, %v5461_v35  ;;  %v5501_v54 = vadd.f32 %v5461_v35, %v5421_v61 }
 0x48f   : > { %v5343_v47 = vand.u32 2147483647, %v14847_v56  ;;  %v6014_v12 = vsel %vm2488_vm10, %v14807_v33, %v14855_v42  ;;  %v6614_v16 = vor.u32 %v6613_v8, %v6610_v4  ;;  %vm5443_vm1 = vcmp.ge.f32.partialorder %v14847_v56, 0.0 }
 0x490   : > { %v5561_v30 = vadd.f32 %v5541_v58, %v5481_v11  ;;  %v5601_v19 = vadd.f32 %v5581_v14, %v5421_v61  ;;  %v6016_v14 = vshrl.u32 %v14816_v2, 16  ;;  %v14879_v22 = vld [vmem:[#allocation2 + $0x14] sm:$0xff]  ;;  %v5521_v41 = vsel %vm5441_vm14, %v5481_v11, %v5501_v54 }
 0x491   : > { %v12538_v31 = vpop.eup %12537  ;;  %v5363_v38 = vsub.f32 0.0, %v5343_v47  ;;  %v6623_v21 = vsel %vm2488_vm10, %v6614_v16, %v14855_v42 }
 0x492   : > { %v5680_v44 = vmul.f32 %v12538_v31, %v5640_v32  ;;  %v5621_v57 = vsel %vm5441_vm14, %v5561_v30, %v5601_v19  ;;  %6158 = vmatmul.bf16.gmra.mxu2 %v6014_v12  ;;  %6771 = vmatmul.bf16.vlgmr.msra.gmra.mxu0 %v6623_v21  ;;  %v6019_v31 = vshll.u32 %v14816_v2, 16  ;;  %v6307_v19 = vshrl.u32 %v14837_v59, 16 }
 0x493   : > { %v12540_v49 = vpop.eup %12539  ;;  %v5392_v26 = vmul.f32 1.442695, %v5363_v38  ;;  %12541 = vrcp.f32 %v5621_v57  ;;  %v6018_v0 = vrot.slane %v6016_v14, 3  ;;  %v6311_v2 = vshll.u32 %v14879_v22, 16 }
 0x494   : > { %v5700_v18 = vmul.f32 %v5680_v44, %v13431_v48  ;;  %v5422_v37 = vmul.f32 %v12540_v49, %v12540_v49  ;;  %v5462_v45 = vmul.f32 2.0, %v12540_v49  ;;  %v5309_v6 = vpop.f32.mrf.mxu0  ;;  %v12159_v44 = vld [vmem:[#allocation2 + $0x14] sm:$0xff]   ;;  %v6021_v4 = vrot.slane %v6019_v31, 4 }
 0x495   : > { %12543 = vpow2.f32 %v5392_v26  ;;  %v14872_v61 = vadd.f32 %v14667_v9, %v5309_v6  ;;  %v6309_v59 = vor.u32 %v6307_v19, %v14850_v5  ;;  %v14894_v54 = vrot.slane %v6311_v2, 1 }
 0x496   : > { %v14867_v60 = vpack.c.bf16 %v5700_v18, %v5699_v29  ;;  %v5482_v13 = vadd.f32 1.0, %v5462_v45  ;;  %v5542_v10 = vmul.f32 2.0, %v5422_v37  ;;  %v5582_v32 = vadd.f32 2.0, %v5462_v45  ;;  %5935 = vmatmul.bf16.gmra.mxu1 %v12159_v44 }
 0x497   : > { %v5344_v47 = vand.u32 2147483647, %v14872_v61  ;;  %v5502_v58 = vadd.f32 %v5462_v45, %v5422_v37  ;;  %v5641_v18 = vmul.f32 %v5521_v41, %v14793_v63  ;;  %v10967_v45 = vld [vmem:[%s15891_s6 + $0x368] sm:$0xff]  ;;  %vm5444_vm2 = vcmp.ge.f32.partialorder %v14872_v61, 0.0 }
 0x498   : > { %11830 = vst [vmem:[#allocation2 + $0x20] sm:$0xff] %v14867_v60   ;;  %v5562_v33 = vadd.f32 %v5542_v10, %v5482_v13  ;;  %v5602_v35 = vadd.f32 %v5582_v32, %v5422_v37  ;;  %6929 = vmatpush.bf16.msra.mxu1 %v10967_v45  ;;  %v14900_v10 = vor.u32 %v6021_v4, %v6018_v0 }
 0x499   : > { %v5364_v38 = vsub.f32 0.0, %v5344_v47  ;;  %v12542_v30 = vpop.eup %12541  ;;  %v5522_v11 = vsel %vm5442_vm0, %v5482_v13, %v5502_v58  ;;  %v6314_v32 = vsel %vm2795_vm15, %v6309_v59, %v14894_v54 }
 0x49a   : > { %v5622_v50 = vsel %vm5442_vm0, %v5562_v33, %v5602_v35  ;;  %v5681_v16 = vmul.f32 %v12542_v30, %v5641_v18  ;;  %v5642_v13 = vmul.f32 %v5522_v11, %v14821_v40 }
 0x49b   : > { %12545 = vrcp.f32 %v5622_v50  ;;  %v12544_v49 = vpop.eup %12543  ;;  %v5394_v29 = vmul.f32 1.442695, %v5364_v38  ;;  %v6023_v50 = vsel %vm2488_vm10, %v14855_v42, %v14900_v10 }
 0x49c   : > { %v5311_v8 = vpop.f32.mrf.mxu0  ;;  %v5423_v57 = vmul.f32 %v12544_v49, %v12544_v49  ;;  %v5463_v37 = vmul.f32 2.0, %v12544_v49  ;;  %v5701_v14 = vmul.f32 %v5681_v16, %v13495_v23 }
 0x49d   : > { %12547 = vpow2.f32 %v5394_v29  ;;  %v14897_v12 = vadd.f32 %v14667_v9, %v5311_v8  ;;  %6450 = vmatmul.bf16.gmra.mxu3 %v6314_v32 }
 0x49e   : > { %v5483_v26 = vadd.f32 1.0, %v5463_v37  ;;  %v5543_v63 = vmul.f32 2.0, %v5423_v57  ;;  %v5583_v6 = vadd.f32 2.0, %v5463_v37  ;;  %v5503_v49 = vadd.f32 %v5463_v37, %v5423_v57 }
 0x49f   : > { %v5345_v21 = vand.u32 2147483647, %v14897_v12  ;;  %vm5445_vm3 = vcmp.ge.f32.partialorder %v14897_v12, 0.0 }
 0x4a0   : > { %v5563_v33 = vadd.f32 %v5543_v63, %v5483_v26  ;;  %v5603_v35 = vadd.f32 %v5583_v6, %v5423_v57  ;;  %v5523_v57 = vsel %vm5443_vm1, %v5483_v26, %v5503_v49 }
 0x4a1   : > { %v12546_v5 = vpop.eup %12545  ;;  %v5365_v58 = vsub.f32 0.0, %v5345_v21  ;;  %v5643_v21 = vmul.f32 %v5523_v57, %v14847_v56 }
 0x4a2   : > { %v5682_v47 = vmul.f32 %v12546_v5, %v5642_v13  ;;  %v5623_v41 = vsel %vm5443_vm1, %v5563_v33, %v5603_v35  ;;  %6163 = vmatmul.bf16.gmra.mxu2 %v6023_v50  ;;  %6776 = vmatmul.bf16.gmra.mxu0 %v6023_v50  ;;  %v12161_v5 = vld [vmem:[#allocation2 + $0x1c] sm:$0xff]   ;;  %v6025_v33 = vshrl.u32 %v14867_v60, 16  ;;  %v6028_v35 = vshll.u32 %v14867_v60, 16 }
 0x4a3   : > { %v12548_v31 = vpop.eup %12547  ;;  %v5396_v38 = vmul.f32 1.442695, %v5365_v58  ;;  %v10966_v60 = vld [vmem:[%s15891_s6 + $0x360] sm:$0xff] }
 0x4a4   : > { %v5702_v40 = vmul.f32 %v5682_v47, %v13506_v39  ;;  %v5424_v44 = vmul.f32 %v12548_v31, %v12548_v31  ;;  %v5464_v30 = vmul.f32 2.0, %v12548_v31  ;;  %v5314_v8 = vpop.f32.mrf.mxu0  ;;  %v14926_v47 = vld [vmem:[#allocation2 + $0x1c] sm:$0xff]  ;;  %v6027_v31 = vrot.slane %v6025_v33, 3  ;;  %6930 = vmatpush.bf16.msra.mxu1 %v10966_v60 }
 0x4a5   : > { %12549 = vpow2.f32 %v5396_v38  ;;  %v14917_v42 = vadd.f32 %v14667_v9, %v5314_v8  ;;  %v6319_v56 = vshll.u32 %v14926_v47, 16 }
 0x4a6   : > { %v14913_v19 = vpack.c.bf16 %v5702_v40, %v5701_v14  ;;  %12551 = vrcp.f32 %v5623_v41  ;;  %v5484_v29 = vadd.f32 1.0, %v5464_v30  ;;  %v5544_v0 = vmul.f32 2.0, %v5424_v44  ;;  %5940 = vmatmul.bf16.gmra.mxu1 %v12161_v5 }
 0x4a7   : > { %v5584_v4 = vadd.f32 2.0, %v5464_v30  ;;  %v5504_v2 = vadd.f32 %v5464_v30, %v5424_v44  ;;  %v5346_v45 = vand.u32 2147483647, %v14917_v42  ;;  %v6030_v40 = vrot.slane %v6028_v35, 4 }
 0x4a8   : > { %11831 = vst [vmem:[#allocation2 + $0x28] sm:$0xff] %v14913_v19   ;;  %v5564_v18 = vadd.f32 %v5544_v0, %v5484_v29  ;;  %vm5446_vm4 = vcmp.ge.f32.partialorder %v14917_v42, 0.0 }
 0x4a9   : > { %v5604_v11 = vadd.f32 %v5584_v4, %v5424_v44  ;;  %v5524_v16 = vsel %vm5444_vm2, %v5484_v29, %v5504_v2  ;;  %v5366_v32 = vsub.f32 0.0, %v5346_v45  ;;  %v6315_v44 = vshrl.u32 %v14879_v22, 16 }
 0x4aa   : > { %v5644_v26 = vmul.f32 %v5524_v16, %v14872_v61  ;;  %v14934_v61 = vor.u32 %v6030_v40, %v6027_v31  ;;  %v6321_v2 = vrot.slane %v6319_v56, 1 }
 0x4ab   : > { %v5624_v37 = vsel %vm5444_vm2, %v5564_v18, %v5604_v11  ;;  %v12550_v59 = vpop.eup %12549  ;;  %v5398_v14 = vmul.f32 1.442695, %v5366_v32  ;;  %v6317_v4 = vor.u32 %v6315_v44, %v14894_v54 }
 0x4ac   : > { %12553 = vrcp.f32 %v5624_v37  ;;  %v12552_v63 = vpop.eup %12551  ;;  %v5425_v6 = vmul.f32 %v12550_v59, %v12550_v59  ;;  %v5465_v13 = vmul.f32 2.0, %v12550_v59  ;;  %v5316_v41 = vpop.f32.mrf.mxu0  ;;  %v6032_v22 = vsel %vm2488_vm10, %v14900_v10, %v14934_v61 }
 0x4ad   : > { %v5683_v58 = vmul.f32 %v12552_v63, %v5643_v21  ;;  %12555 = vpow2.f32 %v5398_v14  ;;  %v14937_v29 = vadd.f32 %v14667_v9, %v5316_v41  ;;  %v6322_v57 = vsel %vm2795_vm15, %v6317_v4, %v6321_v2 }
 0x4ae   : > { %v5485_v50 = vadd.f32 1.0, %v5465_v13  ;;  %v5545_v38 = vmul.f32 2.0, %v5425_v6  ;;  %v5585_v49 = vadd.f32 2.0, %v5465_v13  ;;  %6455 = vmatmul.bf16.gmra.mxu3 %v6322_v57  ;;  %v6034_v41 = vshrl.u32 %v14913_v19, 16 }
 0x4af   : > { %v5347_v8 = vand.u32 2147483647, %v14937_v29  ;;  %v5703_v18 = vmul.f32 %v5683_v58, %v13601_v62  ;;  %v5505_v58 = vadd.f32 %v5465_v13, %v5425_v6  ;;  %v12163_v60 = vld [vmem:[#allocation2 + $0x24] sm:$0xff]   ;;  %vm5447_vm5 = vcmp.ge.f32.partialorder %v14937_v29, 0.0 }
 0x4b0   : > { %v5565_v37 = vadd.f32 %v5545_v38, %v5485_v50  ;;  %v5605_v45 = vadd.f32 %v5585_v49, %v5425_v6  ;;  %v14958_v38 = vld [vmem:[#allocation2 + $0x24] sm:$0xff]  ;;  %v6323_v6 = vshrl.u32 %v14926_v47, 16 }
 0x4b1   : > { %v5367_v59 = vsub.f32 0.0, %v5347_v8  ;;  %v6327_v13 = vshll.u32 %v14958_v38, 16 }
 0x4b2   : > { %v12554_v30 = vpop.eup %12553  ;;  %6168 = vmatmul.bf16.gmra.mxu2 %v6032_v22  ;;  %6781 = vmatmul.bf16.gmra.mxu0 %v6032_v22  ;;  %v5625_v33 = vsel %vm5445_vm3, %v5565_v37, %v5605_v45  ;;  %v5525_v22 = vsel %vm5445_vm3, %v5485_v50, %v5505_v58  ;;  %v6325_v45 = vor.u32 %v6323_v6, %v6321_v2 }
 0x4b3   : > { %v5684_v0 = vmul.f32 %v12554_v30, %v5644_v26  ;;  %v12556_v16 = vpop.eup %12555  ;;  %v5400_v63 = vmul.f32 1.442695, %v5367_v59  ;;  %v6037_v30 = vshll.u32 %v14913_v19, 16  ;;  %v14970_v47 = vrot.slane %v6327_v13, 1 }
 0x4b4   : > { %v5319_v32 = vpop.f32.mrf.mxu0  ;;  %v5426_v10 = vmul.f32 %v12556_v16, %v12556_v16  ;;  %v5466_v21 = vmul.f32 2.0, %v12556_v16 }
 0x4b5   : > { %v5704_v11 = vmul.f32 %v5684_v0, %v13603_v7  ;;  %v14952_v5 = vadd.f32 %v14667_v9, %v5319_v32  ;;  %12557 = vpow2.f32 %v5400_v63  ;;  %v6036_v0 = vrot.slane %v6034_v41, 3 }
 0x4b6   : > { %v5486_v35 = vadd.f32 1.0, %v5466_v21  ;;  %v5546_v26 = vmul.f32 2.0, %v5426_v10  ;;  %v5586_v14 = vadd.f32 2.0, %v5466_v21  ;;  %12559 = vrcp.f32 %v5625_v33  ;;  %5945 = vmatmul.bf16.gmra.mxu1 %v12163_v60 }
 0x4b7   : > { %v14947_v54 = vpack.c.bf16 %v5704_v11, %v5703_v18  ;;  %v5348_v31 = vand.u32 2147483647, %v14952_v5  ;;  %v5506_v49 = vadd.f32 %v5466_v21, %v5426_v10  ;;  %v6039_v11 = vrot.slane %v6037_v30, 4 }
 0x4b8   : > { %v5566_v40 = vadd.f32 %v5546_v26, %v5486_v35  ;;  %v5606_v44 = vadd.f32 %v5586_v14, %v5426_v10  ;;  %v5645_v33 = vmul.f32 %v5525_v22, %v14897_v12  ;;  %v6330_v26 = vsel %vm2795_vm15, %v6325_v45, %v14970_v47 }
 0x4b9   : > { %11832 = vst [vmem:[#allocation2 + $0x30] sm:$0xff] %v14947_v54   ;;  %v5368_v56 = vsub.f32 0.0, %v5348_v31  ;;  %v14968_v59 = vor.u32 %v6039_v11, %v6036_v0  ;;  %v5526_v63 = vsel %vm5446_vm4, %v5486_v35, %v5506_v49  ;;  %vm5448_vm6 = vcmp.ge.f32.partialorder %v14952_v5, 0.0 }
 0x4ba   : > { %v5626_v8 = vsel %vm5446_vm4, %v5566_v40, %v5606_v44  ;;  %v5646_v35 = vmul.f32 %v5526_v63, %v14917_v42  ;;  %v14991_v42 = vld [vmem:[%s15890_s5 + $0x1] ss:$0 sm:$0xff] }
 0x4bb   : > { %v12558_v4 = vpop.eup %12557  ;;  %v5402_v18 = vmul.f32 1.442695, %v5368_v56  ;;  %12561 = vrcp.f32 %v5626_v8  ;;  %v6041_v2 = vsel %vm2488_vm10, %v14934_v61, %v14968_v59 }
 0x4bc   : > { %v5321_v57 = vpop.f32.mrf.mxu0  ;;  %v5427_v37 = vmul.f32 %v12558_v4, %v12558_v4  ;;  %v5467_v19 = vmul.f32 2.0, %v12558_v4  ;;  %v12560_v50 = vpop.eup %12559 }
 0x4bd   : > { %12563 = vpow2.f32 %v5402_v18  ;;  %v14973_v16 = vadd.f32 %v14667_v9, %v5321_v57  ;;  %v5685_v31 = vmul.f32 %v12560_v50, %v5645_v33  ;;  %v6043_v33 = vshrl.u32 %v14947_v54, 16 }
 0x4be   : > { %v5487_v32 = vadd.f32 1.0, %v5467_v19  ;;  %v5547_v10 = vmul.f32 2.0, %v5427_v37  ;;  %v5587_v21 = vadd.f32 2.0, %v5467_v19  ;;  %6460 = vmatmul.bf16.gmra.mxu3 %v6330_v26  ;;  %v5507_v56 = vadd.f32 %v5467_v19, %v5427_v37 }
 0x4bf   : > { %v5349_v58 = vand.u32 2147483647, %v14973_v16  ;;  %v5705_v13 = vmul.f32 %v5685_v31, %v13663_v52  ;;  %vm5449_vm7 = vcmp.ge.f32.partialorder %v14973_v16, 0.0 }
 0x4c0   : > { %v5567_v9 = vadd.f32 %v5547_v10, %v5487_v32  ;;  %v5607_v14 = vadd.f32 %v5587_v21, %v5427_v37  ;;  %v5527_v57 = vsel %vm5447_vm5, %v5487_v32, %v5507_v56  ;;  %v12165_v10 = vld [vmem:[#allocation2 + $0x2c] sm:$0xff]   ;;  %v10965_v21 = vld [vmem:[%s15891_s6 + $0x358] sm:$0xff] }
 0x4c1   : > { %v5369_v40 = vsub.f32 0.0, %v5349_v58  ;;  %v12562_v12 = vpop.eup %12561  ;;  %v5647_v26 = vmul.f32 %v5527_v57, %v14937_v29  ;;  %6931 = vmatpush.bf16.msra.mxu1 %v10965_v21  ;;  %v6331_v29 = vshrl.u32 %v14958_v38, 16 }
 0x4c2   : > { %6173 = vmatmul.bf16.gmra.mxu2 %v6041_v2  ;;  %v5627_v41 = vsel %vm5447_vm5, %v5567_v9, %v5607_v14  ;;  %6786 = vmatmul.bf16.gmra.mxu0 %v6041_v2  ;;  %v5686_v44 = vmul.f32 %v12562_v12, %v5646_v35  ;;  %v6046_v2 = vshll.u32 %v14947_v54, 16  ;;  %v15013_v9 = vld [vmem:[#allocation2 + $0x2c] sm:$0xff]  ;;  %v6045_v35 = vrot.slane %v6043_v33, 3 }
 0x4c3   : > { %v12564_v61 = vpop.eup %12563  ;;  %v5404_v60 = vmul.f32 1.442695, %v5369_v40  ;;  %12565 = vrcp.f32 %v5627_v41  ;;  %v6335_v56 = vshll.u32 %v15013_v9, 16 }
 0x4c4   : > { %v5324_v30 = vpop.f32.mrf.mxu0  ;;  %v5428_v49 = vmul.f32 %v12564_v61, %v12564_v61  ;;  %v5468_v0 = vmul.f32 2.0, %v12564_v61  ;;  %v5706_v4 = vmul.f32 %v5686_v44, %v15947_v53  ;;  %v6048_v40 = vrot.slane %v6046_v2, 4 }
 0x4c5   : > { %v14994_v6 = vadd.f32 %v14991_v42, %v5324_v30  ;;  %12567 = vpow2.f32 %v5404_v60 }
 0x4c6   : > { %v5488_v22 = vadd.f32 1.0, %v5468_v0  ;;  %v5548_v8 = vmul.f32 2.0, %v5428_v49  ;;  %v5588_v18 = vadd.f32 2.0, %v5468_v0  ;;  %v14998_v11 = vpack.c.bf16 %v5706_v4, %v5705_v13  ;;  %5950 = vmatmul.bf16.gmra.mxu1 %v12165_v10 }
 0x4c7   : > { %v5350_v37 = vand.u32 2147483647, %v14994_v6  ;;  %v5508_v19 = vadd.f32 %v5468_v0, %v5428_v49  ;;  %v15018_v44 = vor.u32 %v6048_v40, %v6045_v35  ;;  %vm5450_vm8 = vcmp.ge.f32.partialorder %v14994_v6, 0.0 }
 0x4c8   : > { %v5568_v45 = vadd.f32 %v5548_v8, %v5488_v22  ;;  %v5608_v50 = vadd.f32 %v5588_v18, %v5428_v49  ;;  %11833 = vst [vmem:[#allocation2 + $0x38] sm:$0xff] %v14998_v11   ;;  %v6337_v8 = vrot.slane %v6335_v56, 1  ;;  %v6055_v56 = vshll.u32 %v14998_v11, 16 }
 0x4c9   : > { %v5370_v63 = vsub.f32 0.0, %v5350_v37  ;;  %v12566_v32 = vpop.eup %12565  ;;  %v5528_v41 = vsel %vm5448_vm6, %v5488_v22, %v5508_v19  ;;  %v6050_v4 = vsel %vm2488_vm10, %v14968_v59, %v15018_v44  ;;  %v6333_v22 = vor.u32 %v6331_v29, %v14970_v47 }
 0x4ca   : > { %v5628_v58 = vsel %vm5448_vm6, %v5568_v45, %v5608_v50  ;;  %v5687_v30 = vmul.f32 %v12566_v32, %v5647_v26  ;;  %v5648_v18 = vmul.f32 %v5528_v41, %v14952_v5  ;;  %v6052_v29 = vshrl.u32 %v14998_v11, 16 }
 0x4cb   : > { %v12568_v14 = vpop.eup %12567  ;;  %12569 = vrcp.f32 %v5628_v58  ;;  %v5406_v31 = vmul.f32 1.442695, %v5370_v63  ;;  %v6338_v45 = vsel %vm2795_vm15, %v6333_v22, %v6337_v8 }
 0x4cc   : > { %v5326_v12 = vpop.f32.mrf.mxu0  ;;  %v5429_v61 = vmul.f32 %v12568_v14, %v12568_v14  ;;  %v5469_v54 = vmul.f32 2.0, %v12568_v14  ;;  %v5707_v59 = vmul.f32 %v5687_v30, %v15949_v1  ;;  %v6054_v22 = vrot.slane %v6052_v29, 3 }
 0x4cd   : > { %12571 = vpow2.f32 %v5406_v31  ;;  %v15022_v60 = vadd.f32 %v14991_v42, %v5326_v12 }
 0x4ce   : > { %v5489_v49 = vadd.f32 1.0, %v5469_v54  ;;  %v5549_v0 = vmul.f32 2.0, %v5429_v61  ;;  %v5589_v13 = vadd.f32 2.0, %v5469_v54  ;;  %6465 = vmatmul.bf16.gmra.mxu3 %v6338_v45  ;;  %v5509_v35 = vadd.f32 %v5469_v54, %v5429_v61 }
 0x4cf   : > { %v5351_v38 = vand.u32 2147483647, %v15022_v60  ;;  %v15045_v30 = vld [vmem:[#allocation2 + $0x34] sm:$0xff]  ;;  %vm5451_vm9 = vcmp.ge.f32.partialorder %v15022_v60, 0.0 }
 0x4d0   : > { %v5569_v37 = vadd.f32 %v5549_v0, %v5489_v49  ;;  %v5609_v19 = vadd.f32 %v5589_v13, %v5429_v61  ;;  %v10964_v0 = vld [vmem:[%s15891_s6 + $0x350] sm:$0xff] }
 0x4d1   : > { %v12570_v57 = vpop.eup %12569  ;;  %v5371_v50 = vsub.f32 0.0, %v5351_v38  ;;  %v6057_v38 = vrot.slane %v6055_v56, 4  ;;  %6932 = vmatpush.bf16.msra.mxu1 %v10964_v0 }
 0x4d2   : > { %6178 = vmatmul.bf16.gmra.mxu2 %v6050_v4  ;;  %v5688_v63 = vmul.f32 %v12570_v57, %v5648_v18  ;;  %6791 = vmatmul.bf16.gmra.mxu0 %v6050_v4  ;;  %v5629_v26 = vsel %vm5449_vm7, %v5569_v37, %v5609_v19  ;;  %v12167_v4 = vld [vmem:[#allocation2 + $0x34] sm:$0xff]   ;;  %v6339_v18 = vshrl.u32 %v15013_v9, 16  ;;  %v6343_v57 = vshll.u32 %v15045_v30, 16 }
 0x4d3   : > { %v12572_v10 = vpop.eup %12571  ;;  %v5408_v47 = vmul.f32 1.442695, %v5371_v50  ;;  %v5529_v37 = vsel %vm5449_vm7, %v5489_v49, %v5509_v35 }
 0x4d4   : > { %v5708_v33 = vmul.f32 %v5688_v63, %v15953_v20  ;;  %v5430_v5 = vmul.f32 %v12572_v10, %v12572_v10  ;;  %v5470_v2 = vmul.f32 2.0, %v12572_v10  ;;  %v15059_v9 = vrot.slane %v6343_v57, 1  ;;  %v10962_v57 = vld [vmem:[%s15891_s6 + $0x340] sm:$0xff] }
 0x4d5   : > { %v5329_v21 = vpop.f32.mrf.mxu0  ;;  %12573 = vpow2.f32 %v5408_v47  ;;  %v15057_v47 = vor.u32 %v6057_v38, %v6054_v22 }
 0x4d6   : > { %v15035_v32 = vadd.f32 %v14991_v42, %v5329_v21  ;;  %v15039_v58 = vpack.c.bf16 %v5708_v33, %v5707_v59  ;;  %v5490_v14 = vadd.f32 1.0, %v5470_v2  ;;  %v5550_v31 = vmul.f32 2.0, %v5430_v5  ;;  %5955 = vmatmul.bf16.gmra.mxu1 %v12167_v4 }
 0x4d7   : > { %v5590_v40 = vadd.f32 2.0, %v5470_v2  ;;  %12575 = vrcp.f32 %v5629_v26  ;;  %v5510_v61 = vadd.f32 %v5470_v2, %v5430_v5  ;;  %v6341_v59 = vor.u32 %v6339_v18, %v6337_v8  ;;  %v10987_v18 = vld [vmem:[%s15891_s6 + $0x3b8] sm:$0xff] }
 0x4d8   : > { %v5352_v12 = vand.u32 2147483647, %v15035_v32  ;;  %11834 = vst [vmem:[#allocation2 + $0x40] sm:$0xff] %v15039_v58   ;;  %v5570_v41 = vadd.f32 %v5550_v31, %v5490_v14  ;;  %v5649_v31 = vmul.f32 %v5529_v37, %v14973_v16  ;;  %v6059_v8 = vsel %vm2488_vm10, %v15018_v44, %v15057_v47  ;;  %7239 = vmatpush.bf16.msra.mxu2 %v10987_v18 }
 0x4d9   : > { %v5610_v54 = vadd.f32 %v5590_v40, %v5430_v5  ;;  %v5530_v49 = vsel %vm5450_vm8, %v5490_v14, %v5510_v61  ;;  %v6346_v35 = vsel %vm2795_vm15, %v6341_v59, %v15059_v9  ;;  %v10963_v14 = vld [vmem:[%s15891_s6 + $0x348] sm:$0xff]  ;;  %v6061_v44 = vshrl.u32 %v15039_v58, 16 }
 0x4da   : > { %v5372_v13 = vsub.f32 0.0, %v5352_v12  ;;  %v5650_v29 = vmul.f32 %v5530_v49, %v14994_v6  ;;  %6933 = vmatpush.bf16.msra.mxu1 %v10963_v14  ;;  %vm5452_vm11 = vcmp.ge.f32.partialorder %v15035_v32, 0.0  ;;  %v6347_v14 = vshrl.u32 %v15045_v30, 16 }
 0x4db   : > { %v12574_v11 = vpop.eup %12573  ;;  %v5630_v19 = vsel %vm5450_vm8, %v5570_v41, %v5610_v54  ;;  %v6063_v59 = vrot.slane %v6061_v44, 3 }
 0x4dc   : > { %v5410_v45 = vmul.f32 1.442695, %v5372_v13  ;;  %12577 = vrcp.f32 %v5630_v19  ;;  %v5431_v63 = vmul.f32 %v12574_v11, %v12574_v11  ;;  %v5471_v10 = vmul.f32 2.0, %v12574_v11 }
 0x4dd   : > { %v5331_v50 = vpop.f32.mrf.mxu0  ;;  %v12576_v33 = vpop.eup %12575  ;;  %v6064_v13 = vshll.u32 %v15039_v58, 16 }
 0x4de   : > { %12579 = vpow2.f32 %v5410_v45  ;;  %v15062_v21 = vadd.f32 %v14991_v42, %v5331_v50  ;;  %v5491_v5 = vadd.f32 1.0, %v5471_v10  ;;  %v5551_v2 = vmul.f32 2.0, %v5431_v63  ;;  %6470 = vmatmul.bf16.gmra.mxu3 %v6346_v35  ;;  %6934 = vmatpush.bf16.msra.mxu1 %v10962_v57 }
 0x4df   : > { %v5591_v26 = vadd.f32 2.0, %v5471_v10  ;;  %v5689_v41 = vmul.f32 %v12576_v33, %v5649_v31  ;;  %v15080_v4 = vld [vmem:[#allocation2 + $0x3c] sm:$0xff]  ;;  %v5511_v37 = vadd.f32 %v5471_v10, %v5431_v63  ;;  %v10986_v33 = vld [vmem:[%s15891_s6 + $0x3b0] sm:$0xff] }
 0x4e0   : > { %v5353_v40 = vand.u32 2147483647, %v15062_v21  ;;  %v5571_v42 = vadd.f32 %v5551_v2, %v5491_v5  ;;  %v6066_v2 = vrot.slane %v6064_v13, 4  ;;  %v12169_v10 = vld [vmem:[#allocation2 + $0x3c] sm:$0xff]   ;;  %7240 = vmatpush.bf16.msra.mxu2 %v10986_v33  ;;  %vm5453_vm12 = vcmp.ge.f32.partialorder %v15062_v21, 0.0 }
 0x4e1   : > { %v5611_v12 = vadd.f32 %v5591_v26, %v5431_v63  ;;  %v5709_v11 = vmul.f32 %v5689_v41, %v15954_v25  ;;  %v6351_v26 = vshll.u32 %v15080_v4, 16  ;;  %v5531_v35 = vsel %vm5451_vm9, %v5491_v5, %v5511_v37  ;;  %v10984_v37 = vld [vmem:[%s15891_s6 + $0x3a0] sm:$0xff] }
 0x4e2   : > { %6183 = vmatmul.bf16.gmra.mxu2 %v6059_v8  ;;  %v5373_v16 = vsub.f32 0.0, %v5353_v40  ;;  %v12578_v56 = vpop.eup %12577  ;;  %6796 = vmatmul.bf16.gmra.mxu0 %v6059_v8  ;;  %v12109_v25 = vld [vmem:[#allocation2 + $0x3c] sm:$0xff]  }
 0x4e3   : > { %v5690_v61 = vmul.f32 %v12578_v56, %v5650_v29  ;;  %v5631_v22 = vsel %vm5451_vm9, %v5571_v42, %v5611_v12  ;;  %v15102_v12 = vor.u32 %v6066_v2, %v6063_v59  ;;  %v15105_v41 = vrot.slane %v6351_v26, 1 }
 0x4e4   : > { %v12580_v0 = vpop.eup %12579  ;;  %v5412_v54 = vmul.f32 1.442695, %v5373_v16 }
 0x4e5   : > { %v5432_v6 = vmul.f32 %v12580_v0, %v12580_v0  ;;  %v5472_v38 = vmul.f32 2.0, %v12580_v0  ;;  %v5710_v58 = vmul.f32 %v5690_v61, %v15955_v17  ;;  %v6349_v0 = vor.u32 %v6347_v14, %v15059_v9  ;;  %v11002_v14 = vld [vmem:[%s15891_s6 + $0x430] sm:$0xff] }
 0x4e6   : > { %12581 = vpow2.f32 %v5412_v54  ;;  %5960 = vmatmul.bf16.gmra.mxu1 %v12169_v10  ;;  %v5651_v61 = vmul.f32 %v5531_v35, %v15022_v60 }
 0x4e7   : > { %v5492_v19 = vadd.f32 1.0, %v5472_v38  ;;  %v5552_v45 = vmul.f32 2.0, %v5432_v6  ;;  %v5592_v50 = vadd.f32 2.0, %v5472_v38  ;;  %v15095_v49 = vpack.c.bf16 %v5710_v58, %v5709_v11 }
 0x4e8   : > { %12583 = vrcp.f32 %v5631_v22  ;;  %v5512_v63 = vadd.f32 %v5472_v38, %v5432_v6  ;;  %v6068_v22 = vsel %vm2488_vm10, %v15057_v47, %v15102_v12  ;;  %v6354_v30 = vsel %vm2795_vm15, %v6349_v0, %v15105_v41  ;;  %v10993_v0 = vld [vmem:[%s15891_s6 + $0x3e8] sm:$0xff] }
 0x4e9   : > { %v5572_v31 = vadd.f32 %v5552_v45, %v5492_v19  ;;  %v5612_v8 = vadd.f32 %v5592_v50, %v5432_v6  ;;  %11835 = vst [vmem:[#allocation2 + $0x48] sm:$0xff] %v15095_v49   ;;  %v10985_v6 = vld [vmem:[%s15891_s6 + $0x3a8] sm:$0xff]  ;;  %v6070_v45 = vshrl.u32 %v15095_v49, 16  ;;  %v6073_v50 = vshll.u32 %v15095_v49, 16 }
 0x4ea   : > { %v5532_v44 = vsel %vm5452_vm11, %v5492_v19, %v5512_v63  ;;  %7241 = vmatpush.bf16.msra.mxu2 %v10985_v6  ;;  %v11003_v19 = vld [vmem:[%s15891_s6 + $0x438] sm:$0xff] }
 0x4eb   : > { %v5632_v40 = vsel %vm5452_vm11, %v5572_v31, %v5612_v8  ;;  %v5652_v18 = vmul.f32 %v5532_v44, %v15035_v32  ;;  %v10995_v32 = vld [vmem:[%s15891_s6 + $0x3f8] sm:$0xff]  ;;  %7729 = vmatpush.bf16.msrb.mxu0 %v11003_v19  ;;  %v6072_v63 = vrot.slane %v6070_v45, 3  ;;  %v6075_v10 = vrot.slane %v6073_v50, 4  ;;  %v10982_v44 = vld [vmem:[%s15891_s6 + $0x390] sm:$0xff] }
 0x4ec   : > { %v12582_v42 = vpop.eup %12581  ;;  %12585 = vrcp.f32 %v5632_v40  ;;  %7565 = vmatpush.bf16.msrb.mxu3 %v10995_v32  ;;  %v10983_v40 = vld [vmem:[%s15891_s6 + $0x398] sm:$0xff] }
 0x4ed   : > { %v5433_v29 = vmul.f32 %v12582_v42, %v12582_v42  ;;  %v5473_v16 = vmul.f32 2.0, %v12582_v42  ;;  %v10994_v42 = vld [vmem:[%s15891_s6 + $0x3f0] sm:$0xff]  ;;  %v10991_v50 = vld [vmem:[%s15891_s6 + $0x3d8] sm:$0xff] }
 0x4ee   : > { %v12584_v56 = vpop.eup %12583  ;;  %6475 = vmatmul.bf16.gmra.mxu3 %v6354_v30  ;;  %7242 = vmatpush.bf16.msra.mxu2 %v10984_v37 }
 0x4ef   : > { %v5493_v5 = vadd.f32 1.0, %v5473_v16  ;;  %v5553_v54 = vmul.f32 2.0, %v5433_v29  ;;  %v5593_v13 = vadd.f32 2.0, %v5473_v16  ;;  %v5691_v38 = vmul.f32 %v12584_v56, %v5651_v61  ;;  %7730 = vmatpush.bf16.msrb.mxu0 %v11002_v14 }
 0x4f0   : > { %v5513_v11 = vadd.f32 %v5473_v16, %v5433_v29  ;;  %v15132_v59 = vld [vmem:[#allocation2 + $0x44] sm:$0xff]  ;;  %7566 = vmatpush.bf16.msrb.mxu3 %v10994_v42 }
 0x4f1   : > { %v5573_v9 = vadd.f32 %v5553_v54, %v5493_v5  ;;  %v5613_v57 = vadd.f32 %v5593_v13, %v5433_v29  ;;  %v5711_v33 = vmul.f32 %v5691_v38, %v15956_v51  ;;  %v6359_v35 = vshll.u32 %v15132_v59, 16  ;;  %v12170_v56 = vld [vmem:[#allocation2 + $0x44] sm:$0xff]  }
 0x4f2   : > { %6188 = vmatmul.bf16.gmra.mxu2 %v6068_v22  ;;  %v12586_v60 = vpop.eup %12585  ;;  %6801 = vmatmul.bf16.gmra.mxu0 %v6068_v22  ;;  %v5533_v31 = vsel %vm5453_vm12, %v5493_v5, %v5513_v11  ;;  %v11001_v5 = vld [vmem:[%s15891_s6 + $0x428] sm:$0xff]  ;;  %v6355_v54 = vshrl.u32 %v15080_v4, 16  ;;  %v11000_v11 = vld [vmem:[%s15891_s6 + $0x420] sm:$0xff] }
 0x4f3   : > { %v5692_v58 = vmul.f32 %v12586_v60, %v5652_v18  ;;  %v5633_v47 = vsel %vm5453_vm12, %v5573_v9, %v5613_v57  ;;  %v5926_v26 = vpop.f32.mrf.mxu1  ;;  %v5653_v29 = vmul.f32 %v5533_v31, %v15062_v21  ;;  %7243 = vmatpush.bf16.msra.mxu2 %v10983_v40  ;;  %v15161_v21 = vor.u32 %v6075_v10, %v6072_v63  ;;  %v10981_v4 = vld [vmem:[%s15891_s6 + $0x388] sm:$0xff] }
 0x4f4   : > { %12587 = vrcp.f32 %v5633_v47  ;;  %v6361_v13 = vrot.slane %v6359_v35, 1  ;;  %v6357_v6 = vor.u32 %v6355_v54, %v15105_v41  ;;  %7567 = vmatpush.bf16.msrb.mxu3 %v10993_v0  ;;  %7731 = vmatpush.bf16.msrb.mxu0 %v11001_v5  ;;  %v10992_v41 = vld [vmem:[%s15891_s6 + $0x3e0] sm:$0xff]  ;;  %v11463_v35 = vunpack.c.h.b16 %v15095_v49  ;;  %v10998_v0 = vld [vmem:[%s15891_s6 + $0x410] sm:$0xff] }
 0x4f5   : > { %v5712_v2 = vmul.f32 %v5692_v58, %v15957_v3  ;;  %v6077_v18 = vsel %vm2488_vm10, %v15102_v12, %v15161_v21  ;;  %v11021_v12 = vld [vmem:[%s15891_s6 + $0x478] sm:$0xff]  ;;  %v10980_v47 = vld [vmem:[%s15891_s6 + $0x380] sm:$0xff]  ;;  %v6363_v5 = vshrl.u32 %v15132_v59, 16 }
 0x4f6   : > { %5965 = vmatmul.bf16.gmra.mxu1 %v12170_v56  ;;  %v6362_v9 = vsel %vm2795_vm15, %v6357_v6, %v6361_v13  ;;  %v12111_v53 = vld [vmem:[#allocation2 + $0x44] sm:$0xff]  }
 0x4f7   : > { %v15138_v8 = vpack.c.bf16 %v5712_v2, %v5711_v33  ;;  %7244 = vmatpush.bf16.msra.mxu2 %v10982_v44  ;;  %v10999_v33 = vld [vmem:[%s15891_s6 + $0x418] sm:$0xff]  ;;  %8041 = vmatpush.bf16.msrb.mxu1 %v11021_v12 }
 0x4f8   : > { %7568 = vmatpush.bf16.msrb.mxu3 %v10992_v41  ;;  %7732 = vmatpush.bf16.msrb.mxu0 %v11000_v11 }
 0x4f9   : > { %11836 = vst [vmem:[#allocation2 + $0x50] sm:$0xff] %v15138_v8   ;;  %v6688_v19 = vshrl.u32 %v15138_v8, 16  ;;  %v6691_v45 = vshll.u32 %v15138_v8, 16 }
 0x4fa   : > { %v12588_v16 = vpop.eup %12587 }
 0x4fb   : > { %v5693_v61 = vmul.f32 %v12588_v16, %v5653_v29  ;;  %v5928_v30 = vpop.f32.mrf.mxu1  ;;  %7245 = vmatpush.bf16.msra.mxu2 %v10981_v4  ;;  %v6690_v16 = vrot.slane %v6688_v19, 3  ;;  %v6693_v56 = vrot.slane %v6691_v45, 4  ;;  %v6365_v4 = vor.u32 %v6363_v5, %v6361_v13  ;;  %v10996_v13 = vld [vmem:[%s15891_s6 + $0x400] sm:$0xff]  ;;  %v11020_v19 = vld [vmem:[%s15891_s6 + $0x470] sm:$0xff] }
 0x4fc   : > { %7569 = vmatpush.bf16.msrb.mxu3 %v10991_v50  ;;  %7733 = vmatpush.bf16.msrb.mxu0 %v10999_v33 }
 0x4fd   : > { %v5713_v22 = vmul.f32 %v5693_v61, %v15958_v46  ;;  %8042 = vmatpush.bf16.msrb.mxu1 %v11020_v19 }
 0x4fe   : > { %6480 = vmatmul.bf16.gmra.mxu3 %v6362_v9 }
 0x4ff   : > { %v5733_v38 = vpack.c.bf16 %v5713_v22, %v5713_v22  ;;  %7246 = vmatpush.bf16.msra.mxu2 %v10980_v47  ;;  %v6694_v22 = vor.u32 %v6693_v56, %v6690_v16 }
 0x500   : > { %v5774_v57 = vld [vmem:[#allocation2 + $0x50] sm:$0xf]  ;;  %7734 = vmatpush.bf16.msrb.mxu0 %v10998_v0 }
 0x501   : > { %5753 = vst [vmem:[#allocation2 + $0x58] sm:$0xf] %v5733_v38  ;;  %v5848_v60 = vunpack.c.l.b16 %v5774_v57  ;;  %v15185_v32 = vld [vmem:[#allocation2 + $0x4c] sm:$0xff]  ;;  %v6695_v11 = vsel %vm2488_vm10, %v15161_v21, %v6694_v22 }
 0x502   : > { %6193 = vmatmul.bf16.gmra.mxu2 %v6077_v18  ;;  %6806 = vmatmul.bf16.gmra.mxu0 %v6077_v18  ;;  %v6367_v29 = vshll.u32 %v15185_v32, 16  ;;  %v10989_v38 = vld [vmem:[%s15891_s6 + $0x3c8] sm:$0xff]  ;;  %v6371_v5 = vshrl.u32 %v15185_v32, 16 }
 0x503   : > { %v5988_v58 = vpack.c.b16 %v5848_v60, %v5848_v60  ;;  %v5931_v31 = vpop.f32.mrf.mxu1  ;;  %v5858_v14 = vpack.c.b16 %v5848_v60, %v11463_v35  ;;  %v10997_v57 = vld [vmem:[%s15891_s6 + $0x408] sm:$0xff]  ;;  %v6224_v60 = vld [vmem:[#allocation2 + $0x54] sm:$0x1] }
 0x504   : > { %v6369_v54 = vrot.slane %v6367_v29, 1  ;;  %7735 = vmatpush.bf16.msrb.mxu0 %v10997_v57  ;;  %v6283_v47 = vunpack.c.l.b16 %v6224_v60  ;;  %v7318_v60 = vld [vmem:[#allocation2 + $0x10] sm:$0x8] }
 0x505   : > { %v6154_v37 = vpop.f32.mrf.mxu2  ;;  %v6079_v63 = vshrl.u32 %v5988_v58, 16  ;;  %v6082_v10 = vshll.u32 %v5988_v58, 16 }
 0x506   : > { %v6155_v2 = vadd.f32 %v6154_v37, %v5926_v26  ;;  %v10990_v26 = vld [vmem:[%s15891_s6 + $0x3d0] sm:$0xff]  ;;  %5970 = vmatmul.bf16.gmra.mxu1 %v5858_v14  ;;  %v6370_v41 = vsel %vm2795_vm15, %v6365_v4, %v6369_v54  ;;  %v6294_v14 = vpack.c.b16 %v6283_v47, %v6283_v47 }
 0x507   : > { %v6081_v40 = vrot.slane %v6079_v63, 3  ;;  %v6084_v42 = vrot.slane %v6082_v10, 4  ;;  %7570 = vmatpush.bf16.msrb.mxu3 %v10990_v26  ;;  %v10970_v37 = vld [vmem:[#allocation2 + $0xc] sm:$0xff]  ;;  %v15230_v63 = vld [vmem:[#allocation2 + $0x14] sm:$0xff] }
 0x508   : > { %v6536_v44 = vld [vmem:[#allocation2 + $0x58] sm:$0xf]  ;;  %7736 = vmatpush.bf16.msrb.mxu0 %v10996_v13  ;;  %v7100_v29 = vshll.u32 %v10970_v37, 16  ;;  %v7105_v56 = vshll.u32 %v15230_v63, 16  ;;  %v6375_v0 = vshll.u32 %v6294_v14, 16  ;;  %v7098_v57 = vshrl.u32 %v10970_v37, 16 }
 0x509   : > { %v6085_v49 = vor.u32 %v6084_v42, %v6081_v40  ;;  %v15204_v6 = vunpack.c.l.b16 %v6536_v44  ;;  %v12754_v40 = vld [vmem:[#allocation2 + $0x10] sm:$0xff] }
 0x50a   : > { %v11466_v42 = vunpack.c.l.b16 %v12754_v40  ;;  %v7107_v4 = vrot.slane %v7105_v56, 1  ;;  %v12085_v56 = vld [vmem:[#allocation2 + $0x14] sm:$0xff]  }
 0x50b   : > { %v5933_v9 = vpop.f32.mrf.mxu1  ;;  %v6086_v59 = vsel %vm2488_vm10, %v15161_v21, %v6085_v49  ;;  %v6606_v12 = vpack.c.b16 %v15204_v6, %v15204_v6  ;;  %7571 = vmatpush.bf16.msrb.mxu3 %v10989_v38  ;;  %v7102_v49 = vrot.slane %v7100_v29, 1  ;;  %v11019_v29 = vld [vmem:[%s15891_s6 + $0x468] sm:$0xff] }
 0x50c   : > { %v6859_v44 = vpack.c.b16 %v11466_v42, %v6576_v34  ;;  %8043 = vmatpush.bf16.msrb.mxu1 %v11019_v29 }
 0x50d   : > { %v6156_v61 = vpop.f32.mrf.mxu2  ;;  %v6697_v50 = vshrl.u32 %v6606_v12, 16  ;;  %v6700_v33 = vshll.u32 %v6606_v12, 16  ;;  %v6377_v12 = vrot.slane %v6375_v0, 1 }
 0x50e   : > { %v6157_v18 = vadd.f32 %v6156_v61, %v5928_v30  ;;  %v10988_v30 = vld [vmem:[%s15891_s6 + $0x3c0] sm:$0xff]  ;;  %6485 = vmatmul.bf16.gmra.mxu3 %v6370_v41  ;;  %v7319_v41 = vld [vmem:[#allocation2 + $0x14] sm:$0xf] }
 0x50f   : > { %7572 = vmatpush.bf16.msrb.mxu3 %v10988_v30  ;;  %v6702_v16 = vrot.slane %v6700_v33, 4  ;;  %v7103_v30 = vor.u32 %v7102_v49, %v7098_v57 }
 0x510   : > { %v6446_v58 = vpop.f32.mrf.mxu3 }
 0x511   : > { %v15225_v21 = vadd.f32 %v6446_v58, %v6155_v2  ;;  %v6699_v2 = vrot.slane %v6697_v50, 3  ;;  %v7108_v34 = vsel %vm2795_vm15, %v7103_v30, %v7107_v4  ;;  %v7378_v58 = vunpack.c.l.b16 %v7319_v41 }
 0x512   : > { %6198 = vmatmul.bf16.gmra.mxu2 %v6086_v59  ;;  %6811 = vmatmul.bf16.gmra.mxu0 %v6695_v11  ;;  %v6373_v11 = vor.u32 %v6371_v5, %v6369_v54 }
 0x513   : > { %v5936_v35 = vpop.f32.mrf.mxu1  ;;  %v6703_v38 = vor.u32 %v6702_v16, %v6699_v2 }
 0x514   : > { %v6378_v47 = vsel %vm2795_vm15, %v6373_v11, %v6377_v12 }
 0x515   : > { %v6159_v45 = vpop.f32.mrf.mxu2  ;;  %v6704_v27 = vsel %vm2488_vm10, %v6694_v22, %v6703_v38  ;;  %v15249_v38 = vpop.f32.mrf.mxu0 }
 0x516   : > { %v6160_v10 = vadd.f32 %v6159_v45, %v5931_v31  ;;  %6935 = vmatmul.bf16.vlgmr.msra.gmra.mxu1 %v6859_v44  ;;  %v10972_v45 = vld [vmem:[#allocation2 + $0x1c] sm:$0xff] }
 0x517   : > { %v7113_v14 = vshll.u32 %v10972_v45, 16 }
 0x518   : > { %v6448_v26 = vpop.f32.mrf.mxu3 }
 0x519   : > { %v15235_v61 = vadd.f32 %v6448_v26, %v6157_v18  ;;  %v7377_v18 = vunpack.c.l.b16 %v7318_v60  ;;  %v7115_v5 = vrot.slane %v7113_v14, 1 }
 0x51b   : > { %v5938_v13 = vpop.f32.mrf.mxu1  ;;  %v7398_v54 = vpack.c.b16 %v7378_v58, %v7377_v18  ;;  %v11896_v18 = vld [vmem:[#allocation2 + $0x20] sm:$0xff]  }
 0x51d   : > { %v6161_v31 = vpop.f32.mrf.mxu2  ;;  %v7410_v22 = vshrl.u32 %v7398_v54, 16  ;;  %v7413_v42 = vshll.u32 %v7398_v54, 16 }
 0x51e   : > { %v6162_v59 = vadd.f32 %v6161_v31, %v5933_v9  ;;  %6490 = vmatmul.bf16.gmra.mxu3 %v6378_v47  ;;  %v11895_v9 = vld [vmem:[#allocation2 + $0x18] sm:$0xff]   ;;  %v7109_v31 = vshrl.u32 %v15230_v63, 16  ;;  %v10973_v63 = vld [vmem:[#allocation2 + $0x24] sm:$0xff] }
 0x51f   : > { %v7418_v33 = vshrl.u32 %v11895_v9, 16  ;;  %v7421_v40 = vshll.u32 %v11895_v9, 16  ;;  %v7415_v49 = vrot.slane %v7413_v42, 4  ;;  %v11502_v60 = vunpack.c.l.b16 %v11895_v9 }
 0x520   : > { %v6451_v32 = vpop.f32.mrf.mxu3  ;;  %v7111_v11 = vor.u32 %v7109_v31, %v7107_v4  ;;  %v7430_v9 = vshll.u32 %v11896_v18, 16  ;;  %v15255_v4 = vpop.f32.mrf.mxu0  ;;  %v12101_v31 = vld [vmem:[#allocation2 + $0x1c] sm:$0xff]  }
 0x521   : > { %v15241_v37 = vadd.f32 %v6451_v32, %v6160_v10  ;;  %v7420_v26 = vrot.slane %v7418_v33, 3  ;;  %v7423_v10 = vrot.slane %v7421_v40, 4  ;;  %v7121_v33 = vshll.u32 %v10973_v63, 16 }
 0x522   : > { %7247 = vmatmul.bf16.vlgmr.msra.gmra.mxu2 %v7108_v34  ;;  %6816 = vmatmul.bf16.gmra.mxu0 %v6704_v27  ;;  %v7116_v30 = vsel %vm2795_vm15, %v7111_v11, %v7115_v5  ;;  %v7661_v27 = vpack.c.b16 %v11502_v60, %v7378_v58  ;;  %v11018_v58 = vld [vmem:[%s15891_s6 + $0x460] sm:$0xff]  ;;  %v7432_v14 = vrot.slane %v7430_v9, 4 }
 0x523   : > { %v5941_v2 = vpop.f32.mrf.mxu1  ;;  %v7424_v41 = vor.u32 %v7423_v10, %v7420_v26  ;;  %8044 = vmatpush.bf16.msrb.mxu1 %v11018_v58 }
 0x525   : > { %v6164_v19 = vpop.f32.mrf.mxu2 }
 0x526   : > { %v6165_v50 = vadd.f32 %v6164_v19, %v5936_v35  ;;  %6940 = vmatmul.bf16.gmra.mxu1 %v12085_v56  ;;  %v7412_v35 = vrot.slane %v7410_v22, 3  ;;  %v12087_v22 = vld [vmem:[#allocation2 + $0x1c] sm:$0xff]  }
 0x528   : > { %v6453_v16 = vpop.f32.mrf.mxu3  ;;  %v7416_v12 = vor.u32 %v7415_v49, %v7412_v35  ;;  %v15263_v49 = vpop.f32.mrf.mxu0 }
 0x529   : > { %v15246_v44 = vadd.f32 %v6453_v16, %v6162_v59  ;;  %v7123_v16 = vrot.slane %v7121_v33, 1 }
 0x52a   : > { %v7425_v59 = vsel %vm2488_vm10, %v7416_v12, %v7424_v41  ;;  %v11897_v12 = vld [vmem:[#allocation2 + $0x28] sm:$0xff]  }
 0x52b   : > { %v5943_v34 = vpop.f32.mrf.mxu1 }
 0x52d   : > { %v6166_v0 = vpop.f32.mrf.mxu2 }
 0x52e   : > { %v6167_v57 = vadd.f32 %v6166_v0, %v5938_v13  ;;  %7573 = vmatmul.bf16.vlgmr.msrb.gmra.mxu3 %v7425_v59  ;;  %v7427_v13 = vshrl.u32 %v11896_v18, 16  ;;  %v7436_v59 = vshrl.u32 %v11897_v12, 16 }
 0x530   : > { %v7429_v42 = vrot.slane %v7427_v13, 3  ;;  %v7438_v13 = vrot.slane %v7436_v59, 3  ;;  %v15268_v33 = vpop.f32.mrf.mxu0 }
 0x531   : > { %v6456_v19 = vpop.f32.mrf.mxu3 }
 0x532   : > { %7252 = vmatmul.bf16.gmra.mxu2 %v7116_v30  ;;  %7737 = vmatmul.bf16.vlgmr.msrb.gmra.mxu0 %v7661_v27  ;;  %v15253_v54 = vadd.f32 %v6456_v19, %v6165_v50  ;;  %v7433_v10 = vor.u32 %v7432_v14, %v7429_v42  ;;  %v10974_v30 = vld [vmem:[#allocation2 + $0x2c] sm:$0xff]  ;;  %v12089_v19 = vld [vmem:[#allocation2 + $0x24] sm:$0xff]  }
 0x533   : > { %v5946_v40 = vpop.f32.mrf.mxu1  ;;  %v7129_v18 = vshll.u32 %v10974_v30, 16 }
 0x534   : > { %v7434_v11 = vsel %vm2488_vm10, %v7424_v41, %v7433_v10  ;;  %v7125_v41 = vshrl.u32 %v10973_v63, 16  ;;  %v11898_v63 = vld [vmem:[#allocation2 + $0x30] sm:$0xff]  }
 0x535   : > { %v6169_v47 = vpop.f32.mrf.mxu2 }
 0x536   : > { %v6170_v32 = vadd.f32 %v6169_v47, %v5941_v2  ;;  %6945 = vmatmul.bf16.gmra.mxu1 %v12087_v22  ;;  %v7117_v2 = vshrl.u32 %v10972_v45, 16  ;;  %v7131_v22 = vrot.slane %v7129_v18, 1 }
 0x538   : > { %v7119_v0 = vor.u32 %v7117_v2, %v7115_v5  ;;  %v7439_v5 = vshll.u32 %v11897_v12, 16 }
 0x539   : > { %v6458_v56 = vpop.f32.mrf.mxu3 }
 0x53a   : > { %v15260_v26 = vadd.f32 %v6458_v56, %v6167_v57  ;;  %v7124_v35 = vsel %vm2795_vm15, %v7119_v0, %v7123_v16  ;;  %v7441_v9 = vrot.slane %v7439_v5, 4  ;;  %v11017_v56 = vld [vmem:[%s15891_s6 + $0x458] sm:$0xff]  ;;  %v12103_v0 = vld [vmem:[#allocation2 + $0x24] sm:$0xff]  }
 0x53b   : > { %v5948_v60 = vpop.f32.mrf.mxu1  ;;  %8045 = vmatpush.bf16.msrb.mxu1 %v11017_v56 }
 0x53d   : > { %v6171_v29 = vpop.f32.mrf.mxu2 }
 0x53e   : > { %v6172_v50 = vadd.f32 %v6171_v29, %v5943_v34  ;;  %7578 = vmatmul.bf16.gmra.mxu3 %v7434_v11  ;;  %v15277_v11 = vpop.f32.mrf.mxu0 }
 0x541   : > { %v6461_v34 = vpop.f32.mrf.mxu3 }
 0x542   : > { %7257 = vmatmul.bf16.gmra.mxu2 %v7124_v35  ;;  %7742 = vmatmul.bf16.gmra.mxu0 %v12101_v31  ;;  %v15266_v57 = vadd.f32 %v6461_v34, %v6170_v32  ;;  %v7127_v32 = vor.u32 %v7125_v41, %v7123_v16  ;;  %v7448_v34 = vshll.u32 %v11898_v63, 16 }
 0x543   : > { %v5951_v47 = vpop.f32.mrf.mxu1 }
 0x544   : > { %v7132_v2 = vsel %vm2795_vm15, %v7127_v32, %v7131_v22 }
 0x545   : > { %v6174_v45 = vpop.f32.mrf.mxu2 }
 0x546   : > { %v6175_v27 = vadd.f32 %v6174_v45, %v5946_v40  ;;  %6950 = vmatmul.bf16.gmra.mxu1 %v12089_v19  ;;  %v7442_v40 = vor.u32 %v7441_v9, %v7438_v13  ;;  %v7445_v45 = vshrl.u32 %v11898_v63, 16  ;;  %v12091_v19 = vld [vmem:[#allocation2 + $0x2c] sm:$0xff]   ;;  %v7450_v9 = vrot.slane %v7448_v34, 4 }
 0x548   : > { %v7443_v31 = vsel %vm2488_vm10, %v7433_v10, %v7442_v40  ;;  %v7447_v13 = vrot.slane %v7445_v45, 3 }
 0x549   : > { %v6463_v14 = vpop.f32.mrf.mxu3 }
 0x54a   : > { %v15270_v29 = vadd.f32 %v6463_v14, %v6172_v50  ;;  %v10975_v50 = vld [vmem:[#allocation2 + $0x34] sm:$0xff] }
 0x54b   : > { %v5953_v35 = vpop.f32.mrf.mxu1  ;;  %v7137_v5 = vshll.u32 %v10975_v50, 16 }
 0x54d   : > { %v6176_v58 = vpop.f32.mrf.mxu2  ;;  %v7139_v41 = vrot.slane %v7137_v5, 1 }
 0x54e   : > { %v6177_v42 = vadd.f32 %v6176_v58, %v5948_v60  ;;  %7583 = vmatmul.bf16.gmra.mxu3 %v7443_v31  ;;  %v7133_v58 = vshrl.u32 %v10974_v30, 16  ;;  %v12105_v31 = vld [vmem:[#allocation2 + $0x2c] sm:$0xff]  }
 0x54f   : > { %v11016_v30 = vld [vmem:[%s15891_s6 + $0x450] sm:$0xff] }
 0x550   : > { %v7135_v56 = vor.u32 %v7133_v58, %v7131_v22  ;;  %v10976_v22 = vld [vmem:[#allocation2 + $0x3c] sm:$0xff]  ;;  %8046 = vmatpush.bf16.msrb.mxu1 %v11016_v30 }
 0x551   : > { %v6466_v12 = vpop.f32.mrf.mxu3 }
 0x552   : > { %7262 = vmatmul.bf16.gmra.mxu2 %v7132_v2  ;;  %7747 = vmatmul.bf16.gmra.mxu0 %v12103_v0  ;;  %v15279_v59 = vadd.f32 %v6466_v12, %v6175_v27  ;;  %v7451_v2 = vor.u32 %v7450_v9, %v7447_v13  ;;  %v15281_v0 = vpop.f32.mrf.mxu0  ;;  %v7140_v27 = vsel %vm2795_vm15, %v7135_v56, %v7139_v41  ;;  %v11899_v12 = vld [vmem:[#allocation2 + $0x38] sm:$0xff]   ;;  %v7145_v13 = vshll.u32 %v10976_v22, 16 }
 0x553   : > { %v5956_v18 = vpop.f32.mrf.mxu1  ;;  %v7454_v34 = vshrl.u32 %v11899_v12, 16  ;;  %v7457_v5 = vshll.u32 %v11899_v12, 16  ;;  %v12107_v12 = vld [vmem:[#allocation2 + $0x34] sm:$0xff]  }
 0x555   : > { %v6179_v60 = vpop.f32.mrf.mxu2  ;;  %v7456_v58 = vrot.slane %v7454_v34, 3  ;;  %v11900_v34 = vld [vmem:[#allocation2 + $0x40] sm:$0xff]  }
 0x556   : > { %v6180_v16 = vadd.f32 %v6179_v60, %v5951_v47  ;;  %6955 = vmatmul.bf16.gmra.mxu1 %v12091_v19  ;;  %v7452_v60 = vsel %vm2488_vm10, %v7442_v40, %v7451_v2 }
 0x559   : > { %v6468_v32 = vpop.f32.mrf.mxu3 }
 0x55a   : > { %v15283_v47 = vadd.f32 %v6468_v32, %v6177_v42  ;;  %v15292_v9 = vpop.f32.mrf.mxu0  ;;  %v7459_v32 = vrot.slane %v7457_v5, 4  ;;  %v10977_v5 = vld [vmem:[#allocation2 + $0x44] sm:$0xff] }
 0x55b   : > { %v5958_v63 = vpop.f32.mrf.mxu1 }
 0x55d   : > { %v6181_v10 = vpop.f32.mrf.mxu2 }
 0x55e   : > { %v6182_v14 = vadd.f32 %v6181_v10, %v5953_v35  ;;  %7588 = vmatmul.bf16.gmra.mxu3 %v7452_v60  ;;  %v12093_v10 = vld [vmem:[#allocation2 + $0x34] sm:$0xff]  }
 0x561   : > { %v6471_v42 = vpop.f32.mrf.mxu3 }
 0x562   : > { %7267 = vmatmul.bf16.gmra.mxu2 %v7140_v27  ;;  %7752 = vmatmul.bf16.gmra.mxu0 %v12105_v31  ;;  %v15290_v19 = vadd.f32 %v6471_v42, %v6180_v16  ;;  %v7141_v27 = vshrl.u32 %v10975_v50, 16  ;;  %v7147_v31 = vrot.slane %v7145_v13, 1  ;;  %v15298_v51 = vpop.f32.mrf.mxu0 }
 0x563   : > { %v5961_v40 = vpop.f32.mrf.mxu1 }
 0x564   : > { %v7143_v30 = vor.u32 %v7141_v27, %v7139_v41  ;;  %v7466_v41 = vshll.u32 %v11900_v34, 16 }
 0x565   : > { %v6184_v35 = vpop.f32.mrf.mxu2 }
 0x566   : > { %v6185_v45 = vadd.f32 %v6184_v35, %v5956_v18  ;;  %6960 = vmatmul.bf16.gmra.mxu1 %v12093_v10  ;;  %v7460_v18 = vor.u32 %v7459_v32, %v7456_v58  ;;  %v7148_v16 = vsel %vm2795_vm15, %v7143_v30, %v7147_v31  ;;  %v7463_v10 = vshrl.u32 %v11900_v34, 16  ;;  %v11015_v58 = vld [vmem:[%s15891_s6 + $0x448] sm:$0xff] }
 0x567   : > { %v7468_v27 = vrot.slane %v7466_v41, 4  ;;  %8047 = vmatpush.bf16.msrb.mxu1 %v11015_v58  ;;  %v7149_v30 = vshrl.u32 %v10976_v22, 16  ;;  %v11901_v41 = vld [vmem:[#allocation2 + $0x48] sm:$0xff]  }
 0x568   : > { %v7461_v3 = vsel %vm2488_vm10, %v7451_v2, %v7460_v18  ;;  %v12095_v2 = vld [vmem:[#allocation2 + $0x3c] sm:$0xff]  }
 0x569   : > { %v6473_v46 = vpop.f32.mrf.mxu3 }
 0x56a   : > { %v15294_v35 = vadd.f32 %v6473_v46, %v6182_v14  ;;  %v7153_v14 = vshll.u32 %v10977_v5, 16 }
 0x56b   : > { %v5963_v42 = vpop.f32.mrf.mxu1 }
 0x56d   : > { %v6186_v56 = vpop.f32.mrf.mxu2 }
 0x56e   : > { %v6187_v60 = vadd.f32 %v6186_v56, %v5958_v63  ;;  %7593 = vmatmul.bf16.gmra.mxu3 %v7461_v3  ;;  %v7465_v56 = vrot.slane %v7463_v10, 3 }
 0x571   : > { %v6476_v13 = vpop.f32.mrf.mxu3 }
 0x572   : > { %7272 = vmatmul.bf16.gmra.mxu2 %v7148_v16  ;;  %7757 = vmatmul.bf16.gmra.mxu0 %v12107_v12  ;;  %v15300_v46 = vadd.f32 %v6476_v13, %v6185_v45  ;;  %v7155_v16 = vrot.slane %v7153_v14, 1  ;;  %v7469_v45 = vor.u32 %v7468_v27, %v7465_v56  ;;  %v10978_v14 = vld [vmem:[#allocation2 + $0x4c] sm:$0xff] }
 0x573   : > { %v5966_v32 = vpop.f32.mrf.mxu1  ;;  %v7165_v7 = vshrl.u32 %v10978_v14, 16 }
 0x574   : > { %v7470_v10 = vsel %vm2488_vm10, %v7460_v18, %v7469_v45  ;;  %v12097_v18 = vld [vmem:[#allocation2 + $0x44] sm:$0xff]  }
 0x575   : > { %v6189_v50 = vpop.f32.mrf.mxu2 }
 0x576   : > { %v6190_v63 = vadd.f32 %v6189_v50, %v5961_v40  ;;  %6965 = vmatmul.bf16.gmra.mxu1 %v12095_v2  ;;  %v15305_v40 = vpop.f32.mrf.mxu0  ;;  %v7151_v50 = vor.u32 %v7149_v30, %v7147_v31 }
 0x578   : > { %v7156_v17 = vsel %vm2795_vm15, %v7151_v50, %v7155_v16 }
 0x579   : > { %v6478_v34 = vpop.f32.mrf.mxu3 }
 0x57a   : > { %v15307_v13 = vadd.f32 %v6478_v34, %v6187_v60  ;;  %v7161_v60 = vshll.u32 %v10978_v14, 16 }
 0x57b   : > { %v5968_v20 = vpop.f32.mrf.mxu1 }
 0x57c   : > { %v7163_v50 = vrot.slane %v7161_v60, 1 }
 0x57d   : > { %v6191_v3 = vpop.f32.mrf.mxu2 }
 0x57e   : > { %v6192_v12 = vadd.f32 %v6191_v3, %v5963_v42  ;;  %7598 = vmatmul.bf16.gmra.mxu3 %v7470_v10  ;;  %v7472_v42 = vshrl.u32 %v11901_v41, 16  ;;  %v7475_v3 = vshll.u32 %v11901_v41, 16  ;;  %v15311_v56 = vpop.f32.mrf.mxu0 }
 0x580   : > { %v7474_v30 = vrot.slane %v7472_v42, 3 }
 0x581   : > { %v6481_v2 = vpop.f32.mrf.mxu3 }
 0x582   : > { %7277 = vmatmul.bf16.gmra.mxu2 %v7156_v17  ;;  %7762 = vmatmul.bf16.gmra.mxu0 %v12109_v25  ;;  %v15313_v31 = vadd.f32 %v6481_v2, %v6190_v63  ;;  %v11014_v17 = vld [vmem:[%s15891_s6 + $0x440] sm:$0xff]  ;;  %v7477_v25 = vrot.slane %v7475_v3, 4  ;;  %v11902_v3 = vld [vmem:[#allocation2 + $0x50] sm:$0xff]  }
 0x583   : > { %v5971_v27 = vpop.f32.mrf.mxu1  ;;  %8048 = vmatpush.bf16.msrb.mxu1 %v11014_v17 }
 0x584   : > { %v7478_v41 = vor.u32 %v7477_v25, %v7474_v30  ;;  %v7481_v30 = vshrl.u32 %v11902_v3, 16  ;;  %v6822_v25 = vadd.f32 %v15249_v38, %v15225_v21  ;;  %v6823_v21 = vadd.f32 %v15255_v4, %v15235_v61 }
 0x585   : > { %v6194_v22 = vpop.f32.mrf.mxu2  ;;  %v6824_v4 = vadd.f32 %v15263_v49, %v15241_v37 }
 0x586   : > { %v6195_v58 = vadd.f32 %v6194_v22, %v5966_v32  ;;  %6970 = vmatmul.bf16.gmra.mxu1 %v12097_v18  ;;  %v7157_v32 = vshrl.u32 %v10977_v5, 16  ;;  %v15321_v2 = vpop.f32.mrf.mxu0  ;;  %v7479_v42 = vsel %vm2488_vm10, %v7469_v45, %v7478_v41  ;;  %v10979_v5 = vld [vmem:[#allocation2 + $0x54] sm:$0xff]  ;;  %v7483_v45 = vrot.slane %v7481_v30, 3  ;;  %v12113_v30 = vld [vmem:[#allocation2 + $0x4c] sm:$0xff]  }
 0x588   : > { %v7159_v22 = vor.u32 %v7157_v32, %v7155_v16  ;;  %v7484_v16 = vshll.u32 %v11902_v3, 16  ;;  %v7169_v32 = vshll.u32 %v10979_v5, 16 }
 0x589   : > { %v6483_v10 = vpop.f32.mrf.mxu3 }
 0x58a   : > { %v15318_v1 = vadd.f32 %v6483_v10, %v6192_v12  ;;  %v7164_v63 = vsel %vm2795_vm15, %v7159_v22, %v7163_v50 }
 0x58b   : > { %v5973_v52 = vpop.f32.mrf.mxu1 }
 0x58c   : > { %15959 = vst [vmem:[#allocation19_spill] sm:$0xff] %v15318_v1  ;;  %v7026_v1 = vld [vmem:[#allocation2 + $0x5c] sm:$0x1] }
 0x58d   : > { %v6196_v34 = vpop.f32.mrf.mxu2 }
 0x58e   : > { %7603 = vmatmul.bf16.gmra.mxu3 %v7479_v42  ;;  %v7486_v42 = vrot.slane %v7484_v16, 4 }
 0x591   : > { %v6486_v18 = vpop.f32.mrf.mxu3 }
 0x592   : > { %7282 = vmatmul.bf16.gmra.mxu2 %v7164_v63  ;;  %7767 = vmatmul.bf16.gmra.mxu0 %v12111_v53  ;;  %v15324_v12 = vadd.f32 %v6486_v18, %v6195_v58  ;;  %v12098_v63 = vld [vmem:[#allocation2 + $0x4c] sm:$0xff]   ;;  %v15330_v53 = vpop.f32.mrf.mxu0  ;;  %v7487_v58 = vor.u32 %v7486_v42, %v7483_v45  ;;  %v7167_v18 = vor.u32 %v7165_v7, %v7163_v50 }
 0x593   : > { %v6936_v10 = vpop.f32.mrf.mxu1 }
 0x594   : > { %v15328_v22 = vadd.f32 %v6936_v10, %v6822_v25  ;;  %v7085_v25 = vunpack.c.l.b16 %v7026_v1  ;;  %v7488_v10 = vsel %vm2488_vm10, %v7478_v41, %v7487_v58  ;;  %v11499_v1 = vunpack.c.h.b16 %v15138_v8 }
 0x595   : > { %v6199_v17 = vpop.f32.mrf.mxu2 }
 0x596   : > { %v6200_v60 = vadd.f32 %v6199_v17, %v5971_v27  ;;  %6975 = vmatmul.bf16.gmra.mxu1 %v12098_v63  ;;  %v7171_v27 = vrot.slane %v7169_v32, 1  ;;  %v6197_v17 = vadd.f32 %v6196_v34, %v5968_v20  ;;  %v11903_v20 = vld [vmem:[#allocation2 + $0x58] sm:$0xff]   ;;  %v7096_v34 = vpack.c.b16 %v7085_v25, %v7085_v25  ;;  %v7338_v25 = vld [vmem:[#allocation2 + $0x60] sm:$0xf] }
 0x597   : > { %v7490_v32 = vshrl.u32 %v11903_v20, 16  ;;  %v7493_v63 = vshll.u32 %v11903_v20, 16  ;;  %v6868_v42 = vpack.c.b16 %v15204_v6, %v11499_v1  ;;  %v7397_v39 = vunpack.c.l.b16 %v7338_v25  ;;  %v11005_v6 = vld [vmem:[#allocation2 + $0x1c] sm:$0xff] }
 0x598   : > { %v7172_v38 = vsel %vm2795_vm15, %v7167_v18, %v7171_v27  ;;  %v7177_v45 = vshll.u32 %v7096_v34, 16  ;;  %v6825_v34 = vadd.f32 %v15268_v33, %v15246_v44  ;;  %v11039_v44 = vld [vmem:[%s15893_s8 + $0x38] sm:$0xff]  ;;  %v6826_v33 = vadd.f32 %v15277_v11, %v15253_v54 }
 0x599   : > { %v6488_v3 = vpop.f32.mrf.mxu3  ;;  %v7492_v18 = vrot.slane %v7490_v32, 3  ;;  %8773 = vmatpush.bf16.msrb.mxu2 %v11039_v44 }
 0x59a   : > { %v15332_v62 = vadd.f32 %v6488_v3, %v6197_v17  ;;  %v15340_v7 = vpop.f32.mrf.mxu0 }
 0x59b   : > { %v6938_v16 = vpop.f32.mrf.mxu1 }
 0x59c   : > { %v15338_v14 = vadd.f32 %v6938_v16, %v6823_v21  ;;  %v7495_v21 = vrot.slane %v7493_v63, 4 }
 0x59d   : > { %v6201_v17 = vpop.f32.mrf.mxu2 }
 0x59e   : > { %7608 = vmatmul.bf16.gmra.mxu3 %v7488_v10  ;;  %v6202_v16 = vadd.f32 %v6201_v17, %v5973_v52  ;;  %v11004_v10 = vld [vmem:[#allocation2 + $0x14] sm:$0xff] }
 0x5a1   : > { %v6491_v50 = vpop.f32.mrf.mxu3 }
 0x5a2   : > { %7287 = vmatmul.bf16.gmra.mxu2 %v7172_v38  ;;  %7772 = vmatmul.bf16.gmra.mxu0 %v12113_v30  ;;  %v15342_v61 = vadd.f32 %v6491_v50, %v6200_v60  ;;  %v7173_v38 = vshrl.u32 %v10979_v5, 16  ;;  %v7179_v60 = vrot.slane %v7177_v45, 1  ;;  %v7496_v50 = vor.u32 %v7495_v21, %v7492_v18  ;;  %v15350_v37 = vpop.f32.mrf.mxu0  ;;  %v12114_v5 = vld [vmem:[#allocation2 + $0x54] sm:$0xff]  }
 0x5a3   : > { %v6941_v41 = vpop.f32.mrf.mxu1  ;;  %v7907_v45 = vshll.u32 %v11005_v6, 16  ;;  %v7900_v18 = vshrl.u32 %v11004_v10, 16 }
 0x5a4   : > { %v15348_v3 = vadd.f32 %v6941_v41, %v6824_v4  ;;  %v7175_v30 = vor.u32 %v7173_v38, %v7171_v27  ;;  %v7902_v27 = vshll.u32 %v11004_v10, 16  ;;  %v7497_v52 = vsel %vm2488_vm10, %v7487_v58, %v7496_v50 }
 0x5a5   : > { %v7408_v4 = vpack.c.b16 %v7397_v39, %v7397_v39  ;;  %v7909_v21 = vrot.slane %v7907_v45, 1  ;;  %v11535_v10 = vunpack.c.h.b16 %v11903_v20  ;;  %v7911_v45 = vshrl.u32 %v11005_v6, 16 }
 0x5a6   : > { %6980 = vmatmul.bf16.gmra.mxu1 %v6868_v42  ;;  %v7180_v32 = vsel %vm2795_vm15, %v7175_v30, %v7179_v60  ;;  %v7904_v41 = vrot.slane %v7902_v27, 1  ;;  %v6828_v20 = vadd.f32 %v15292_v9, %v15266_v57  ;;  %v6829_v6 = vadd.f32 %v15298_v51, %v15270_v29  ;;  %v11037_v51 = vld [vmem:[%s15893_s8 + $0x28] sm:$0xff] }
 0x5a7   : > { %v7499_v42 = vshrl.u32 %v7408_v4, 16  ;;  %v7502_v17 = vshll.u32 %v7408_v4, 16  ;;  %v6831_v29 = vadd.f32 %v15311_v56, %v15283_v47  ;;  %v6833_v47 = vadd.f32 %v15330_v53, %v15294_v35  ;;  %v11036_v56 = vld [vmem:[%s15893_s8 + $0x20] sm:$0xff] }
 0x5a8   : > { %v7905_v25 = vor.u32 %v7904_v41, %v7900_v18  ;;  %v11010_v53 = vld [vmem:[#allocation2 + $0x44] sm:$0xff] }
 0x5a9   : > { %v6493_v8 = vpop.f32.mrf.mxu3  ;;  %v7501_v60 = vrot.slane %v7499_v42, 3 }
 0x5aa   : > { %v15352_v49 = vadd.f32 %v6493_v8, %v6202_v16  ;;  %v15365_v38 = vpop.f32.mrf.mxu0  ;;  %v7504_v16 = vrot.slane %v7502_v17, 4  ;;  %v7910_v8 = vsel %vm2795_vm15, %v7905_v25, %v7909_v21  ;;  %v11007_v17 = vld [vmem:[#allocation2 + $0x2c] sm:$0xff] }
 0x5ab   : > { %v6943_v63 = vpop.f32.mrf.mxu1  ;;  %v7923_v57 = vshll.u32 %v11007_v17, 16 }
 0x5ac   : > { %v15358_v1 = vadd.f32 %v6943_v63, %v6825_v34  ;;  %v7505_v34 = vor.u32 %v7504_v16, %v7501_v60  ;;  %v7670_v63 = vpack.c.b16 %v7397_v39, %v11535_v10 }
 0x5ae   : > { %7613 = vmatmul.bf16.gmra.mxu3 %v7497_v52  ;;  %v7506_v11 = vsel %vm2488_vm10, %v7496_v50, %v7505_v34 }
 0x5b2   : > { %7292 = vmatmul.bf16.gmra.mxu2 %v7180_v32  ;;  %7777 = vmatmul.bf16.gmra.mxu0 %v12114_v5  ;;  %v11006_v32 = vld [vmem:[#allocation2 + $0x24] sm:$0xff]  ;;  %v6827_v5 = vadd.f32 %v15281_v0, %v15260_v26  ;;  %v15375_v52 = vpop.f32.mrf.mxu0  ;;  %v11038_v26 = vld [vmem:[%s15893_s8 + $0x30] sm:$0xff]  ;;  %v7913_v0 = vor.u32 %v7911_v45, %v7909_v21  ;;  %v11009_v45 = vld [vmem:[#allocation2 + $0x3c] sm:$0xff] }
 0x5b3   : > { %v6946_v58 = vpop.f32.mrf.mxu1  ;;  %v7915_v4 = vshll.u32 %v11006_v32, 16  ;;  %8774 = vmatpush.bf16.msrb.mxu2 %v11038_v26  ;;  %v7919_v9 = vshrl.u32 %v11006_v32, 16 }
 0x5b4   : > { %v15367_v30 = vadd.f32 %v6946_v58, %v6826_v33  ;;  %v7925_v33 = vrot.slane %v7923_v57, 1  ;;  %v6830_v58 = vadd.f32 %v15305_v40, %v15279_v59  ;;  %v7927_v40 = vshrl.u32 %v11007_v17, 16 }
 0x5b5   : > { %v7917_v41 = vrot.slane %v7915_v4, 1 }
 0x5b6   : > { %8049 = vmatmul.bf16.vlgmr.msrb.gmra.mxu1 %v7910_v8  ;;  %v11008_v8 = vld [vmem:[#allocation2 + $0x34] sm:$0xff] }
 0x5b7   : > { %v7918_v50 = vsel %vm2795_vm15, %v7913_v0, %v7917_v41  ;;  %v7921_v25 = vor.u32 %v7919_v9, %v7917_v41  ;;  %8775 = vmatpush.bf16.msrb.mxu2 %v11037_v51  ;;  %v7931_v59 = vshll.u32 %v11008_v8, 16 }
 0x5b9   : > { %v7926_v16 = vsel %vm2795_vm15, %v7921_v25, %v7925_v33  ;;  %v7933_v32 = vrot.slane %v7931_v59, 1 }
 0x5ba   : > { %v6812_v0 = vpop.f32.mrf.mxu0 }
 0x5bb   : > { %v6948_v54 = vpop.f32.mrf.mxu1  ;;  %8776 = vmatpush.bf16.msrb.mxu2 %v11036_v56 }
 0x5bc   : > { %v15373_v27 = vadd.f32 %v6948_v54, %v6827_v5  ;;  %v6832_v5 = vadd.f32 %v15321_v2, %v15290_v19  ;;  %v7929_v54 = vor.u32 %v7927_v40, %v7925_v33  ;;  %v7939_v19 = vshll.u32 %v11009_v45, 16 }
 0x5bd   : > { %v7935_v2 = vshrl.u32 %v11008_v8, 16 }
 0x5be   : > { %7618 = vmatmul.bf16.gmra.mxu3 %v7506_v11  ;;  %v7934_v4 = vsel %vm2795_vm15, %v7929_v54, %v7933_v32  ;;  %v7941_v26 = vrot.slane %v7939_v19, 1  ;;  %v6838_v54 = vadd.f32 %v6812_v0, %v15324_v12  ;;  %v11012_v19 = vld [vmem:[#allocation2 + $0x54] sm:$0xff] }
 0x5bf   : > { %v7937_v17 = vor.u32 %v7935_v2, %v7933_v32  ;;  %v7248_v32 = vpop.f32.mrf.mxu2 }
 0x5c1   : > { %v7942_v35 = vsel %vm2795_vm15, %v7937_v17, %v7941_v26 }
 0x5c2   : > { %7782 = vmatmul.bf16.gmra.mxu0 %v7670_v63  ;;  %v6814_v33 = vpop.f32.mrf.mxu0 }
 0x5c3   : > { %v6951_v39 = vpop.f32.mrf.mxu1 }
 0x5c4   : > { %v15382_v42 = vadd.f32 %v6951_v39, %v6828_v20  ;;  %v6834_v39 = vadd.f32 %v15340_v7, %v15300_v46  ;;  %v11035_v46 = vld [vmem:[%s15893_s8 + $0x18] sm:$0xff]  ;;  %v6836_v7 = vadd.f32 %v15365_v38, %v15313_v31  ;;  %v11034_v31 = vld [vmem:[%s15893_s8 + $0x10] sm:$0xff]  ;;  %v7574_v38 = vpop.f32.mrf.mxu3 }
 0x5c5   : > { %8777 = vmatpush.bf16.msrb.mxu2 %v11035_v46 }
 0x5c6   : > { %8054 = vmatmul.bf16.gmra.mxu1 %v7918_v50 }
 0x5c7   : > { %v7250_v2 = vpop.f32.mrf.mxu2 }
 0x5c9   : > { %8778 = vmatpush.bf16.msrb.mxu2 %v11034_v31 }
 0x5cb   : > { %v6953_v18 = vpop.f32.mrf.mxu1 }
 0x5cc   : > { %v15387_v44 = vadd.f32 %v6953_v18, %v6829_v6  ;;  %v6835_v18 = vadd.f32 %v15350_v37, %v15307_v13  ;;  %v6817_v13 = vpop.f32.mrf.mxu0  ;;  %v7576_v0 = vpop.f32.mrf.mxu3 }
 0x5d3   : > { %v6956_v21 = vpop.f32.mrf.mxu1 }
 0x5d4   : > { %v15391_v60 = vadd.f32 %v6956_v21, %v6830_v58  ;;  %v7947_v58 = vshll.u32 %v11010_v53, 16  ;;  %v7943_v21 = vshrl.u32 %v11009_v45, 16  ;;  %v6819_v40 = vpop.f32.mrf.mxu0 }
 0x5d6   : > { %8059 = vmatmul.bf16.gmra.mxu1 %v7926_v16  ;;  %v7949_v25 = vrot.slane %v7947_v58, 1  ;;  %v7945_v8 = vor.u32 %v7943_v21, %v7941_v26  ;;  %v6839_v26 = vadd.f32 %v6814_v33, %v15332_v62  ;;  %v7253_v21 = vpop.f32.mrf.mxu2  ;;  %v15446_v62 = vld [vmem:[#allocation2 + $0x5c] sm:$0xff]  ;;  %v6841_v33 = vadd.f32 %v6819_v40, %v15352_v49 }
 0x5d7   : > { %v15458_v49 = vld [vmem:[%s15892_s7 + $0x1] ss:$0 sm:$0xff] }
 0x5d8   : > { %v7950_v37 = vsel %vm2795_vm15, %v7945_v8, %v7949_v25  ;;  %v7298_v8 = vadd.f32 %v7248_v32, %v15328_v22  ;;  %v7299_v22 = vadd.f32 %v7250_v2, %v15338_v14  ;;  %v7300_v14 = vadd.f32 %v7253_v21, %v15348_v3 }
 0x5db   : > { %v6958_v10 = vpop.f32.mrf.mxu1 }
 0x5dc   : > { %v15399_v34 = vadd.f32 %v6958_v10, %v6831_v29  ;;  %v11011_v29 = vld [vmem:[#allocation2 + $0x4c] sm:$0xff] }
 0x5dd   : > { %v7955_v59 = vshll.u32 %v11011_v29, 16  ;;  %v7959_v17 = vshrl.u32 %v11011_v29, 16  ;;  %v7624_v29 = vadd.f32 %v7574_v38, %v7298_v8  ;;  %v7625_v38 = vadd.f32 %v7576_v0, %v7299_v22 }
 0x5e3   : > { %v6961_v63 = vpop.f32.mrf.mxu1 }
 0x5e4   : > { %v15403_v11 = vadd.f32 %v6961_v63, %v6832_v5  ;;  %v7951_v5 = vshrl.u32 %v11010_v53, 16  ;;  %v7957_v63 = vrot.slane %v7955_v59, 1  ;;  %v6840_v53 = vadd.f32 %v6817_v13, %v15342_v61  ;;  %v7255_v59 = vpop.f32.mrf.mxu2 }
 0x5e5   : > { %v7971_v13 = vshll.u32 %v15446_v62, 16 }
 0x5e6   : > { %8064 = vmatmul.bf16.gmra.mxu1 %v7934_v4  ;;  %v7953_v45 = vor.u32 %v7951_v5, %v7949_v25  ;;  %v7961_v58 = vor.u32 %v7959_v17, %v7957_v63  ;;  %v7967_v5 = vshrl.u32 %v11012_v19, 16 }
 0x5e7   : > { %v15453_v31 = vrot.slane %v7971_v13, 1 }
 0x5e8   : > { %v7958_v56 = vsel %vm2795_vm15, %v7953_v45, %v7957_v63 }
 0x5eb   : > { %v6963_v41 = vpop.f32.mrf.mxu1 }
 0x5ec   : > { %v15411_v20 = vadd.f32 %v6963_v41, %v6833_v47  ;;  %v7738_v41 = vpop.f32.mrf.mxu0 }
 0x5f3   : > { %v6966_v50 = vpop.f32.mrf.mxu1 }
 0x5f4   : > { %v15415_v6 = vadd.f32 %v6966_v50, %v6834_v39  ;;  %v7963_v50 = vshll.u32 %v11012_v19, 16 }
 0x5f6   : > { %8069 = vmatmul.bf16.gmra.mxu1 %v7942_v35  ;;  %v7965_v35 = vrot.slane %v7963_v50, 1 }
 0x5f8   : > { %v7966_v46 = vsel %vm2795_vm15, %v7961_v58, %v7965_v35 }
 0x5fb   : > { %v6968_v57 = vpop.f32.mrf.mxu1 }
 0x5fc   : > { %v15420_v9 = vadd.f32 %v6968_v57, %v6835_v18  ;;  %v7740_v18 = vpop.f32.mrf.mxu0 }
 0x5fd   : > { %v7789_v50 = vadd.f32 %v7740_v18, %v7625_v38 }
 0x603   : > { %v6971_v16 = vpop.f32.mrf.mxu1 }
 0x604   : > { %v15427_v51 = vadd.f32 %v6971_v16, %v6836_v7  ;;  %v7579_v7 = vpop.f32.mrf.mxu3  ;;  %v7743_v61 = vpop.f32.mrf.mxu0 }
 0x605   : > { %v7626_v0 = vadd.f32 %v7579_v7, %v7300_v14 }
 0x606   : > { %8074 = vmatmul.bf16.gmra.mxu1 %v7950_v37 }
 0x607   : > { %v7790_v8 = vadd.f32 %v7743_v61, %v7626_v0 }
 0x60b   : > { %v15430_v10 = vpop.f32.mrf.mxu1 }
 0x60c   : > { %v7581_v63 = vpop.f32.mrf.mxu3  ;;  %v7745_v19 = vpop.f32.mrf.mxu0 }
 0x613   : > { %v6976_v4 = vpop.f32.mrf.mxu1 }
 0x614   : > { %v15436_v47 = vadd.f32 %v6976_v4, %v6838_v54  ;;  %v7969_v54 = vor.u32 %v7967_v5, %v7965_v35  ;;  %v7788_v4 = vadd.f32 %v7738_v41, %v7624_v29  ;;  %v7584_v17 = vpop.f32.mrf.mxu3  ;;  %v7301_v5 = vadd.f32 %v7255_v59, %v15358_v1  ;;  %v7828_v1 = vld [vmem:[#allocation2 + $0x64] sm:$0x1] }
 0x616   : > { %8079 = vmatmul.bf16.gmra.mxu1 %v7958_v56  ;;  %v7974_v45 = vsel %vm2795_vm15, %v7969_v54, %v15453_v31  ;;  %v7627_v7 = vadd.f32 %v7581_v63, %v7301_v5  ;;  %v7975_v63 = vshrl.u32 %v15446_v62, 16 }
 0x618   : > { %v7977_v62 = vor.u32 %v7975_v63, %v15453_v31 }
 0x61b   : > { %v6978_v39 = vpop.f32.mrf.mxu1 }
 0x61c   : > { %v15440_v12 = vadd.f32 %v6978_v39, %v6839_v26  ;;  %v7258_v26 = vpop.f32.mrf.mxu2  ;;  %v15477_v54 = vpop.f32.mrf.mxu3 }
 0x623   : > { %v6981_v57 = vpop.f32.mrf.mxu1 }
 0x624   : > { %v15443_v25 = vadd.f32 %v6981_v57, %v6840_v53 }
 0x626   : > { %8084 = vmatmul.bf16.gmra.mxu1 %v7966_v46  ;;  %v15472_v46 = vpop.f32.mrf.mxu0 }
 0x62b   : > { %v6983_v16 = vpop.f32.mrf.mxu1 }
 0x62c   : > { %v15450_v37 = vadd.f32 %v6983_v16, %v6841_v33  ;;  %v15474_v33 = vpop.f32.mrf.mxu2 }
 0x633   : > { %v8050_v40 = vpop.f32.mrf.mxu1 }
 0x634   : > { %v8100_v32 = vadd.f32 %v8050_v40, %v7788_v4  ;;  %v15492_v14 = vpop.f32.mrf.mxu2 }
 0x636   : > { %v15464_v56 = vadd.f32 %v15458_v49, %v8100_v32  ;;  %8089 = vmatmul.bf16.gmra.mxu1 %v7974_v45 }
 0x638   : > { %v8145_v41 = vand.u32 2147483647, %v15464_v56  ;;  %vm8245_vm10 = vcmp.ge.f32.partialorder %v15464_v56, 0.0 }
 0x63a   : > { %v8165_v39 = vsub.f32 0.0, %v8145_v41  ;;  %v11033_v41 = vld [vmem:[%s15893_s8 + $0x8] sm:$0xff] }
 0x63b   : > { %v8052_v35 = vpop.f32.mrf.mxu1  ;;  %8779 = vmatpush.bf16.msrb.mxu2 %v11033_v41 }
 0x63c   : > { %v8185_v53 = vmul.f32 1.442695, %v8165_v39  ;;  %v8101_v57 = vadd.f32 %v8052_v35, %v7789_v50  ;;  %v7887_v39 = vunpack.c.l.b16 %v7828_v1  ;;  %v15488_v50 = vpop.f32.mrf.mxu0 }
 0x63e   : > { %12589 = vpow2.f32 %v8185_v53  ;;  %v15469_v2 = vadd.f32 %v15458_v49, %v8101_v57  ;;  %v7791_v53 = vadd.f32 %v7745_v19, %v7627_v7 }
 0x640   : > { %v8146_v58 = vand.u32 2147483647, %v15469_v2  ;;  %vm8246_vm13 = vcmp.ge.f32.partialorder %v15469_v2, 0.0 }
 0x642   : > { %v8166_v16 = vsub.f32 0.0, %v8146_v58 }
 0x643   : > { %v8055_v29 = vpop.f32.mrf.mxu1 }
 0x644   : > { %v12590_v18 = vpop.eup %12589  ;;  %v8187_v13 = vmul.f32 1.442695, %v8166_v16  ;;  %v8102_v4 = vadd.f32 %v8055_v29, %v7790_v8  ;;  %v7898_v16 = vpack.c.b16 %v7887_v39, %v7887_v39 }
 0x645   : > { %v8225_v3 = vmul.f32 %v12590_v18, %v12590_v18  ;;  %v8265_v21 = vmul.f32 2.0, %v12590_v18 }
 0x646   : > { %12591 = vpow2.f32 %v8187_v13  ;;  %v15480_v45 = vadd.f32 %v15458_v49, %v8102_v4  ;;  %v7979_v4 = vshll.u32 %v7898_v16, 16 }
 0x647   : > { %v8285_v40 = vadd.f32 1.0, %v8265_v21  ;;  %v8345_v22 = vmul.f32 2.0, %v8225_v3  ;;  %v8385_v32 = vadd.f32 2.0, %v8265_v21  ;;  %v8305_v0 = vadd.f32 %v8265_v21, %v8225_v3 }
 0x648   : > { %v8147_v59 = vand.u32 2147483647, %v15480_v45 }
 0x649   : > { %v8365_v38 = vadd.f32 %v8345_v22, %v8285_v40  ;;  %v8405_v61 = vadd.f32 %v8385_v32, %v8225_v3  ;;  %v7302_v22 = vadd.f32 %v7258_v26, %v15367_v30  ;;  %v15496_v32 = vpop.f32.mrf.mxu3  ;;  %v7981_v3 = vrot.slane %v7979_v4, 1 }
 0x64a   : > { %v8167_v58 = vsub.f32 0.0, %v8147_v59  ;;  %v8325_v41 = vsel %vm8245_vm10, %v8285_v40, %v8305_v0  ;;  %v15509_v40 = vpop.f32.mrf.mxu0  ;;  %v15511_v0 = vpop.f32.mrf.mxu2 }
 0x64b   : > { %v8425_v35 = vsel %vm8245_vm10, %v8365_v38, %v8405_v61  ;;  %v8057_v8 = vpop.f32.mrf.mxu1  ;;  %v7628_v61 = vadd.f32 %v7584_v17, %v7302_v22  ;;  %v7982_v30 = vsel %vm2795_vm15, %v7977_v62, %v7981_v3  ;;  %v7303_v17 = vadd.f32 %v15474_v33, %v15373_v27  ;;  %v11537_v27 = vld [vmem:[%s13061_s25] sm:$0xff]  }
 0x64c   : > { %v12592_v57 = vpop.eup %12591  ;;  %12593 = vrcp.f32 %v8425_v35  ;;  %v8103_v29 = vadd.f32 %v8057_v8, %v7791_v53  ;;  %v8189_v5 = vmul.f32 1.442695, %v8167_v58  ;;  %8094 = vmatmul.bf16.gmra.mxu1 %v7982_v30  ;;  %v8445_v35 = vmul.f32 %v8325_v41, %v15464_v56 }
 0x64d   : > { %v8226_v18 = vmul.f32 %v12592_v57, %v12592_v57  ;;  %v8266_v13 = vmul.f32 2.0, %v12592_v57  ;;  %v7629_v56 = vadd.f32 %v15477_v54, %v7303_v17  ;;  %v11032_v54 = vld [vmem:[%s15893_s8] sm:$0xff]  ;;  %vm8247_vm15 = vcmp.ge.f32.partialorder %v15480_v45, 0.0 }
 0x64e   : > { %12595 = vpow2.f32 %v8189_v5  ;;  %v15499_v21 = vadd.f32 %v15458_v49, %v8103_v29  ;;  %v11539_v30 = vunpack.c.h.bf16 %v11537_v27  ;;  %8780 = vmatpush.bf16.msrb.mxu2 %v11032_v54 }
 0x64f   : > { %v8286_v19 = vadd.f32 1.0, %v8266_v13  ;;  %v8346_v7 = vmul.f32 2.0, %v8226_v18  ;;  %v8386_v38 = vadd.f32 2.0, %v8266_v13  ;;  %v8306_v31 = vadd.f32 %v8266_v13, %v8226_v18 }
 0x650   : > { %v8148_v26 = vand.u32 2147483647, %v15499_v21  ;;  %vm8248_vm14 = vcmp.ge.f32.partialorder %v15499_v21, 0.0 }
 0x651   : > { %v8366_v1 = vadd.f32 %v8346_v7, %v8286_v19  ;;  %v8406_v59 = vadd.f32 %v8386_v38, %v8226_v18  ;;  %v8326_v16 = vsel %vm8246_vm13, %v8286_v19, %v8306_v31  ;;  %v7792_v18 = vadd.f32 %v15472_v46, %v7628_v61  ;;  %v15515_v4 = vpop.f32.mrf.mxu3 }
 0x652   : > { %v12594_v39 = vpop.eup %12593  ;;  %v8168_v53 = vsub.f32 0.0, %v8148_v26  ;;  %v8446_v33 = vmul.f32 %v8326_v16, %v15469_v2  ;;  %v7793_v26 = vadd.f32 %v15488_v50, %v7629_v56  ;;  %v7755_v17 = vpop.f32.mrf.mxu0 }
 0x653   : > { %v8426_v63 = vsel %vm8246_vm13, %v8366_v1, %v8406_v59  ;;  %v8485_v58 = vmul.f32 %v12594_v39, %v8445_v35  ;;  %v8060_v13 = vpop.f32.mrf.mxu1  ;;  %v11538_v59 = vunpack.c.l.bf16 %v11537_v27 }
 0x654   : > { %12597 = vrcp.f32 %v8426_v63  ;;  %v12596_v57 = vpop.eup %12595  ;;  %v8191_v8 = vmul.f32 1.442695, %v8168_v53  ;;  %v8104_v62 = vadd.f32 %v8060_v13, %v7792_v18  ;;  %v7268_v18 = vpop.f32.mrf.mxu2 }
 0x655   : > { %v8227_v29 = vmul.f32 %v12596_v57, %v12596_v57  ;;  %v8267_v5 = vmul.f32 2.0, %v12596_v57  ;;  %v8505_v19 = vmul.f32 %v8485_v58, %v13365_v15 }
 0x656   : > { %12599 = vpow2.f32 %v8191_v8  ;;  %v15521_v46 = vadd.f32 %v15458_v49, %v8104_v62  ;;  %v7304_v62 = vadd.f32 %v15492_v14, %v15382_v42 }
 0x657   : > { %v8287_v22 = vadd.f32 1.0, %v8267_v5  ;;  %v8347_v7 = vmul.f32 2.0, %v8227_v29  ;;  %v8387_v38 = vadd.f32 2.0, %v8267_v5  ;;  %v8565_v63 = vadd.f32 %v11538_v59, %v8505_v19 }
 0x658   : > { %v8149_v2 = vand.u32 2147483647, %v15521_v46  ;;  %v8307_v13 = vadd.f32 %v8267_v5, %v8227_v29  ;;  %vm8249_vm0 = vcmp.ge.f32.partialorder %v15521_v46, 0.0 }
 0x659   : > { %v8367_v41 = vadd.f32 %v8347_v7, %v8287_v22  ;;  %v8407_v1 = vadd.f32 %v8387_v38, %v8227_v29  ;;  %v7630_v38 = vadd.f32 %v15496_v32, %v7304_v62 }
 0x65a   : > { %v12598_v3 = vpop.eup %12597  ;;  %v8169_v35 = vsub.f32 0.0, %v8149_v2  ;;  %v8327_v29 = vsel %vm8247_vm15, %v8287_v22, %v8307_v13  ;;  %v7305_v22 = vadd.f32 %v15511_v0, %v15387_v44 }
 0x65b   : > { %v8486_v61 = vmul.f32 %v12598_v3, %v8446_v33  ;;  %v8427_v15 = vsel %vm8247_vm15, %v8367_v41, %v8407_v1  ;;  %v8062_v53 = vpop.f32.mrf.mxu1  ;;  %v15538_v3 = vpop.f32.mrf.mxu3  ;;  %v8447_v54 = vmul.f32 %v8327_v29, %v15480_v45  ;;  %v7794_v32 = vadd.f32 %v15509_v40, %v7630_v38 }
 0x65c   : > { %v12600_v39 = vpop.eup %12599  ;;  %v8105_v8 = vadd.f32 %v8062_v53, %v7793_v26  ;;  %12601 = vrcp.f32 %v8427_v15  ;;  %v7758_v15 = vpop.f32.mrf.mxu0  ;;  %v7631_v53 = vadd.f32 %v15515_v4, %v7305_v22 }
 0x65d   : > { %v8506_v31 = vmul.f32 %v8486_v61, %v13392_v55  ;;  %v8228_v58 = vmul.f32 %v12600_v39, %v12600_v39  ;;  %v8268_v16 = vmul.f32 2.0, %v12600_v39  ;;  %v8193_v55 = vmul.f32 1.442695, %v8169_v35 }
 0x65e   : > { %v15535_v7 = vadd.f32 %v15458_v49, %v8105_v8 }
 0x65f   : > { %v8566_v57 = vadd.f32 %v11539_v30, %v8506_v31  ;;  %v8288_v33 = vadd.f32 1.0, %v8268_v16  ;;  %v8348_v50 = vmul.f32 2.0, %v8228_v58  ;;  %v8388_v56 = vadd.f32 2.0, %v8268_v16 }
 0x660   : > { %12603 = vpow2.f32 %v8193_v55  ;;  %v8308_v5 = vadd.f32 %v8268_v16, %v8228_v58  ;;  %v8150_v42 = vand.u32 2147483647, %v15535_v7  ;;  %v11944_v16 = vld [vmem:[%s13061_s25 + $0x8] sm:$0xff]   ;;  %vm8250_vm1 = vcmp.ge.f32.partialorder %v15535_v7, 0.0 }
 0x661   : > { %v11579_v27 = vpack.c.bf16 %v8566_v57, %v8565_v63  ;;  %v8368_v19 = vadd.f32 %v8348_v50, %v8288_v33  ;;  %v8408_v61 = vadd.f32 %v8388_v56, %v8228_v58  ;;  %v7270_v57 = vpop.f32.mrf.mxu2  ;;  %v7795_v50 = vadd.f32 %v7755_v17, %v7631_v53 }
 0x662   : > { %v12602_v14 = vpop.eup %12601  ;;  %v8170_v1 = vsub.f32 0.0, %v8150_v42  ;;  %v8328_v31 = vsel %vm8248_vm14, %v8288_v33, %v8308_v5  ;;  %v11542_v56 = vunpack.c.l.bf16 %v11944_v16  ;;  %v11543_v38 = vunpack.c.h.bf16 %v11944_v16 }
 0x663   : > { %11580 = vst [vmem:[%s13061_s25] sm:$0xff] %v11579_v27   ;;  %v8428_v41 = vsel %vm8248_vm14, %v8368_v19, %v8408_v61  ;;  %v8065_v59 = vpop.f32.mrf.mxu1  ;;  %v8487_v26 = vmul.f32 %v12602_v14, %v8447_v54  ;;  %v8448_v8 = vmul.f32 %v8328_v31, %v15499_v21  ;;  %v7596_v0 = vpop.f32.mrf.mxu3  ;;  %v7306_v5 = vadd.f32 %v7268_v18, %v15391_v60 }
 0x664   : > { %12605 = vrcp.f32 %v8428_v41  ;;  %v8195_v30 = vmul.f32 1.442695, %v8170_v1  ;;  %v8106_v35 = vadd.f32 %v8065_v59, %v7794_v32 }
 0x665   : > { %v8507_v55 = vmul.f32 %v8487_v26, %v13419_v28  ;;  %v7632_v60 = vadd.f32 %v15538_v3, %v7306_v5 }
 0x666   : > { %v12604_v2 = vpop.eup %12603  ;;  %12607 = vpow2.f32 %v8195_v30  ;;  %v15553_v13 = vadd.f32 %v15458_v49, %v8106_v35 }
 0x667   : > { %v8229_v39 = vmul.f32 %v12604_v2, %v12604_v2  ;;  %v8269_v63 = vmul.f32 2.0, %v12604_v2  ;;  %v8567_v14 = vadd.f32 %v11542_v56, %v8507_v55  ;;  %v7760_v2 = vpop.f32.mrf.mxu0  ;;  %v7796_v55 = vadd.f32 %v7758_v15, %v7632_v60 }
 0x668   : > { %v8151_v4 = vand.u32 2147483647, %v15553_v13  ;;  %vm8251_vm2 = vcmp.ge.f32.partialorder %v15553_v13, 0.0 }
 0x669   : > { %v8289_v45 = vadd.f32 1.0, %v8269_v63  ;;  %v8349_v58 = vmul.f32 2.0, %v8229_v39  ;;  %v8389_v40 = vadd.f32 2.0, %v8269_v63  ;;  %v8309_v41 = vadd.f32 %v8269_v63, %v8229_v39 }
 0x66a   : > { %v12606_v44 = vpop.eup %12605  ;;  %v8171_v28 = vsub.f32 0.0, %v8151_v4  ;;  %v7307_v4 = vadd.f32 %v7270_v57, %v15399_v34 }
 0x66b   : > { %v8369_v62 = vadd.f32 %v8349_v58, %v8289_v45  ;;  %v8409_v27 = vadd.f32 %v8389_v40, %v8229_v39  ;;  %v8488_v33 = vmul.f32 %v12606_v44, %v8448_v8  ;;  %v8067_v19 = vpop.f32.mrf.mxu1  ;;  %v8329_v35 = vsel %vm8249_vm0, %v8289_v45, %v8309_v41  ;;  %v7599_v40 = vpop.f32.mrf.mxu3  ;;  %v11022_v44 = vld [vmem:[%s13061_s25] sm:$0xff] }
 0x66c   : > { %v12608_v29 = vpop.eup %12607  ;;  %v8107_v42 = vadd.f32 %v8067_v19, %v7795_v50  ;;  %v8197_v17 = vmul.f32 1.442695, %v8171_v28  ;;  %8781 = vmatmul.bf16.vlgmr.msrb.gmra.mxu2 %v11022_v44 }
 0x66d   : > { %v8429_v21 = vsel %vm8249_vm0, %v8369_v62, %v8409_v27  ;;  %v8508_v61 = vmul.f32 %v8488_v33, %v13470_v24  ;;  %v8230_v1 = vmul.f32 %v12608_v29, %v12608_v29  ;;  %v8270_v54 = vmul.f32 2.0, %v12608_v29  ;;  %v7273_v24 = vpop.f32.mrf.mxu2 }
 0x66e   : > { %12609 = vrcp.f32 %v8429_v21  ;;  %v15563_v59 = vadd.f32 %v15458_v49, %v8107_v42  ;;  %v8449_v27 = vmul.f32 %v8329_v35, %v15521_v46  ;;  %v7633_v29 = vadd.f32 %v7596_v0, %v7307_v4 }
 0x66f   : > { %v8568_v32 = vadd.f32 %v11543_v38, %v8508_v61  ;;  %v8290_v22 = vadd.f32 1.0, %v8270_v54  ;;  %v8350_v31 = vmul.f32 2.0, %v8230_v1  ;;  %v8390_v30 = vadd.f32 2.0, %v8270_v54  ;;  %v11945_v38 = vld [vmem:[%s13061_s25 + $0x10] sm:$0xff]   ;;  %v7763_v61 = vpop.f32.mrf.mxu0 }
 0x670   : > { %12611 = vpow2.f32 %v8197_v17  ;;  %v8152_v26 = vand.u32 2147483647, %v15563_v59  ;;  %v8310_v53 = vadd.f32 %v8270_v54, %v8230_v1  ;;  %v11546_v57 = vunpack.c.l.bf16 %v11945_v38 }
 0x671   : > { %v11584_v18 = vpack.c.bf16 %v8568_v32, %v8567_v14  ;;  %v8370_v39 = vadd.f32 %v8350_v31, %v8290_v22  ;;  %v8410_v63 = vadd.f32 %v8390_v30, %v8230_v1  ;;  %v11547_v41 = vunpack.c.h.bf16 %v11945_v38 }
 0x672   : > { %v8172_v58 = vsub.f32 0.0, %v8152_v26  ;;  %v8330_v50 = vsel %vm8250_vm1, %v8290_v22, %v8310_v53  ;;  %v7308_v31 = vadd.f32 %v7273_v24, %v15403_v11  ;;  %v7797_v30 = vadd.f32 %v7760_v2, %v7633_v29 }
 0x673   : > { %11953 = vst [vmem:[%s13061_s25 + $0x8] sm:$0xff] %v11584_v18   ;;  %v8430_v16 = vsel %vm8250_vm1, %v8370_v39, %v8410_v63  ;;  %v8070_v62 = vpop.f32.mrf.mxu1  ;;  %v8450_v15 = vmul.f32 %v8330_v50, %v15535_v7  ;;  %v7601_v18 = vpop.f32.mrf.mxu3  ;;  %vm8252_vm3 = vcmp.ge.f32.partialorder %v15563_v59, 0.0 }
 0x674   : > { %v12610_v3 = vpop.eup %12609  ;;  %12613 = vrcp.f32 %v8430_v16  ;;  %v8199_v8 = vmul.f32 1.442695, %v8172_v58  ;;  %v8108_v45 = vadd.f32 %v8070_v62, %v7796_v55 }
 0x675   : > { %v8489_v56 = vmul.f32 %v12610_v3, %v8449_v27  ;;  %v7275_v34 = vpop.f32.mrf.mxu2 }
 0x676   : > { %v12612_v33 = vpop.eup %12611  ;;  %12615 = vpow2.f32 %v8199_v8  ;;  %v15576_v5 = vadd.f32 %v15458_v49, %v8108_v45 }
 0x677   : > { %v8231_v21 = vmul.f32 %v12612_v33, %v12612_v33  ;;  %v8271_v19 = vmul.f32 2.0, %v12612_v33  ;;  %v8509_v54 = vmul.f32 %v8489_v56, %v13382_v43  ;;  %v7765_v50 = vpop.f32.mrf.mxu0 }
 0x678   : > { %v8153_v1 = vand.u32 2147483647, %v15576_v5  ;;  %vm8253_vm4 = vcmp.ge.f32.partialorder %v15576_v5, 0.0 }
 0x679   : > { %v8291_v28 = vadd.f32 1.0, %v8271_v19  ;;  %v8351_v46 = vmul.f32 2.0, %v8231_v21  ;;  %v8391_v42 = vadd.f32 2.0, %v8271_v19  ;;  %v8311_v43 = vadd.f32 %v8271_v19, %v8231_v21 }
 0x67a   : > { %v12614_v14 = vpop.eup %12613  ;;  %v8173_v7 = vsub.f32 0.0, %v8153_v1  ;;  %v8569_v16 = vadd.f32 %v11546_v57, %v8509_v54  ;;  %v11023_v19 = vld [vmem:[%s13061_s25 + $0x8] sm:$0xff] }
 0x67b   : > { %v8490_v32 = vmul.f32 %v12614_v14, %v8450_v15  ;;  %v8371_v17 = vadd.f32 %v8351_v46, %v8291_v28  ;;  %v8411_v0 = vadd.f32 %v8391_v42, %v8231_v21  ;;  %v8072_v60 = vpop.f32.mrf.mxu1  ;;  %v8331_v62 = vsel %vm8251_vm2, %v8291_v28, %v8311_v43  ;;  %v7604_v57 = vpop.f32.mrf.mxu3 }
 0x67c   : > { %v12616_v22 = vpop.eup %12615  ;;  %v8201_v53 = vmul.f32 1.442695, %v8173_v7  ;;  %v8109_v58 = vadd.f32 %v8072_v60, %v7797_v30  ;;  %v7309_v46 = vadd.f32 %v7275_v34, %v15411_v20  ;;  %8786 = vmatmul.bf16.gmra.mxu2 %v11023_v19 }
 0x67d   : > { %v8510_v26 = vmul.f32 %v8490_v32, %v13424_v36  ;;  %v8431_v39 = vsel %vm8251_vm2, %v8371_v17, %v8411_v0  ;;  %v8232_v63 = vmul.f32 %v12616_v22, %v12616_v22  ;;  %v8272_v35 = vmul.f32 2.0, %v12616_v22  ;;  %v7278_v56 = vpop.f32.mrf.mxu2  ;;  %v11946_v22 = vld [vmem:[%s13061_s25 + $0x18] sm:$0xff]  }
 0x67e   : > { %12617 = vrcp.f32 %v8431_v39  ;;  %v15587_v2 = vadd.f32 %v15458_v49, %v8109_v58  ;;  %v7634_v36 = vadd.f32 %v7599_v40, %v7308_v31  ;;  %v8451_v40 = vmul.f32 %v8331_v62, %v15553_v13 }
 0x67f   : > { %v8570_v11 = vadd.f32 %v11547_v41, %v8510_v26  ;;  %v8292_v24 = vadd.f32 1.0, %v8272_v35  ;;  %v8352_v3 = vmul.f32 2.0, %v8232_v63  ;;  %v8392_v8 = vadd.f32 2.0, %v8272_v35 }
 0x680   : > { %12619 = vpow2.f32 %v8201_v53  ;;  %v8312_v27 = vadd.f32 %v8272_v35, %v8232_v63  ;;  %v8154_v4 = vand.u32 2147483647, %v15587_v2  ;;  %v7798_v29 = vadd.f32 %v7763_v61, %v7634_v36  ;;  %v7768_v35 = vpop.f32.mrf.mxu0 }
 0x681   : > { %v11589_v44 = vpack.c.bf16 %v8570_v11, %v8569_v16  ;;  %v8372_v55 = vadd.f32 %v8352_v3, %v8292_v24  ;;  %v8412_v33 = vadd.f32 %v8392_v8, %v8232_v63  ;;  %v7635_v17 = vadd.f32 %v7601_v18, %v7309_v46 }
 0x682   : > { %v8174_v21 = vsub.f32 0.0, %v8154_v4  ;;  %v8332_v42 = vsel %vm8252_vm3, %v8292_v24, %v8312_v27  ;;  %v7310_v18 = vadd.f32 %v7278_v56, %v15415_v6  ;;  %v11550_v43 = vunpack.c.l.bf16 %v11946_v22 }
 0x683   : > { %11954 = vst [vmem:[%s13061_s25 + $0x10] sm:$0xff] %v11589_v44   ;;  %v8432_v38 = vsel %vm8252_vm3, %v8372_v55, %v8412_v33  ;;  %v8075_v15 = vpop.f32.mrf.mxu1  ;;  %v8452_v61 = vmul.f32 %v8332_v42, %v15563_v59  ;;  %v7799_v63 = vadd.f32 %v7765_v50, %v7635_v17  ;;  %v11551_v53 = vunpack.c.h.bf16 %v11946_v22  ;;  %v7606_v33 = vpop.f32.mrf.mxu3 }
 0x684   : > { %v12618_v45 = vpop.eup %12617  ;;  %12621 = vrcp.f32 %v8432_v38  ;;  %v8203_v14 = vmul.f32 1.442695, %v8174_v21  ;;  %v8110_v32 = vadd.f32 %v8075_v15, %v7798_v29  ;;  %vm8254_vm5 = vcmp.ge.f32.partialorder %v15587_v2, 0.0 }
 0x685   : > { %v8491_v41 = vmul.f32 %v12618_v45, %v8451_v40  ;;  %v7280_v16 = vpop.f32.mrf.mxu2  ;;  %v7636_v45 = vadd.f32 %v7604_v57, %v7310_v18 }
 0x686   : > { %v12620_v28 = vpop.eup %12619  ;;  %12623 = vpow2.f32 %v8203_v14  ;;  %v15600_v7 = vadd.f32 %v15458_v49, %v8110_v32  ;;  %v7311_v17 = vadd.f32 %v7280_v16, %v15420_v9 }
 0x687   : > { %v8233_v1 = vmul.f32 %v12620_v28, %v12620_v28  ;;  %v8273_v54 = vmul.f32 2.0, %v12620_v28  ;;  %v8511_v34 = vmul.f32 %v8491_v41, %v13431_v48  ;;  %v7800_v57 = vadd.f32 %v7768_v35, %v7636_v45 }
 0x688   : > { %v8155_v39 = vand.u32 2147483647, %v15600_v7  ;;  %vm8255_vm6 = vcmp.ge.f32.partialorder %v15600_v7, 0.0 }
 0x689   : > { %v8293_v0 = vadd.f32 1.0, %v8273_v54  ;;  %v8353_v13 = vmul.f32 2.0, %v8233_v1  ;;  %v8393_v31 = vadd.f32 2.0, %v8273_v54  ;;  %v8571_v8 = vadd.f32 %v11550_v43, %v8511_v34 }
 0x68a   : > { %v12622_v20 = vpop.eup %12621  ;;  %v8175_v24 = vsub.f32 0.0, %v8155_v39  ;;  %v8313_v36 = vadd.f32 %v8273_v54, %v8233_v1  ;;  %v11024_v14 = vld [vmem:[%s13061_s25 + $0x10] sm:$0xff] }
 0x68b   : > { %v8373_v30 = vadd.f32 %v8353_v13, %v8293_v0  ;;  %v8492_v60 = vmul.f32 %v12622_v20, %v8452_v61  ;;  %v8413_v26 = vadd.f32 %v8393_v31, %v8233_v1  ;;  %v8077_v59 = vpop.f32.mrf.mxu1  ;;  %v7770_v1 = vpop.f32.mrf.mxu0  ;;  %v11947_v31 = vld [vmem:[%s13061_s25 + $0x20] sm:$0xff]  }
 0x68c   : > { %v12624_v58 = vpop.eup %12623  ;;  %v8111_v3 = vadd.f32 %v8077_v59, %v7799_v63  ;;  %v8205_v62 = vmul.f32 1.442695, %v8175_v24  ;;  %v8333_v19 = vsel %vm8253_vm4, %v8293_v0, %v8313_v36  ;;  %8791 = vmatmul.bf16.gmra.mxu2 %v11024_v14  ;;  %v11554_v35 = vunpack.c.l.bf16 %v11947_v31  ;;  %v15960_v59 = vld [vmem:[#allocation3_spill] sm:$0xff] }
 0x68d   : > { %v8512_v11 = vmul.f32 %v8492_v60, %v13495_v23  ;;  %v8433_v48 = vsel %vm8253_vm4, %v8373_v30, %v8413_v26  ;;  %v8234_v44 = vmul.f32 %v12624_v58, %v12624_v58  ;;  %v8274_v6 = vmul.f32 2.0, %v12624_v58  ;;  %v7283_v13 = vpop.f32.mrf.mxu2  ;;  %v7609_v26 = vpop.f32.mrf.mxu3 }
 0x68e   : > { %12625 = vrcp.f32 %v8433_v48  ;;  %v15610_v27 = vadd.f32 %v15458_v49, %v8111_v3  ;;  %v8453_v54 = vmul.f32 %v8333_v19, %v15576_v5  ;;  %v7637_v30 = vadd.f32 %v7606_v33, %v7311_v17 }
 0x68f   : > { %v8572_v55 = vadd.f32 %v11551_v53, %v8512_v11  ;;  %v8294_v4 = vadd.f32 1.0, %v8274_v6  ;;  %v8354_v50 = vmul.f32 2.0, %v8234_v44  ;;  %v8394_v23 = vadd.f32 2.0, %v8274_v6 }
 0x690   : > { %12627 = vpow2.f32 %v8205_v62  ;;  %v8156_v38 = vand.u32 2147483647, %v15610_v27  ;;  %v8314_v29 = vadd.f32 %v8274_v6, %v8234_v44  ;;  %v11555_v43 = vunpack.c.h.bf16 %v11947_v31 }
 0x691   : > { %v11594_v56 = vpack.c.bf16 %v8572_v55, %v8571_v8  ;;  %v8374_v21 = vadd.f32 %v8354_v50, %v8294_v4  ;;  %v8414_v40 = vadd.f32 %v8394_v23, %v8234_v44  ;;  %v7312_v3 = vadd.f32 %v7283_v13, %v15427_v51  ;;  %v15961_v44 = vld [vmem:[#allocation4_spill] sm:$0xff] }
 0x692   : > { %v8176_v15 = vsub.f32 0.0, %v8156_v38  ;;  %v8334_v0 = vsel %vm8254_vm5, %v8294_v4, %v8314_v29  ;;  %vm8256_vm7 = vcmp.ge.f32.partialorder %v15610_v27, 0.0 }
 0x693   : > { %11955 = vst [vmem:[%s13061_s25 + $0x18] sm:$0xff] %v11594_v56   ;;  %v8434_v28 = vsel %vm8254_vm5, %v8374_v21, %v8414_v40  ;;  %v8080_v41 = vpop.f32.mrf.mxu1  ;;  %v8454_v39 = vmul.f32 %v8334_v0, %v15587_v2  ;;  %v7801_v2 = vadd.f32 %v7770_v1, %v7637_v30  ;;  %v7773_v45 = vpop.f32.mrf.mxu0 }
 0x694   : > { %v12626_v46 = vpop.eup %12625  ;;  %12629 = vrcp.f32 %v8434_v28  ;;  %v8207_v42 = vmul.f32 1.442695, %v8176_v15  ;;  %v8112_v22 = vadd.f32 %v8080_v41, %v7800_v57  ;;  %v15962_v15 = vld [vmem:[#allocation19_spill] sm:$0xff] }
 0x695   : > { %v8493_v61 = vmul.f32 %v12626_v46, %v8453_v54  ;;  %v7285_v40 = vpop.f32.mrf.mxu2  ;;  %v6837_v28 = vadd.f32 %v15375_v52, %v15962_v15  ;;  %v7638_v46 = vadd.f32 %v7609_v26, %v7312_v3 }
 0x696   : > { %v12628_v32 = vpop.eup %12627  ;;  %12631 = vpow2.f32 %v8207_v42  ;;  %v15622_v60 = vadd.f32 %v15458_v49, %v8112_v22 }
 0x697   : > { %v8235_v20 = vmul.f32 %v12628_v32, %v12628_v32  ;;  %v8275_v34 = vmul.f32 2.0, %v12628_v32  ;;  %v8513_v58 = vmul.f32 %v8493_v61, %v15960_v59  ;;  %v7611_v32 = vpop.f32.mrf.mxu3  ;;  %v7001_v13 = vadd.f32 %v15430_v10, %v6837_v28  ;;  %v11948_v59 = vld [vmem:[%s13061_s25 + $0x28] sm:$0xff]  }
 0x698   : > { %v8157_v53 = vand.u32 2147483647, %v15622_v60  ;;  %v7802_v31 = vadd.f32 %v7773_v45, %v7638_v46  ;;  %vm8257_vm8 = vcmp.ge.f32.partialorder %v15622_v60, 0.0 }
 0x699   : > { %v8295_v5 = vadd.f32 1.0, %v8275_v34  ;;  %v8355_v63 = vmul.f32 2.0, %v8235_v20  ;;  %v8395_v18 = vadd.f32 2.0, %v8275_v34  ;;  %v8315_v4 = vadd.f32 %v8275_v34, %v8235_v20 }
 0x69a   : > { %v12630_v9 = vpop.eup %12629  ;;  %v8177_v8 = vsub.f32 0.0, %v8157_v53  ;;  %v8573_v56 = vadd.f32 %v11554_v35, %v8513_v58  ;;  %v11025_v61 = vld [vmem:[%s13061_s25 + $0x18] sm:$0xff]  ;;  %v7313_v30 = vadd.f32 %v7285_v40, %v7001_v13 }
 0x69b   : > { %v8494_v16 = vmul.f32 %v12630_v9, %v8454_v39  ;;  %v8375_v11 = vadd.f32 %v8355_v63, %v8295_v5  ;;  %v8415_v48 = vadd.f32 %v8395_v18, %v8235_v20  ;;  %v8082_v36 = vpop.f32.mrf.mxu1  ;;  %v8335_v57 = vsel %vm8255_vm6, %v8295_v5, %v8315_v4  ;;  %v7775_v10 = vpop.f32.mrf.mxu0 }
 0x69c   : > { %v12632_v24 = vpop.eup %12631  ;;  %v8209_v50 = vmul.f32 1.442695, %v8177_v8  ;;  %v8113_v23 = vadd.f32 %v8082_v36, %v7801_v2  ;;  %v8455_v22 = vmul.f32 %v8335_v57, %v15600_v7  ;;  %8796 = vmatmul.bf16.gmra.mxu2 %v11025_v61  ;;  %v7639_v35 = vadd.f32 %v7611_v32, %v7313_v30 }
 0x69d   : > { %v8514_v6 = vmul.f32 %v8494_v16, %v15961_v44  ;;  %v8435_v55 = vsel %vm8255_vm6, %v8375_v11, %v8415_v48  ;;  %v8236_v62 = vmul.f32 %v12632_v24, %v12632_v24  ;;  %v8276_v33 = vmul.f32 2.0, %v12632_v24  ;;  %v7288_v7 = vpop.f32.mrf.mxu2  ;;  %v15963_v24 = vld [vmem:[#allocation5_spill] sm:$0xff] }
 0x69e   : > { %12633 = vrcp.f32 %v8435_v55  ;;  %v15633_v29 = vadd.f32 %v15458_v49, %v8113_v23  ;;  %v7314_v55 = vadd.f32 %v7288_v7, %v15436_v47  ;;  %v11559_v4 = vunpack.c.h.bf16 %v11948_v59  ;;  %v15964_v23 = vld [vmem:[#allocation7_spill] sm:$0xff] }
 0x69f   : > { %v8574_v38 = vadd.f32 %v11555_v43, %v8514_v6  ;;  %v8296_v51 = vadd.f32 1.0, %v8276_v33  ;;  %v8356_v21 = vmul.f32 2.0, %v8236_v62  ;;  %v8396_v19 = vadd.f32 2.0, %v8276_v33 }
 0x6a0   : > { %12635 = vpow2.f32 %v8209_v50  ;;  %v8316_v41 = vadd.f32 %v8276_v33, %v8236_v62  ;;  %v8158_v54 = vand.u32 2147483647, %v15633_v29  ;;  %v7803_v6 = vadd.f32 %v7775_v10, %v7639_v35 }
 0x6a1   : > { %v11599_v42 = vpack.c.bf16 %v8574_v38, %v8573_v56  ;;  %v8376_v14 = vadd.f32 %v8356_v21, %v8296_v51  ;;  %v8416_v1 = vadd.f32 %v8396_v19, %v8236_v62  ;;  %v7614_v62 = vpop.f32.mrf.mxu3  ;;  %v11558_v33 = vunpack.c.l.bf16 %v11948_v59 }
 0x6a2   : > { %v8178_v52 = vsub.f32 0.0, %v8158_v54  ;;  %v8336_v26 = vsel %vm8256_vm7, %v8296_v51, %v8316_v41  ;;  %v7640_v41 = vadd.f32 %v7614_v62, %v7314_v55  ;;  %vm8258_vm9 = vcmp.ge.f32.partialorder %v15633_v29, 0.0 }
 0x6a3   : > { %11956 = vst [vmem:[%s13061_s25 + $0x20] sm:$0xff] %v11599_v42   ;;  %v8436_v0 = vsel %vm8256_vm7, %v8376_v14, %v8416_v1  ;;  %v8085_v20 = vpop.f32.mrf.mxu1  ;;  %v8456_v58 = vmul.f32 %v8336_v26, %v15610_v27  ;;  %v7778_v32 = vpop.f32.mrf.mxu0 }
 0x6a4   : > { %v12634_v17 = vpop.eup %12633  ;;  %12637 = vrcp.f32 %v8436_v0  ;;  %v8211_v39 = vmul.f32 1.442695, %v8178_v52  ;;  %v8114_v9 = vadd.f32 %v8085_v20, %v7802_v31  ;;  %v7804_v30 = vadd.f32 %v7778_v32, %v7640_v41 }
 0x6a5   : > { %v8495_v5 = vmul.f32 %v12634_v17, %v8455_v22  ;;  %v7290_v22 = vpop.f32.mrf.mxu2 }
 0x6a6   : > { %v12636_v34 = vpop.eup %12635  ;;  %12639 = vpow2.f32 %v8211_v39  ;;  %v15648_v11 = vadd.f32 %v15458_v49, %v8114_v9 }
 0x6a7   : > { %v8237_v63 = vmul.f32 %v12636_v34, %v12636_v34  ;;  %v8277_v18 = vmul.f32 2.0, %v12636_v34  ;;  %v8515_v3 = vmul.f32 %v8495_v5, %v15963_v24 }
 0x6a8   : > { %v8159_v44 = vand.u32 2147483647, %v15648_v11  ;;  %vm8259_vm11 = vcmp.ge.f32.partialorder %v15648_v11, 0.0 }
 0x6a9   : > { %v8297_v43 = vadd.f32 1.0, %v8277_v18  ;;  %v8357_v53 = vmul.f32 2.0, %v8237_v63  ;;  %v8397_v16 = vadd.f32 2.0, %v8277_v18  ;;  %v8575_v21 = vadd.f32 %v11558_v33, %v8515_v3  ;;  %v7616_v39 = vpop.f32.mrf.mxu3 }
 0x6aa   : > { %v12638_v48 = vpop.eup %12637  ;;  %v8179_v38 = vsub.f32 0.0, %v8159_v44  ;;  %v8317_v40 = vadd.f32 %v8277_v18, %v8237_v63  ;;  %v11026_v34 = vld [vmem:[%s13061_s25 + $0x20] sm:$0xff]  ;;  %v7315_v18 = vadd.f32 %v7290_v22, %v15440_v12 }
 0x6ab   : > { %v8377_v8 = vadd.f32 %v8357_v53, %v8297_v43  ;;  %v8496_v2 = vmul.f32 %v12638_v48, %v8456_v58  ;;  %v8417_v36 = vadd.f32 %v8397_v16, %v8237_v63  ;;  %v8087_v27 = vpop.f32.mrf.mxu1  ;;  %v15672_v58 = vld [vmem:[%s15892_s7 + $0x1] ss:$0 sm:$0xff] }
 0x6ac   : > { %v12640_v50 = vpop.eup %12639  ;;  %v8115_v51 = vadd.f32 %v8087_v27, %v7803_v6  ;;  %v8213_v28 = vmul.f32 1.442695, %v8179_v38  ;;  %v8337_v0 = vsel %vm8257_vm8, %v8297_v43, %v8317_v40  ;;  %8801 = vmatmul.bf16.gmra.mxu2 %v11026_v34  ;;  %v11949_v43 = vld [vmem:[%s13061_s25 + $0x30] sm:$0xff]   ;;  %v7641_v59 = vadd.f32 %v7616_v39, %v7315_v18  ;;  %v15965_v44 = vld [vmem:[#allocation6_spill] sm:$0xff] }
 0x6ad   : > { %v8516_v45 = vmul.f32 %v8496_v2, %v15964_v23  ;;  %v8437_v56 = vsel %vm8257_vm8, %v8377_v8, %v8417_v36  ;;  %v8238_v19 = vmul.f32 %v12640_v50, %v12640_v50  ;;  %v8278_v15 = vmul.f32 2.0, %v12640_v50  ;;  %v7780_v36 = vpop.f32.mrf.mxu0 }
 0x6ae   : > { %12641 = vrcp.f32 %v8437_v56  ;;  %v15658_v46 = vadd.f32 %v15458_v49, %v8115_v51  ;;  %v8457_v5 = vmul.f32 %v8337_v0, %v15622_v60  ;;  %v11562_v8 = vunpack.c.l.bf16 %v11949_v43  ;;  %v15966_v56 = vld [vmem:[#allocation8_spill] sm:$0xff] }
 0x6af   : > { %v8576_v47 = vadd.f32 %v11559_v4, %v8516_v45  ;;  %v8298_v42 = vadd.f32 1.0, %v8278_v15  ;;  %v8358_v14 = vmul.f32 2.0, %v8238_v19  ;;  %v8398_v57 = vadd.f32 2.0, %v8278_v15  ;;  %v7293_v45 = vpop.f32.mrf.mxu2 }
 0x6b0   : > { %12643 = vpow2.f32 %v8213_v28  ;;  %v8160_v54 = vand.u32 2147483647, %v15658_v46  ;;  %v8318_v49 = vadd.f32 %v8278_v15, %v8238_v19  ;;  %v11563_v27 = vunpack.c.h.bf16 %v11949_v43 }
 0x6b1   : > { %v11604_v1 = vpack.c.bf16 %v8576_v47, %v8575_v21  ;;  %v8378_v17 = vadd.f32 %v8358_v14, %v8298_v42  ;;  %v8418_v13 = vadd.f32 %v8398_v57, %v8238_v19  ;;  %v7805_v23 = vadd.f32 %v7780_v36, %v7641_v59  ;;  %v7619_v28 = vpop.f32.mrf.mxu3 }
 0x6b2   : > { %v8180_v52 = vsub.f32 0.0, %v8160_v54  ;;  %v8338_v9 = vsel %vm8258_vm9, %v8298_v42, %v8318_v49  ;;  %vm8260_vm12 = vcmp.ge.f32.partialorder %v15658_v46, 0.0 }
 0x6b3   : > { %11957 = vst [vmem:[%s13061_s25 + $0x28] sm:$0xff] %v11604_v1   ;;  %v8438_v61 = vsel %vm8258_vm9, %v8378_v17, %v8418_v13  ;;  %v8090_v26 = vpop.f32.mrf.mxu1  ;;  %v8458_v60 = vmul.f32 %v8338_v9, %v15633_v29  ;;  %v7316_v13 = vadd.f32 %v7293_v45, %v15443_v25 }
 0x6b4   : > { %v12642_v31 = vpop.eup %12641  ;;  %12645 = vrcp.f32 %v8438_v61  ;;  %v8215_v20 = vmul.f32 1.442695, %v8180_v52  ;;  %v8116_v35 = vadd.f32 %v8090_v26, %v7804_v30 }
 0x6b5   : > { %v8497_v10 = vmul.f32 %v12642_v31, %v8457_v5  ;;  %v7642_v31 = vadd.f32 %v7619_v28, %v7316_v13  ;;  %v7783_v30 = vpop.f32.mrf.mxu0 }
 0x6b6   : > { %v12644_v63 = vpop.eup %12643  ;;  %12647 = vpow2.f32 %v8215_v20  ;;  %v15675_v16 = vadd.f32 %v15672_v58, %v8116_v35 }
 0x6b7   : > { %v8239_v53 = vmul.f32 %v12644_v63, %v12644_v63  ;;  %v8279_v7 = vmul.f32 2.0, %v12644_v63  ;;  %v8517_v6 = vmul.f32 %v8497_v10, %v15965_v44  ;;  %v7295_v63 = vpop.f32.mrf.mxu2  ;;  %v7806_v43 = vadd.f32 %v7783_v30, %v7642_v31 }
 0x6b8   : > { %v8161_v2 = vand.u32 2147483647, %v15675_v16  ;;  %vm8261_vm10 = vcmp.ge.f32.partialorder %v15675_v16, 0.0 }
 0x6b9   : > { %v8299_v12 = vadd.f32 1.0, %v8279_v7  ;;  %v8359_v48 = vmul.f32 2.0, %v8239_v53  ;;  %v8399_v24 = vadd.f32 2.0, %v8279_v7  ;;  %v8319_v19 = vadd.f32 %v8279_v7, %v8239_v53  ;;  %v7621_v7 = vpop.f32.mrf.mxu3 }
 0x6ba   : > { %v12646_v3 = vpop.eup %12645  ;;  %v8181_v50 = vsub.f32 0.0, %v8161_v2  ;;  %v8577_v42 = vadd.f32 %v11562_v8, %v8517_v6  ;;  %v11027_v39 = vld [vmem:[%s13061_s25 + $0x28] sm:$0xff]  ;;  %v15967_v2 = vld [vmem:[#allocation9_spill] sm:$0xff] }
 0x6bb   : > { %v8498_v55 = vmul.f32 %v12646_v3, %v8458_v60  ;;  %v8379_v62 = vadd.f32 %v8359_v48, %v8299_v12  ;;  %v8419_v33 = vadd.f32 %v8399_v24, %v8239_v53  ;;  %v8092_v29 = vpop.f32.mrf.mxu1  ;;  %v8339_v0 = vsel %vm8259_vm11, %v8299_v12, %v8319_v19 }
 0x6bc   : > { %v12648_v4 = vpop.eup %12647  ;;  %v8217_v15 = vmul.f32 1.442695, %v8181_v50  ;;  %v8117_v47 = vadd.f32 %v8092_v29, %v7805_v23  ;;  %v8459_v26 = vmul.f32 %v8339_v0, %v15648_v11  ;;  %8806 = vmatmul.bf16.gmra.mxu2 %v11027_v39  ;;  %v7317_v12 = vadd.f32 %v7295_v63, %v15450_v37  ;;  %v11950_v11 = vld [vmem:[%s13061_s25 + $0x38] sm:$0xff]   ;;  %v15968_v37 = vld [vmem:[#allocation10_spill] sm:$0xff] }
 0x6bd   : > { %v8518_v38 = vmul.f32 %v8498_v55, %v15966_v56  ;;  %v8439_v51 = vsel %vm8259_vm11, %v8379_v62, %v8419_v33  ;;  %v8240_v21 = vmul.f32 %v12648_v4, %v12648_v4  ;;  %v8280_v40 = vmul.f32 2.0, %v12648_v4  ;;  %v7785_v45 = vpop.f32.mrf.mxu0 }
 0x6be   : > { %12649 = vrcp.f32 %v8439_v51  ;;  %v15685_v54 = vadd.f32 %v15672_v58, %v8117_v47  ;;  %v7643_v6 = vadd.f32 %v7621_v7, %v7317_v12  ;;  %v11566_v4 = vunpack.c.l.bf16 %v11950_v11 }
 0x6bf   : > { %v8578_v14 = vadd.f32 %v11563_v27, %v8518_v38  ;;  %v8300_v57 = vadd.f32 1.0, %v8280_v40  ;;  %v8360_v41 = vmul.f32 2.0, %v8240_v21  ;;  %v8400_v1 = vadd.f32 2.0, %v8280_v40 }
 0x6c0   : > { %12651 = vpow2.f32 %v8217_v15  ;;  %v8162_v52 = vand.u32 2147483647, %v15685_v54  ;;  %v8320_v22 = vadd.f32 %v8280_v40, %v8240_v21  ;;  %v11567_v23 = vunpack.c.h.bf16 %v11950_v11 }
 0x6c1   : > { %v11609_v32 = vpack.c.bf16 %v8578_v14, %v8577_v42  ;;  %v8380_v17 = vadd.f32 %v8360_v41, %v8300_v57  ;;  %v8420_v49 = vadd.f32 %v8400_v1, %v8240_v21  ;;  %v7807_v15 = vadd.f32 %v7785_v45, %v7643_v6 }
 0x6c2   : > { %v8182_v34 = vsub.f32 0.0, %v8162_v52  ;;  %v8340_v9 = vsel %vm8260_vm12, %v8300_v57, %v8320_v22  ;;  %vm8262_vm13 = vcmp.ge.f32.partialorder %v15685_v54, 0.0 }
 0x6c3   : > { %11958 = vst [vmem:[%s13061_s25 + $0x30] sm:$0xff] %v11609_v32   ;;  %v8440_v20 = vsel %vm8260_vm12, %v8380_v17, %v8420_v49  ;;  %v8460_v48 = vmul.f32 %v8340_v9, %v15658_v46 }
 0x6c4   : > { %v12650_v61 = vpop.eup %12649  ;;  %12653 = vrcp.f32 %v8440_v20  ;;  %v8219_v5 = vmul.f32 1.442695, %v8182_v34 }
 0x6c5   : > { %v8499_v18 = vmul.f32 %v12650_v61, %v8459_v26 }
 0x6c6   : > { %v12652_v25 = vpop.eup %12651  ;;  %12655 = vpow2.f32 %v8219_v5 }
 0x6c7   : > { %v8241_v35 = vmul.f32 %v12652_v25, %v12652_v25  ;;  %v8281_v10 = vmul.f32 2.0, %v12652_v25  ;;  %v8519_v36 = vmul.f32 %v8499_v18, %v15967_v2 }
 0x6c9   : > { %v8095_v53 = vpop.f32.mrf.mxu1  ;;  %v8301_v59 = vadd.f32 1.0, %v8281_v10  ;;  %v8361_v60 = vmul.f32 2.0, %v8241_v35  ;;  %v8401_v24 = vadd.f32 2.0, %v8281_v10  ;;  %v8579_v56 = vadd.f32 %v11566_v4, %v8519_v36 }
 0x6ca   : > { %v8118_v3 = vadd.f32 %v8095_v53, %v7806_v43  ;;  %v12654_v8 = vpop.eup %12653  ;;  %v8321_v38 = vadd.f32 %v8281_v10, %v8241_v35  ;;  %v11028_v26 = vld [vmem:[%s13061_s25 + $0x30] sm:$0xff] }
 0x6cb   : > { %v8381_v44 = vadd.f32 %v8361_v60, %v8301_v59  ;;  %v8500_v55 = vmul.f32 %v12654_v8, %v8460_v48  ;;  %v8421_v62 = vadd.f32 %v8401_v24, %v8241_v35  ;;  %v15969_v35 = vld [vmem:[#allocation11_spill] sm:$0xff]  ;;  %v15970_v60 = vld [vmem:[#allocation12_spill] sm:$0xff] }
 0x6cc   : > { %v15700_v33 = vadd.f32 %v15672_v58, %v8118_v3  ;;  %v12656_v27 = vpop.eup %12655  ;;  %v8341_v13 = vsel %vm8261_vm10, %v8301_v59, %v8321_v38  ;;  %8811 = vmatmul.bf16.gmra.mxu2 %v11028_v26 }
 0x6cd   : > { %v8520_v50 = vmul.f32 %v8500_v55, %v15968_v37  ;;  %v8441_v46 = vsel %vm8261_vm10, %v8381_v44, %v8421_v62  ;;  %v8242_v51 = vmul.f32 %v12656_v27, %v12656_v27  ;;  %v8282_v21 = vmul.f32 2.0, %v12656_v27 }
 0x6ce   : > { %v8163_v29 = vand.u32 2147483647, %v15700_v33  ;;  %12657 = vrcp.f32 %v8441_v46  ;;  %v8461_v31 = vmul.f32 %v8341_v13, %v15675_v16  ;;  %vm8263_vm15 = vcmp.ge.f32.partialorder %v15700_v33, 0.0 }
 0x6cf   : > { %v8580_v40 = vadd.f32 %v11567_v23, %v8520_v50  ;;  %v8302_v28 = vadd.f32 1.0, %v8282_v21  ;;  %v8362_v42 = vmul.f32 2.0, %v8242_v51  ;;  %v8402_v14 = vadd.f32 2.0, %v8282_v21 }
 0x6d0   : > { %v8183_v19 = vsub.f32 0.0, %v8163_v29  ;;  %v8322_v0 = vadd.f32 %v8282_v21, %v8242_v51 }
 0x6d1   : > { %v8097_v47 = vpop.f32.mrf.mxu1  ;;  %v11614_v57 = vpack.c.bf16 %v8580_v40, %v8579_v56  ;;  %v8382_v32 = vadd.f32 %v8362_v42, %v8302_v28  ;;  %v8422_v17 = vadd.f32 %v8402_v14, %v8242_v51  ;;  %v15727_v14 = vld [vmem:[%s15894_s9] ss:$0 sm:$0xff] }
 0x6d2   : > { %v8221_v41 = vmul.f32 1.442695, %v8183_v19  ;;  %v8119_v1 = vadd.f32 %v8097_v47, %v7807_v15  ;;  %v8342_v20 = vsel %vm8262_vm13, %v8302_v28, %v8322_v0  ;;  %v11952_v15 = vld [vmem:[%s13061_s25 + $0x48] sm:$0xff]   ;;  %v15971_v47 = vld [vmem:[#allocation13_spill] sm:$0xff] }
 0x6d3   : > { %11959 = vst [vmem:[%s13061_s25 + $0x38] sm:$0xff] %v11614_v57   ;;  %v8442_v52 = vsel %vm8262_vm13, %v8382_v32, %v8422_v17  ;;  %v8462_v5 = vmul.f32 %v8342_v20, %v15685_v54  ;;  %v11574_v57 = vunpack.c.l.bf16 %v11952_v15 }
 0x6d4   : > { %12659 = vpow2.f32 %v8221_v41  ;;  %v8144_v49 = vadd.f32 %v15672_v58, %v8119_v1  ;;  %v12658_v22 = vpop.eup %12657  ;;  %v11951_v58 = vld [vmem:[%s13061_s25 + $0x40] sm:$0xff]  }
 0x6d5   : > { %12661 = vrcp.f32 %v8442_v52  ;;  %v8501_v30 = vmul.f32 %v12658_v22, %v8461_v31  ;;  %v11570_v59 = vunpack.c.l.bf16 %v11951_v58  ;;  %v11571_v11 = vunpack.c.h.bf16 %v11951_v58  ;;  %v15972_v41 = vld [vmem:[#allocation14_spill] sm:$0xff] }
 0x6d6   : > { %v8164_v61 = vand.u32 2147483647, %v8144_v49  ;;  %vm8264_vm14 = vcmp.ge.f32.partialorder %v8144_v49, 0.0 }
 0x6d7   : > { %v8521_v10 = vmul.f32 %v8501_v30, %v15969_v35 }
 0x6d8   : > { %v8184_v34 = vsub.f32 0.0, %v8164_v61 }
 0x6d9   : > { %v8581_v54 = vadd.f32 %v11570_v59, %v8521_v10 }
 0x6da   : > { %v12660_v39 = vpop.eup %12659  ;;  %v8223_v25 = vmul.f32 1.442695, %v8184_v34  ;;  %v11029_v23 = vld [vmem:[%s13061_s25 + $0x38] sm:$0xff] }
 0x6db   : > { %v8243_v63 = vmul.f32 %v12660_v39, %v12660_v39  ;;  %v8283_v18 = vmul.f32 2.0, %v12660_v39  ;;  %v12662_v9 = vpop.eup %12661 }
 0x6dc   : > { %12663 = vpow2.f32 %v8223_v25  ;;  %v8502_v43 = vmul.f32 %v12662_v9, %v8462_v5  ;;  %8816 = vmatmul.bf16.gmra.mxu2 %v11029_v23 }
 0x6dd   : > { %v8303_v53 = vadd.f32 1.0, %v8283_v18  ;;  %v8363_v7 = vmul.f32 2.0, %v8243_v63  ;;  %v8403_v16 = vadd.f32 2.0, %v8283_v18  ;;  %v8323_v55 = vadd.f32 %v8283_v18, %v8243_v63 }
 0x6de   : > { %v8522_v12 = vmul.f32 %v8502_v43, %v15970_v60 }
 0x6df   : > { %v8383_v48 = vadd.f32 %v8363_v7, %v8303_v53  ;;  %v8423_v24 = vadd.f32 %v8403_v16, %v8243_v63  ;;  %v8343_v46 = vsel %vm8263_vm15, %v8303_v53, %v8323_v55 }
 0x6e0   : > { %v8582_v3 = vadd.f32 %v11571_v11, %v8522_v12  ;;  %v8463_v38 = vmul.f32 %v8343_v46, %v15700_v33  ;;  %v11575_v33 = vunpack.c.h.bf16 %v11952_v15 }
 0x6e1   : > { %v8443_v2 = vsel %vm8263_vm15, %v8383_v48, %v8423_v24 }
 0x6e2   : > { %v12664_v8 = vpop.eup %12663  ;;  %v11619_v36 = vpack.c.bf16 %v8582_v3, %v8581_v54  ;;  %12665 = vrcp.f32 %v8443_v2 }
 0x6e3   : > { %v8244_v44 = vmul.f32 %v12664_v8, %v12664_v8  ;;  %v8284_v6 = vmul.f32 2.0, %v12664_v8 }
 0x6e4   : > { %11960 = vst [vmem:[%s13061_s25 + $0x40] sm:$0xff] %v11619_v36  }
 0x6e5   : > { %v8304_v62 = vadd.f32 1.0, %v8284_v6  ;;  %v8364_v4 = vmul.f32 2.0, %v8244_v44  ;;  %v8404_v27 = vadd.f32 2.0, %v8284_v6  ;;  %v8324_v29 = vadd.f32 %v8284_v6, %v8244_v44 }
 0x6e7   : > { %v8384_v37 = vadd.f32 %v8364_v4, %v8304_v62  ;;  %v8424_v50 = vadd.f32 %v8404_v27, %v8244_v44  ;;  %v8344_v51 = vsel %vm8264_vm14, %v8304_v62, %v8324_v29 }
 0x6e8   : > { %v12666_v56 = vpop.eup %12665  ;;  %v8464_v40 = vmul.f32 %v8344_v51, %v8144_v49 }
 0x6e9   : > { %v8444_v45 = vsel %vm8264_vm14, %v8384_v37, %v8424_v50  ;;  %v8503_v21 = vmul.f32 %v12666_v56, %v8463_v38 }
 0x6ea   : > { %12667 = vrcp.f32 %v8444_v45 }
 0x6eb   : > { %v8523_v28 = vmul.f32 %v8503_v21, %v15971_v47  ;;  %v11030_v52 = vld [vmem:[%s13061_s25 + $0x40] sm:$0xff] }
 0x6ec   : > { %8821 = vmatmul.bf16.gmra.mxu2 %v11030_v52 }
 0x6ed   : > { %v8583_v32 = vadd.f32 %v11574_v57, %v8523_v28 }
 0x6ef   : > { %v8782_v13 = vpop.f32.mrf.mxu2 }
 0x6f0   : > { %v12668_v19 = vpop.eup %12667  ;;  %v8783_v0 = vadd.f32 %v15727_v14, %v8782_v13 }
 0x6f1   : > { %v8504_v42 = vmul.f32 %v12668_v19, %v8464_v40 }
 0x6f2   : > { %v8832_v22 = vand.u32 2147483647, %v8783_v0  ;;  %vm8932_vm0 = vcmp.ge.f32.partialorder %v8783_v0, 0.0 }
 0x6f3   : > { %v8524_v1 = vmul.f32 %v8504_v42, %v15972_v41 }
 0x6f4   : > { %v8852_v61 = vsub.f32 0.0, %v8832_v22 }
 0x6f5   : > { %v8584_v17 = vadd.f32 %v11575_v33, %v8524_v1 }
 0x6f6   : > { %v8872_v31 = vmul.f32 1.442695, %v8852_v61 }
 0x6f7   : > { %v11624_v49 = vpack.c.bf16 %v8584_v17, %v8583_v32  ;;  %v8784_v20 = vpop.f32.mrf.mxu2 }
 0x6f8   : > { %12669 = vpow2.f32 %v8872_v31  ;;  %v8785_v34 = vadd.f32 %v15727_v14, %v8784_v20 }
 0x6f9   : > { %11961 = vst [vmem:[%s13061_s25 + $0x48] sm:$0xff] %v11624_v49  }
 0x6fa   : > { %v8833_v30 = vand.u32 2147483647, %v8785_v34  ;;  %vm8933_vm1 = vcmp.ge.f32.partialorder %v8785_v34, 0.0 }
 0x6fc   : > { %v8853_v26 = vsub.f32 0.0, %v8833_v30 }
 0x6fe   : > { %v12670_v39 = vpop.eup %12669  ;;  %v8874_v25 = vmul.f32 1.442695, %v8853_v26 }
 0x6ff   : > { %v8912_v5 = vmul.f32 %v12670_v39, %v12670_v39  ;;  %v8952_v63 = vmul.f32 2.0, %v12670_v39  ;;  %v8787_v18 = vpop.f32.mrf.mxu2 }
 0x700   : > { %12671 = vpow2.f32 %v8874_v25  ;;  %v11031_v10 = vld [vmem:[%s13061_s25 + $0x48] sm:$0xff]  ;;  %v15736_v43 = vadd.f32 %v15727_v14, %v8787_v18 }
 0x701   : > { %v8972_v9 = vadd.f32 1.0, %v8952_v63  ;;  %v9032_v58 = vmul.f32 2.0, %v8912_v5  ;;  %v9072_v35 = vadd.f32 2.0, %v8952_v63  ;;  %8826 = vmatmul.bf16.gmra.mxu2 %v11031_v10  ;;  %v8992_v44 = vadd.f32 %v8952_v63, %v8912_v5 }
 0x702   : > { %v8834_v53 = vand.u32 2147483647, %v15736_v43  ;;  %vm8934_vm2 = vcmp.ge.f32.partialorder %v15736_v43, 0.0 }
 0x703   : > { %v9052_v7 = vadd.f32 %v9032_v58, %v8972_v9  ;;  %v9092_v16 = vadd.f32 %v9072_v35, %v8912_v5  ;;  %v9012_v50 = vsel %vm8932_vm0, %v8972_v9, %v8992_v44 }
 0x704   : > { %v8854_v60 = vsub.f32 0.0, %v8834_v53  ;;  %v9132_v21 = vmul.f32 %v9012_v50, %v8783_v0 }
 0x705   : > { %v9112_v54 = vsel %vm8932_vm0, %v9052_v7, %v9092_v16 }
 0x706   : > { %v12672_v59 = vpop.eup %12671  ;;  %v8876_v48 = vmul.f32 1.442695, %v8854_v60 }
 0x707   : > { %v8913_v12 = vmul.f32 %v12672_v59, %v12672_v59  ;;  %v8953_v11 = vmul.f32 2.0, %v12672_v59  ;;  %v8789_v24 = vpop.f32.mrf.mxu2 }
 0x708   : > { %12673 = vpow2.f32 %v8876_v48  ;;  %v15741_v36 = vadd.f32 %v15727_v14, %v8789_v24 }
 0x709   : > { %v8973_v3 = vadd.f32 1.0, %v8953_v11  ;;  %v9033_v8 = vmul.f32 2.0, %v8913_v12  ;;  %v9073_v2 = vadd.f32 2.0, %v8953_v11  ;;  %12675 = vrcp.f32 %v9112_v54 }
 0x70a   : > { %v8993_v62 = vadd.f32 %v8953_v11, %v8913_v12  ;;  %v8835_v4 = vand.u32 2147483647, %v15741_v36  ;;  %vm8935_vm3 = vcmp.ge.f32.partialorder %v15741_v36, 0.0 }
 0x70b   : > { %v9053_v6 = vadd.f32 %v9033_v8, %v8973_v3  ;;  %v9093_v55 = vadd.f32 %v9073_v2, %v8913_v12 }
 0x70c   : > { %v8855_v37 = vsub.f32 0.0, %v8835_v4  ;;  %v9013_v46 = vsel %vm8933_vm1, %v8973_v3, %v8993_v62 }
 0x70d   : > { %v9113_v27 = vsel %vm8933_vm1, %v9053_v6, %v9093_v55  ;;  %v9133_v19 = vmul.f32 %v9013_v46, %v8785_v34 }
 0x70e   : > { %12677 = vrcp.f32 %v9113_v27  ;;  %v12674_v23 = vpop.eup %12673  ;;  %v8878_v29 = vmul.f32 1.442695, %v8855_v37 }
 0x70f   : > { %v8914_v45 = vmul.f32 %v12674_v23, %v12674_v23  ;;  %v8954_v56 = vmul.f32 2.0, %v12674_v23  ;;  %v8792_v38 = vpop.f32.mrf.mxu2  ;;  %v12676_v51 = vpop.eup %12675 }
 0x710   : > { %12679 = vpow2.f32 %v8878_v29  ;;  %v15746_v40 = vadd.f32 %v15727_v14, %v8792_v38  ;;  %v9172_v41 = vmul.f32 %v12676_v51, %v9132_v21 }
 0x711   : > { %v8974_v15 = vadd.f32 1.0, %v8954_v56  ;;  %v9034_v47 = vmul.f32 2.0, %v8914_v45  ;;  %v9074_v28 = vadd.f32 2.0, %v8954_v56  ;;  %v8994_v63 = vadd.f32 %v8954_v56, %v8914_v45 }
 0x712   : > { %v8836_v57 = vand.u32 2147483647, %v15746_v40  ;;  %vm8936_vm4 = vcmp.ge.f32.partialorder %v15746_v40, 0.0 }
 0x713   : > { %v9054_v17 = vadd.f32 %v9034_v47, %v8974_v15  ;;  %v9094_v13 = vadd.f32 %v9074_v28, %v8914_v45  ;;  %v9014_v16 = vsel %vm8934_vm2, %v8974_v15, %v8994_v63 }
 0x714   : > { %v12678_v42 = vpop.eup %12677  ;;  %v8856_v33 = vsub.f32 0.0, %v8836_v57  ;;  %v9134_v3 = vmul.f32 %v9014_v16, %v15736_v43 }
 0x715   : > { %v9173_v1 = vmul.f32 %v12678_v42, %v9133_v19  ;;  %v9114_v20 = vsel %vm8934_vm2, %v9054_v17, %v9094_v13 }
 0x716   : > { %v12680_v49 = vpop.eup %12679  ;;  %v8880_v0 = vmul.f32 1.442695, %v8856_v33 }
 0x717   : > { %v11629_v32 = vpack.c.bf16 %v9173_v1, %v9172_v41  ;;  %v8915_v52 = vmul.f32 %v12680_v49, %v12680_v49  ;;  %v8955_v22 = vmul.f32 2.0, %v12680_v49  ;;  %v8794_v61 = vpop.f32.mrf.mxu2 }
 0x718   : > { %12681 = vpow2.f32 %v8880_v0  ;;  %v15752_v31 = vadd.f32 %v15727_v14, %v8794_v61 }
 0x719   : > { %11630 = vst [vmem:[%s13061_s25] sm:$0xff] %v11629_v32   ;;  %v8975_v34 = vadd.f32 1.0, %v8955_v22  ;;  %v9035_v30 = vmul.f32 2.0, %v8915_v52  ;;  %v9075_v26 = vadd.f32 2.0, %v8955_v22  ;;  %12683 = vrcp.f32 %v9114_v20 }
 0x71a   : > { %v8837_v39 = vand.u32 2147483647, %v15752_v31  ;;  %v8995_v18 = vadd.f32 %v8955_v22, %v8915_v52  ;;  %vm8937_vm5 = vcmp.ge.f32.partialorder %v15752_v31, 0.0 }
 0x71b   : > { %v9055_v25 = vadd.f32 %v9035_v30, %v8975_v34  ;;  %v9095_v5 = vadd.f32 %v9075_v26, %v8915_v52 }
 0x71c   : > { %v8857_v9 = vsub.f32 0.0, %v8837_v39  ;;  %v9015_v59 = vsel %vm8935_vm3, %v8975_v34, %v8995_v18 }
 0x71d   : > { %v9115_v58 = vsel %vm8935_vm3, %v9055_v25, %v9095_v5  ;;  %v9135_v8 = vmul.f32 %v9015_v59, %v15741_v36 }
 0x71e   : > { %v12682_v35 = vpop.eup %12681  ;;  %12685 = vrcp.f32 %v9115_v58  ;;  %v8882_v10 = vmul.f32 1.442695, %v8857_v9 }
 0x71f   : > { %v8916_v53 = vmul.f32 %v12682_v35, %v12682_v35  ;;  %v8956_v7 = vmul.f32 2.0, %v12682_v35  ;;  %v8797_v60 = vpop.f32.mrf.mxu2  ;;  %v12684_v24 = vpop.eup %12683 }
 0x720   : > { %12687 = vpow2.f32 %v8882_v10  ;;  %v15761_v54 = vadd.f32 %v15727_v14, %v8797_v60  ;;  %v9174_v6 = vmul.f32 %v12684_v24, %v9134_v3 }
 0x721   : > { %v8976_v12 = vadd.f32 1.0, %v8956_v7  ;;  %v9036_v11 = vmul.f32 2.0, %v8916_v53  ;;  %v9076_v48 = vadd.f32 2.0, %v8956_v7  ;;  %v8996_v21 = vadd.f32 %v8956_v7, %v8916_v53 }
 0x722   : > { %v8838_v44 = vand.u32 2147483647, %v15761_v54  ;;  %vm8938_vm6 = vcmp.ge.f32.partialorder %v15761_v54, 0.0 }
 0x723   : > { %v9056_v62 = vadd.f32 %v9036_v11, %v8976_v12  ;;  %v9096_v4 = vadd.f32 %v9076_v48, %v8916_v53  ;;  %v9016_v41 = vsel %vm8936_vm4, %v8976_v12, %v8996_v21 }
 0x724   : > { %v12686_v2 = vpop.eup %12685  ;;  %v8858_v37 = vsub.f32 0.0, %v8838_v44  ;;  %v9136_v52 = vmul.f32 %v9016_v41, %v15746_v40 }
 0x725   : > { %v9175_v55 = vmul.f32 %v12686_v2, %v9135_v8  ;;  %v9116_v43 = vsel %vm8936_vm4, %v9056_v62, %v9096_v4 }
 0x726   : > { %v12688_v27 = vpop.eup %12687  ;;  %v8884_v29 = vmul.f32 1.442695, %v8858_v37 }
 0x727   : > { %v11634_v50 = vpack.c.bf16 %v9175_v55, %v9174_v6  ;;  %v8917_v23 = vmul.f32 %v12688_v27, %v12688_v27  ;;  %v8957_v46 = vmul.f32 2.0, %v12688_v27  ;;  %v8799_v45 = vpop.f32.mrf.mxu2 }
 0x728   : > { %12689 = vpow2.f32 %v8884_v29  ;;  %v15771_v51 = vadd.f32 %v15727_v14, %v8799_v45 }
 0x729   : > { %11962 = vst [vmem:[%s13061_s25 + $0x8] sm:$0xff] %v11634_v50   ;;  %v8977_v36 = vadd.f32 1.0, %v8957_v46  ;;  %v9037_v56 = vmul.f32 2.0, %v8917_v23  ;;  %v9077_v38 = vadd.f32 2.0, %v8957_v46  ;;  %12691 = vrcp.f32 %v9116_v43 }
 0x72a   : > { %v8997_v47 = vadd.f32 %v8957_v46, %v8917_v23  ;;  %v8839_v28 = vand.u32 2147483647, %v15771_v51  ;;  %vm8939_vm7 = vcmp.ge.f32.partialorder %v15771_v51, 0.0 }
 0x72b   : > { %v9057_v19 = vadd.f32 %v9037_v56, %v8977_v36  ;;  %v9097_v15 = vadd.f32 %v9077_v38, %v8917_v23 }
 0x72c   : > { %v8859_v57 = vsub.f32 0.0, %v8839_v28  ;;  %v9017_v33 = vsel %vm8937_vm5, %v8977_v36, %v8997_v47 }
 0x72d   : > { %v9117_v42 = vsel %vm8937_vm5, %v9057_v19, %v9097_v15  ;;  %v9137_v61 = vmul.f32 %v9017_v33, %v15752_v31 }
 0x72e   : > { %12693 = vrcp.f32 %v9117_v42  ;;  %v12690_v1 = vpop.eup %12689  ;;  %v8886_v32 = vmul.f32 1.442695, %v8859_v57 }
 0x72f   : > { %v8918_v17 = vmul.f32 %v12690_v1, %v12690_v1  ;;  %v8958_v13 = vmul.f32 2.0, %v12690_v1  ;;  %v8802_v49 = vpop.f32.mrf.mxu2  ;;  %v12692_v0 = vpop.eup %12691 }
 0x730   : > { %12695 = vpow2.f32 %v8886_v32  ;;  %v15779_v22 = vadd.f32 %v15727_v14, %v8802_v49  ;;  %v9176_v25 = vmul.f32 %v12692_v0, %v9136_v52 }
 0x731   : > { %v8978_v20 = vadd.f32 1.0, %v8958_v13  ;;  %v9038_v34 = vmul.f32 2.0, %v8918_v17  ;;  %v9078_v30 = vadd.f32 2.0, %v8958_v13  ;;  %v8998_v3 = vadd.f32 %v8958_v13, %v8918_v17 }
 0x732   : > { %v8840_v39 = vand.u32 2147483647, %v15779_v22  ;;  %vm8940_vm8 = vcmp.ge.f32.partialorder %v15779_v22, 0.0 }
 0x733   : > { %v9058_v9 = vadd.f32 %v9038_v34, %v8978_v20  ;;  %v9098_v58 = vadd.f32 %v9078_v30, %v8918_v17  ;;  %v9018_v27 = vsel %vm8938_vm6, %v8978_v20, %v8998_v3 }
 0x734   : > { %v12694_v26 = vpop.eup %12693  ;;  %v8860_v63 = vsub.f32 0.0, %v8840_v39  ;;  %v9138_v36 = vmul.f32 %v9018_v27, %v15761_v54 }
 0x735   : > { %v9177_v5 = vmul.f32 %v12694_v26, %v9137_v61  ;;  %v9118_v16 = vsel %vm8938_vm6, %v9058_v9, %v9098_v58 }
 0x736   : > { %v12696_v40 = vpop.eup %12695  ;;  %v8888_v35 = vmul.f32 1.442695, %v8860_v63 }
 0x737   : > { %v11639_v18 = vpack.c.bf16 %v9177_v5, %v9176_v25  ;;  %v8919_v10 = vmul.f32 %v12696_v40, %v12696_v40  ;;  %v8959_v53 = vmul.f32 2.0, %v12696_v40  ;;  %v8804_v7 = vpop.f32.mrf.mxu2 }
 0x738   : > { %12697 = vpow2.f32 %v8888_v35  ;;  %v15786_v31 = vadd.f32 %v15727_v14, %v8804_v7 }
 0x739   : > { %11963 = vst [vmem:[%s13061_s25 + $0x10] sm:$0xff] %v11639_v18   ;;  %v8979_v59 = vadd.f32 1.0, %v8959_v53  ;;  %v9039_v60 = vmul.f32 2.0, %v8919_v10  ;;  %v9079_v12 = vadd.f32 2.0, %v8959_v53  ;;  %12699 = vrcp.f32 %v9118_v16 }
 0x73a   : > { %v8841_v11 = vand.u32 2147483647, %v15786_v31  ;;  %v8999_v8 = vadd.f32 %v8959_v53, %v8919_v10  ;;  %vm8941_vm9 = vcmp.ge.f32.partialorder %v15786_v31, 0.0 }
 0x73b   : > { %v9059_v48 = vadd.f32 %v9039_v60, %v8979_v59  ;;  %v9099_v24 = vadd.f32 %v9079_v12, %v8919_v10 }
 0x73c   : > { %v8861_v2 = vsub.f32 0.0, %v8841_v11  ;;  %v9019_v37 = vsel %vm8939_vm7, %v8979_v59, %v8999_v8 }
 0x73d   : > { %v9119_v44 = vsel %vm8939_vm7, %v9059_v48, %v9099_v24  ;;  %v9139_v56 = vmul.f32 %v9019_v37, %v15771_v51 }
 0x73e   : > { %v12698_v6 = vpop.eup %12697  ;;  %12701 = vrcp.f32 %v9119_v44  ;;  %v8890_v55 = vmul.f32 1.442695, %v8861_v2 }
 0x73f   : > { %v8920_v62 = vmul.f32 %v12698_v6, %v12698_v6  ;;  %v8960_v4 = vmul.f32 2.0, %v12698_v6  ;;  %v8807_v50 = vpop.f32.mrf.mxu2  ;;  %v12700_v45 = vpop.eup %12699 }
 0x740   : > { %12703 = vpow2.f32 %v8890_v55  ;;  %v15795_v43 = vadd.f32 %v15727_v14, %v8807_v50  ;;  %v9178_v19 = vmul.f32 %v12700_v45, %v9138_v36 }
 0x741   : > { %v8980_v23 = vadd.f32 1.0, %v8960_v4  ;;  %v9040_v46 = vmul.f32 2.0, %v8920_v62  ;;  %v9080_v29 = vadd.f32 2.0, %v8960_v4  ;;  %v9000_v52 = vadd.f32 %v8960_v4, %v8920_v62 }
 0x742   : > { %v8842_v21 = vand.u32 2147483647, %v15795_v43  ;;  %vm8942_vm11 = vcmp.ge.f32.partialorder %v15795_v43, 0.0 }
 0x743   : > { %v9060_v47 = vadd.f32 %v9040_v46, %v8980_v23  ;;  %v9100_v28 = vadd.f32 %v9080_v29, %v8920_v62  ;;  %v9020_v25 = vsel %vm8940_vm8, %v8980_v23, %v9000_v52 }
 0x744   : > { %v12702_v38 = vpop.eup %12701  ;;  %v8862_v57 = vsub.f32 0.0, %v8842_v21  ;;  %v9140_v35 = vmul.f32 %v9020_v25, %v15779_v22 }
 0x745   : > { %v9179_v15 = vmul.f32 %v12702_v38, %v9139_v56  ;;  %v9120_v54 = vsel %vm8940_vm8, %v9060_v47, %v9100_v28 }
 0x746   : > { %v12704_v42 = vpop.eup %12703  ;;  %v8892_v32 = vmul.f32 1.442695, %v8862_v57 }
 0x747   : > { %v11644_v41 = vpack.c.bf16 %v9179_v15, %v9178_v19  ;;  %v8921_v1 = vmul.f32 %v12704_v42, %v12704_v42  ;;  %v8961_v33 = vmul.f32 2.0, %v12704_v42  ;;  %v8809_v17 = vpop.f32.mrf.mxu2 }
 0x748   : > { %12705 = vpow2.f32 %v8892_v32  ;;  %v15805_v0 = vadd.f32 %v15727_v14, %v8809_v17 }
 0x749   : > { %11964 = vst [vmem:[%s13061_s25 + $0x18] sm:$0xff] %v11644_v41   ;;  %v8981_v51 = vadd.f32 1.0, %v8961_v33  ;;  %v9041_v13 = vmul.f32 2.0, %v8921_v1  ;;  %v9081_v49 = vadd.f32 2.0, %v8961_v33  ;;  %12707 = vrcp.f32 %v9120_v54 }
 0x74a   : > { %v9001_v34 = vadd.f32 %v8961_v33, %v8921_v1  ;;  %v8843_v30 = vand.u32 2147483647, %v15805_v0  ;;  %vm8943_vm12 = vcmp.ge.f32.partialorder %v15805_v0, 0.0 }
 0x74b   : > { %v9061_v61 = vadd.f32 %v9041_v13, %v8981_v51  ;;  %v9101_v20 = vadd.f32 %v9081_v49, %v8921_v1 }
 0x74c   : > { %v8863_v39 = vsub.f32 0.0, %v8843_v30  ;;  %v9021_v63 = vsel %vm8941_vm9, %v8981_v51, %v9001_v34 }
 0x74d   : > { %v9121_v26 = vsel %vm8941_vm9, %v9061_v61, %v9101_v20  ;;  %v9141_v10 = vmul.f32 %v9021_v63, %v15786_v31 }
 0x74e   : > { %12709 = vrcp.f32 %v9121_v26  ;;  %v12706_v5 = vpop.eup %12705  ;;  %v8894_v18 = vmul.f32 1.442695, %v8863_v39 }
 0x74f   : > { %v8922_v9 = vmul.f32 %v12706_v5, %v12706_v5  ;;  %v8962_v58 = vmul.f32 2.0, %v12706_v5  ;;  %v12708_v40 = vpop.eup %12707  ;;  %v8812_v60 = vpop.f32.mrf.mxu2 }
 0x750   : > { %12711 = vpow2.f32 %v8894_v18  ;;  %v9180_v12 = vmul.f32 %v12708_v40, %v9140_v35  ;;  %v15814_v3 = vadd.f32 %v15727_v14, %v8812_v60 }
 0x751   : > { %v8982_v53 = vadd.f32 1.0, %v8962_v58  ;;  %v9042_v7 = vmul.f32 2.0, %v8922_v9  ;;  %v9082_v16 = vadd.f32 2.0, %v8962_v58  ;;  %v9002_v37 = vadd.f32 %v8962_v58, %v8922_v9 }
 0x752   : > { %v8844_v22 = vand.u32 2147483647, %v15814_v3  ;;  %vm8944_vm10 = vcmp.ge.f32.partialorder %v15814_v3, 0.0 }
 0x753   : > { %v9062_v48 = vadd.f32 %v9042_v7, %v8982_v53  ;;  %v9102_v24 = vadd.f32 %v9082_v16, %v8922_v9  ;;  %v9022_v21 = vsel %vm8942_vm11, %v8982_v53, %v9002_v37 }
 0x754   : > { %v12710_v59 = vpop.eup %12709  ;;  %v8864_v55 = vsub.f32 0.0, %v8844_v22  ;;  %v9142_v57 = vmul.f32 %v9022_v21, %v15795_v43 }
 0x755   : > { %v9181_v11 = vmul.f32 %v12710_v59, %v9141_v10  ;;  %v9122_v31 = vsel %vm8942_vm11, %v9062_v48, %v9102_v24 }
 0x756   : > { %v12712_v2 = vpop.eup %12711  ;;  %12713 = vrcp.f32 %v9122_v31  ;;  %v8896_v50 = vmul.f32 1.442695, %v8864_v55 }
 0x757   : > { %v11649_v8 = vpack.c.bf16 %v9181_v11, %v9180_v12  ;;  %v8923_v44 = vmul.f32 %v12712_v2, %v12712_v2  ;;  %v8963_v6 = vmul.f32 2.0, %v12712_v2  ;;  %v8814_v23 = vpop.f32.mrf.mxu2 }
 0x758   : > { %v15822_v36 = vadd.f32 %v15727_v14, %v8814_v23  ;;  %12715 = vpow2.f32 %v8896_v50 }
 0x759   : > { %11965 = vst [vmem:[%s13061_s25 + $0x20] sm:$0xff] %v11649_v8   ;;  %v8983_v62 = vadd.f32 1.0, %v8963_v6  ;;  %v9043_v4 = vmul.f32 2.0, %v8923_v44  ;;  %v9083_v27 = vadd.f32 2.0, %v8963_v6  ;;  %v9003_v46 = vadd.f32 %v8963_v6, %v8923_v44 }
 0x75a   : > { %v8845_v38 = vand.u32 2147483647, %v15822_v36  ;;  %vm8945_vm13 = vcmp.ge.f32.partialorder %v15822_v36, 0.0 }
 0x75b   : > { %v9063_v29 = vadd.f32 %v9043_v4, %v8983_v62  ;;  %v9103_v45 = vadd.f32 %v9083_v27, %v8923_v44  ;;  %v9023_v19 = vsel %vm8943_vm12, %v8983_v62, %v9003_v46 }
 0x75c   : > { %v8865_v15 = vsub.f32 0.0, %v8845_v38  ;;  %v12714_v47 = vpop.eup %12713  ;;  %v9143_v41 = vmul.f32 %v9023_v19, %v15805_v0 }
 0x75d   : > { %v9123_v56 = vsel %vm8943_vm12, %v9063_v29, %v9103_v45  ;;  %v9182_v51 = vmul.f32 %v12714_v47, %v9142_v57 }
 0x75e   : > { %12717 = vrcp.f32 %v9123_v56  ;;  %v8898_v28 = vmul.f32 1.442695, %v8865_v15  ;;  %v12716_v42 = vpop.eup %12715 }
 0x75f   : > { %v8817_v1 = vpop.f32.mrf.mxu2  ;;  %v8924_v33 = vmul.f32 %v12716_v42, %v12716_v42  ;;  %v8964_v32 = vmul.f32 2.0, %v12716_v42 }
 0x760   : > { %12719 = vpow2.f32 %v8898_v28  ;;  %v15831_v17 = vadd.f32 %v15727_v14, %v8817_v1 }
 0x761   : > { %v8984_v49 = vadd.f32 1.0, %v8964_v32  ;;  %v9044_v52 = vmul.f32 2.0, %v8924_v33  ;;  %v9084_v61 = vadd.f32 2.0, %v8964_v32  ;;  %v9004_v53 = vadd.f32 %v8964_v32, %v8924_v33 }
 0x762   : > { %v8846_v20 = vand.u32 2147483647, %v15831_v17  ;;  %vm8946_vm15 = vcmp.ge.f32.partialorder %v15831_v17, 0.0 }
 0x763   : > { %v9064_v43 = vadd.f32 %v9044_v52, %v8984_v49  ;;  %v9104_v30 = vadd.f32 %v9084_v61, %v8924_v33  ;;  %v9024_v48 = vsel %vm8944_vm10, %v8984_v49, %v9004_v53 }
 0x764   : > { %v12718_v54 = vpop.eup %12717  ;;  %v8866_v0 = vsub.f32 0.0, %v8846_v20  ;;  %v9144_v55 = vmul.f32 %v9024_v48, %v15814_v3 }
 0x765   : > { %v9183_v13 = vmul.f32 %v12718_v54, %v9143_v41  ;;  %v9124_v9 = vsel %vm8944_vm10, %v9064_v43, %v9104_v30 }
 0x766   : > { %v12720_v26 = vpop.eup %12719  ;;  %v8900_v5 = vmul.f32 1.442695, %v8866_v0 }
 0x767   : > { %v11654_v34 = vpack.c.bf16 %v9183_v13, %v9182_v51  ;;  %v8925_v39 = vmul.f32 %v12720_v26, %v12720_v26  ;;  %v8965_v25 = vmul.f32 2.0, %v12720_v26  ;;  %v8819_v63 = vpop.f32.mrf.mxu2 }
 0x768   : > { %v15837_v18 = vadd.f32 %v15727_v14, %v8819_v63  ;;  %12721 = vpow2.f32 %v8900_v5 }
 0x769   : > { %11966 = vst [vmem:[%s13061_s25 + $0x28] sm:$0xff] %v11654_v34   ;;  %v8985_v58 = vadd.f32 1.0, %v8965_v25  ;;  %v9045_v40 = vmul.f32 2.0, %v8925_v39  ;;  %v9085_v35 = vadd.f32 2.0, %v8965_v25  ;;  %12723 = vrcp.f32 %v9124_v9 }
 0x76a   : > { %v8847_v10 = vand.u32 2147483647, %v15837_v18  ;;  %v9005_v59 = vadd.f32 %v8965_v25, %v8925_v39  ;;  %vm8947_vm14 = vcmp.ge.f32.partialorder %v15837_v18, 0.0 }
 0x76b   : > { %v9065_v7 = vadd.f32 %v9045_v40, %v8985_v58  ;;  %v9105_v16 = vadd.f32 %v9085_v35, %v8925_v39 }
 0x76c   : > { %v8867_v60 = vsub.f32 0.0, %v8847_v10  ;;  %v9025_v2 = vsel %vm8945_vm13, %v8985_v58, %v9005_v59 }
 0x76d   : > { %v9125_v12 = vsel %vm8945_vm13, %v9065_v7, %v9105_v16  ;;  %v9145_v4 = vmul.f32 %v9025_v2, %v15822_v36 }
 0x76e   : > { %12725 = vrcp.f32 %v9125_v12  ;;  %v8902_v11 = vmul.f32 1.442695, %v8867_v60  ;;  %v12722_v8 = vpop.eup %12721 }
 0x76f   : > { %v8822_v24 = vpop.f32.mrf.mxu2  ;;  %v8926_v31 = vmul.f32 %v12722_v8, %v12722_v8  ;;  %v8966_v44 = vmul.f32 2.0, %v12722_v8  ;;  %v12724_v6 = vpop.eup %12723 }
 0x770   : > { %12727 = vpow2.f32 %v8902_v11  ;;  %v15846_v22 = vadd.f32 %v15727_v14, %v8822_v24  ;;  %v9184_v29 = vmul.f32 %v12724_v6, %v9144_v55 }
 0x771   : > { %v8986_v27 = vadd.f32 1.0, %v8966_v44  ;;  %v9046_v37 = vmul.f32 2.0, %v8926_v31  ;;  %v9086_v50 = vadd.f32 2.0, %v8966_v44  ;;  %v9006_v32 = vadd.f32 %v8966_v44, %v8926_v31 }
 0x772   : > { %v8848_v62 = vand.u32 2147483647, %v15846_v22  ;;  %vm8948_vm0 = vcmp.ge.f32.partialorder %v15846_v22, 0.0 }
 0x773   : > { %v9066_v56 = vadd.f32 %v9046_v37, %v8986_v27  ;;  %v9106_v38 = vadd.f32 %v9086_v50, %v8926_v31  ;;  %v9026_v20 = vsel %vm8946_vm15, %v8986_v27, %v9006_v32 }
 0x774   : > { %v12726_v23 = vpop.eup %12725  ;;  %v8868_v46 = vsub.f32 0.0, %v8848_v62  ;;  %v9146_v5 = vmul.f32 %v9026_v20, %v15831_v17 }
 0x775   : > { %v9185_v45 = vmul.f32 %v12726_v23, %v9145_v4  ;;  %v9126_v42 = vsel %vm8946_vm15, %v9066_v56, %v9106_v38 }
 0x776   : > { %v12728_v21 = vpop.eup %12727  ;;  %v8904_v19 = vmul.f32 1.442695, %v8868_v46 }
 0x777   : > { %v11659_v15 = vpack.c.bf16 %v9185_v45, %v9184_v29  ;;  %v8927_v47 = vmul.f32 %v12728_v21, %v12728_v21  ;;  %v8967_v28 = vmul.f32 2.0, %v12728_v21  ;;  %v8824_v3 = vpop.f32.mrf.mxu2 }
 0x778   : > { %v15853_v36 = vadd.f32 %v15727_v14, %v8824_v3  ;;  %12729 = vpow2.f32 %v8904_v19 }
 0x779   : > { %11967 = vst [vmem:[%s13061_s25 + $0x30] sm:$0xff] %v11659_v15   ;;  %v8987_v57 = vadd.f32 1.0, %v8967_v28  ;;  %v9047_v41 = vmul.f32 2.0, %v8927_v47  ;;  %v9087_v1 = vadd.f32 2.0, %v8967_v28  ;;  %12731 = vrcp.f32 %v9126_v42 }
 0x77a   : > { %v8849_v33 = vand.u32 2147483647, %v15853_v36  ;;  %v9007_v13 = vadd.f32 %v8967_v28, %v8927_v47  ;;  %vm8949_vm1 = vcmp.ge.f32.partialorder %v15853_v36, 0.0 }
 0x77b   : > { %v9067_v54 = vadd.f32 %v9047_v41, %v8987_v57  ;;  %v9107_v51 = vadd.f32 %v9087_v1, %v8927_v47 }
 0x77c   : > { %v8869_v49 = vsub.f32 0.0, %v8849_v33  ;;  %v9027_v30 = vsel %vm8947_vm14, %v8987_v57, %v9007_v13 }
 0x77d   : > { %v9127_v52 = vsel %vm8947_vm14, %v9067_v54, %v9107_v51  ;;  %v9147_v9 = vmul.f32 %v9027_v30, %v15837_v18 }
 0x77e   : > { %12733 = vrcp.f32 %v9127_v52  ;;  %v8906_v61 = vmul.f32 1.442695, %v8869_v49  ;;  %v12730_v43 = vpop.eup %12729 }
 0x77f   : > { %v8928_v26 = vmul.f32 %v12730_v43, %v12730_v43  ;;  %v8968_v39 = vmul.f32 2.0, %v12730_v43  ;;  %v12732_v25 = vpop.eup %12731 }
 0x780   : > { %12735 = vpow2.f32 %v8906_v61  ;;  %v9186_v7 = vmul.f32 %v12732_v25, %v9146_v5 }
 0x781   : > { %v8988_v58 = vadd.f32 1.0, %v8968_v39  ;;  %v9048_v40 = vmul.f32 2.0, %v8928_v26  ;;  %v9088_v35 = vadd.f32 2.0, %v8968_v39  ;;  %v9008_v62 = vadd.f32 %v8968_v39, %v8928_v26 }
 0x783   : > { %v9068_v59 = vadd.f32 %v9048_v40, %v8988_v58  ;;  %v9108_v60 = vadd.f32 %v9088_v35, %v8928_v26  ;;  %v9028_v46 = vsel %vm8948_vm0, %v8988_v58, %v9008_v62 }
 0x784   : > { %v8827_v34 = vpop.f32.mrf.mxu2  ;;  %v12734_v10 = vpop.eup %12733  ;;  %v9148_v19 = vmul.f32 %v9028_v46, %v15846_v22 }
 0x785   : > { %v15863_v0 = vadd.f32 %v15727_v14, %v8827_v34  ;;  %v9187_v16 = vmul.f32 %v12734_v10, %v9147_v9  ;;  %v9128_v2 = vsel %vm8948_vm0, %v9068_v59, %v9108_v60 }
 0x786   : > { %v12736_v12 = vpop.eup %12735 }
 0x787   : > { %v8850_v63 = vand.u32 2147483647, %v15863_v0  ;;  %v11664_v48 = vpack.c.bf16 %v9187_v16, %v9186_v7  ;;  %v8929_v24 = vmul.f32 %v12736_v12, %v12736_v12  ;;  %v8969_v8 = vmul.f32 2.0, %v12736_v12 }
 0x788   : > { %vm8950_vm2 = vcmp.ge.f32.partialorder %v15863_v0, 0.0 }
 0x789   : > { %v8870_v53 = vsub.f32 0.0, %v8850_v63  ;;  %11968 = vst [vmem:[%s13061_s25 + $0x38] sm:$0xff] %v11664_v48   ;;  %v8989_v31 = vadd.f32 1.0, %v8969_v8  ;;  %v9049_v44 = vmul.f32 2.0, %v8929_v24  ;;  %v9089_v6 = vadd.f32 2.0, %v8969_v8 }
 0x78a   : > { %v9009_v37 = vadd.f32 %v8969_v8, %v8929_v24 }
 0x78b   : > { %v8908_v11 = vmul.f32 1.442695, %v8870_v53  ;;  %v9069_v4 = vadd.f32 %v9049_v44, %v8989_v31  ;;  %v9109_v27 = vadd.f32 %v9089_v6, %v8929_v24 }
 0x78c   : > { %v8829_v17 = vpop.f32.mrf.mxu2  ;;  %v9029_v45 = vsel %vm8949_vm1, %v8989_v31, %v9009_v37 }
 0x78d   : > { %v8830_v18 = vadd.f32 %v15727_v14, %v8829_v17  ;;  %12737 = vpow2.f32 %v8908_v11  ;;  %v9129_v23 = vsel %vm8949_vm1, %v9069_v4, %v9109_v27  ;;  %v9149_v15 = vmul.f32 %v9029_v45, %v15853_v36 }
 0x78e   : > { %12739 = vrcp.f32 %v9128_v2 }
 0x78f   : > { %v8851_v55 = vand.u32 2147483647, %v8830_v18  ;;  %12741 = vrcp.f32 %v9129_v23  ;;  %vm8951_vm3 = vcmp.ge.f32.partialorder %v8830_v18, 0.0 }
 0x791   : > { %v8871_v50 = vsub.f32 0.0, %v8851_v55 }
 0x793   : > { %v8910_v14 = vmul.f32 1.442695, %v8871_v50  ;;  %v12738_v29 = vpop.eup %12737 }
 0x794   : > { %v8930_v56 = vmul.f32 %v12738_v29, %v12738_v29  ;;  %v8970_v38 = vmul.f32 2.0, %v12738_v29  ;;  %v12740_v21 = vpop.eup %12739 }
 0x795   : > { %12743 = vpow2.f32 %v8910_v14  ;;  %v12742_v42 = vpop.eup %12741  ;;  %v9188_v57 = vmul.f32 %v12740_v21, %v9148_v19 }
 0x796   : > { %v8990_v47 = vadd.f32 1.0, %v8970_v38  ;;  %v9050_v28 = vmul.f32 2.0, %v8930_v56  ;;  %v9090_v3 = vadd.f32 2.0, %v8970_v38  ;;  %v9189_v41 = vmul.f32 %v12742_v42, %v9149_v15 }
 0x797   : > { %v9010_v34 = vadd.f32 %v8970_v38, %v8930_v56 }
 0x798   : > { %v9070_v1 = vadd.f32 %v9050_v28, %v8990_v47  ;;  %v9110_v33 = vadd.f32 %v9090_v3, %v8930_v56  ;;  %v11669_v54 = vpack.c.bf16 %v9189_v41, %v9188_v57 }
 0x799   : > { %v9030_v26 = vsel %vm8950_vm2, %v8990_v47, %v9010_v34 }
 0x79a   : > { %11969 = vst [vmem:[%s13061_s25 + $0x40] sm:$0xff] %v11669_v54   ;;  %v9130_v49 = vsel %vm8950_vm2, %v9070_v1, %v9110_v33  ;;  %v9150_v5 = vmul.f32 %v9030_v26, %v15863_v0 }
 0x79b   : > { %v12744_v32 = vpop.eup %12743  ;;  %12745 = vrcp.f32 %v9130_v49 }
 0x79c   : > { %v8931_v51 = vmul.f32 %v12744_v32, %v12744_v32  ;;  %v8971_v13 = vmul.f32 2.0, %v12744_v32 }
 0x79e   : > { %v8991_v52 = vadd.f32 1.0, %v8971_v13  ;;  %v9051_v22 = vmul.f32 2.0, %v8931_v51  ;;  %v9091_v61 = vadd.f32 2.0, %v8971_v13  ;;  %v9011_v43 = vadd.f32 %v8971_v13, %v8931_v51 }
 0x7a0   : > { %v9071_v36 = vadd.f32 %v9051_v22, %v8991_v52  ;;  %v9111_v20 = vadd.f32 %v9091_v61, %v8931_v51  ;;  %v9031_v39 = vsel %vm8951_vm3, %v8991_v52, %v9011_v43 }
 0x7a1   : > { %v12746_v25 = vpop.eup %12745  ;;  %v9151_v63 = vmul.f32 %v9031_v39, %v8830_v18 }
 0x7a2   : > { %v9131_v30 = vsel %vm8951_vm3, %v9071_v36, %v9111_v20  ;;  %v9190_v58 = vmul.f32 %v12746_v25, %v9150_v5 }
 0x7a3   : > { %12747 = vrcp.f32 %v9131_v30 }
 0x7a9   : > { %v12748_v9 = vpop.eup %12747 }
 0x7aa   : > { %v9191_v40 = vmul.f32 %v12748_v9, %v9151_v63 }
 0x7ac   : > { %v11674_v35 = vpack.c.bf16 %v9191_v40, %v9190_v58 }
 0x7ae   : > { %11970 = vst [vmem:[%s13061_s25 + $0x48] sm:$0xff] %v11674_v35  }
 0x7af PF: > { %s22_s17 = sadd.s32 1, %s12762_s17  }
 0x7b0   : > { %p19_p4 = scmp.ge.s32.totalorder %s22_s17, 4  }
 0x7b2   :  { %21 = sbr.rel (!%p19_p4) target bundleno = 1 (0x1), region = 122 }

</bundles_post_ra>
